<compile_context>
chip_gen: v6e
topology: v6e:2x2x1
jax: 0.10.0
libtpu: 0.0.40
codegen_flags: <defaults>
</compile_context>

<pallas_src>
import functools

import jax
import jax.numpy as jnp
from jax.experimental import pallas as pl
from jax.experimental.pallas import tpu as pltpu

BN_EPS = 1e-5
VMEM_LIMIT = 32 * 1024 * 1024  # ample for <=5 MiB/call footprints, OK on v7x


def _round_up(x, m):
    return (x + m - 1) // m * m


# ---------------------------------------------------------------------------
# Pallas kernels
# ---------------------------------------------------------------------------
def _conv_bn_act_kernel(x_ref, w_ref, b_ref, *rest, relu, has_mask,
                        has_residual, pool):
    """Single-K-step (patches @ weight) with fused epilogue:
    + bias [+ residual] [ReLU or per-column-masked ReLU] [global avg pool],
    f32 math, bf16 (or f32 pooled) store.  No accumulator scratch needed."""
    idx = 0
    m_ref = r_ref = None
    if has_mask:
        m_ref = rest[idx]
        idx += 1
    if has_residual:
        r_ref = rest[idx]
        idx += 1
    o_ref = rest[idx]

    acc = jnp.dot(x_ref[...], w_ref[...], preferred_element_type=jnp.float32)
    acc = acc + b_ref[...]
    if has_residual:
        acc = acc + r_ref[...].astype(jnp.float32)
    if has_mask:
        acc = jnp.where(m_ref[...] > 0.0, jnp.maximum(acc, 0.0), acc)
    elif relu:
        acc = jnp.maximum(acc, 0.0)
    if pool:
        b = o_ref.shape[0]
        hw = acc.shape[0] // b
        acc = jnp.mean(acc.reshape(b, hw, acc.shape[1]), axis=1)
    o_ref[...] = acc.astype(o_ref.dtype)


def _maxpool_kernel(p_ref, o_ref):
    # p_ref: (9, tm, C) window-axis-leading -> unrolled elementwise maxima (VPU).
    m = jnp.maximum(p_ref[0], p_ref[1])
    for t in range(2, 9):
        m = jnp.maximum(m, p_ref[t])
    o_ref[...] = m


# ---------------------------------------------------------------------------
# Pallas wrappers
# ---------------------------------------------------------------------------
def fused_conv_matmul(patches, weight, bias, *, residual=None, relu=True,
                      relu_mask=None, pool_batch=None, out_dtype=jnp.bfloat16):
    """patches (M, K); weight (K, N) bf16 with BN scale folded in; bias (1, N)
    f32; K, N multiples of 128.  Single K step (the largest weight tile of this
    net, 4608x512 bf16 = 4.5 MiB, always fits VMEM).  If pool_batch is set the
    call returns (pool_batch, N) f32 = mean over spatial after the epilogue."""
    M, K = patches.shape
    Kw, N = weight.shape
    assert K == Kw and K % 128 == 0 and N % 128 == 0

    x = patches.astype(jnp.bfloat16)

    if pool_batch is not None:
        # pooled epilogue needs all spatial rows of every batch element in one block
        assert M % pool_batch == 0 and M % 8 == 0, (M, pool_batch)
        Mp, tm, allow_m_split = M, M, False
    else:
        Mp = _round_up(M, 8)
        tm = min(512, Mp)
        allow_m_split = True

    tn = min(512, N)
    # Guarantee >= 2 parallel grid blocks where cheaply possible (keeps the
    # second v7x TensorCore busy; costs at most one extra ~0.35us step on
    # single-core v5e/v6e).
    if (Mp // tm) * (N // tn) == 1:
        if allow_m_split and Mp % 16 == 0 and Mp >= 16:
            tm = Mp // 2
        elif tn % 256 == 0 and tn >= 256:
            tn //= 2
    Mp = _round_up(Mp, tm)

    if Mp != M:
        x = jnp.pad(x, ((0, Mp - M), (0, 0)))

    args = [x, weight, bias]
    in_specs = [
        pl.BlockSpec((tm, K), lambda i, j: (i, 0)),
        pl.BlockSpec((K, tn), lambda i, j: (0, j)),
        pl.BlockSpec((1, tn), lambda i, j: (0, j)),
    ]
    has_mask = relu_mask is not None
    if has_mask:
        args.append(relu_mask)
        in_specs.append(pl.BlockSpec((1, tn), lambda i, j: (0, j)))
    has_res = residual is not None
    if has_res:
        r = residual.astype(jnp.bfloat16)
        if Mp != M:
            r = jnp.pad(r, ((0, Mp - M), (0, 0)))
        args.append(r)
        in_specs.append(pl.BlockSpec((tm, tn), lambda i, j: (i, j)))

    if pool_batch is not None:
        out_shape = jax.ShapeDtypeStruct((pool_batch, N), jnp.float32)
        out_spec = pl.BlockSpec((pool_batch, tn), lambda i, j: (0, j))
    else:
        out_shape = jax.ShapeDtypeStruct((Mp, N), out_dtype)
        out_spec = pl.BlockSpec((tm, tn), lambda i, j: (i, j))

    kernel = functools.partial(_conv_bn_act_kernel, relu=relu,
                               has_mask=has_mask, has_residual=has_res,
                               pool=pool_batch is not None)
    return pl.pallas_call(
        kernel,
        grid=(Mp // tm, N // tn),
        in_specs=in_specs,
        out_specs=out_spec,
        out_shape=out_shape,
        compiler_params=pltpu.CompilerParams(
            dimension_semantics=("parallel", "parallel"),
            vmem_limit_bytes=VMEM_LIMIT,
        ),
    )(*args)


def maxpool3x3_s2_p1(x):
    """PyTorch MaxPool2d(kernel_size=3, stride=2, padding=1) on NHWC input."""
    # TODO(synk): taps array is still materialized by XLA (tiny at this size);
    # an in-kernel shifted-window version would cut the redundant HBM traffic.
    N, H, W, C = x.shape
    Ho = (H + 2 - 3) // 2 + 1
    Wo = (W + 2 - 3) // 2 + 1
    x_p = jnp.pad(x, ((0, 0), (1, 1), (1, 1), (0, 0)),
                  constant_values=-jnp.inf)
    taps = [
        x_p[:, dy: dy + Ho * 2: 2, dx: dx + Wo * 2: 2, :]
        for dy in range(3) for dx in range(3)
    ]
    M = N * Ho * Wo
    p = jnp.stack(taps, axis=0).reshape(9, M, C)

    Mp = _round_up(M, 8)
    tm = min(512, Mp)
    Mp = _round_up(Mp, tm)
    if Mp != M:
        p = jnp.pad(p, ((0, 0), (0, Mp - M), (0, 0)))

    out = pl.pallas_call(
        _maxpool_kernel,
        grid=(Mp // tm,),
        in_specs=[pl.BlockSpec((9, tm, C), lambda i: (0, i, 0))],
        out_specs=pl.BlockSpec((tm, C), lambda i: (i, 0)),
        out_shape=jax.ShapeDtypeStruct((Mp, C), x.dtype),
        compiler_params=pltpu.CompilerParams(
            dimension_semantics=("parallel",),
            vmem_limit_bytes=VMEM_LIMIT,
        ),
    )(p)
    return out[:M].reshape(N, Ho, Wo, C)


# ---------------------------------------------------------------------------
# Plain-JAX glue: im2col patch extraction & conv wrapper
# ---------------------------------------------------------------------------
# TODO(synk): replace materialized im2col with in-kernel tap accumulation
# (shifted-window BlockSpecs); hard for the strided convs, so not done here.
def _extract_patches(x, kh, kw, stride, pad):
    """x: NHWC -> (N, Ho, Wo, kh*kw, C) patches (row-major window order)."""
    N, H, W, C = x.shape
    x_p = jnp.pad(x, ((0, 0), (pad, pad), (pad, pad), (0, 0)))
    Ho = (H + 2 * pad - kh) // stride + 1
    Wo = (W + 2 * pad - kw) // stride + 1
    cols = []
    for dy in range(kh):
        for dx in range(kw):
            cols.append(
                x_p[:, dy: dy + Ho * stride: stride, dx: dx + Wo * stride: stride, :]
            )
    patches = jnp.stack(cols, axis=3)  # (N, Ho, Wo, kh*kw, C)
    return patches, Ho, Wo


def conv_bn_act(x, cp, kh, kw, stride, pad, *, relu=True, residual2d=None,
                pool_batch=None):
    """Conv2d(bias=False) + BatchNorm (inference, scale folded into weights)
    [+ per-column ReLU mask] [+ residual] [+ ReLU] [+ global avg pool].

    x: NHWC (channel-padded) bf16; cp: prepared {'w','bias'[,'relu_mask']};
    residual2d: (M, Nout) or None.  Returns NHWC bf16 (padded channels zero),
    or (pool_batch, Nout) f32 if pool_batch is set."""
    N = x.shape[0]
    C = x.shape[-1]
    patches, Ho, Wo = _extract_patches(x, kh, kw, stride, pad)
    M = N * Ho * Wo
    K = kh * kw * C
    p2d = patches.reshape(M, K)
    Kp, Nout = cp["w"].shape
    if Kp != K:  # stem: 7*7*3 = 147 -> 256 (K must be a multiple of 128)
        p2d = jnp.pad(p2d, ((0, 0), (0, Kp - K)))
    out2d = fused_conv_matmul(p2d, cp["w"], cp["bias"],
                              residual=residual2d, relu=relu,
                              relu_mask=cp.get("relu_mask"),
                              pool_batch=pool_batch)
    if pool_batch is not None:
        return out2d                                   # (pool_batch, Nout) f32
    return out2d[:M].reshape(N, Ho, Wo, Nout)


# ---------------------------------------------------------------------------
# Parameter init (deterministic, matches module __init__ shapes)
# ---------------------------------------------------------------------------
def _kaiming_conv(key, shape):
    # nn.init.kaiming_normal_(mode='fan_out', nonlinearity='relu')
    o, i, kh, kw = shape
    fan_out = o * kh * kw
    std = (2.0 / fan_out) ** 0.5
    return jax.random.normal(key, shape, jnp.float32) * std


def _prep_conv_bn(w_oihw, cin_pad, cout_pad):
    """Prepare conv+BN: (O,I,kh,kw) f32 -> lane-dense bf16 (Kp, cout_pad) matmul
    weight with zero-padded in/out channels and the inference-BN scale folded in
    (f32 fold, then bf16 cast), plus a (1, cout_pad) f32 bias."""
    O, I, kh, kw = w_oihw.shape
    # BN inference affine of a fresh nn.BatchNorm2d: gamma=1, beta=0, mean=0,
    # var=1 -> scale = 1/sqrt(1+eps), bias = 0.  Fold scale into the weights.
    scale = 1.0 / (1.0 + BN_EPS) ** 0.5
    w = jnp.transpose(w_oihw, (2, 3, 1, 0)) * scale              # (kh, kw, I, O)
    w = jnp.pad(w, ((0, 0), (0, 0), (0, cin_pad - I), (0, cout_pad - O)))
    w2d = w.reshape(kh * kw * cin_pad, cout_pad)
    K = w2d.shape[0]
    Kp = _round_up(K, 128)
    w2d = jnp.pad(w2d, ((0, Kp - K), (0, 0))).astype(jnp.bfloat16)
    bias = jnp.zeros((1, cout_pad), jnp.float32)                 # beta - mean*scale
    return {"w": w2d, "bias": bias}


def _prep_layer2_fused(w_conv1_oihw, w_ds_oihw):
    """layer2 conv1 (3x3 s2, with ReLU) and its downsample (1x1 s2, no ReLU)
    fused into one (1152, 1024) weight: the 1x1 weight sits on the centre-tap
    rows of the 3x3 im2col K (the centre tap of the s2/p1 3x3 window is exactly
    the 1x1-s2 input).  A per-column mask selects which outputs get ReLU."""
    c1 = _prep_conv_bn(w_conv1_oihw, cin_pad=128, cout_pad=512)   # (1152, 512)
    ds = _prep_conv_bn(w_ds_oihw, cin_pad=128, cout_pad=512)      # (128, 512)
    K = c1["w"].shape[0]
    C = 128
    center = 4 * C                                 # tap (dy=1, dx=1) of 3x3
    ds_full = jnp.zeros((K, 512), jnp.bfloat16)
    ds_full = ds_full.at[center:center + C, :].set(ds["w"])
    w = jnp.concatenate([c1["w"], ds_full], axis=1)               # (1152, 1024)
    bias = jnp.concatenate([c1["bias"], ds["bias"]], axis=1)      # (1, 1024)
    relu_mask = jnp.concatenate([jnp.ones((1, 512), jnp.float32),
                                 jnp.zeros((1, 512), jnp.float32)], axis=1)
    return {"w": w, "bias": bias, "relu_mask": relu_mask}


def init_params(num_channels, key):
    ks = jax.random.split(key, 6)
    p = {}
    # stem conv7x7 (num_channels -> 64, padded to 128 output lanes)
    p["conv1"] = _prep_conv_bn(_kaiming_conv(ks[0], (64, num_channels, 7, 7)),
                               cin_pad=num_channels, cout_pad=128)
    # layer1: BasicBlock(64 -> 64), stride 1, no downsample (64 padded to 128)
    p["l1_conv1"] = _prep_conv_bn(_kaiming_conv(ks[1], (64, 64, 3, 3)),
                                  cin_pad=128, cout_pad=128)
    p["l1_conv2"] = _prep_conv_bn(_kaiming_conv(ks[2], (64, 64, 3, 3)),
                                  cin_pad=128, cout_pad=128)
    # layer2: BasicBlock(64 -> 512), stride 2; conv1 + conv1x1-downsample fused
    p["l2_fused"] = _prep_layer2_fused(
        _kaiming_conv(ks[3], (512, 64, 3, 3)),
        _kaiming_conv(ks[5], (512, 64, 1, 1)))
    p["l2_conv2"] = _prep_conv_bn(_kaiming_conv(ks[4], (512, 512, 3, 3)),
                                  cin_pad=512, cout_pad=512)
    return p


# ---------------------------------------------------------------------------
# Forward pass (ResNet(BasicBlock, [1, 1], num_channels), first_conv & maxpool1)
# ---------------------------------------------------------------------------
# TODO(synk): a fully weight-resident single pallas_call chaining
# stem->layer1->layer2 with activations in VMEM scratch is not done; the
# forward remains 6 pallas_calls (stem, maxpool, 2x layer1, fused l2a, l2_conv2+pool).
def resnet_forward(x_nchw, p):
    batch = x_nchw.shape[0]
    # NCHW -> NHWC, bf16 activations (MXU-native); epilogues stay f32.
    x = jnp.transpose(x_nchw, (0, 2, 3, 1)).astype(jnp.bfloat16)

    # stem: conv7x7 s2 p3 + bn + relu + maxpool3x3 s2 p1
    x0 = conv_bn_act(x, p["conv1"], 7, 7, stride=2, pad=3, relu=True)
    x0 = maxpool3x3_s2_p1(x0)

    # layer1: BasicBlock(64, 64), identity shortcut
    n0, h0, w0, c0 = x0.shape
    res0 = x0.reshape(n0 * h0 * w0, c0)
    out = conv_bn_act(x0, p["l1_conv1"], 3, 3, stride=1, pad=1, relu=True)
    x1 = conv_bn_act(out, p["l1_conv2"], 3, 3, stride=1, pad=1, relu=True,
                     residual2d=res0)

    # layer2: BasicBlock(64, 512, stride=2): conv1(+ReLU) and the conv1x1+BN
    # downsample computed in ONE fused call (columns 0:512 / 512:1024).
    y = conv_bn_act(x1, p["l2_fused"], 3, 3, stride=2, pad=1)
    branch = y[..., :512]                                       # relu(bn(conv1))
    ni, hi, wi, _ = y.shape
    identity2d = y[..., 512:].reshape(ni * hi * wi, 512)        # downsample path

    # conv2 + bn + residual + relu, with the global average pool fused into the
    # epilogue -> directly returns the (batch, 512) f32 features.
    feats = conv_bn_act(branch, p["l2_conv2"], 3, 3, stride=1, pad=1, relu=True,
                        residual2d=identity2d, pool_batch=batch)
    return feats  # (batch, 512) float32  (avgpool(1,1) + flatten, no fc)


if __name__ == "__main__":
    key = jax.random.PRNGKey(0)
    k_x, k_p = jax.random.split(key)

    batch, num_channels, spatial = 2, 3, 32
    x = jax.random.normal(k_x, (batch, num_channels, spatial, spatial),
                          jnp.float32)
    params = init_params(num_channels, k_p)

    fwd = jax.jit(resnet_forward)
    feats = jax.block_until_ready(fwd(x, params))

    assert feats.shape == (batch, 512), feats.shape
    assert feats.dtype == jnp.float32
    assert bool(jnp.all(jnp.isfinite(feats)))
    print("KERNEL_OK")
</pallas_src>

<mosaic_0001>
module attributes {stable_mosaic.version = 11 : i64} {
  func.func @_conv_bn_act_kernel(%arg0: i32, %arg1: i32, %arg2: memref<256x256xbf16, #tpu.memory_space<vmem>>, %arg3: memref<256x128xbf16, #tpu.memory_space<vmem>>, %arg4: memref<1x128xf32, #tpu.memory_space<vmem>>, %arg5: memref<256x128xbf16, #tpu.memory_space<vmem>>) attributes {dimension_semantics = [#tpu.dimension_semantics<parallel>, #tpu.dimension_semantics<parallel>], iteration_bounds = array<i64: 2, 1>, scalar_prefetch = 0 : i64, scratch_operands = 0 : i64, tpu.core_type = #tpu.core_type<tc>, window_params = [{transform_indices = @transform_0, window_bounds = array<i64: 256, 256>}, {transform_indices = @transform_1, window_bounds = array<i64: 256, 128>}, {transform_indices = @transform_2, window_bounds = array<i64: 1, 128>}, {transform_indices = @transform_3, window_bounds = array<i64: 256, 128>}]} {
    %c0 = arith.constant 0 : index
    %c0_0 = arith.constant 0 : index
    %0 = vector.load %arg2[%c0, %c0_0] : memref<256x256xbf16, #tpu.memory_space<vmem>>, vector<256x256xbf16>
    %c0_1 = arith.constant 0 : index
    %c0_2 = arith.constant 0 : index
    %1 = vector.load %arg3[%c0_1, %c0_2] : memref<256x128xbf16, #tpu.memory_space<vmem>>, vector<256x128xbf16>
    %cst = arith.constant dense<0.000000e+00> : vector<256x128xf32>
    %2 = tpu.matmul %0, %1, %cst {dimension_numbers = #tpu.dot_dimension_numbers<[1], [0], [0], [1], [0, 0, 1, 1], [], []>} : vector<256x256xbf16>, vector<256x128xbf16>, vector<256x128xf32> -> vector<256x128xf32>
    %c0_3 = arith.constant 0 : index
    %c0_4 = arith.constant 0 : index
    %3 = vector.load %arg4[%c0_3, %c0_4] : memref<1x128xf32, #tpu.memory_space<vmem>>, vector<1x128xf32>
    %4 = vector.broadcast %3 : vector<1x128xf32> to vector<256x128xf32>
    %5 = arith.addf %2, %4 : vector<256x128xf32>
    %cst_5 = arith.constant 0.000000e+00 : f32
    %6 = vector.broadcast %cst_5 : f32 to vector<256x128xf32>
    %7 = arith.maximumf %5, %6 : vector<256x128xf32>
    %8 = arith.truncf %7 : vector<256x128xf32> to vector<256x128xbf16>
    %c0_6 = arith.constant 0 : index
    %c0_7 = arith.constant 0 : index
    %9 = vector.load %arg5[%c0_6, %c0_7] : memref<256x128xbf16, #tpu.memory_space<vmem>>, vector<256x128xbf16>
    tpu.vector_store %arg5[%c0_6, %c0_7], %8 {strides = array<i32>} : memref<256x128xbf16, #tpu.memory_space<vmem>>, vector<256x128xbf16>,
    return
  }
  func.func @transform_0(%arg0: i32, %arg1: i32) -> (i32, i32) {
    %c0_i32 = arith.constant 0 : i32
    %c0_i32_0 = arith.constant 0 : i32
    return %arg0, %c0_i32 : i32, i32
  }
  func.func @transform_1(%arg0: i32, %arg1: i32) -> (i32, i32) {
    %c0_i32 = arith.constant 0 : i32
    %c0_i32_0 = arith.constant 0 : i32
    return %c0_i32, %arg1 : i32, i32
  }
  func.func @transform_2(%arg0: i32, %arg1: i32) -> (i32, i32) {
    %c0_i32 = arith.constant 0 : i32
    %c0_i32_0 = arith.constant 0 : i32
    return %c0_i32, %arg1 : i32, i32
  }
  func.func @transform_3(%arg0: i32, %arg1: i32) -> (i32, i32) {
    %c0_i32 = arith.constant 0 : i32
    return %arg0, %arg1 : i32, i32
  }
}

module attributes {stable_mosaic.version = 11 : i64} {
  func.func @_maxpool_kernel(%arg0: i32, %arg1: memref<9x128x128xbf16, #tpu.memory_space<vmem>>, %arg2: memref<128x128xbf16, #tpu.memory_space<vmem>>) attributes {dimension_semantics = [#tpu.dimension_semantics<parallel>], iteration_bounds = array<i64: 1>, scalar_prefetch = 0 : i64, scratch_operands = 0 : i64, tpu.core_type = #tpu.core_type<tc>, window_params = [{transform_indices = @transform_0, window_bounds = array<i64: 9, 128, 128>}, {transform_indices = @transform_1, window_bounds = array<i64: 128, 128>}]} {
    %c0 = arith.constant 0 : index
    %c0_0 = arith.constant 0 : index
    %c0_1 = arith.constant 0 : index
    %0 = vector.load %arg1[%c0, %c0_0, %c0_1] : memref<9x128x128xbf16, #tpu.memory_space<vmem>>, vector<1x128x128xbf16>
    %1 = vector.shape_cast %0 : vector<1x128x128xbf16> to vector<128x128xbf16>
    %c1 = arith.constant 1 : index
    %c0_2 = arith.constant 0 : index
    %c0_3 = arith.constant 0 : index
    %2 = vector.load %arg1[%c1, %c0_2, %c0_3] : memref<9x128x128xbf16, #tpu.memory_space<vmem>>, vector<1x128x128xbf16>
    %3 = vector.shape_cast %2 : vector<1x128x128xbf16> to vector<128x128xbf16>
    %4 = arith.maximumf %1, %3 : vector<128x128xbf16>
    %c2 = arith.constant 2 : index
    %c0_4 = arith.constant 0 : index
    %c0_5 = arith.constant 0 : index
    %5 = vector.load %arg1[%c2, %c0_4, %c0_5] : memref<9x128x128xbf16, #tpu.memory_space<vmem>>, vector<1x128x128xbf16>
    %6 = vector.shape_cast %5 : vector<1x128x128xbf16> to vector<128x128xbf16>
    %7 = arith.maximumf %4, %6 : vector<128x128xbf16>
    %c3 = arith.constant 3 : index
    %c0_6 = arith.constant 0 : index
    %c0_7 = arith.constant 0 : index
    %8 = vector.load %arg1[%c3, %c0_6, %c0_7] : memref<9x128x128xbf16, #tpu.memory_space<vmem>>, vector<1x128x128xbf16>
    %9 = vector.shape_cast %8 : vector<1x128x128xbf16> to vector<128x128xbf16>
    %10 = arith.maximumf %7, %9 : vector<128x128xbf16>
    %c4 = arith.constant 4 : index
    %c0_8 = arith.constant 0 : index
    %c0_9 = arith.constant 0 : index
    %11 = vector.load %arg1[%c4, %c0_8, %c0_9] : memref<9x128x128xbf16, #tpu.memory_space<vmem>>, vector<1x128x128xbf16>
    %12 = vector.shape_cast %11 : vector<1x128x128xbf16> to vector<128x128xbf16>
    %13 = arith.maximumf %10, %12 : vector<128x128xbf16>
    %c5 = arith.constant 5 : index
    %c0_10 = arith.constant 0 : index
    %c0_11 = arith.constant 0 : index
    %14 = vector.load %arg1[%c5, %c0_10, %c0_11] : memref<9x128x128xbf16, #tpu.memory_space<vmem>>, vector<1x128x128xbf16>
    %15 = vector.shape_cast %14 : vector<1x128x128xbf16> to vector<128x128xbf16>
    %16 = arith.maximumf %13, %15 : vector<128x128xbf16>
    %c6 = arith.constant 6 : index
    %c0_12 = arith.constant 0 : index
    %c0_13 = arith.constant 0 : index
    %17 = vector.load %arg1[%c6, %c0_12, %c0_13] : memref<9x128x128xbf16, #tpu.memory_space<vmem>>, vector<1x128x128xbf16>
    %18 = vector.shape_cast %17 : vector<1x128x128xbf16> to vector<128x128xbf16>
    %19 = arith.maximumf %16, %18 : vector<128x128xbf16>
    %c7 = arith.constant 7 : index
    %c0_14 = arith.constant 0 : index
    %c0_15 = arith.constant 0 : index
    %20 = vector.load %arg1[%c7, %c0_14, %c0_15] : memref<9x128x128xbf16, #tpu.memory_space<vmem>>, vector<1x128x128xbf16>
    %21 = vector.shape_cast %20 : vector<1x128x128xbf16> to vector<128x128xbf16>
    %22 = arith.maximumf %19, %21 : vector<128x128xbf16>
    %c8 = arith.constant 8 : index
    %c0_16 = arith.constant 0 : index
    %c0_17 = arith.constant 0 : index
    %23 = vector.load %arg1[%c8, %c0_16, %c0_17] : memref<9x128x128xbf16, #tpu.memory_space<vmem>>, vector<1x128x128xbf16>
    %24 = vector.shape_cast %23 : vector<1x128x128xbf16> to vector<128x128xbf16>
    %25 = arith.maximumf %22, %24 : vector<128x128xbf16>
    %c0_18 = arith.constant 0 : index
    %c0_19 = arith.constant 0 : index
    %26 = vector.load %arg2[%c0_18, %c0_19] : memref<128x128xbf16, #tpu.memory_space<vmem>>, vector<128x128xbf16>
    tpu.vector_store %arg2[%c0_18, %c0_19], %25 {strides = array<i32>} : memref<128x128xbf16, #tpu.memory_space<vmem>>, vector<128x128xbf16>,
    return
  }
  func.func @transform_0(%arg0: i32) -> (i32, i32, i32) {
    %c0_i32 = arith.constant 0 : i32
    %c0_i32_0 = arith.constant 0 : i32
    %c0_i32_1 = arith.constant 0 : i32
    return %c0_i32, %arg0, %c0_i32_0 : i32, i32, i32
  }
  func.func @transform_1(%arg0: i32) -> (i32, i32) {
    %c0_i32 = arith.constant 0 : i32
    %c0_i32_0 = arith.constant 0 : i32
    return %arg0, %c0_i32 : i32, i32
  }
}

module attributes {stable_mosaic.version = 11 : i64} {
  func.func @_conv_bn_act_kernel(%arg0: i32, %arg1: i32, %arg2: memref<64x1152xbf16, #tpu.memory_space<vmem>>, %arg3: memref<1152x128xbf16, #tpu.memory_space<vmem>>, %arg4: memref<1x128xf32, #tpu.memory_space<vmem>>, %arg5: memref<64x128xbf16, #tpu.memory_space<vmem>>) attributes {dimension_semantics = [#tpu.dimension_semantics<parallel>, #tpu.dimension_semantics<parallel>], iteration_bounds = array<i64: 2, 1>, scalar_prefetch = 0 : i64, scratch_operands = 0 : i64, tpu.core_type = #tpu.core_type<tc>, window_params = [{transform_indices = @transform_0, window_bounds = array<i64: 64, 1152>}, {transform_indices = @transform_1, window_bounds = array<i64: 1152, 128>}, {transform_indices = @transform_2, window_bounds = array<i64: 1, 128>}, {transform_indices = @transform_3, window_bounds = array<i64: 64, 128>}]} {
    %c0 = arith.constant 0 : index
    %c0_0 = arith.constant 0 : index
    %0 = vector.load %arg2[%c0, %c0_0] : memref<64x1152xbf16, #tpu.memory_space<vmem>>, vector<64x1152xbf16>
    %c0_1 = arith.constant 0 : index
    %c0_2 = arith.constant 0 : index
    %1 = vector.load %arg3[%c0_1, %c0_2] : memref<1152x128xbf16, #tpu.memory_space<vmem>>, vector<1152x128xbf16>
    %cst = arith.constant dense<0.000000e+00> : vector<64x128xf32>
    %2 = tpu.matmul %0, %1, %cst {dimension_numbers = #tpu.dot_dimension_numbers<[1], [0], [0], [1], [0, 0, 1, 1], [], []>} : vector<64x1152xbf16>, vector<1152x128xbf16>, vector<64x128xf32> -> vector<64x128xf32>
    %c0_3 = arith.constant 0 : index
    %c0_4 = arith.constant 0 : index
    %3 = vector.load %arg4[%c0_3, %c0_4] : memref<1x128xf32, #tpu.memory_space<vmem>>, vector<1x128xf32>
    %4 = vector.broadcast %3 : vector<1x128xf32> to vector<64x128xf32>
    %5 = arith.addf %2, %4 : vector<64x128xf32>
    %cst_5 = arith.constant 0.000000e+00 : f32
    %6 = vector.broadcast %cst_5 : f32 to vector<64x128xf32>
    %7 = arith.maximumf %5, %6 : vector<64x128xf32>
    %8 = arith.truncf %7 : vector<64x128xf32> to vector<64x128xbf16>
    %c0_6 = arith.constant 0 : index
    %c0_7 = arith.constant 0 : index
    %9 = vector.load %arg5[%c0_6, %c0_7] : memref<64x128xbf16, #tpu.memory_space<vmem>>, vector<64x128xbf16>
    tpu.vector_store %arg5[%c0_6, %c0_7], %8 {strides = array<i32>} : memref<64x128xbf16, #tpu.memory_space<vmem>>, vector<64x128xbf16>,
    return
  }
  func.func @transform_0(%arg0: i32, %arg1: i32) -> (i32, i32) {
    %c0_i32 = arith.constant 0 : i32
    %c0_i32_0 = arith.constant 0 : i32
    return %arg0, %c0_i32 : i32, i32
  }
  func.func @transform_1(%arg0: i32, %arg1: i32) -> (i32, i32) {
    %c0_i32 = arith.constant 0 : i32
    %c0_i32_0 = arith.constant 0 : i32
    return %c0_i32, %arg1 : i32, i32
  }
  func.func @transform_2(%arg0: i32, %arg1: i32) -> (i32, i32) {
    %c0_i32 = arith.constant 0 : i32
    %c0_i32_0 = arith.constant 0 : i32
    return %c0_i32, %arg1 : i32, i32
  }
  func.func @transform_3(%arg0: i32, %arg1: i32) -> (i32, i32) {
    %c0_i32 = arith.constant 0 : i32
    return %arg0, %arg1 : i32, i32
  }
}

module attributes {stable_mosaic.version = 11 : i64} {
  func.func @_conv_bn_act_kernel(%arg0: i32, %arg1: i32, %arg2: memref<64x1152xbf16, #tpu.memory_space<vmem>>, %arg3: memref<1152x128xbf16, #tpu.memory_space<vmem>>, %arg4: memref<1x128xf32, #tpu.memory_space<vmem>>, %arg5: memref<64x128xbf16, #tpu.memory_space<vmem>>, %arg6: memref<64x128xbf16, #tpu.memory_space<vmem>>) attributes {dimension_semantics = [#tpu.dimension_semantics<parallel>, #tpu.dimension_semantics<parallel>], iteration_bounds = array<i64: 2, 1>, scalar_prefetch = 0 : i64, scratch_operands = 0 : i64, tpu.core_type = #tpu.core_type<tc>, window_params = [{transform_indices = @transform_0, window_bounds = array<i64: 64, 1152>}, {transform_indices = @transform_1, window_bounds = array<i64: 1152, 128>}, {transform_indices = @transform_2, window_bounds = array<i64: 1, 128>}, {transform_indices = @transform_3, window_bounds = array<i64: 64, 128>}, {transform_indices = @transform_4, window_bounds = array<i64: 64, 128>}]} {
    %c0 = arith.constant 0 : index
    %c0_0 = arith.constant 0 : index
    %0 = vector.load %arg2[%c0, %c0_0] : memref<64x1152xbf16, #tpu.memory_space<vmem>>, vector<64x1152xbf16>
    %c0_1 = arith.constant 0 : index
    %c0_2 = arith.constant 0 : index
    %1 = vector.load %arg3[%c0_1, %c0_2] : memref<1152x128xbf16, #tpu.memory_space<vmem>>, vector<1152x128xbf16>
    %cst = arith.constant dense<0.000000e+00> : vector<64x128xf32>
    %2 = tpu.matmul %0, %1, %cst {dimension_numbers = #tpu.dot_dimension_numbers<[1], [0], [0], [1], [0, 0, 1, 1], [], []>} : vector<64x1152xbf16>, vector<1152x128xbf16>, vector<64x128xf32> -> vector<64x128xf32>
    %c0_3 = arith.constant 0 : index
    %c0_4 = arith.constant 0 : index
    %3 = vector.load %arg4[%c0_3, %c0_4] : memref<1x128xf32, #tpu.memory_space<vmem>>, vector<1x128xf32>
    %4 = vector.broadcast %3 : vector<1x128xf32> to vector<64x128xf32>
    %5 = arith.addf %2, %4 : vector<64x128xf32>
    %c0_5 = arith.constant 0 : index
    %c0_6 = arith.constant 0 : index
    %6 = vector.load %arg5[%c0_5, %c0_6] : memref<64x128xbf16, #tpu.memory_space<vmem>>, vector<64x128xbf16>
    %7 = arith.extf %6 : vector<64x128xbf16> to vector<64x128xf32>
    %8 = arith.addf %5, %7 : vector<64x128xf32>
    %cst_7 = arith.constant 0.000000e+00 : f32
    %9 = vector.broadcast %cst_7 : f32 to vector<64x128xf32>
    %10 = arith.maximumf %8, %9 : vector<64x128xf32>
    %11 = arith.truncf %10 : vector<64x128xf32> to vector<64x128xbf16>
    %c0_8 = arith.constant 0 : index
    %c0_9 = arith.constant 0 : index
    %12 = vector.load %arg6[%c0_8, %c0_9] : memref<64x128xbf16, #tpu.memory_space<vmem>>, vector<64x128xbf16>
    tpu.vector_store %arg6[%c0_8, %c0_9], %11 {strides = array<i32>} : memref<64x128xbf16, #tpu.memory_space<vmem>>, vector<64x128xbf16>,
    return
  }
  func.func @transform_0(%arg0: i32, %arg1: i32) -> (i32, i32) {
    %c0_i32 = arith.constant 0 : i32
    %c0_i32_0 = arith.constant 0 : i32
    return %arg0, %c0_i32 : i32, i32
  }
  func.func @transform_1(%arg0: i32, %arg1: i32) -> (i32, i32) {
    %c0_i32 = arith.constant 0 : i32
    %c0_i32_0 = arith.constant 0 : i32
    return %c0_i32, %arg1 : i32, i32
  }
  func.func @transform_2(%arg0: i32, %arg1: i32) -> (i32, i32) {
    %c0_i32 = arith.constant 0 : i32
    %c0_i32_0 = arith.constant 0 : i32
    return %c0_i32, %arg1 : i32, i32
  }
  func.func @transform_3(%arg0: i32, %arg1: i32) -> (i32, i32) {
    %c0_i32 = arith.constant 0 : i32
    return %arg0, %arg1 : i32, i32
  }
  func.func @transform_4(%arg0: i32, %arg1: i32) -> (i32, i32) {
    %c0_i32 = arith.constant 0 : i32
    return %arg0, %arg1 : i32, i32
  }
}

module attributes {stable_mosaic.version = 11 : i64} {
  func.func @_conv_bn_act_kernel(%arg0: i32, %arg1: i32, %arg2: memref<32x1152xbf16, #tpu.memory_space<vmem>>, %arg3: memref<1152x512xbf16, #tpu.memory_space<vmem>>, %arg4: memref<1x512xf32, #tpu.memory_space<vmem>>, %arg5: memref<1x512xf32, #tpu.memory_space<vmem>>, %arg6: memref<32x512xbf16, #tpu.memory_space<vmem>>) attributes {dimension_semantics = [#tpu.dimension_semantics<parallel>, #tpu.dimension_semantics<parallel>], iteration_bounds = array<i64: 1, 2>, scalar_prefetch = 0 : i64, scratch_operands = 0 : i64, tpu.core_type = #tpu.core_type<tc>, window_params = [{transform_indices = @transform_0, window_bounds = array<i64: 32, 1152>}, {transform_indices = @transform_1, window_bounds = array<i64: 1152, 512>}, {transform_indices = @transform_2, window_bounds = array<i64: 1, 512>}, {transform_indices = @transform_3, window_bounds = array<i64: 1, 512>}, {transform_indices = @transform_4, window_bounds = array<i64: 32, 512>}]} {
    %c0 = arith.constant 0 : index
    %c0_0 = arith.constant 0 : index
    %0 = vector.load %arg2[%c0, %c0_0] : memref<32x1152xbf16, #tpu.memory_space<vmem>>, vector<32x1152xbf16>
    %c0_1 = arith.constant 0 : index
    %c0_2 = arith.constant 0 : index
    %1 = vector.load %arg3[%c0_1, %c0_2] : memref<1152x512xbf16, #tpu.memory_space<vmem>>, vector<1152x512xbf16>
    %cst = arith.constant dense<0.000000e+00> : vector<32x512xf32>
    %2 = tpu.matmul %0, %1, %cst {dimension_numbers = #tpu.dot_dimension_numbers<[1], [0], [0], [1], [0, 0, 1, 1], [], []>} : vector<32x1152xbf16>, vector<1152x512xbf16>, vector<32x512xf32> -> vector<32x512xf32>
    %c0_3 = arith.constant 0 : index
    %c0_4 = arith.constant 0 : index
    %3 = vector.load %arg4[%c0_3, %c0_4] : memref<1x512xf32, #tpu.memory_space<vmem>>, vector<1x512xf32>
    %4 = vector.broadcast %3 : vector<1x512xf32> to vector<32x512xf32>
    %5 = arith.addf %2, %4 : vector<32x512xf32>
    %c0_5 = arith.constant 0 : index
    %c0_6 = arith.constant 0 : index
    %6 = vector.load %arg5[%c0_5, %c0_6] : memref<1x512xf32, #tpu.memory_space<vmem>>, vector<1x512xf32>
    %cst_7 = arith.constant 0.000000e+00 : f32
    %7 = vector.broadcast %cst_7 : f32 to vector<1x512xf32>
    %8 = arith.cmpf ogt, %6, %7 : vector<1x512xf32>
    %cst_8 = arith.constant 0.000000e+00 : f32
    %9 = vector.broadcast %cst_8 : f32 to vector<32x512xf32>
    %10 = arith.maximumf %5, %9 : vector<32x512xf32>
    %11 = vector.shape_cast %8 : vector<1x512xi1> to vector<1x512xi1>
    %12 = vector.broadcast %11 : vector<1x512xi1> to vector<32x512xi1>
    %13 = arith.select %12, %10, %5 : vector<32x512xi1>, vector<32x512xf32>
    %14 = arith.truncf %13 : vector<32x512xf32> to vector<32x512xbf16>
    %c0_9 = arith.constant 0 : index
    %c0_10 = arith.constant 0 : index
    %15 = vector.load %arg6[%c0_9, %c0_10] : memref<32x512xbf16, #tpu.memory_space<vmem>>, vector<32x512xbf16>
    tpu.vector_store %arg6[%c0_9, %c0_10], %14 {strides = array<i32>} : memref<32x512xbf16, #tpu.memory_space<vmem>>, vector<32x512xbf16>,
    return
  }
  func.func @transform_0(%arg0: i32, %arg1: i32) -> (i32, i32) {
    %c0_i32 = arith.constant 0 : i32
    %c0_i32_0 = arith.constant 0 : i32
    return %arg0, %c0_i32 : i32, i32
  }
  func.func @transform_1(%arg0: i32, %arg1: i32) -> (i32, i32) {
    %c0_i32 = arith.constant 0 : i32
    %c0_i32_0 = arith.constant 0 : i32
    return %c0_i32, %arg1 : i32, i32
  }
  func.func @transform_2(%arg0: i32, %arg1: i32) -> (i32, i32) {
    %c0_i32 = arith.constant 0 : i32
    %c0_i32_0 = arith.constant 0 : i32
    return %c0_i32, %arg1 : i32, i32
  }
  func.func @transform_3(%arg0: i32, %arg1: i32) -> (i32, i32) {
    %c0_i32 = arith.constant 0 : i32
    %c0_i32_0 = arith.constant 0 : i32
    return %c0_i32, %arg1 : i32, i32
  }
  func.func @transform_4(%arg0: i32, %arg1: i32) -> (i32, i32) {
    %c0_i32 = arith.constant 0 : i32
    return %arg0, %arg1 : i32, i32
  }
}

module attributes {stable_mosaic.version = 11 : i64} {
  func.func @_conv_bn_act_kernel(%arg0: i32, %arg1: i32, %arg2: memref<32x4608xbf16, #tpu.memory_space<vmem>>, %arg3: memref<4608x256xbf16, #tpu.memory_space<vmem>>, %arg4: memref<1x256xf32, #tpu.memory_space<vmem>>, %arg5: memref<32x256xbf16, #tpu.memory_space<vmem>>, %arg6: memref<2x256xf32, #tpu.memory_space<vmem>>) attributes {dimension_semantics = [#tpu.dimension_semantics<parallel>, #tpu.dimension_semantics<parallel>], iteration_bounds = array<i64: 1, 2>, scalar_prefetch = 0 : i64, scratch_operands = 0 : i64, tpu.core_type = #tpu.core_type<tc>, window_params = [{transform_indices = @transform_0, window_bounds = array<i64: 32, 4608>}, {transform_indices = @transform_1, window_bounds = array<i64: 4608, 256>}, {transform_indices = @transform_2, window_bounds = array<i64: 1, 256>}, {transform_indices = @transform_3, window_bounds = array<i64: 32, 256>}, {transform_indices = @transform_4, window_bounds = array<i64: 2, 256>}]} {
    %c0 = arith.constant 0 : index
    %c0_0 = arith.constant 0 : index
    %0 = vector.load %arg2[%c0, %c0_0] : memref<32x4608xbf16, #tpu.memory_space<vmem>>, vector<32x4608xbf16>
    %c0_1 = arith.constant 0 : index
    %c0_2 = arith.constant 0 : index
    %1 = vector.load %arg3[%c0_1, %c0_2] : memref<4608x256xbf16, #tpu.memory_space<vmem>>, vector<4608x256xbf16>
    %cst = arith.constant dense<0.000000e+00> : vector<32x256xf32>
    %2 = tpu.matmul %0, %1, %cst {dimension_numbers = #tpu.dot_dimension_numbers<[1], [0], [0], [1], [0, 0, 1, 1], [], []>} : vector<32x4608xbf16>, vector<4608x256xbf16>, vector<32x256xf32> -> vector<32x256xf32>
    %c0_3 = arith.constant 0 : index
    %c0_4 = arith.constant 0 : index
    %3 = vector.load %arg4[%c0_3, %c0_4] : memref<1x256xf32, #tpu.memory_space<vmem>>, vector<1x256xf32>
    %4 = vector.broadcast %3 : vector<1x256xf32> to vector<32x256xf32>
    %5 = arith.addf %2, %4 : vector<32x256xf32>
    %c0_5 = arith.constant 0 : index
    %c0_6 = arith.constant 0 : index
    %6 = vector.load %arg5[%c0_5, %c0_6] : memref<32x256xbf16, #tpu.memory_space<vmem>>, vector<32x256xbf16>
    %7 = arith.extf %6 : vector<32x256xbf16> to vector<32x256xf32>
    %8 = arith.addf %5, %7 : vector<32x256xf32>
    %cst_7 = arith.constant 0.000000e+00 : f32
    %9 = vector.broadcast %cst_7 : f32 to vector<32x256xf32>
    %10 = arith.maximumf %8, %9 : vector<32x256xf32>
    %11 = vector.shape_cast %10 : vector<32x256xf32> to vector<2x16x256xf32>
    %cst_8 = arith.constant dense<0.000000e+00> : vector<2x256xf32>
    %12 = vector.multi_reduction <add>, %11, %cst_8 [1] : vector<2x16x256xf32> to vector<2x256xf32>
    %cst_9 = arith.constant 1.600000e+01 : f32
    %13 = vector.broadcast %cst_9 : f32 to vector<2x256xf32>
    %14 = arith.divf %12, %13 : vector<2x256xf32>
    %c0_10 = arith.constant 0 : index
    %c0_11 = arith.constant 0 : index
    %15 = vector.load %arg6[%c0_10, %c0_11] : memref<2x256xf32, #tpu.memory_space<vmem>>, vector<2x256xf32>
    tpu.vector_store %arg6[%c0_10, %c0_11], %14 {strides = array<i32>} : memref<2x256xf32, #tpu.memory_space<vmem>>, vector<2x256xf32>,
    return
  }
  func.func @transform_0(%arg0: i32, %arg1: i32) -> (i32, i32) {
    %c0_i32 = arith.constant 0 : i32
    %c0_i32_0 = arith.constant 0 : i32
    return %arg0, %c0_i32 : i32, i32
  }
  func.func @transform_1(%arg0: i32, %arg1: i32) -> (i32, i32) {
    %c0_i32 = arith.constant 0 : i32
    %c0_i32_0 = arith.constant 0 : i32
    return %c0_i32, %arg1 : i32, i32
  }
  func.func @transform_2(%arg0: i32, %arg1: i32) -> (i32, i32) {
    %c0_i32 = arith.constant 0 : i32
    %c0_i32_0 = arith.constant 0 : i32
    return %c0_i32, %arg1 : i32, i32
  }
  func.func @transform_3(%arg0: i32, %arg1: i32) -> (i32, i32) {
    %c0_i32 = arith.constant 0 : i32
    return %arg0, %arg1 : i32, i32
  }
  func.func @transform_4(%arg0: i32, %arg1: i32) -> (i32, i32) {
    %c0_i32 = arith.constant 0 : i32
    %c0_i32_0 = arith.constant 0 : i32
    return %c0_i32, %arg1 : i32, i32
  }
}

</mosaic_0001>

<bundles_post_ra>
// kernel: resnet_forward.6
= control target key start
LH: loop header
LB: loop body
LE: loop exit
PB: predicated region body
PF: predicated region fallthrough
CT: control target
= control target key end

     0   :  { %s1494_s12 = smov 0   ;;  %s1496_s13 = smov 0   ;;  %s1668_s0 = inlined_call_operand.vmem [shape: bf16[512,256], index: 0, kind: input, shape index: {}]   ;;  %s1669_s1 = inlined_call_operand.vmem [shape: bf16[256,128], index: 1, kind: input, shape index: {}]   ;;  %s1670_s2 = inlined_call_operand.vmem [shape: f32[1,128], index: 2, kind: input, shape index: {}]   ;;  %s1671_s3 = inlined_call_operand.vmem [shape: bf16[512,128], index: 3, kind: output, shape index: {}]  }
   0x1   :  { %s1498_s14 = smov 0  }
   0x2 LB: > { %s25_s15 = sadd.s32 1, %s1468_s13  ;;  %p1017_p0 = scmp.ge.s32.totalorder %s1472_s14, 1  ;;  %s1472_s14 = sphi %s1498_s14, %s13_s14   ;;  %s1468_s13 = sphi %s1496_s13, %s1673_s13   ;;  %s1464_s12 = sphi %s1494_s12, %s1672_s12  }
   0x3   : > { %p27_p1 = scmp.ge.s32.totalorder %s25_s15, 2  ;;  %p170_p2 = scmp.lt.s32.totalorder %s1472_s14, 3 }
   0x5   : > { %s1675_s15 = smov (%p27_p1, %s25_s15), 0  ;;  %p171_p3 = pnand %p1017_p0, %p170_p2 }
   0x6   : > { %s1018_s18 = sshll.u32 (!%p171_p3), %s1464_s12, 5 }
   0x7   : > { %174 = sbr.rel (%p171_p3) target bundleno = 309 (0x135), region = 32  ;;  %p206_p4 = scmp.lt.s32.totalorder (!%p171_p3), %s1018_s18, 63 }
   0xc   : > { %v1386_v0 = vld [vmem:[%s1669_s1 + $0x78] sm:$0xff]   ;;  %v1388_v2 = vld [vmem:[%s1669_s1 + $0x70] sm:$0xff]   ;;  %v1390_v4 = vld [vmem:[%s1669_s1 + $0x68] sm:$0xff]   ;;  %s1677_s18 = smov (!%p206_p4, %s1018_s18), 63 }
   0xd   : > { %v1387_v1 = vld [vmem:[%s1669_s1 + $0x38] sm:$0xff]   ;;  %1234 = vmatprep.subr.bf16.mxu0 %v1386_v0  ;;  %1346 = vmatprep.subr.bf16.mxu1 %v1386_v0  ;;  %v1389_v3 = vld [vmem:[%s1669_s1 + $0x30] sm:$0xff]   ;;  %v1391_v5 = vld [vmem:[%s1669_s1 + $0x28] sm:$0xff]   ;;  %s1106_s6 = sshll.u32 %s1677_s18, 3  ;;  %s1022_s5 = sshll.u32 %s1677_s18, 2 }
   0xe   : > { %1235 = vmatpush3.bf16.msra.mxu0 %v1387_v1  ;;  %1354 = vmatpush3.bf16.msra.mxu1 %v1387_v1  ;;  %v1392_v6 = vld [vmem:[%s1669_s1 + $0x60] sm:$0xff]   ;;  %v1394_v8 = vld [vmem:[%s1669_s1 + $0x58] sm:$0xff]   ;;  %s1545_s11 = scalar_lea.vmem %s1668_s0, %s1106_s6  ;;  %v1396_v10 = vld [vmem:[%s1669_s1 + $0x50] sm:$0xff]   ;;  %s1613_s8 = scalar_lea.vmem %s1671_s3, %s1022_s5 }
   0xf   : > { %1236 = vmatprep.subr.bf16.mxu0 %v1388_v2  ;;  %1347 = vmatprep.subr.bf16.mxu1 %v1388_v2  ;;  %v1393_v7 = vld [vmem:[%s1669_s1 + $0x20] sm:$0xff]   ;;  %v1395_v9 = vld [vmem:[%s1669_s1 + $0x18] sm:$0xff]   ;;  %v1397_v13 = vld [vmem:[%s1669_s1 + $0x10] sm:$0xff]  }
  0x10   : > { %v1404_v11 = vld [vmem:[%s1545_s11 + $0x4] ss:$8 sps:$4 sm:$0xff]   ;;  %v1402_v18 = vld [vmem:[%s1545_s11] ss:$8 sps:$4 sm:$0xff]   ;;  %v1408_v20 = vld [vmem:[%s1545_s11 + $0x14] ss:$8 sps:$4 sm:$0xff]  }
  0x11   : > { %v1407_v12 = vld [vmem:[%s1545_s11 + $0x84] ss:$8 sps:$4 sm:$0xff]   ;;  %588 = vmatprep.mubr.bf16.mxu0 %v1404_v11  ;;  %v1405_v19 = vld [vmem:[%s1545_s11 + $0x80] ss:$8 sps:$4 sm:$0xff]   ;;  %v1410_v21 = vld [vmem:[%s1545_s11 + $0x94] ss:$8 sps:$4 sm:$0xff]  }
  0x12   : > { %1237 = vmatpush3.bf16.msra.mxu0 %v1389_v3  ;;  %1355 = vmatpush3.bf16.msra.mxu1 %v1389_v3  ;;  %v1398_v14 = vld [vmem:[%s1669_s1 + $0x48] sm:$0xff]   ;;  %v1400_v16 = vld [vmem:[%s1669_s1 + $0x40] sm:$0xff]   ;;  %v1412_v22 = vld [vmem:[%s1545_s11 + $0x10] ss:$8 sps:$4 sm:$0xff]  }
  0x13   : > { %1238 = vmatprep.subr.bf16.mxu0 %v1390_v4  ;;  %1348 = vmatprep.subr.bf16.mxu1 %v1390_v4  ;;  %v1399_v15 = vld [vmem:[%s1669_s1 + $0x8] sm:$0xff]   ;;  %v1401_v17 = vld [vmem:[%s1669_s1] sm:$0xff]   ;;  %v1413_v23 = vld [vmem:[%s1545_s11 + $0x90] ss:$8 sps:$4 sm:$0xff]  }
  0x14   : > { %652 = vmatprep.mubr.bf16.mxu1 %v1407_v12  ;;  %v1414_v24 = vld [vmem:[%s1545_s11 + $0x24] ss:$8 sps:$4 sm:$0xff]   ;;  %v1418_v26 = vld [vmem:[%s1545_s11 + $0x20] ss:$8 sps:$4 sm:$0xff]   ;;  %v1420_v28 = vld [vmem:[%s1545_s11 + $0x34] ss:$8 sps:$4 sm:$0xff]  }
  0x15   : > { %v1416_v25 = vld [vmem:[%s1545_s11 + $0xa4] ss:$8 sps:$4 sm:$0xff]   ;;  %v1419_v27 = vld [vmem:[%s1545_s11 + $0xa0] ss:$8 sps:$4 sm:$0xff]   ;;  %v1422_v29 = vld [vmem:[%s1545_s11 + $0xb4] ss:$8 sps:$4 sm:$0xff]  }
  0x16   : > { %1239 = vmatpush3.bf16.msra.mxu0 %v1391_v5  ;;  %1356 = vmatpush3.bf16.msra.mxu1 %v1391_v5  ;;  %v1424_v30 = vld [vmem:[%s1545_s11 + $0x30] ss:$8 sps:$4 sm:$0xff]   ;;  %v1426_v32 = vld [vmem:[%s1545_s11 + $0x44] ss:$8 sps:$4 sm:$0xff]   ;;  %v1430_v34 = vld [vmem:[%s1545_s11 + $0x40] ss:$8 sps:$4 sm:$0xff]  }
  0x17   : > { %1240 = vmatprep.subr.bf16.mxu0 %v1392_v6  ;;  %1349 = vmatprep.subr.bf16.mxu1 %v1392_v6  ;;  %v1425_v31 = vld [vmem:[%s1545_s11 + $0xb0] ss:$8 sps:$4 sm:$0xff]   ;;  %v1428_v33 = vld [vmem:[%s1545_s11 + $0xc4] ss:$8 sps:$4 sm:$0xff]   ;;  %v1431_v35 = vld [vmem:[%s1545_s11 + $0xc0] ss:$8 sps:$4 sm:$0xff]  }
  0x18   : > { %v1432_v36 = vld [vmem:[%s1545_s11 + $0x54] ss:$8 sps:$4 sm:$0xff]   ;;  %v1436_v38 = vld [vmem:[%s1545_s11 + $0x50] ss:$8 sps:$4 sm:$0xff]   ;;  %v1438_v40 = vld [vmem:[%s1545_s11 + $0x64] ss:$8 sps:$4 sm:$0xff]  }
  0x19   : > { %v1434_v37 = vld [vmem:[%s1545_s11 + $0xd4] ss:$8 sps:$4 sm:$0xff]   ;;  %v1437_v39 = vld [vmem:[%s1545_s11 + $0xd0] ss:$8 sps:$4 sm:$0xff]   ;;  %v1440_v41 = vld [vmem:[%s1545_s11 + $0xe4] ss:$8 sps:$4 sm:$0xff]  }
  0x1a   : > { %1241 = vmatpush3.bf16.msra.mxu0 %v1393_v7  ;;  %1357 = vmatpush3.bf16.msra.mxu1 %v1393_v7  ;;  %v1442_v42 = vld [vmem:[%s1545_s11 + $0x60] ss:$8 sps:$4 sm:$0xff]   ;;  %v1444_v44 = vld [vmem:[%s1545_s11 + $0x74] ss:$8 sps:$4 sm:$0xff]   ;;  %v1448_v46 = vld [vmem:[%s1545_s11 + $0x70] ss:$8 sps:$4 sm:$0xff]  }
  0x1b   : > { %1242 = vmatprep.subr.bf16.mxu0 %v1394_v8  ;;  %1350 = vmatprep.subr.bf16.mxu1 %v1394_v8  ;;  %v1443_v43 = vld [vmem:[%s1545_s11 + $0xe0] ss:$8 sps:$4 sm:$0xff]   ;;  %v1446_v45 = vld [vmem:[%s1545_s11 + $0xf4] ss:$8 sps:$4 sm:$0xff]   ;;  %v1449_v47 = vld [vmem:[%s1545_s11 + $0xf0] ss:$8 sps:$4 sm:$0xff]  }
  0x1c   : > { %v1603_v52 = vld [vmem:[%s1670_s2] ss:$0 sm:$0xff] }
  0x1e   : > { %1243 = vmatpush3.bf16.msra.mxu0 %v1395_v9  ;;  %1358 = vmatpush3.bf16.msra.mxu1 %v1395_v9 }
  0x1f   : > { %1244 = vmatprep.subr.bf16.mxu0 %v1396_v10  ;;  %1351 = vmatprep.subr.bf16.mxu1 %v1396_v10 }
  0x22   : > { %1245 = vmatpush3.bf16.msra.mxu0 %v1397_v13  ;;  %1359 = vmatpush3.bf16.msra.mxu1 %v1397_v13 }
  0x23   : > { %1246 = vmatprep.subr.bf16.mxu0 %v1398_v14  ;;  %1352 = vmatprep.subr.bf16.mxu1 %v1398_v14 }
  0x26   : > { %1247 = vmatpush3.bf16.msra.mxu0 %v1399_v15  ;;  %1360 = vmatpush3.bf16.msra.mxu1 %v1399_v15 }
  0x27   : > { %1248 = vmatprep.subr.bf16.mxu0 %v1400_v16  ;;  %1353 = vmatprep.subr.bf16.mxu1 %v1400_v16 }
  0x2a   : > { %1249 = vmatpush3.bf16.msra.mxu0 %v1401_v17  ;;  %1361 = vmatpush3.bf16.msra.mxu1 %v1401_v17 }
  0x2d   : > { %589 = vmatmul.mubr.bf16.vlgmr.msra.gmra.mxu0 %v1402_v18  ;;  %653 = vmatmul.mubr.bf16.vlgmr.msra.gmra.mxu1 %v1405_v19 }
  0x2e   : > { %596 = vmatprep.mubr.bf16.mxu0 %v1408_v20  ;;  %660 = vmatprep.mubr.bf16.mxu1 %v1410_v21 }
  0x35   : > { %597 = vmatmul.mubr.bf16.gmra.mxu0 %v1412_v22  ;;  %661 = vmatmul.mubr.bf16.gmra.mxu1 %v1413_v23 }
  0x36   : > { %604 = vmatprep.mubr.bf16.mxu0 %v1414_v24  ;;  %668 = vmatprep.mubr.bf16.mxu1 %v1416_v25 }
  0x3d   : > { %605 = vmatmul.mubr.bf16.gmra.mxu0 %v1418_v26  ;;  %669 = vmatmul.mubr.bf16.gmra.mxu1 %v1419_v27 }
  0x3e   : > { %612 = vmatprep.mubr.bf16.mxu0 %v1420_v28  ;;  %676 = vmatprep.mubr.bf16.mxu1 %v1422_v29 }
  0x45   : > { %613 = vmatmul.mubr.bf16.gmra.mxu0 %v1424_v30  ;;  %677 = vmatmul.mubr.bf16.gmra.mxu1 %v1425_v31 }
  0x46   : > { %620 = vmatprep.mubr.bf16.mxu0 %v1426_v32  ;;  %684 = vmatprep.mubr.bf16.mxu1 %v1428_v33 }
  0x4d   : > { %621 = vmatmul.mubr.bf16.gmra.mxu0 %v1430_v34  ;;  %685 = vmatmul.mubr.bf16.gmra.mxu1 %v1431_v35 }
  0x4e   : > { %628 = vmatprep.mubr.bf16.mxu0 %v1432_v36  ;;  %692 = vmatprep.mubr.bf16.mxu1 %v1434_v37 }
  0x55   : > { %629 = vmatmul.mubr.bf16.gmra.mxu0 %v1436_v38  ;;  %693 = vmatmul.mubr.bf16.gmra.mxu1 %v1437_v39 }
  0x56   : > { %636 = vmatprep.mubr.bf16.mxu0 %v1438_v40  ;;  %700 = vmatprep.mubr.bf16.mxu1 %v1440_v41 }
  0x5d   : > { %637 = vmatmul.mubr.bf16.gmra.mxu0 %v1442_v42  ;;  %701 = vmatmul.mubr.bf16.gmra.mxu1 %v1443_v43 }
  0x5e   : > { %644 = vmatprep.mubr.bf16.mxu0 %v1444_v44  ;;  %708 = vmatprep.mubr.bf16.mxu1 %v1446_v45 }
  0x65   : > { %645 = vmatmul.mubr.bf16.gmra.mxu0 %v1448_v46  ;;  %709 = vmatmul.mubr.bf16.gmra.mxu1 %v1449_v47 }
  0xed   : > { %v1250_v48 = vpop.f32.mrf.mxu0  ;;  %v1298_v49 = vpop.f32.mrf.mxu1 }
  0xef   : > { %v1251_v50 = vpop.f32.mrf.mxu0  ;;  %v1299_v51 = vpop.f32.mrf.mxu1 }
  0xf0   : > { %v1252_v53 = vadd.f32 %v1251_v50, %v1250_v48  ;;  %v1300_v54 = vadd.f32 %v1299_v51, %v1298_v49 }
  0xf1   : > { %v1253_v55 = vpop.f32.mrf.mxu0  ;;  %v1301_v56 = vpop.f32.mrf.mxu1 }
  0xf2   : > { %v591_v57 = vadd.f32 %v1252_v53, %v1603_v52  ;;  %v655_v58 = vadd.f32 %v1300_v54, %v1603_v52 }
  0xf3   : > { %v1254_v59 = vpop.f32.mrf.mxu0  ;;  %v1302_v60 = vpop.f32.mrf.mxu1 }
  0xf4   : > { %v1255_v61 = vadd.f32 %v1254_v59, %v1253_v55  ;;  %v1303_v62 = vadd.f32 %v1302_v60, %v1301_v56  ;;  %v717_v3 = vmax.f32 %v591_v57, 0.0  ;;  %v733_v4 = vmax.f32 %v655_v58, 0.0 }
  0xf5   : > { %v1256_v63 = vpop.f32.mrf.mxu0  ;;  %v1304_v0 = vpop.f32.mrf.mxu1 }
  0xf6   : > { %v594_v1 = vadd.f32 %v1255_v61, %v1603_v52  ;;  %v658_v2 = vadd.f32 %v1303_v62, %v1603_v52 }
  0xf7   : > { %v1257_v5 = vpop.f32.mrf.mxu0  ;;  %v1305_v6 = vpop.f32.mrf.mxu1 }
  0xf8   : > { %v718_v7 = vmax.f32 %v594_v1, 0.0  ;;  %v734_v8 = vmax.f32 %v658_v2, 0.0  ;;  %v1258_v9 = vadd.f32 %v1257_v5, %v1256_v63  ;;  %v1306_v10 = vadd.f32 %v1305_v6, %v1304_v0 }
  0xf9   : > { %v1259_v11 = vpop.f32.mrf.mxu0  ;;  %v1307_v12 = vpop.f32.mrf.mxu1 }
  0xfa   : > { %v1142_v13 = vpack.c.bf16 %v718_v7, %v717_v3  ;;  %v1182_v14 = vpack.c.bf16 %v734_v8, %v733_v4  ;;  %v599_v15 = vadd.f32 %v1258_v9, %v1603_v52  ;;  %v663_v16 = vadd.f32 %v1306_v10, %v1603_v52 }
  0xfb   : > { %v1260_v17 = vpop.f32.mrf.mxu0  ;;  %v1308_v18 = vpop.f32.mrf.mxu1 }
  0xfc   : > { %1143 = vst [vmem:[%s1613_s8] sm:$0xff] %v1142_v13   ;;  %1226 = vst [vmem:[%s1613_s8 + $0x40] sm:$0xff] %v1182_v14   ;;  %v1261_v19 = vadd.f32 %v1260_v17, %v1259_v11  ;;  %v1309_v20 = vadd.f32 %v1308_v18, %v1307_v12  ;;  %v719_v25 = vmax.f32 %v599_v15, 0.0  ;;  %v735_v26 = vmax.f32 %v663_v16, 0.0 }
  0xfd   : > { %v1262_v21 = vpop.f32.mrf.mxu0  ;;  %v1310_v22 = vpop.f32.mrf.mxu1 }
  0xfe   : > { %v602_v23 = vadd.f32 %v1261_v19, %v1603_v52  ;;  %v666_v24 = vadd.f32 %v1309_v20, %v1603_v52 }
  0xff   : > { %v1263_v27 = vpop.f32.mrf.mxu0  ;;  %v1311_v28 = vpop.f32.mrf.mxu1 }
 0x100   : > { %v720_v29 = vmax.f32 %v602_v23, 0.0  ;;  %v736_v30 = vmax.f32 %v666_v24, 0.0  ;;  %v1264_v31 = vadd.f32 %v1263_v27, %v1262_v21  ;;  %v1312_v32 = vadd.f32 %v1311_v28, %v1310_v22 }
 0x101   : > { %v1265_v33 = vpop.f32.mrf.mxu0  ;;  %v1313_v34 = vpop.f32.mrf.mxu1 }
 0x102   : > { %v1147_v35 = vpack.c.bf16 %v720_v29, %v719_v25  ;;  %v1187_v36 = vpack.c.bf16 %v736_v30, %v735_v26  ;;  %v607_v37 = vadd.f32 %v1264_v31, %v1603_v52  ;;  %v671_v38 = vadd.f32 %v1312_v32, %v1603_v52 }
 0x103   : > { %v1266_v39 = vpop.f32.mrf.mxu0  ;;  %v1314_v40 = vpop.f32.mrf.mxu1 }
 0x104   : > { %1219 = vst [vmem:[%s1613_s8 + $0x8] sm:$0xff] %v1147_v35   ;;  %1227 = vst [vmem:[%s1613_s8 + $0x48] sm:$0xff] %v1187_v36   ;;  %v1267_v41 = vadd.f32 %v1266_v39, %v1265_v33  ;;  %v1315_v42 = vadd.f32 %v1314_v40, %v1313_v34  ;;  %v721_v47 = vmax.f32 %v607_v37, 0.0  ;;  %v737_v48 = vmax.f32 %v671_v38, 0.0 }
 0x105   : > { %v1268_v43 = vpop.f32.mrf.mxu0  ;;  %v1316_v44 = vpop.f32.mrf.mxu1 }
 0x106   : > { %v610_v45 = vadd.f32 %v1267_v41, %v1603_v52  ;;  %v674_v46 = vadd.f32 %v1315_v42, %v1603_v52 }
 0x107   : > { %v1269_v49 = vpop.f32.mrf.mxu0  ;;  %v1317_v50 = vpop.f32.mrf.mxu1 }
 0x108   : > { %v722_v51 = vmax.f32 %v610_v45, 0.0  ;;  %v738_v53 = vmax.f32 %v674_v46, 0.0  ;;  %v1270_v54 = vadd.f32 %v1269_v49, %v1268_v43  ;;  %v1318_v55 = vadd.f32 %v1317_v50, %v1316_v44 }
 0x109   : > { %v1271_v56 = vpop.f32.mrf.mxu0  ;;  %v1319_v57 = vpop.f32.mrf.mxu1 }
 0x10a   : > { %v1152_v58 = vpack.c.bf16 %v722_v51, %v721_v47  ;;  %v1192_v59 = vpack.c.bf16 %v738_v53, %v737_v48  ;;  %v615_v60 = vadd.f32 %v1270_v54, %v1603_v52  ;;  %v679_v61 = vadd.f32 %v1318_v55, %v1603_v52 }
 0x10b   : > { %v1272_v62 = vpop.f32.mrf.mxu0  ;;  %v1320_v63 = vpop.f32.mrf.mxu1 }
 0x10c   : > { %1220 = vst [vmem:[%s1613_s8 + $0x10] sm:$0xff] %v1152_v58   ;;  %1228 = vst [vmem:[%s1613_s8 + $0x50] sm:$0xff] %v1192_v59   ;;  %v1273_v0 = vadd.f32 %v1272_v62, %v1271_v56  ;;  %v1321_v1 = vadd.f32 %v1320_v63, %v1319_v57  ;;  %v723_v6 = vmax.f32 %v615_v60, 0.0  ;;  %v739_v7 = vmax.f32 %v679_v61, 0.0 }
 0x10d   : > { %v1274_v2 = vpop.f32.mrf.mxu0  ;;  %v1322_v3 = vpop.f32.mrf.mxu1 }
 0x10e   : > { %v618_v4 = vadd.f32 %v1273_v0, %v1603_v52  ;;  %v682_v5 = vadd.f32 %v1321_v1, %v1603_v52 }
 0x10f   : > { %v1275_v8 = vpop.f32.mrf.mxu0  ;;  %v1323_v9 = vpop.f32.mrf.mxu1 }
 0x110   : > { %v724_v10 = vmax.f32 %v618_v4, 0.0  ;;  %v740_v11 = vmax.f32 %v682_v5, 0.0  ;;  %v1276_v12 = vadd.f32 %v1275_v8, %v1274_v2  ;;  %v1324_v13 = vadd.f32 %v1323_v9, %v1322_v3 }
 0x111   : > { %v1277_v14 = vpop.f32.mrf.mxu0  ;;  %v1325_v15 = vpop.f32.mrf.mxu1 }
 0x112   : > { %v1157_v16 = vpack.c.bf16 %v724_v10, %v723_v6  ;;  %v1197_v17 = vpack.c.bf16 %v740_v11, %v739_v7  ;;  %v623_v18 = vadd.f32 %v1276_v12, %v1603_v52  ;;  %v687_v19 = vadd.f32 %v1324_v13, %v1603_v52 }
 0x113   : > { %v1278_v20 = vpop.f32.mrf.mxu0  ;;  %v1326_v21 = vpop.f32.mrf.mxu1 }
 0x114   : > { %1221 = vst [vmem:[%s1613_s8 + $0x18] sm:$0xff] %v1157_v16   ;;  %1229 = vst [vmem:[%s1613_s8 + $0x58] sm:$0xff] %v1197_v17   ;;  %v1279_v22 = vadd.f32 %v1278_v20, %v1277_v14  ;;  %v1327_v23 = vadd.f32 %v1326_v21, %v1325_v15  ;;  %v725_v28 = vmax.f32 %v623_v18, 0.0  ;;  %v741_v29 = vmax.f32 %v687_v19, 0.0 }
 0x115   : > { %v1280_v24 = vpop.f32.mrf.mxu0  ;;  %v1328_v25 = vpop.f32.mrf.mxu1 }
 0x116   : > { %v626_v26 = vadd.f32 %v1279_v22, %v1603_v52  ;;  %v690_v27 = vadd.f32 %v1327_v23, %v1603_v52 }
 0x117   : > { %v1281_v30 = vpop.f32.mrf.mxu0  ;;  %v1329_v31 = vpop.f32.mrf.mxu1 }
 0x118   : > { %v726_v32 = vmax.f32 %v626_v26, 0.0  ;;  %v742_v33 = vmax.f32 %v690_v27, 0.0  ;;  %v1282_v34 = vadd.f32 %v1281_v30, %v1280_v24  ;;  %v1330_v35 = vadd.f32 %v1329_v31, %v1328_v25 }
 0x119   : > { %v1283_v36 = vpop.f32.mrf.mxu0  ;;  %v1331_v37 = vpop.f32.mrf.mxu1 }
 0x11a   : > { %v1162_v38 = vpack.c.bf16 %v726_v32, %v725_v28  ;;  %v1202_v39 = vpack.c.bf16 %v742_v33, %v741_v29  ;;  %v631_v40 = vadd.f32 %v1282_v34, %v1603_v52  ;;  %v695_v41 = vadd.f32 %v1330_v35, %v1603_v52 }
 0x11b   : > { %v1284_v42 = vpop.f32.mrf.mxu0  ;;  %v1332_v43 = vpop.f32.mrf.mxu1 }
 0x11c   : > { %1222 = vst [vmem:[%s1613_s8 + $0x20] sm:$0xff] %v1162_v38   ;;  %1230 = vst [vmem:[%s1613_s8 + $0x60] sm:$0xff] %v1202_v39   ;;  %v1285_v44 = vadd.f32 %v1284_v42, %v1283_v36  ;;  %v1333_v45 = vadd.f32 %v1332_v43, %v1331_v37  ;;  %v727_v50 = vmax.f32 %v631_v40, 0.0  ;;  %v743_v51 = vmax.f32 %v695_v41, 0.0 }
 0x11d   : > { %v1286_v46 = vpop.f32.mrf.mxu0  ;;  %v1334_v47 = vpop.f32.mrf.mxu1 }
 0x11e   : > { %v634_v48 = vadd.f32 %v1285_v44, %v1603_v52  ;;  %v698_v49 = vadd.f32 %v1333_v45, %v1603_v52 }
 0x11f   : > { %v1287_v53 = vpop.f32.mrf.mxu0  ;;  %v1335_v54 = vpop.f32.mrf.mxu1 }
 0x120   : > { %v728_v55 = vmax.f32 %v634_v48, 0.0  ;;  %v744_v56 = vmax.f32 %v698_v49, 0.0  ;;  %v1288_v57 = vadd.f32 %v1287_v53, %v1286_v46  ;;  %v1336_v58 = vadd.f32 %v1335_v54, %v1334_v47 }
 0x121   : > { %v1289_v59 = vpop.f32.mrf.mxu0  ;;  %v1337_v60 = vpop.f32.mrf.mxu1 }
 0x122   : > { %v1167_v61 = vpack.c.bf16 %v728_v55, %v727_v50  ;;  %v1207_v62 = vpack.c.bf16 %v744_v56, %v743_v51  ;;  %v639_v63 = vadd.f32 %v1288_v57, %v1603_v52  ;;  %v703_v0 = vadd.f32 %v1336_v58, %v1603_v52 }
 0x123   : > { %v1290_v1 = vpop.f32.mrf.mxu0  ;;  %v1338_v2 = vpop.f32.mrf.mxu1 }
 0x124   : > { %1223 = vst [vmem:[%s1613_s8 + $0x28] sm:$0xff] %v1167_v61   ;;  %1231 = vst [vmem:[%s1613_s8 + $0x68] sm:$0xff] %v1207_v62   ;;  %v1291_v3 = vadd.f32 %v1290_v1, %v1289_v59  ;;  %v1339_v4 = vadd.f32 %v1338_v2, %v1337_v60  ;;  %v729_v9 = vmax.f32 %v639_v63, 0.0  ;;  %v745_v10 = vmax.f32 %v703_v0, 0.0 }
 0x125   : > { %v1292_v5 = vpop.f32.mrf.mxu0  ;;  %v1340_v6 = vpop.f32.mrf.mxu1 }
 0x126   : > { %v642_v7 = vadd.f32 %v1291_v3, %v1603_v52  ;;  %v706_v8 = vadd.f32 %v1339_v4, %v1603_v52 }
 0x127   : > { %v1293_v11 = vpop.f32.mrf.mxu0  ;;  %v1341_v12 = vpop.f32.mrf.mxu1 }
 0x128   : > { %v730_v13 = vmax.f32 %v642_v7, 0.0  ;;  %v746_v14 = vmax.f32 %v706_v8, 0.0  ;;  %v1294_v15 = vadd.f32 %v1293_v11, %v1292_v5  ;;  %v1342_v16 = vadd.f32 %v1341_v12, %v1340_v6 }
 0x129   : > { %v1295_v17 = vpop.f32.mrf.mxu0  ;;  %v1343_v18 = vpop.f32.mrf.mxu1 }
 0x12a   : > { %v1172_v19 = vpack.c.bf16 %v730_v13, %v729_v9  ;;  %v1212_v20 = vpack.c.bf16 %v746_v14, %v745_v10  ;;  %v647_v23 = vadd.f32 %v1294_v15, %v1603_v52  ;;  %v711_v24 = vadd.f32 %v1342_v16, %v1603_v52 }
 0x12b   : > { %v1296_v21 = vpop.f32.mrf.mxu0  ;;  %v1344_v22 = vpop.f32.mrf.mxu1 }
 0x12c   : > { %1224 = vst [vmem:[%s1613_s8 + $0x30] sm:$0xff] %v1172_v19   ;;  %1232 = vst [vmem:[%s1613_s8 + $0x70] sm:$0xff] %v1212_v20   ;;  %v1297_v25 = vadd.f32 %v1296_v21, %v1295_v17  ;;  %v1345_v26 = vadd.f32 %v1344_v22, %v1343_v18  ;;  %v731_v29 = vmax.f32 %v647_v23, 0.0  ;;  %v747_v30 = vmax.f32 %v711_v24, 0.0 }
 0x12e   : > { %v650_v27 = vadd.f32 %v1297_v25, %v1603_v52  ;;  %v714_v28 = vadd.f32 %v1345_v26, %v1603_v52 }
 0x130   : > { %v732_v31 = vmax.f32 %v650_v27, 0.0  ;;  %v748_v32 = vmax.f32 %v714_v28, 0.0 }
 0x132   : > { %v1177_v33 = vpack.c.bf16 %v732_v31, %v731_v29  ;;  %v1217_v34 = vpack.c.bf16 %v748_v32, %v747_v30 }
 0x134   : > { %1225 = vst [vmem:[%s1613_s8 + $0x38] sm:$0xff] %v1177_v33   ;;  %1233 = vst [vmem:[%s1613_s8 + $0x78] sm:$0xff] %v1217_v34  }
 0x135 PF: > { %s13_s14 = sadd.s32 1, %s1472_s14   ;;  %s1672_s12 = smov %s1468_s13 }
 0x136   : > { %p10_p5 = scmp.ge.s32.totalorder %s13_s14, 4   ;;  %s1673_s13 = smov %s1675_s15 }
 0x138   :  { %12 = sbr.rel (!%p10_p5) target bundleno = 2 (0x2), region = 68 }

// kernel: resnet_forward.7
= control target key start
LH: loop header
LB: loop body
LE: loop exit
PB: predicated region body
PF: predicated region fallthrough
CT: control target
= control target key end

     0   :  { %s957_s0 = inlined_call_operand.vmem [shape: bf16[9,128,128], index: 0, kind: input, shape index: {}]   ;;  %s958_s1 = inlined_call_operand.vmem [shape: bf16[128,128], index: 1, kind: output, shape index: {}]  }
   0x1   :  { %v8_v0 = vld [vmem:[%s957_s0] sm:$0xf]  ;;  %v9_v1 = vld [vmem:[%s957_s0 + $0x4] sm:$0xf]  ;;  %v10_v18 = vld [vmem:[%s957_s0 + $0x8] sm:$0xf] }
   0x2   :  { %v308_v2 = vld [vmem:[%s957_s0 + $0x40] sm:$0xf]  ;;  %v309_v3 = vld [vmem:[%s957_s0 + $0x44] sm:$0xf]  ;;  %v11_v19 = vld [vmem:[%s957_s0 + $0xc] sm:$0xf] }
   0x3   :  { %v41_v4 = vmax.bf16 %v308_v2, %v8_v0  ;;  %v324_v5 = vld [vmem:[%s957_s0 + $0x80] sm:$0xf]  ;;  %v325_v6 = vld [vmem:[%s957_s0 + $0x84] sm:$0xf]  ;;  %v42_v7 = vmax.bf16 %v309_v3, %v9_v1  ;;  %v310_v20 = vld [vmem:[%s957_s0 + $0x48] sm:$0xf] }
   0x4   :  { %v340_v8 = vld [vmem:[%s957_s0 + $0xc0] sm:$0xf]  ;;  %v341_v10 = vld [vmem:[%s957_s0 + $0xc4] sm:$0xf]  ;;  %v311_v22 = vld [vmem:[%s957_s0 + $0x4c] sm:$0xf]  ;;  %v43_v23 = vmax.bf16 %v310_v20, %v10_v18 }
   0x5   :  { %v74_v9 = vmax.bf16 %v324_v5, %v41_v4  ;;  %v75_v11 = vmax.bf16 %v325_v6, %v42_v7  ;;  %v356_v12 = vld [vmem:[%s957_s0 + $0x100] sm:$0xf]  ;;  %v357_v14 = vld [vmem:[%s957_s0 + $0x104] sm:$0xf]  ;;  %v326_v24 = vld [vmem:[%s957_s0 + $0x88] sm:$0xf]  ;;  %v44_v28 = vmax.bf16 %v311_v22, %v11_v19 }
   0x6   :  { %v372_v15 = vld [vmem:[%s957_s0 + $0x140] sm:$0xf]  ;;  %v373_v16 = vld [vmem:[%s957_s0 + $0x144] sm:$0xf]  ;;  %v327_v25 = vld [vmem:[%s957_s0 + $0x8c] sm:$0xf]  ;;  %v76_v33 = vmax.bf16 %v326_v24, %v43_v23 }
   0x7   :  { %v107_v13 = vmax.bf16 %v340_v8, %v74_v9  ;;  %v108_v17 = vmax.bf16 %v341_v10, %v75_v11  ;;  %v388_v27 = vld [vmem:[%s957_s0 + $0x180] sm:$0xf]  ;;  %v342_v29 = vld [vmem:[%s957_s0 + $0xc8] sm:$0xf]  ;;  %v389_v31 = vld [vmem:[%s957_s0 + $0x184] sm:$0xf]  ;;  %v77_v38 = vmax.bf16 %v327_v25, %v44_v28 }
   0x8   :  { %v404_v32 = vld [vmem:[%s957_s0 + $0x1c0] sm:$0xf]  ;;  %v343_v34 = vld [vmem:[%s957_s0 + $0xcc] sm:$0xf]  ;;  %v405_v36 = vld [vmem:[%s957_s0 + $0x1c4] sm:$0xf]  ;;  %v109_v42 = vmax.bf16 %v342_v29, %v76_v33 }
   0x9   :  { %v140_v21 = vmax.bf16 %v356_v12, %v107_v13  ;;  %v141_v26 = vmax.bf16 %v357_v14, %v108_v17  ;;  %v420_v37 = vld [vmem:[%s957_s0 + $0x200] sm:$0xf]  ;;  %v358_v39 = vld [vmem:[%s957_s0 + $0x108] sm:$0xf]  ;;  %v421_v41 = vld [vmem:[%s957_s0 + $0x204] sm:$0xf]  ;;  %v110_v47 = vmax.bf16 %v343_v34, %v77_v38 }
   0xa   :  { %v359_v43 = vld [vmem:[%s957_s0 + $0x10c] sm:$0xf]  ;;  %v374_v44 = vld [vmem:[%s957_s0 + $0x148] sm:$0xf]  ;;  %v12_v48 = vld [vmem:[%s957_s0 + $0x10] sm:$0xf]  ;;  %v142_v52 = vmax.bf16 %v358_v39, %v109_v42 }
   0xb   :  { %v173_v30 = vmax.bf16 %v372_v15, %v140_v21  ;;  %v174_v35 = vmax.bf16 %v373_v16, %v141_v26  ;;  %v375_v45 = vld [vmem:[%s957_s0 + $0x14c] sm:$0xf]  ;;  %v13_v49 = vld [vmem:[%s957_s0 + $0x14] sm:$0xf]  ;;  %v312_v50 = vld [vmem:[%s957_s0 + $0x50] sm:$0xf]  ;;  %v143_v58 = vmax.bf16 %v359_v43, %v110_v47 }
   0xc   :  { %v313_v53 = vld [vmem:[%s957_s0 + $0x54] sm:$0xf]  ;;  %v45_v54 = vmax.bf16 %v312_v50, %v12_v48  ;;  %v328_v55 = vld [vmem:[%s957_s0 + $0x90] sm:$0xf]  ;;  %v390_v59 = vld [vmem:[%s957_s0 + $0x188] sm:$0xf]  ;;  %v175_v63 = vmax.bf16 %v374_v44, %v142_v52 }
   0xd   :  { %v206_v40 = vmax.bf16 %v388_v27, %v173_v30  ;;  %v207_v46 = vmax.bf16 %v389_v31, %v174_v35  ;;  %v329_v56 = vld [vmem:[%s957_s0 + $0x94] sm:$0xf]  ;;  %v46_v60 = vmax.bf16 %v313_v53, %v13_v49  ;;  %v344_v61 = vld [vmem:[%s957_s0 + $0xd0] sm:$0xf]  ;;  %v391_v0 = vld [vmem:[%s957_s0 + $0x18c] sm:$0xf]  ;;  %v176_v5 = vmax.bf16 %v375_v45, %v143_v58 }
   0xe   :  { %v406_v1 = vld [vmem:[%s957_s0 + $0x1c8] sm:$0xf]  ;;  %v78_v2 = vmax.bf16 %v328_v55, %v45_v54  ;;  %v345_v3 = vld [vmem:[%s957_s0 + $0xd4] sm:$0xf]  ;;  %v407_v6 = vld [vmem:[%s957_s0 + $0x1cc] sm:$0xf]  ;;  %v208_v10 = vmax.bf16 %v390_v59, %v175_v63 }
   0xf   :  { %v239_v51 = vmax.bf16 %v404_v32, %v206_v40  ;;  %v240_v57 = vmax.bf16 %v405_v36, %v207_v46  ;;  %v422_v7 = vld [vmem:[%s957_s0 + $0x208] sm:$0xf]  ;;  %v79_v8 = vmax.bf16 %v329_v56, %v46_v60  ;;  %v360_v9 = vld [vmem:[%s957_s0 + $0x110] sm:$0xf]  ;;  %v423_v11 = vld [vmem:[%s957_s0 + $0x20c] sm:$0xf]  ;;  %v209_v17 = vmax.bf16 %v391_v0, %v176_v5 }
  0x10   :  { %v111_v12 = vmax.bf16 %v344_v61, %v78_v2  ;;  %v361_v13 = vld [vmem:[%s957_s0 + $0x114] sm:$0xf]  ;;  %v376_v14 = vld [vmem:[%s957_s0 + $0x150] sm:$0xf]  ;;  %v14_v19 = vld [vmem:[%s957_s0 + $0x18] sm:$0xf]  ;;  %v241_v22 = vmax.bf16 %v406_v1, %v208_v10 }
  0x11   :  { %v272_v62 = vmax.bf16 %v420_v37, %v239_v51  ;;  %v273_v4 = vmax.bf16 %v421_v41, %v240_v57  ;;  %v377_v15 = vld [vmem:[%s957_s0 + $0x154] sm:$0xf]  ;;  %v112_v18 = vmax.bf16 %v345_v3, %v79_v8  ;;  %v15_v20 = vld [vmem:[%s957_s0 + $0x1c] sm:$0xf]  ;;  %v314_v21 = vld [vmem:[%s957_s0 + $0x58] sm:$0xf]  ;;  %v242_v28 = vmax.bf16 %v407_v6, %v209_v17 }
  0x12   :  { %v144_v23 = vmax.bf16 %v360_v9, %v111_v12  ;;  %v315_v24 = vld [vmem:[%s957_s0 + $0x5c] sm:$0xf]  ;;  %v47_v25 = vmax.bf16 %v314_v21, %v14_v19  ;;  %v330_v26 = vld [vmem:[%s957_s0 + $0x98] sm:$0xf]  ;;  %v392_v30 = vld [vmem:[%s957_s0 + $0x190] sm:$0xf]  ;;  %v274_v33 = vmax.bf16 %v422_v7, %v241_v22 }
  0x13   :  { %v476_v16 = vcombine.low %v272_v62, %v273_v4  ;;  %v331_v27 = vld [vmem:[%s957_s0 + $0x9c] sm:$0xf]  ;;  %v145_v29 = vmax.bf16 %v361_v13, %v112_v18  ;;  %v48_v31 = vmax.bf16 %v315_v24, %v15_v20  ;;  %v346_v32 = vld [vmem:[%s957_s0 + $0xd8] sm:$0xf]  ;;  %v393_v35 = vld [vmem:[%s957_s0 + $0x194] sm:$0xf]  ;;  %v275_v39 = vmax.bf16 %v423_v11, %v242_v28 }
  0x14   :  { %v177_v34 = vmax.bf16 %v376_v14, %v144_v23  ;;  %v408_v36 = vld [vmem:[%s957_s0 + $0x1d0] sm:$0xf]  ;;  %v80_v37 = vmax.bf16 %v330_v26, %v47_v25  ;;  %v347_v38 = vld [vmem:[%s957_s0 + $0xdc] sm:$0xf]  ;;  %v409_v41 = vld [vmem:[%s957_s0 + $0x1d4] sm:$0xf] }
  0x15   :  { %440 = vst [vmem:[%s958_s1] sm:$0xff] %v476_v16   ;;  %v178_v40 = vmax.bf16 %v377_v15, %v145_v29  ;;  %v424_v42 = vld [vmem:[%s957_s0 + $0x210] sm:$0xf]  ;;  %v81_v43 = vmax.bf16 %v331_v27, %v48_v31  ;;  %v362_v44 = vld [vmem:[%s957_s0 + $0x118] sm:$0xf]  ;;  %v425_v46 = vld [vmem:[%s957_s0 + $0x214] sm:$0xf]  ;;  %v477_v51 = vcombine.low %v274_v33, %v275_v39 }
  0x16   :  { %v210_v45 = vmax.bf16 %v392_v30, %v177_v34  ;;  %v113_v47 = vmax.bf16 %v346_v32, %v80_v37  ;;  %v363_v48 = vld [vmem:[%s957_s0 + $0x11c] sm:$0xf]  ;;  %v378_v49 = vld [vmem:[%s957_s0 + $0x158] sm:$0xf]  ;;  %v16_v54 = vld [vmem:[%s957_s0 + $0x20] sm:$0xf] }
  0x17   :  { %v379_v50 = vld [vmem:[%s957_s0 + $0x15c] sm:$0xf]  ;;  %v211_v52 = vmax.bf16 %v393_v35, %v178_v40  ;;  %v114_v53 = vmax.bf16 %v347_v38, %v81_v43  ;;  %v17_v55 = vld [vmem:[%s957_s0 + $0x24] sm:$0xf]  ;;  %v316_v56 = vld [vmem:[%s957_s0 + $0x60] sm:$0xf] }
  0x18   :  { %v243_v57 = vmax.bf16 %v408_v36, %v210_v45  ;;  %v146_v58 = vmax.bf16 %v362_v44, %v113_v47  ;;  %v317_v59 = vld [vmem:[%s957_s0 + $0x64] sm:$0xf]  ;;  %v49_v60 = vmax.bf16 %v316_v56, %v16_v54  ;;  %v332_v61 = vld [vmem:[%s957_s0 + $0xa0] sm:$0xf]  ;;  %478 = vst [vmem:[%s958_s1 + $0x8] sm:$0xff] %v477_v51  }
  0x19   :  { %v333_v62 = vld [vmem:[%s957_s0 + $0xa4] sm:$0xf]  ;;  %v244_v63 = vmax.bf16 %v409_v41, %v211_v52  ;;  %v147_v0 = vmax.bf16 %v363_v48, %v114_v53  ;;  %v394_v1 = vld [vmem:[%s957_s0 + $0x198] sm:$0xf]  ;;  %v50_v2 = vmax.bf16 %v317_v59, %v17_v55  ;;  %v348_v3 = vld [vmem:[%s957_s0 + $0xe0] sm:$0xf] }
  0x1a   :  { %v276_v4 = vmax.bf16 %v424_v42, %v243_v57  ;;  %v179_v5 = vmax.bf16 %v378_v49, %v146_v58  ;;  %v395_v6 = vld [vmem:[%s957_s0 + $0x19c] sm:$0xf]  ;;  %v410_v7 = vld [vmem:[%s957_s0 + $0x1d8] sm:$0xf]  ;;  %v82_v8 = vmax.bf16 %v332_v61, %v49_v60  ;;  %v349_v9 = vld [vmem:[%s957_s0 + $0xe4] sm:$0xf] }
  0x1b   :  { %v277_v10 = vmax.bf16 %v425_v46, %v244_v63  ;;  %v180_v11 = vmax.bf16 %v379_v50, %v147_v0  ;;  %v411_v12 = vld [vmem:[%s957_s0 + $0x1dc] sm:$0xf]  ;;  %v426_v13 = vld [vmem:[%s957_s0 + $0x218] sm:$0xf]  ;;  %v83_v14 = vmax.bf16 %v333_v62, %v50_v2  ;;  %v364_v15 = vld [vmem:[%s957_s0 + $0x120] sm:$0xf] }
  0x1c   :  { %v212_v16 = vmax.bf16 %v394_v1, %v179_v5  ;;  %v427_v17 = vld [vmem:[%s957_s0 + $0x21c] sm:$0xf]  ;;  %v115_v18 = vmax.bf16 %v348_v3, %v82_v8  ;;  %v365_v19 = vld [vmem:[%s957_s0 + $0x124] sm:$0xf]  ;;  %v380_v20 = vld [vmem:[%s957_s0 + $0x160] sm:$0xf] }
  0x1d   :  { %v381_v21 = vld [vmem:[%s957_s0 + $0x164] sm:$0xf]  ;;  %v479_v22 = vcombine.low %v276_v4, %v277_v10  ;;  %v213_v23 = vmax.bf16 %v395_v6, %v180_v11  ;;  %v116_v24 = vmax.bf16 %v349_v9, %v83_v14  ;;  %v18_v25 = vld [vmem:[%s957_s0 + $0x28] sm:$0xf]  ;;  %v19_v26 = vld [vmem:[%s957_s0 + $0x2c] sm:$0xf] }
  0x1e   :  { %v318_v27 = vld [vmem:[%s957_s0 + $0x68] sm:$0xf]  ;;  %v245_v28 = vmax.bf16 %v410_v7, %v212_v16  ;;  %v148_v29 = vmax.bf16 %v364_v15, %v115_v18  ;;  %v319_v30 = vld [vmem:[%s957_s0 + $0x6c] sm:$0xf]  ;;  %v396_v36 = vld [vmem:[%s957_s0 + $0x1a0] sm:$0xf] }
  0x1f   :  { %v51_v31 = vmax.bf16 %v318_v27, %v18_v25  ;;  %v334_v32 = vld [vmem:[%s957_s0 + $0xa8] sm:$0xf]  ;;  %v335_v33 = vld [vmem:[%s957_s0 + $0xac] sm:$0xf]  ;;  %480 = vst [vmem:[%s958_s1 + $0x10] sm:$0xff] %v479_v22   ;;  %v246_v34 = vmax.bf16 %v411_v12, %v213_v23  ;;  %v149_v35 = vmax.bf16 %v365_v19, %v116_v24  ;;  %v52_v37 = vmax.bf16 %v319_v30, %v19_v26 }
  0x20   :  { %v350_v38 = vld [vmem:[%s957_s0 + $0xe8] sm:$0xf]  ;;  %v278_v39 = vmax.bf16 %v426_v13, %v245_v28  ;;  %v181_v40 = vmax.bf16 %v380_v20, %v148_v29  ;;  %v397_v41 = vld [vmem:[%s957_s0 + $0x1a4] sm:$0xf]  ;;  %v412_v42 = vld [vmem:[%s957_s0 + $0x1e0] sm:$0xf] }
  0x21   :  { %v84_v43 = vmax.bf16 %v334_v32, %v51_v31  ;;  %v351_v44 = vld [vmem:[%s957_s0 + $0xec] sm:$0xf]  ;;  %v279_v45 = vmax.bf16 %v427_v17, %v246_v34  ;;  %v182_v46 = vmax.bf16 %v381_v21, %v149_v35  ;;  %v413_v47 = vld [vmem:[%s957_s0 + $0x1e4] sm:$0xf]  ;;  %v428_v48 = vld [vmem:[%s957_s0 + $0x220] sm:$0xf]  ;;  %v85_v49 = vmax.bf16 %v335_v33, %v52_v37 }
  0x22   :  { %v366_v50 = vld [vmem:[%s957_s0 + $0x128] sm:$0xf]  ;;  %v214_v51 = vmax.bf16 %v396_v36, %v181_v40  ;;  %v429_v52 = vld [vmem:[%s957_s0 + $0x224] sm:$0xf]  ;;  %v367_v54 = vld [vmem:[%s957_s0 + $0x12c] sm:$0xf] }
  0x23   :  { %v117_v53 = vmax.bf16 %v350_v38, %v84_v43  ;;  %v382_v55 = vld [vmem:[%s957_s0 + $0x168] sm:$0xf]  ;;  %v383_v56 = vld [vmem:[%s957_s0 + $0x16c] sm:$0xf]  ;;  %v481_v57 = vcombine.low %v278_v39, %v279_v45  ;;  %v215_v58 = vmax.bf16 %v397_v41, %v182_v46  ;;  %v118_v59 = vmax.bf16 %v351_v44, %v85_v49  ;;  %v20_v60 = vld [vmem:[%s957_s0 + $0x30] sm:$0xf] }
  0x24   :  { %v21_v61 = vld [vmem:[%s957_s0 + $0x34] sm:$0xf]  ;;  %v320_v62 = vld [vmem:[%s957_s0 + $0x70] sm:$0xf]  ;;  %v247_v63 = vmax.bf16 %v412_v42, %v214_v51  ;;  %v398_v7 = vld [vmem:[%s957_s0 + $0x1a8] sm:$0xf] }
  0x25   :  { %v150_v0 = vmax.bf16 %v366_v50, %v117_v53  ;;  %v321_v1 = vld [vmem:[%s957_s0 + $0x74] sm:$0xf]  ;;  %v53_v2 = vmax.bf16 %v320_v62, %v20_v60  ;;  %v336_v3 = vld [vmem:[%s957_s0 + $0xb0] sm:$0xf]  ;;  %482 = vst [vmem:[%s958_s1 + $0x18] sm:$0xff] %v481_v57   ;;  %v248_v5 = vmax.bf16 %v413_v47, %v215_v58  ;;  %v151_v6 = vmax.bf16 %v367_v54, %v118_v59 }
  0x26   :  { %v337_v4 = vld [vmem:[%s957_s0 + $0xb4] sm:$0xf]  ;;  %v54_v8 = vmax.bf16 %v321_v1, %v21_v61  ;;  %v352_v9 = vld [vmem:[%s957_s0 + $0xf0] sm:$0xf]  ;;  %v280_v10 = vmax.bf16 %v428_v48, %v247_v63  ;;  %v399_v12 = vld [vmem:[%s957_s0 + $0x1ac] sm:$0xf] }
  0x27   :  { %v183_v11 = vmax.bf16 %v382_v55, %v150_v0  ;;  %v414_v13 = vld [vmem:[%s957_s0 + $0x1e8] sm:$0xf]  ;;  %v86_v14 = vmax.bf16 %v336_v3, %v53_v2  ;;  %v353_v15 = vld [vmem:[%s957_s0 + $0xf4] sm:$0xf]  ;;  %v281_v16 = vmax.bf16 %v429_v52, %v248_v5  ;;  %v184_v17 = vmax.bf16 %v383_v56, %v151_v6  ;;  %v415_v18 = vld [vmem:[%s957_s0 + $0x1ec] sm:$0xf] }
  0x28   :  { %v430_v19 = vld [vmem:[%s957_s0 + $0x228] sm:$0xf]  ;;  %v87_v20 = vmax.bf16 %v337_v4, %v54_v8  ;;  %v368_v21 = vld [vmem:[%s957_s0 + $0x130] sm:$0xf]  ;;  %v431_v23 = vld [vmem:[%s957_s0 + $0x22c] sm:$0xf] }
  0x29   :  { %v216_v22 = vmax.bf16 %v398_v7, %v183_v11  ;;  %v119_v24 = vmax.bf16 %v352_v9, %v86_v14  ;;  %v369_v25 = vld [vmem:[%s957_s0 + $0x134] sm:$0xf]  ;;  %v384_v26 = vld [vmem:[%s957_s0 + $0x170] sm:$0xf]  ;;  %v483_v28 = vcombine.low %v280_v10, %v281_v16  ;;  %v217_v29 = vmax.bf16 %v399_v12, %v184_v17  ;;  %v22_v31 = vld [vmem:[%s957_s0 + $0x38] sm:$0xf] }
  0x2a   :  { %v385_v27 = vld [vmem:[%s957_s0 + $0x174] sm:$0xf]  ;;  %v120_v30 = vmax.bf16 %v353_v15, %v87_v20  ;;  %v23_v32 = vld [vmem:[%s957_s0 + $0x3c] sm:$0xf]  ;;  %v322_v33 = vld [vmem:[%s957_s0 + $0x78] sm:$0xf] }
  0x2b   :  { %v249_v34 = vmax.bf16 %v414_v13, %v216_v22  ;;  %v152_v35 = vmax.bf16 %v368_v21, %v119_v24  ;;  %v323_v36 = vld [vmem:[%s957_s0 + $0x7c] sm:$0xf]  ;;  %v55_v37 = vmax.bf16 %v322_v33, %v22_v31  ;;  %v338_v38 = vld [vmem:[%s957_s0 + $0xb8] sm:$0xf]  ;;  %484 = vst [vmem:[%s958_s1 + $0x20] sm:$0xff] %v483_v28   ;;  %v250_v40 = vmax.bf16 %v415_v18, %v217_v29 }
  0x2c   :  { %v339_v39 = vld [vmem:[%s957_s0 + $0xbc] sm:$0xf]  ;;  %v153_v41 = vmax.bf16 %v369_v25, %v120_v30  ;;  %v400_v42 = vld [vmem:[%s957_s0 + $0x1b0] sm:$0xf]  ;;  %v56_v43 = vmax.bf16 %v323_v36, %v23_v32  ;;  %v354_v44 = vld [vmem:[%s957_s0 + $0xf8] sm:$0xf] }
  0x2d   :  { %v282_v45 = vmax.bf16 %v430_v19, %v249_v34  ;;  %v185_v46 = vmax.bf16 %v384_v26, %v152_v35  ;;  %v401_v47 = vld [vmem:[%s957_s0 + $0x1b4] sm:$0xf]  ;;  %v88_v48 = vmax.bf16 %v338_v38, %v55_v37  ;;  %v355_v49 = vld [vmem:[%s957_s0 + $0xfc] sm:$0xf]  ;;  %v283_v50 = vmax.bf16 %v431_v23, %v250_v40  ;;  %v416_v52 = vld [vmem:[%s957_s0 + $0x1f0] sm:$0xf] }
  0x2e   :  { %v186_v51 = vmax.bf16 %v385_v27, %v153_v41  ;;  %v89_v53 = vmax.bf16 %v339_v39, %v56_v43  ;;  %v370_v54 = vld [vmem:[%s957_s0 + $0x138] sm:$0xf]  ;;  %v417_v56 = vld [vmem:[%s957_s0 + $0x1f4] sm:$0xf]  ;;  %v371_v58 = vld [vmem:[%s957_s0 + $0x13c] sm:$0xf] }
  0x2f   :  { %v218_v55 = vmax.bf16 %v400_v42, %v185_v46  ;;  %v121_v57 = vmax.bf16 %v354_v44, %v88_v48  ;;  %v485_v59 = vcombine.low %v282_v45, %v283_v50  ;;  %v432_v61 = vld [vmem:[%s957_s0 + $0x230] sm:$0xf]  ;;  %v386_v63 = vld [vmem:[%s957_s0 + $0x178] sm:$0xf]  ;;  %v433_v1 = vld [vmem:[%s957_s0 + $0x234] sm:$0xf] }
  0x30   :  { %v219_v60 = vmax.bf16 %v401_v47, %v186_v51  ;;  %v122_v62 = vmax.bf16 %v355_v49, %v89_v53  ;;  %v387_v3 = vld [vmem:[%s957_s0 + $0x17c] sm:$0xf]  ;;  %v402_v6 = vld [vmem:[%s957_s0 + $0x1b8] sm:$0xf] }
  0x31   :  { %v251_v0 = vmax.bf16 %v416_v52, %v218_v55  ;;  %v154_v2 = vmax.bf16 %v370_v54, %v121_v57  ;;  %486 = vst [vmem:[%s958_s1 + $0x28] sm:$0xff] %v485_v59   ;;  %v403_v9 = vld [vmem:[%s957_s0 + $0x1bc] sm:$0xf]  ;;  %v418_v12 = vld [vmem:[%s957_s0 + $0x1f8] sm:$0xf] }
  0x32   :  { %v252_v4 = vmax.bf16 %v417_v56, %v219_v60  ;;  %v155_v5 = vmax.bf16 %v371_v58, %v122_v62  ;;  %v419_v14 = vld [vmem:[%s957_s0 + $0x1fc] sm:$0xf]  ;;  %v434_v17 = vld [vmem:[%s957_s0 + $0x238] sm:$0xf] }
  0x33   :  { %v284_v7 = vmax.bf16 %v432_v61, %v251_v0  ;;  %v187_v8 = vmax.bf16 %v386_v63, %v154_v2  ;;  %v435_v19 = vld [vmem:[%s957_s0 + $0x23c] sm:$0xf] }
  0x34   :  { %v285_v10 = vmax.bf16 %v433_v1, %v252_v4  ;;  %v188_v11 = vmax.bf16 %v387_v3, %v155_v5 }
  0x35   :  { %v220_v13 = vmax.bf16 %v402_v6, %v187_v8 }
  0x36   :  { %v487_v15 = vcombine.low %v284_v7, %v285_v10  ;;  %v221_v16 = vmax.bf16 %v403_v9, %v188_v11 }
  0x37   :  { %v253_v18 = vmax.bf16 %v418_v12, %v220_v13 }
  0x38   :  { %488 = vst [vmem:[%s958_s1 + $0x30] sm:$0xff] %v487_v15   ;;  %v254_v20 = vmax.bf16 %v419_v14, %v221_v16 }
  0x39   :  { %v286_v21 = vmax.bf16 %v434_v17, %v253_v18 }
  0x3a   :  { %v287_v22 = vmax.bf16 %v435_v19, %v254_v20 }
  0x3c   :  { %v489_v23 = vcombine.low %v286_v21, %v287_v22 }
  0x3e   :  { %490 = vst [vmem:[%s958_s1 + $0x38] sm:$0xff] %v489_v23  }

// kernel: resnet_forward.8
= control target key start
LH: loop header
LB: loop body
LE: loop exit
PB: predicated region body
PF: predicated region fallthrough
CT: control target
= control target key end

     0   :  { %s2077_s12 = smov 0   ;;  %s2079_s13 = smov 0   ;;  %s2437_s0 = inlined_call_operand.vmem [shape: bf16[128,1152], index: 0, kind: input, shape index: {}]   ;;  %s2438_s1 = inlined_call_operand.vmem [shape: bf16[1152,128], index: 1, kind: input, shape index: {}]   ;;  %s2439_s2 = inlined_call_operand.vmem [shape: f32[1,128], index: 2, kind: input, shape index: {}]   ;;  %s2440_s3 = inlined_call_operand.vmem [shape: bf16[128,128], index: 3, kind: output, shape index: {}]  }
   0x1   :  { %s2081_s14 = smov 0  }
   0x2 LB: > { %s25_s15 = sadd.s32 1, %s2051_s13  ;;  %p1517_p0 = scmp.ge.s32.totalorder %s2055_s14, 1  ;;  %s2055_s14 = sphi %s2081_s14, %s13_s14   ;;  %s2051_s13 = sphi %s2079_s13, %s2452_s13   ;;  %s2047_s12 = sphi %s2077_s12, %s2451_s12  }
   0x3   : > { %p27_p1 = scmp.ge.s32.totalorder %s25_s15, 2  ;;  %p170_p2 = scmp.lt.s32.totalorder %s2055_s14, 3 }
   0x5   : > { %s2454_s15 = smov (%p27_p1, %s25_s15), 0  ;;  %p171_p3 = pnand %p1517_p0, %p170_p2 }
   0x7   : > { %174 = sbr.rel (%p171_p3) target bundleno = 318 (0x13e), region = 32 }
   0xc   : > { %v1909_v0 = vld [vmem:[%s2438_s1 + $0x78] sm:$0xff]   ;;  %v1913_v4 = vld [vmem:[%s2438_s1 + $0x70] sm:$0xff]   ;;  %v1917_v8 = vld [vmem:[%s2438_s1 + $0x68] sm:$0xff]   ;;  %s1518_s23 = sshll.u32 %s2047_s12, 3 }
   0xd   : > { %v1910_v1 = vld [vmem:[%s2438_s1 + $0xf8] sm:$0xff]   ;;  %1672 = vmatprep.subr.bf16.mxu0 %v1909_v0  ;;  %v1914_v5 = vld [vmem:[%s2438_s1 + $0xf0] sm:$0xff]   ;;  %v1918_v9 = vld [vmem:[%s2438_s1 + $0xe8] sm:$0xff]   ;;  %p206_p4 = scmp.lt.s32.totalorder %s1518_s23, 15 }
   0xe   : > { %v1911_v2 = vld [vmem:[%s2438_s1 + $0x38] sm:$0xff]   ;;  %1712 = vmatprep.subr.bf16.mxu1 %v1910_v1  ;;  %v1915_v6 = vld [vmem:[%s2438_s1 + $0x30] sm:$0xff]   ;;  %v1919_v10 = vld [vmem:[%s2438_s1 + $0x28] sm:$0xff]  }
   0xf   : > { %v1912_v3 = vld [vmem:[%s2438_s1 + $0xb8] sm:$0xff]   ;;  %1673 = vmatpush3.bf16.msra.mxu0 %v1911_v2  ;;  %v1916_v7 = vld [vmem:[%s2438_s1 + $0xb0] sm:$0xff]   ;;  %v1920_v11 = vld [vmem:[%s2438_s1 + $0xa8] sm:$0xff]   ;;  %s2456_s23 = smov (!%p206_p4, %s1518_s23), 15 }
  0x10   : > { %1713 = vmatpush3.bf16.msra.mxu1 %v1912_v3  ;;  %1674 = vmatprep.subr.bf16.mxu0 %v1913_v4  ;;  %v1921_v12 = vld [vmem:[%s2438_s1 + $0x60] sm:$0xff]   ;;  %v1925_v16 = vld [vmem:[%s2438_s1 + $0x58] sm:$0xff]   ;;  %v1929_v20 = vld [vmem:[%s2438_s1 + $0x50] sm:$0xff]   ;;  %s1884_s22 = smul.u32 36, %s2456_s23  ;;  %s1521_s4 = sshll.u32 %s2456_s23, 2 }
  0x11   : > { %1714 = vmatprep.subr.bf16.mxu1 %v1914_v5  ;;  %v1922_v13 = vld [vmem:[%s2438_s1 + $0xe0] sm:$0xff]   ;;  %v1926_v17 = vld [vmem:[%s2438_s1 + $0xd8] sm:$0xff]   ;;  %v1930_v21 = vld [vmem:[%s2438_s1 + $0xd0] sm:$0xff]   ;;  %s226_s7 = scalar_lea.vmem %s2440_s3, %s1521_s4 }
  0x12   : > { %v1923_v14 = vld [vmem:[%s2438_s1 + $0x20] sm:$0xff]   ;;  %v1927_v18 = vld [vmem:[%s2438_s1 + $0x18] sm:$0xff]   ;;  %v1931_v22 = vld [vmem:[%s2438_s1 + $0x10] sm:$0xff]   ;;  %s2194_s6 = scalar_lea.vmem %s2437_s0, %s1884_s22 }
  0x13   : > { %1675 = vmatpush3.bf16.msra.mxu0 %v1915_v6  ;;  %v1924_v15 = vld [vmem:[%s2438_s1 + $0xa0] sm:$0xff]   ;;  %v1928_v19 = vld [vmem:[%s2438_s1 + $0x98] sm:$0xff]   ;;  %v1932_v23 = vld [vmem:[%s2438_s1 + $0x90] sm:$0xff]  }
  0x14   : > { %1715 = vmatpush3.bf16.msra.mxu1 %v1916_v7  ;;  %1676 = vmatprep.subr.bf16.mxu0 %v1917_v8  ;;  %v1933_v24 = vld [vmem:[%s2438_s1 + $0x48] sm:$0xff]   ;;  %v1937_v28 = vld [vmem:[%s2438_s1 + $0x40] sm:$0xff]   ;;  %v1947_v36 = vld [vmem:[%s2438_s1 + $0x178] sm:$0xff]  }
  0x15   : > { %1716 = vmatprep.subr.bf16.mxu1 %v1918_v9  ;;  %v1934_v25 = vld [vmem:[%s2438_s1 + $0xc8] sm:$0xff]   ;;  %v1938_v29 = vld [vmem:[%s2438_s1 + $0xc0] sm:$0xff]   ;;  %v1948_v37 = vld [vmem:[%s2438_s1 + $0x1f8] sm:$0xff]  }
  0x16   : > { %v1935_v26 = vld [vmem:[%s2438_s1 + $0x8] sm:$0xff]   ;;  %v1939_v30 = vld [vmem:[%s2438_s1] sm:$0xff]   ;;  %v1949_v38 = vld [vmem:[%s2438_s1 + $0x138] sm:$0xff]  }
  0x17   : > { %1677 = vmatpush3.bf16.msra.mxu0 %v1919_v10  ;;  %v1936_v27 = vld [vmem:[%s2438_s1 + $0x88] sm:$0xff]   ;;  %v1940_v31 = vld [vmem:[%s2438_s1 + $0x80] sm:$0xff]   ;;  %v1950_v39 = vld [vmem:[%s2438_s1 + $0x1b8] sm:$0xff]  }
  0x18   : > { %1717 = vmatpush3.bf16.msra.mxu1 %v1920_v11  ;;  %1678 = vmatprep.subr.bf16.mxu0 %v1921_v12  ;;  %v1941_v32 = vld [vmem:[%s2194_s6] ss:$36 sps:$4 sm:$0xff]   ;;  %v1944_v34 = vld [vmem:[%s2194_s6 + $0x8] ss:$36 sps:$4 sm:$0xff]   ;;  %v1951_v40 = vld [vmem:[%s2438_s1 + $0x170] sm:$0xff]  }
  0x19   : > { %1718 = vmatprep.subr.bf16.mxu1 %v1922_v13  ;;  %v1943_v33 = vld [vmem:[%s2194_s6 + $0x4] ss:$36 sps:$4 sm:$0xff]   ;;  %v1946_v35 = vld [vmem:[%s2194_s6 + $0xc] ss:$36 sps:$4 sm:$0xff]   ;;  %v1957_v45 = vld [vmem:[%s2194_s6 + $0x54] ss:$36 sps:$4 sm:$0xff]  }
  0x1a   : > { %1068 = vmatprep.mubr.bf16.mxu0 %v1943_v33  ;;  %1133 = vmatprep.mubr.bf16.mxu1 %v1946_v35  ;;  %v1952_v41 = vld [vmem:[%s2438_s1 + $0x1f0] sm:$0xff]   ;;  %v1959_v46 = vld [vmem:[%s2194_s6 + $0x48] ss:$36 sps:$4 sm:$0xff]   ;;  %v1965_v52 = vld [vmem:[%s2438_s1 + $0x160] sm:$0xff]  }
  0x1b   : > { %1679 = vmatpush3.bf16.msra.mxu0 %v1923_v14  ;;  %v1953_v42 = vld [vmem:[%s2438_s1 + $0x130] sm:$0xff]   ;;  %v1961_v48 = vld [vmem:[%s2438_s1 + $0x168] sm:$0xff]   ;;  %v1966_v53 = vld [vmem:[%s2438_s1 + $0x1e0] sm:$0xff]  }
  0x1c   : > { %1719 = vmatpush3.bf16.msra.mxu1 %v1924_v15  ;;  %1680 = vmatprep.subr.bf16.mxu0 %v1925_v16  ;;  %v1954_v43 = vld [vmem:[%s2438_s1 + $0x1b0] sm:$0xff]   ;;  %v1962_v49 = vld [vmem:[%s2438_s1 + $0x1e8] sm:$0xff]   ;;  %v1967_v54 = vld [vmem:[%s2438_s1 + $0x120] sm:$0xff]  }
  0x1d   : > { %1720 = vmatprep.subr.bf16.mxu1 %v1926_v17  ;;  %v1955_v44 = vld [vmem:[%s2194_s6 + $0x4c] ss:$36 sps:$4 sm:$0xff]   ;;  %v1968_v55 = vld [vmem:[%s2438_s1 + $0x1a0] sm:$0xff]   ;;  %v1969_v56 = vld [vmem:[%s2194_s6 + $0x94] ss:$36 sps:$4 sm:$0xff]  }
  0x1e   : > { %v1960_v47 = vld [vmem:[%s2194_s6 + $0x50] ss:$36 sps:$4 sm:$0xff]   ;;  %v1963_v50 = vld [vmem:[%s2438_s1 + $0x128] sm:$0xff]   ;;  %v1971_v57 = vld [vmem:[%s2194_s6 + $0x9c] ss:$36 sps:$4 sm:$0xff]  }
  0x1f   : > { %1681 = vmatpush3.bf16.msra.mxu0 %v1927_v18  ;;  %v1964_v51 = vld [vmem:[%s2438_s1 + $0x1a8] sm:$0xff]   ;;  %v1973_v58 = vld [vmem:[%s2194_s6 + $0x90] ss:$36 sps:$4 sm:$0xff]   ;;  %v1974_v59 = vld [vmem:[%s2194_s6 + $0x98] ss:$36 sps:$4 sm:$0xff]  }
  0x20   : > { %1721 = vmatpush3.bf16.msra.mxu1 %v1928_v19  ;;  %1682 = vmatprep.subr.bf16.mxu0 %v1929_v20  ;;  %v1975_v60 = vld [vmem:[%s2438_s1 + $0x158] sm:$0xff]   ;;  %v1979_v0 = vld [vmem:[%s2438_s1 + $0x150] sm:$0xff]   ;;  %v1985_v5 = vld [vmem:[%s2194_s6 + $0xe4] ss:$36 sps:$4 sm:$0xff]  }
  0x21   : > { %1722 = vmatprep.subr.bf16.mxu1 %v1930_v21  ;;  %v1976_v61 = vld [vmem:[%s2438_s1 + $0x1d8] sm:$0xff]   ;;  %v1980_v1 = vld [vmem:[%s2438_s1 + $0x1d0] sm:$0xff]   ;;  %v1988_v7 = vld [vmem:[%s2194_s6 + $0xe0] ss:$36 sps:$4 sm:$0xff]  }
  0x22   : > { %v1977_v62 = vld [vmem:[%s2438_s1 + $0x118] sm:$0xff]   ;;  %v1981_v2 = vld [vmem:[%s2438_s1 + $0x110] sm:$0xff]   ;;  %v1989_v8 = vld [vmem:[%s2438_s1 + $0x148] sm:$0xff]  }
  0x23   : > { %1683 = vmatpush3.bf16.msra.mxu0 %v1931_v22  ;;  %v1978_v63 = vld [vmem:[%s2438_s1 + $0x198] sm:$0xff]   ;;  %v1982_v3 = vld [vmem:[%s2438_s1 + $0x190] sm:$0xff]   ;;  %v1990_v9 = vld [vmem:[%s2438_s1 + $0x1c8] sm:$0xff]  }
  0x24   : > { %1723 = vmatpush3.bf16.msra.mxu1 %v1932_v23  ;;  %1684 = vmatprep.subr.bf16.mxu0 %v1933_v24  ;;  %v1983_v4 = vld [vmem:[%s2194_s6 + $0xdc] ss:$36 sps:$4 sm:$0xff]   ;;  %v1991_v10 = vld [vmem:[%s2438_s1 + $0x108] sm:$0xff]   ;;  %v1997_v16 = vld [vmem:[%s2194_s6 + $0x10] ss:$36 sps:$4 sm:$0xff]  }
  0x25   : > { %1724 = vmatprep.subr.bf16.mxu1 %v1934_v25  ;;  %v1987_v6 = vld [vmem:[%s2194_s6 + $0xd8] ss:$36 sps:$4 sm:$0xff]   ;;  %v1992_v11 = vld [vmem:[%s2438_s1 + $0x188] sm:$0xff]   ;;  %v1993_v12 = vld [vmem:[%s2438_s1 + $0x140] sm:$0xff]  }
  0x26   : > { %v1994_v13 = vld [vmem:[%s2438_s1 + $0x1c0] sm:$0xff]   ;;  %v1999_v17 = vld [vmem:[%s2194_s6 + $0x14] ss:$36 sps:$4 sm:$0xff]   ;;  %v2021_v33 = vld [vmem:[%s2194_s6 + $0xec] ss:$36 sps:$4 sm:$0xff]  }
  0x27   : > { %1685 = vmatpush3.bf16.msra.mxu0 %v1935_v26  ;;  %v1995_v14 = vld [vmem:[%s2438_s1 + $0x100] sm:$0xff]   ;;  %v2000_v18 = vld [vmem:[%s2194_s6 + $0x18] ss:$36 sps:$4 sm:$0xff]   ;;  %v2004_v21 = vld [vmem:[%s2438_s1 + $0x230] sm:$0xff]  }
  0x28   : > { %1725 = vmatpush3.bf16.msra.mxu1 %v1936_v27  ;;  %1686 = vmatprep.subr.bf16.mxu0 %v1937_v28  ;;  %v1996_v15 = vld [vmem:[%s2438_s1 + $0x180] sm:$0xff]   ;;  %v2003_v20 = vld [vmem:[%s2438_s1 + $0x238] sm:$0xff]   ;;  %v2011_v26 = vld [vmem:[%s2438_s1 + $0x228] sm:$0xff]  }
  0x29   : > { %1726 = vmatprep.subr.bf16.mxu1 %v1938_v29  ;;  %v2002_v19 = vld [vmem:[%s2194_s6 + $0x1c] ss:$36 sps:$4 sm:$0xff]   ;;  %v2007_v23 = vld [vmem:[%s2194_s6 + $0x64] ss:$36 sps:$4 sm:$0xff]   ;;  %v2015_v28 = vld [vmem:[%s2194_s6 + $0xac] ss:$36 sps:$4 sm:$0xff]  }
  0x2a   : > { %v2005_v22 = vld [vmem:[%s2194_s6 + $0x5c] ss:$36 sps:$4 sm:$0xff]   ;;  %v2013_v27 = vld [vmem:[%s2194_s6 + $0xa4] ss:$36 sps:$4 sm:$0xff]   ;;  %v2020_v35 = vld [vmem:[%s2438_s1 + $0x210] sm:$0xff]  }
  0x2b   : > { %1687 = vmatpush3.bf16.msra.mxu0 %v1939_v30  ;;  %v2009_v24 = vld [vmem:[%s2194_s6 + $0x58] ss:$36 sps:$4 sm:$0xff]   ;;  %v2010_v25 = vld [vmem:[%s2194_s6 + $0x60] ss:$36 sps:$4 sm:$0xff]  }
  0x2c   : > { %1727 = vmatpush3.bf16.msra.mxu1 %v1940_v31  ;;  %1752 = vmatprep.subr.bf16.mxu0 %v1947_v36  ;;  %v2012_v29 = vld [vmem:[%s2438_s1 + $0x220] sm:$0xff]   ;;  %v2018_v31 = vld [vmem:[%s2194_s6 + $0xa8] ss:$36 sps:$4 sm:$0xff]  }
  0x2d   : > { %1792 = vmatprep.subr.bf16.mxu1 %v1948_v37  ;;  %v2017_v30 = vld [vmem:[%s2194_s6 + $0xa0] ss:$36 sps:$4 sm:$0xff]   ;;  %v2025_v36 = vld [vmem:[%s2194_s6 + $0xe8] ss:$36 sps:$4 sm:$0xff]  }
  0x2e   : > { %1069 = vmatmul.mubr.bf16.vlgmr.msra.gmra.mxu0 %v1941_v32  ;;  %v2019_v32 = vld [vmem:[%s2438_s1 + $0x218] sm:$0xff]   ;;  %v2027_v37 = vld [vmem:[%s2438_s1 + $0x208] sm:$0xff]  }
  0x2f   : > { %1134 = vmatmul.mubr.bf16.vlgmr.msra.gmra.mxu1 %v1944_v34  ;;  %1753 = vmatpush3.bf16.msra.mxu0 %v1949_v38  ;;  %v2023_v34 = vld [vmem:[%s2194_s6 + $0xf4] ss:$36 sps:$4 sm:$0xff]  }
  0x30   : > { %1793 = vmatpush3.bf16.msra.mxu1 %v1950_v39  ;;  %1754 = vmatprep.subr.bf16.mxu0 %v1951_v40  ;;  %v2026_v38 = vld [vmem:[%s2194_s6 + $0xf0] ss:$36 sps:$4 sm:$0xff]   ;;  %v2029_v39 = vld [vmem:[%s2194_s6 + $0x20] ss:$36 sps:$4 sm:$0xff]  }
  0x31   : > { %1794 = vmatprep.subr.bf16.mxu1 %v1952_v41  ;;  %1076 = vmatprep.mubr.bf16.mxu0 %v1955_v44  ;;  %v2030_v40 = vld [vmem:[%s2194_s6 + $0xb0] ss:$36 sps:$4 sm:$0xff]   ;;  %v2028_v41 = vld [vmem:[%s2438_s1 + $0x200] sm:$0xff]  }
  0x32   : > { %1141 = vmatprep.mubr.bf16.mxu1 %v1957_v45 }
  0x33   : > { %1755 = vmatpush3.bf16.msra.mxu0 %v1953_v42  ;;  %v2031_v42 = vld [vmem:[%s2194_s6 + $0x68] ss:$36 sps:$4 sm:$0xff]  }
  0x34   : > { %1795 = vmatpush3.bf16.msra.mxu1 %v1954_v43  ;;  %1756 = vmatprep.subr.bf16.mxu0 %v1961_v48  ;;  %v2032_v43 = vld [vmem:[%s2194_s6 + $0xf8] ss:$36 sps:$4 sm:$0xff]  }
  0x35   : > { %1796 = vmatprep.subr.bf16.mxu1 %v1962_v49 }
  0x36   : > { %1077 = vmatmul.mubr.bf16.gmra.mxu0 %v1959_v46 }
  0x37   : > { %1142 = vmatmul.mubr.bf16.gmra.mxu1 %v1960_v47  ;;  %1757 = vmatpush3.bf16.msra.mxu0 %v1963_v50 }
  0x38   : > { %1797 = vmatpush3.bf16.msra.mxu1 %v1964_v51  ;;  %1758 = vmatprep.subr.bf16.mxu0 %v1965_v52 }
  0x39   : > { %1798 = vmatprep.subr.bf16.mxu1 %v1966_v53  ;;  %1084 = vmatprep.mubr.bf16.mxu0 %v1969_v56 }
  0x3a   : > { %1149 = vmatprep.mubr.bf16.mxu1 %v1971_v57 }
  0x3b   : > { %1759 = vmatpush3.bf16.msra.mxu0 %v1967_v54 }
  0x3c   : > { %1799 = vmatpush3.bf16.msra.mxu1 %v1968_v55  ;;  %1760 = vmatprep.subr.bf16.mxu0 %v1975_v60 }
  0x3d   : > { %1800 = vmatprep.subr.bf16.mxu1 %v1976_v61 }
  0x3e   : > { %1085 = vmatmul.mubr.bf16.gmra.mxu0 %v1973_v58 }
  0x3f   : > { %1150 = vmatmul.mubr.bf16.gmra.mxu1 %v1974_v59  ;;  %1761 = vmatpush3.bf16.msra.mxu0 %v1977_v62 }
  0x40   : > { %1801 = vmatpush3.bf16.msra.mxu1 %v1978_v63  ;;  %1762 = vmatprep.subr.bf16.mxu0 %v1979_v0 }
  0x41   : > { %1802 = vmatprep.subr.bf16.mxu1 %v1980_v1  ;;  %1092 = vmatprep.mubr.bf16.mxu0 %v1983_v4 }
  0x42   : > { %1157 = vmatprep.mubr.bf16.mxu1 %v1985_v5 }
  0x43   : > { %1763 = vmatpush3.bf16.msra.mxu0 %v1981_v2 }
  0x44   : > { %1803 = vmatpush3.bf16.msra.mxu1 %v1982_v3  ;;  %1764 = vmatprep.subr.bf16.mxu0 %v1989_v8 }
  0x45   : > { %1804 = vmatprep.subr.bf16.mxu1 %v1990_v9 }
  0x46   : > { %1093 = vmatmul.mubr.bf16.gmra.mxu0 %v1987_v6 }
  0x47   : > { %1158 = vmatmul.mubr.bf16.gmra.mxu1 %v1988_v7  ;;  %1765 = vmatpush3.bf16.msra.mxu0 %v1991_v10 }
  0x48   : > { %1805 = vmatpush3.bf16.msra.mxu1 %v1992_v11  ;;  %1766 = vmatprep.subr.bf16.mxu0 %v1993_v12 }
  0x49   : > { %1806 = vmatprep.subr.bf16.mxu1 %v1994_v13  ;;  %1198 = vmatprep.mubr.bf16.mxu0 %v1999_v17 }
  0x4a   : > { %1263 = vmatprep.mubr.bf16.mxu1 %v2002_v19 }
  0x4b   : > { %1767 = vmatpush3.bf16.msra.mxu0 %v1995_v14 }
  0x4c   : > { %1807 = vmatpush3.bf16.msra.mxu1 %v1996_v15  ;;  %1844 = vmatprep.subr.bf16.mxu0 %v2003_v20 }
  0x4d   : > { %1868 = vmatprep.subr.bf16.mxu1 %v2003_v20 }
  0x4e   : > { %1199 = vmatmul.mubr.bf16.vlgmr.msra.gmra.mxu0 %v1997_v16 }
  0x4f   : > { %1264 = vmatmul.mubr.bf16.vlgmr.msra.gmra.mxu1 %v2000_v18  ;;  %1845 = vmatpush3.bf16.msra.mxu0 %v2003_v20 }
  0x50   : > { %1876 = vmatpush3.bf16.msra.mxu1 %v2003_v20  ;;  %1846 = vmatprep.subr.bf16.mxu0 %v2004_v21 }
  0x51   : > { %1869 = vmatprep.subr.bf16.mxu1 %v2004_v21  ;;  %1206 = vmatprep.mubr.bf16.mxu0 %v2005_v22 }
  0x52   : > { %1271 = vmatprep.mubr.bf16.mxu1 %v2007_v23 }
  0x53   : > { %1847 = vmatpush3.bf16.msra.mxu0 %v2004_v21 }
  0x54   : > { %1877 = vmatpush3.bf16.msra.mxu1 %v2004_v21  ;;  %1848 = vmatprep.subr.bf16.mxu0 %v2011_v26 }
  0x55   : > { %1870 = vmatprep.subr.bf16.mxu1 %v2011_v26 }
  0x56   : > { %1207 = vmatmul.mubr.bf16.gmra.mxu0 %v2009_v24 }
  0x57   : > { %1272 = vmatmul.mubr.bf16.gmra.mxu1 %v2010_v25  ;;  %1214 = vmatprep.mubr.bf16.mxu0 %v2013_v27 }
  0x58   : > { %1849 = vmatpush3.bf16.msra.mxu0 %v2011_v26  ;;  %1279 = vmatprep.mubr.bf16.mxu1 %v2015_v28 }
  0x59   : > { %1878 = vmatpush3.bf16.msra.mxu1 %v2011_v26  ;;  %1850 = vmatprep.subr.bf16.mxu0 %v2012_v29 }
  0x5a   : > { %1871 = vmatprep.subr.bf16.mxu1 %v2012_v29 }
  0x5c   : > { %1851 = vmatpush3.bf16.msra.mxu0 %v2012_v29 }
  0x5d   : > { %1879 = vmatpush3.bf16.msra.mxu1 %v2012_v29  ;;  %1852 = vmatprep.subr.bf16.mxu0 %v2019_v32 }
  0x5e   : > { %1215 = vmatmul.mubr.bf16.gmra.mxu0 %v2017_v30  ;;  %1872 = vmatprep.subr.bf16.mxu1 %v2019_v32  ;;  %v1522_v30 = vld [vmem:[%s2439_s2] ss:$0 sm:$0xff] }
  0x5f   : > { %1280 = vmatmul.mubr.bf16.gmra.mxu1 %v2018_v31  ;;  %1222 = vmatprep.mubr.bf16.mxu0 %v2021_v33 }
  0x60   : > { %1853 = vmatpush3.bf16.msra.mxu0 %v2019_v32  ;;  %1287 = vmatprep.mubr.bf16.mxu1 %v2023_v34 }
  0x61   : > { %1880 = vmatpush3.bf16.msra.mxu1 %v2019_v32  ;;  %1854 = vmatprep.subr.bf16.mxu0 %v2020_v35 }
  0x62   : > { %1873 = vmatprep.subr.bf16.mxu1 %v2020_v35 }
  0x64   : > { %1855 = vmatpush3.bf16.msra.mxu0 %v2020_v35 }
  0x65   : > { %1881 = vmatpush3.bf16.msra.mxu1 %v2020_v35  ;;  %1856 = vmatprep.subr.bf16.mxu0 %v2027_v37 }
  0x66   : > { %1223 = vmatmul.mubr.bf16.gmra.mxu0 %v2025_v36  ;;  %1874 = vmatprep.subr.bf16.mxu1 %v2027_v37 }
  0x67   : > { %1288 = vmatmul.mubr.bf16.gmra.mxu1 %v2026_v38  ;;  %1860 = vmatprep.mubr.bf16.mxu0 %v2029_v39 }
  0x68   : > { %1857 = vmatpush3.bf16.msra.mxu0 %v2027_v37  ;;  %1864 = vmatprep.mubr.bf16.mxu1 %v2030_v40 }
  0x69   : > { %1882 = vmatpush3.bf16.msra.mxu1 %v2027_v37  ;;  %1858 = vmatprep.subr.bf16.mxu0 %v2028_v41 }
  0x6a   : > { %1875 = vmatprep.subr.bf16.mxu1 %v2028_v41 }
  0x6c   : > { %1859 = vmatpush3.bf16.msra.mxu0 %v2028_v41 }
  0x6d   : > { %1883 = vmatpush3.bf16.msra.mxu1 %v2028_v41 }
  0x6f   : > { %1861 = vmatmul.mubr.bf16.vlgmr.msra.gmra.mxu0 %v2031_v42 }
  0x70   : > { %1865 = vmatmul.mubr.bf16.vlgmr.msra.gmra.mxu1 %v2032_v43 }
  0xee   : > { %v1688_v44 = vpop.f32.mrf.mxu0 }
  0xef   : > { %v1728_v45 = vpop.f32.mrf.mxu1 }
  0xf0   : > { %v1689_v46 = vpop.f32.mrf.mxu0 }
  0xf1   : > { %v1729_v47 = vpop.f32.mrf.mxu1  ;;  %v1690_v29 = vadd.f32 %v1689_v46, %v1688_v44 }
  0xf2   : > { %v1691_v48 = vpop.f32.mrf.mxu0  ;;  %v1730_v42 = vadd.f32 %v1729_v47, %v1728_v45 }
  0xf3   : > { %v2358_v49 = vpop.f32.mrf.mxu1  ;;  %v1071_v38 = vadd.f32 %v1690_v29, %v1522_v30 }
  0xf4   : > { %v1692_v50 = vpop.f32.mrf.mxu0 }
  0xf5   : > { %v2360_v51 = vpop.f32.mrf.mxu1  ;;  %v1693_v33 = vadd.f32 %v1692_v50, %v1691_v48 }
  0xf6   : > { %v1694_v52 = vpop.f32.mrf.mxu0  ;;  %v1733_v50 = vadd.f32 %v2360_v51, %v2358_v49 }
  0xf7   : > { %v2362_v53 = vpop.f32.mrf.mxu1  ;;  %v1074_v44 = vadd.f32 %v1693_v33, %v1522_v30 }
  0xf8   : > { %v1695_v54 = vpop.f32.mrf.mxu0 }
  0xf9   : > { %v1735_v55 = vpop.f32.mrf.mxu1  ;;  %v1696_v34 = vadd.f32 %v1695_v54, %v1694_v52 }
  0xfa   : > { %v1697_v56 = vpop.f32.mrf.mxu0  ;;  %v1736_v52 = vadd.f32 %v1735_v55, %v2362_v53 }
  0xfb   : > { %v2364_v57 = vpop.f32.mrf.mxu1  ;;  %v1079_v46 = vadd.f32 %v1696_v34, %v1522_v30 }
  0xfc   : > { %v1698_v58 = vpop.f32.mrf.mxu0 }
  0xfd   : > { %v2366_v59 = vpop.f32.mrf.mxu1  ;;  %v1699_v39 = vadd.f32 %v1698_v58, %v1697_v56 }
  0xfe   : > { %v1700_v60 = vpop.f32.mrf.mxu0  ;;  %v1739_v45 = vadd.f32 %v2366_v59, %v2364_v57 }
  0xff   : > { %v2368_v61 = vpop.f32.mrf.mxu1  ;;  %v1082_v48 = vadd.f32 %v1699_v39, %v1522_v30 }
 0x100   : > { %v1701_v62 = vpop.f32.mrf.mxu0 }
 0x101   : > { %v2370_v63 = vpop.f32.mrf.mxu1 }
 0x102   : > { %v1703_v0 = vpop.f32.mrf.mxu0  ;;  %v1742_v55 = vadd.f32 %v2370_v63, %v2368_v61 }
 0x103   : > { %v2372_v1 = vpop.f32.mrf.mxu1 }
 0x104   : > { %v1704_v2 = vpop.f32.mrf.mxu0 }
 0x105   : > { %v2374_v3 = vpop.f32.mrf.mxu1  ;;  %v1705_v54 = vadd.f32 %v1704_v2, %v1703_v0 }
 0x106   : > { %v1706_v4 = vpop.f32.mrf.mxu0 }
 0x107   : > { %v1746_v5 = vpop.f32.mrf.mxu1  ;;  %v1090_v0 = vadd.f32 %v1705_v54, %v1522_v30 }
 0x108   : > { %v1707_v6 = vpop.f32.mrf.mxu0 }
 0x109   : > { %v1747_v7 = vpop.f32.mrf.mxu1  ;;  %v1708_v35 = vadd.f32 %v1707_v6, %v1706_v4 }
 0x10a   : > { %v1709_v8 = vpop.f32.mrf.mxu0  ;;  %v1748_v56 = vadd.f32 %v1747_v7, %v1746_v5 }
 0x10b   : > { %v1749_v9 = vpop.f32.mrf.mxu1 }
 0x10c   : > { %v1710_v10 = vpop.f32.mrf.mxu0 }
 0x10d   : > { %v1750_v11 = vpop.f32.mrf.mxu1  ;;  %v1711_v43 = vadd.f32 %v1710_v10, %v1709_v8  ;;  %v1144_v8 = vadd.f32 %v1736_v52, %v1079_v46 }
 0x10e   : > { %v1768_v12 = vpop.f32.mrf.mxu0  ;;  %v1751_v49 = vadd.f32 %v1750_v11, %v1749_v9 }
 0x10f   : > { %v2376_v13 = vpop.f32.mrf.mxu1  ;;  %v1098_v47 = vadd.f32 %v1711_v43, %v1522_v30 }
 0x110   : > { %v1769_v14 = vpop.f32.mrf.mxu0 }
 0x111   : > { %v2378_v15 = vpop.f32.mrf.mxu1  ;;  %v1770_v51 = vadd.f32 %v1769_v14, %v1768_v12  ;;  %v1163_v7 = vadd.f32 %v1751_v49, %v1098_v47 }
 0x112   : > { %v2380_v16 = vpop.f32.mrf.mxu0 }
 0x113   : > { %v2382_v17 = vpop.f32.mrf.mxu1 }
 0x114   : > { %2441 = vst [vmem:[#allocation2_spill] sm:$0xff] %v2382_v17  ;;  %v1772_v18 = vpop.f32.mrf.mxu0  ;;  %v1095_v17 = vadd.f32 %v1708_v35, %v1522_v30  ;;  %v1147_v35 = vadd.f32 %v1739_v45, %v1082_v48 }
 0x115   : > { %v2384_v19 = vpop.f32.mrf.mxu1 }
 0x116   : > { %2442 = vst [vmem:[#allocation3_spill] sm:$0xff] %v2384_v19  ;;  %v1774_v20 = vpop.f32.mrf.mxu0  ;;  %v1702_v19 = vadd.f32 %v1701_v62, %v1700_v60  ;;  %v1139_v62 = vadd.f32 %v1733_v50, %v1074_v44  ;;  %v1160_v29 = vadd.f32 %v1748_v56, %v1095_v17 }
 0x117   : > { %v2386_v21 = vpop.f32.mrf.mxu1 }
 0x118   : > { %v1775_v22 = vpop.f32.mrf.mxu0  ;;  %v1087_v10 = vadd.f32 %v1702_v19, %v1522_v30 }
 0x119   : > { %v2388_v23 = vpop.f32.mrf.mxu1  ;;  %v1776_v6 = vadd.f32 %v1775_v22, %v1774_v20  ;;  %v1773_v20 = vadd.f32 %v1772_v18, %v2380_v16  ;;  %v1810_v18 = vadd.f32 %v2378_v15, %v2376_v13 }
 0x11a   : > { %v1777_v24 = vpop.f32.mrf.mxu0  ;;  %v1152_v17 = vadd.f32 %v1742_v55, %v1087_v10  ;;  %v1816_v61 = vadd.f32 %v2388_v23, %v2386_v21 }
 0x11b   : > { %v2390_v25 = vpop.f32.mrf.mxu1  ;;  %v1209_v22 = vadd.f32 %v1776_v6, %v1144_v8  ;;  %v2449_v44 = vld [vmem:[#allocation2_spill] sm:$0xff] }
 0x11c   : > { %2443 = vst [vmem:[#allocation4_spill] sm:$0xff] %v2390_v25  ;;  %v1778_v26 = vpop.f32.mrf.mxu0  ;;  %v1136_v25 = vadd.f32 %v1730_v42, %v1071_v38  ;;  %v1204_v38 = vadd.f32 %v1773_v20, %v1139_v62 }
 0x11d   : > { %v2392_v27 = vpop.f32.mrf.mxu1  ;;  %v1779_v53 = vadd.f32 %v1778_v26, %v1777_v24  ;;  %v2450_v46 = vld [vmem:[#allocation3_spill] sm:$0xff] }
 0x11e   : > { %2444 = vst [vmem:[#allocation5_spill] sm:$0xff] %v2392_v27  ;;  %v1780_v28 = vpop.f32.mrf.mxu0  ;;  %v1201_v14 = vadd.f32 %v1770_v51, %v1136_v25  ;;  %v1813_v48 = vadd.f32 %v2450_v46, %v2449_v44 }
 0x11f   : > { %v2397_v31 = vpop.f32.mrf.mxu1  ;;  %v1212_v63 = vadd.f32 %v1779_v53, %v1147_v35 }
 0x120   : > { %2445 = vst [vmem:[#allocation6_spill] sm:$0xff] %v2397_v31  ;;  %v1781_v32 = vpop.f32.mrf.mxu0  ;;  %v1266_v52 = vadd.f32 %v1810_v18, %v1201_v14 }
 0x121   : > { %v2399_v36 = vpop.f32.mrf.mxu1  ;;  %v1782_v2 = vadd.f32 %v1781_v32, %v1780_v28 }
 0x122   : > { %v1783_v37 = vpop.f32.mrf.mxu0 }
 0x123   : > { %v2401_v40 = vpop.f32.mrf.mxu1  ;;  %v1217_v28 = vadd.f32 %v1782_v2, %v1152_v17  ;;  %v2446_v39 = vld [vmem:[#allocation4_spill] sm:$0xff] }
 0x124   : > { %v1784_v41 = vpop.f32.mrf.mxu0 }
 0x125   : > { %v1824_v27 = vpop.f32.mrf.mxu1  ;;  %v1785_v9 = vadd.f32 %v1784_v41, %v1783_v37  ;;  %v1274_v37 = vadd.f32 %v1816_v61, %v1209_v22 }
 0x126   : > { %v1786_v31 = vpop.f32.mrf.mxu0  ;;  %v1825_v15 = vadd.f32 %v1824_v27, %v2401_v40 }
 0x127   : > { %v1826_v58 = vpop.f32.mrf.mxu1  ;;  %v2448_v41 = vld [vmem:[#allocation6_spill] sm:$0xff] }
 0x128   : > { %v1787_v4 = vpop.f32.mrf.mxu0  ;;  %v1822_v21 = vadd.f32 %v2399_v36, %v2448_v41  ;;  %v1269_v36 = vadd.f32 %v1813_v48, %v1204_v38 }
 0x129   : > { %v1788_v60 = vadd.f32 %v1787_v4, %v1786_v31  ;;  %v1827_v33 = vpop.f32.mrf.mxu1  ;;  %v1745_v31 = vadd.f32 %v2374_v3, %v2372_v1  ;;  %v2447_v1 = vld [vmem:[#allocation5_spill] sm:$0xff] }
 0x12a   : > { %v1789_v34 = vpop.f32.mrf.mxu0  ;;  %v1828_v11 = vadd.f32 %v1827_v33, %v1826_v58  ;;  %v1819_v3 = vadd.f32 %v2447_v1, %v2446_v39  ;;  %v1282_v58 = vadd.f32 %v1822_v21, %v1217_v28 }
 0x12b   : > { %v1225_v5 = vadd.f32 %v1788_v60, %v1160_v29  ;;  %v1829_v57 = vpop.f32.mrf.mxu1  ;;  %v1155_v26 = vadd.f32 %v1745_v31, %v1090_v0 }
 0x12c   : > { %v1790_v59 = vpop.f32.mrf.mxu0  ;;  %v1277_v13 = vadd.f32 %v1819_v3, %v1212_v63 }
 0x12d   : > { %v1791_v19 = vadd.f32 %v1790_v59, %v1789_v34  ;;  %v1830_v12 = vpop.f32.mrf.mxu1  ;;  %v1290_v16 = vadd.f32 %v1828_v11, %v1225_v5  ;;  %v1220_v23 = vadd.f32 %v1785_v9, %v1155_v26 }
 0x12e   : > { %v1831_v30 = vadd.f32 %v1830_v12, %v1829_v57 }
 0x12f   : > { %v1228_v24 = vadd.f32 %v1791_v19, %v1163_v7  ;;  %v1862_v32 = vpop.f32.mrf.mxu0  ;;  %v1285_v10 = vadd.f32 %v1825_v15, %v1220_v23 }
 0x130   : > { %v1866_v25 = vpop.f32.mrf.mxu1  ;;  %v1339_v50 = vadd.f32 %v1862_v32, %v1274_v37 }
 0x131   : > { %v1330_v42 = vpop.f32.mrf.mxu0  ;;  %v1293_v43 = vadd.f32 %v1831_v30, %v1228_v24  ;;  %v1355_v56 = vadd.f32 %v1866_v25, %v1290_v16 }
 0x132   : > { %v1346_v54 = vpop.f32.mrf.mxu1  ;;  %v1331_v45 = vadd.f32 %v1330_v42, %v1266_v52  ;;  %v1363_v29 = vmax.f32 %v1339_v50, 0.0 }
 0x133   : > { %v1863_v4 = vpop.f32.mrf.mxu0  ;;  %v1347_v60 = vadd.f32 %v1346_v54, %v1282_v58  ;;  %v1367_v49 = vmax.f32 %v1355_v56, 0.0 }
 0x134   : > { %v1342_v47 = vadd.f32 %v1863_v4, %v1277_v13  ;;  %v1867_v6 = vpop.f32.mrf.mxu1  ;;  %v1361_v51 = vmax.f32 %v1331_v45, 0.0 }
 0x135   : > { %v1358_v62 = vadd.f32 %v1867_v6, %v1293_v43  ;;  %v1333_v8 = vpop.f32.mrf.mxu0  ;;  %v1365_v0 = vmax.f32 %v1347_v60, 0.0 }
 0x136   : > { %v1364_v33 = vmax.f32 %v1342_v47, 0.0  ;;  %v1334_v34 = vadd.f32 %v1333_v8, %v1269_v36  ;;  %v1349_v35 = vpop.f32.mrf.mxu1 }
 0x137   : > { %v1368_v27 = vmax.f32 %v1358_v62, 0.0  ;;  %v1350_v40 = vadd.f32 %v1349_v35, %v1285_v10 }
 0x138   : > { %v1657_v53 = vpack.c.bf16 %v1364_v33, %v1363_v29  ;;  %v1362_v55 = vmax.f32 %v1334_v34, 0.0 }
 0x139   : > { %v1667_v2 = vpack.c.bf16 %v1368_v27, %v1367_v49  ;;  %v1366_v5 = vmax.f32 %v1350_v40, 0.0 }
 0x13a   : > { %1669 = vst [vmem:[%s226_s7 + $0x8] sm:$0xff] %v1657_v53   ;;  %v1652_v57 = vpack.c.bf16 %v1362_v55, %v1361_v51 }
 0x13b   : > { %1671 = vst [vmem:[%s226_s7 + $0x18] sm:$0xff] %v1667_v2   ;;  %v1662_v59 = vpack.c.bf16 %v1366_v5, %v1365_v0 }
 0x13c   : > { %1653 = vst [vmem:[%s226_s7] sm:$0xff] %v1652_v57  }
 0x13d   : > { %1670 = vst [vmem:[%s226_s7 + $0x10] sm:$0xff] %v1662_v59  }
 0x13e PF: > { %s13_s14 = sadd.s32 1, %s2055_s14   ;;  %s2451_s12 = smov %s2051_s13 }
 0x13f   : > { %p10_p5 = scmp.ge.s32.totalorder %s13_s14, 4   ;;  %s2452_s13 = smov %s2454_s15 }
 0x141   :  { %12 = sbr.rel (!%p10_p5) target bundleno = 2 (0x2), region = 68 }

// kernel: resnet_forward.9
= control target key start
LH: loop header
LB: loop body
LE: loop exit
PB: predicated region body
PF: predicated region fallthrough
CT: control target
= control target key end

     0   :  { %s2202_s15 = smov 0   ;;  %s2204_s16 = smov 0   ;;  %s2608_s0 = inlined_call_operand.vmem [shape: bf16[128,1152], index: 0, kind: input, shape index: {}]   ;;  %s2609_s1 = inlined_call_operand.vmem [shape: bf16[1152,128], index: 1, kind: input, shape index: {}]   ;;  %s2610_s2 = inlined_call_operand.vmem [shape: f32[1,128], index: 2, kind: input, shape index: {}]   ;;  %s2611_s3 = inlined_call_operand.vmem [shape: bf16[128,128], index: 3, kind: input, shape index: {}]   ;;  %s2612_s4 = inlined_call_operand.vmem [shape: bf16[128,128], index: 4, kind: output, shape index: {}]  }
   0x1   :  { %s2206_s17 = smov 0  }
   0x2 LB: > { %s26_s18 = sadd.s32 1, %s2171_s16  ;;  %p1616_p0 = scmp.ge.s32.totalorder %s2175_s17, 1  ;;  %s2175_s17 = sphi %s2206_s17, %s14_s17   ;;  %s2171_s16 = sphi %s2204_s16, %s2618_s16   ;;  %s2167_s15 = sphi %s2202_s15, %s2617_s15  }
   0x3   : > { %p28_p1 = scmp.ge.s32.totalorder %s26_s18, 2  ;;  %p211_p2 = scmp.lt.s32.totalorder %s2175_s17, 3 }
   0x5   : > { %s2620_s18 = smov (%p28_p1, %s26_s18), 0  ;;  %p212_p3 = pnand %p1616_p0, %p211_p2 }
   0x7   : > { %215 = sbr.rel (%p212_p3) target bundleno = 320 (0x140), region = 36 }
   0xc   : > { %v2029_v0 = vld [vmem:[%s2609_s1 + $0x78] sm:$0xff]   ;;  %v2033_v4 = vld [vmem:[%s2609_s1 + $0x70] sm:$0xff]   ;;  %v2037_v8 = vld [vmem:[%s2609_s1 + $0x68] sm:$0xff]   ;;  %s1617_s27 = sshll.u32 %s2167_s15, 3 }
   0xd   : > { %v2030_v1 = vld [vmem:[%s2609_s1 + $0xf8] sm:$0xff]   ;;  %1792 = vmatprep.subr.bf16.mxu0 %v2029_v0  ;;  %v2034_v5 = vld [vmem:[%s2609_s1 + $0xf0] sm:$0xff]   ;;  %v2038_v9 = vld [vmem:[%s2609_s1 + $0xe8] sm:$0xff]   ;;  %p257_p4 = scmp.lt.s32.totalorder %s1617_s27, 15 }
   0xe   : > { %v2031_v2 = vld [vmem:[%s2609_s1 + $0x38] sm:$0xff]   ;;  %1832 = vmatprep.subr.bf16.mxu1 %v2030_v1  ;;  %v2035_v6 = vld [vmem:[%s2609_s1 + $0x30] sm:$0xff]   ;;  %v2039_v10 = vld [vmem:[%s2609_s1 + $0x28] sm:$0xff]  }
   0xf   : > { %v2032_v3 = vld [vmem:[%s2609_s1 + $0xb8] sm:$0xff]   ;;  %1793 = vmatpush3.bf16.msra.mxu0 %v2031_v2  ;;  %v2036_v7 = vld [vmem:[%s2609_s1 + $0xb0] sm:$0xff]   ;;  %v2040_v11 = vld [vmem:[%s2609_s1 + $0xa8] sm:$0xff]   ;;  %s2622_s27 = smov (!%p257_p4, %s1617_s27), 15 }
  0x10   : > { %1833 = vmatpush3.bf16.msra.mxu1 %v2032_v3  ;;  %1794 = vmatprep.subr.bf16.mxu0 %v2033_v4  ;;  %v2041_v12 = vld [vmem:[%s2609_s1 + $0x60] sm:$0xff]   ;;  %v2045_v16 = vld [vmem:[%s2609_s1 + $0x58] sm:$0xff]   ;;  %v2049_v20 = vld [vmem:[%s2609_s1 + $0x50] sm:$0xff]   ;;  %s2004_s28 = smul.u32 36, %s2622_s27 }
  0x11   : > { %1834 = vmatprep.subr.bf16.mxu1 %v2034_v5  ;;  %v2042_v13 = vld [vmem:[%s2609_s1 + $0xe0] sm:$0xff]   ;;  %v2046_v17 = vld [vmem:[%s2609_s1 + $0xd8] sm:$0xff]   ;;  %v2050_v21 = vld [vmem:[%s2609_s1 + $0xd0] sm:$0xff]  }
  0x12   : > { %v2043_v14 = vld [vmem:[%s2609_s1 + $0x20] sm:$0xff]   ;;  %v2047_v18 = vld [vmem:[%s2609_s1 + $0x18] sm:$0xff]   ;;  %v2051_v22 = vld [vmem:[%s2609_s1 + $0x10] sm:$0xff]   ;;  %s2319_s12 = scalar_lea.vmem %s2608_s0, %s2004_s28 }
  0x13   : > { %1795 = vmatpush3.bf16.msra.mxu0 %v2035_v6  ;;  %v2044_v15 = vld [vmem:[%s2609_s1 + $0xa0] sm:$0xff]   ;;  %v2048_v19 = vld [vmem:[%s2609_s1 + $0x98] sm:$0xff]   ;;  %v2052_v23 = vld [vmem:[%s2609_s1 + $0x90] sm:$0xff]  }
  0x14   : > { %1835 = vmatpush3.bf16.msra.mxu1 %v2036_v7  ;;  %1796 = vmatprep.subr.bf16.mxu0 %v2037_v8  ;;  %v2053_v24 = vld [vmem:[%s2609_s1 + $0x48] sm:$0xff]   ;;  %v2057_v28 = vld [vmem:[%s2609_s1 + $0x40] sm:$0xff]   ;;  %v2067_v36 = vld [vmem:[%s2609_s1 + $0x178] sm:$0xff]  }
  0x15   : > { %1836 = vmatprep.subr.bf16.mxu1 %v2038_v9  ;;  %v2054_v25 = vld [vmem:[%s2609_s1 + $0xc8] sm:$0xff]   ;;  %v2058_v29 = vld [vmem:[%s2609_s1 + $0xc0] sm:$0xff]   ;;  %v2068_v37 = vld [vmem:[%s2609_s1 + $0x1f8] sm:$0xff]  }
  0x16   : > { %v2055_v26 = vld [vmem:[%s2609_s1 + $0x8] sm:$0xff]   ;;  %v2059_v30 = vld [vmem:[%s2609_s1] sm:$0xff]   ;;  %v2069_v38 = vld [vmem:[%s2609_s1 + $0x138] sm:$0xff]  }
  0x17   : > { %1797 = vmatpush3.bf16.msra.mxu0 %v2039_v10  ;;  %v2056_v27 = vld [vmem:[%s2609_s1 + $0x88] sm:$0xff]   ;;  %v2060_v31 = vld [vmem:[%s2609_s1 + $0x80] sm:$0xff]   ;;  %v2070_v39 = vld [vmem:[%s2609_s1 + $0x1b8] sm:$0xff]  }
  0x18   : > { %1837 = vmatpush3.bf16.msra.mxu1 %v2040_v11  ;;  %1798 = vmatprep.subr.bf16.mxu0 %v2041_v12  ;;  %v2061_v32 = vld [vmem:[%s2319_s12] ss:$36 sps:$4 sm:$0xff]   ;;  %v2064_v34 = vld [vmem:[%s2319_s12 + $0x8] ss:$36 sps:$4 sm:$0xff]   ;;  %v2071_v40 = vld [vmem:[%s2609_s1 + $0x170] sm:$0xff]  }
  0x19   : > { %1838 = vmatprep.subr.bf16.mxu1 %v2042_v13  ;;  %v2063_v33 = vld [vmem:[%s2319_s12 + $0x4] ss:$36 sps:$4 sm:$0xff]   ;;  %v2066_v35 = vld [vmem:[%s2319_s12 + $0xc] ss:$36 sps:$4 sm:$0xff]   ;;  %v2077_v45 = vld [vmem:[%s2319_s12 + $0x54] ss:$36 sps:$4 sm:$0xff]  }
  0x1a   : > { %1128 = vmatprep.mubr.bf16.mxu0 %v2063_v33  ;;  %1193 = vmatprep.mubr.bf16.mxu1 %v2066_v35  ;;  %v2072_v41 = vld [vmem:[%s2609_s1 + $0x1f0] sm:$0xff]   ;;  %v2079_v46 = vld [vmem:[%s2319_s12 + $0x48] ss:$36 sps:$4 sm:$0xff]   ;;  %v2085_v52 = vld [vmem:[%s2609_s1 + $0x160] sm:$0xff]  }
  0x1b   : > { %1799 = vmatpush3.bf16.msra.mxu0 %v2043_v14  ;;  %v2073_v42 = vld [vmem:[%s2609_s1 + $0x130] sm:$0xff]   ;;  %v2081_v48 = vld [vmem:[%s2609_s1 + $0x168] sm:$0xff]   ;;  %v2086_v53 = vld [vmem:[%s2609_s1 + $0x1e0] sm:$0xff]  }
  0x1c   : > { %1839 = vmatpush3.bf16.msra.mxu1 %v2044_v15  ;;  %1800 = vmatprep.subr.bf16.mxu0 %v2045_v16  ;;  %v2074_v43 = vld [vmem:[%s2609_s1 + $0x1b0] sm:$0xff]   ;;  %v2082_v49 = vld [vmem:[%s2609_s1 + $0x1e8] sm:$0xff]   ;;  %v2087_v54 = vld [vmem:[%s2609_s1 + $0x120] sm:$0xff]  }
  0x1d   : > { %1840 = vmatprep.subr.bf16.mxu1 %v2046_v17  ;;  %v2075_v44 = vld [vmem:[%s2319_s12 + $0x4c] ss:$36 sps:$4 sm:$0xff]   ;;  %v2088_v55 = vld [vmem:[%s2609_s1 + $0x1a0] sm:$0xff]   ;;  %v2089_v56 = vld [vmem:[%s2319_s12 + $0x94] ss:$36 sps:$4 sm:$0xff]  }
  0x1e   : > { %v2080_v47 = vld [vmem:[%s2319_s12 + $0x50] ss:$36 sps:$4 sm:$0xff]   ;;  %v2083_v50 = vld [vmem:[%s2609_s1 + $0x128] sm:$0xff]   ;;  %v2091_v57 = vld [vmem:[%s2319_s12 + $0x9c] ss:$36 sps:$4 sm:$0xff]  }
  0x1f   : > { %1801 = vmatpush3.bf16.msra.mxu0 %v2047_v18  ;;  %v2084_v51 = vld [vmem:[%s2609_s1 + $0x1a8] sm:$0xff]   ;;  %v2093_v58 = vld [vmem:[%s2319_s12 + $0x90] ss:$36 sps:$4 sm:$0xff]   ;;  %v2094_v59 = vld [vmem:[%s2319_s12 + $0x98] ss:$36 sps:$4 sm:$0xff]  }
  0x20   : > { %1841 = vmatpush3.bf16.msra.mxu1 %v2048_v19  ;;  %1802 = vmatprep.subr.bf16.mxu0 %v2049_v20  ;;  %v2095_v60 = vld [vmem:[%s2609_s1 + $0x158] sm:$0xff]   ;;  %v2099_v0 = vld [vmem:[%s2609_s1 + $0x150] sm:$0xff]   ;;  %v2105_v5 = vld [vmem:[%s2319_s12 + $0xe4] ss:$36 sps:$4 sm:$0xff]  }
  0x21   : > { %1842 = vmatprep.subr.bf16.mxu1 %v2050_v21  ;;  %v2096_v61 = vld [vmem:[%s2609_s1 + $0x1d8] sm:$0xff]   ;;  %v2100_v1 = vld [vmem:[%s2609_s1 + $0x1d0] sm:$0xff]   ;;  %v2108_v7 = vld [vmem:[%s2319_s12 + $0xe0] ss:$36 sps:$4 sm:$0xff]  }
  0x22   : > { %v2097_v62 = vld [vmem:[%s2609_s1 + $0x118] sm:$0xff]   ;;  %v2101_v2 = vld [vmem:[%s2609_s1 + $0x110] sm:$0xff]   ;;  %v2109_v8 = vld [vmem:[%s2609_s1 + $0x148] sm:$0xff]  }
  0x23   : > { %1803 = vmatpush3.bf16.msra.mxu0 %v2051_v22  ;;  %v2098_v63 = vld [vmem:[%s2609_s1 + $0x198] sm:$0xff]   ;;  %v2102_v3 = vld [vmem:[%s2609_s1 + $0x190] sm:$0xff]   ;;  %v2110_v9 = vld [vmem:[%s2609_s1 + $0x1c8] sm:$0xff]  }
  0x24   : > { %1843 = vmatpush3.bf16.msra.mxu1 %v2052_v23  ;;  %1804 = vmatprep.subr.bf16.mxu0 %v2053_v24  ;;  %v2103_v4 = vld [vmem:[%s2319_s12 + $0xdc] ss:$36 sps:$4 sm:$0xff]   ;;  %v2111_v10 = vld [vmem:[%s2609_s1 + $0x108] sm:$0xff]   ;;  %v2117_v16 = vld [vmem:[%s2319_s12 + $0x10] ss:$36 sps:$4 sm:$0xff]  }
  0x25   : > { %1844 = vmatprep.subr.bf16.mxu1 %v2054_v25  ;;  %v2107_v6 = vld [vmem:[%s2319_s12 + $0xd8] ss:$36 sps:$4 sm:$0xff]   ;;  %v2112_v11 = vld [vmem:[%s2609_s1 + $0x188] sm:$0xff]   ;;  %v2113_v12 = vld [vmem:[%s2609_s1 + $0x140] sm:$0xff]  }
  0x26   : > { %v2114_v13 = vld [vmem:[%s2609_s1 + $0x1c0] sm:$0xff]   ;;  %v2119_v17 = vld [vmem:[%s2319_s12 + $0x14] ss:$36 sps:$4 sm:$0xff]   ;;  %v2141_v33 = vld [vmem:[%s2319_s12 + $0xec] ss:$36 sps:$4 sm:$0xff]  }
  0x27   : > { %1805 = vmatpush3.bf16.msra.mxu0 %v2055_v26  ;;  %v2115_v14 = vld [vmem:[%s2609_s1 + $0x100] sm:$0xff]   ;;  %v2120_v18 = vld [vmem:[%s2319_s12 + $0x18] ss:$36 sps:$4 sm:$0xff]   ;;  %v2124_v21 = vld [vmem:[%s2609_s1 + $0x230] sm:$0xff]  }
  0x28   : > { %1845 = vmatpush3.bf16.msra.mxu1 %v2056_v27  ;;  %1806 = vmatprep.subr.bf16.mxu0 %v2057_v28  ;;  %v2116_v15 = vld [vmem:[%s2609_s1 + $0x180] sm:$0xff]   ;;  %v2123_v20 = vld [vmem:[%s2609_s1 + $0x238] sm:$0xff]   ;;  %v2131_v26 = vld [vmem:[%s2609_s1 + $0x228] sm:$0xff]  }
  0x29   : > { %1846 = vmatprep.subr.bf16.mxu1 %v2058_v29  ;;  %v2122_v19 = vld [vmem:[%s2319_s12 + $0x1c] ss:$36 sps:$4 sm:$0xff]   ;;  %v2127_v23 = vld [vmem:[%s2319_s12 + $0x64] ss:$36 sps:$4 sm:$0xff]   ;;  %v2135_v28 = vld [vmem:[%s2319_s12 + $0xac] ss:$36 sps:$4 sm:$0xff]  }
  0x2a   : > { %v2125_v22 = vld [vmem:[%s2319_s12 + $0x5c] ss:$36 sps:$4 sm:$0xff]   ;;  %v2133_v27 = vld [vmem:[%s2319_s12 + $0xa4] ss:$36 sps:$4 sm:$0xff]   ;;  %v2140_v35 = vld [vmem:[%s2609_s1 + $0x210] sm:$0xff]  }
  0x2b   : > { %1807 = vmatpush3.bf16.msra.mxu0 %v2059_v30  ;;  %v2129_v24 = vld [vmem:[%s2319_s12 + $0x58] ss:$36 sps:$4 sm:$0xff]   ;;  %v2130_v25 = vld [vmem:[%s2319_s12 + $0x60] ss:$36 sps:$4 sm:$0xff]  }
  0x2c   : > { %1847 = vmatpush3.bf16.msra.mxu1 %v2060_v31  ;;  %1872 = vmatprep.subr.bf16.mxu0 %v2067_v36  ;;  %v2132_v29 = vld [vmem:[%s2609_s1 + $0x220] sm:$0xff]   ;;  %v2138_v31 = vld [vmem:[%s2319_s12 + $0xa8] ss:$36 sps:$4 sm:$0xff]  }
  0x2d   : > { %1912 = vmatprep.subr.bf16.mxu1 %v2068_v37  ;;  %v2137_v30 = vld [vmem:[%s2319_s12 + $0xa0] ss:$36 sps:$4 sm:$0xff]   ;;  %v2145_v36 = vld [vmem:[%s2319_s12 + $0xe8] ss:$36 sps:$4 sm:$0xff]  }
  0x2e   : > { %1129 = vmatmul.mubr.bf16.vlgmr.msra.gmra.mxu0 %v2061_v32  ;;  %v2139_v32 = vld [vmem:[%s2609_s1 + $0x218] sm:$0xff]   ;;  %v2147_v37 = vld [vmem:[%s2609_s1 + $0x208] sm:$0xff]  }
  0x2f   : > { %1194 = vmatmul.mubr.bf16.vlgmr.msra.gmra.mxu1 %v2064_v34  ;;  %1873 = vmatpush3.bf16.msra.mxu0 %v2069_v38  ;;  %v2143_v34 = vld [vmem:[%s2319_s12 + $0xf4] ss:$36 sps:$4 sm:$0xff]  }
  0x30   : > { %1913 = vmatpush3.bf16.msra.mxu1 %v2070_v39  ;;  %1874 = vmatprep.subr.bf16.mxu0 %v2071_v40  ;;  %v2146_v38 = vld [vmem:[%s2319_s12 + $0xf0] ss:$36 sps:$4 sm:$0xff]   ;;  %v2149_v39 = vld [vmem:[%s2319_s12 + $0x20] ss:$36 sps:$4 sm:$0xff]  }
  0x31   : > { %1914 = vmatprep.subr.bf16.mxu1 %v2072_v41  ;;  %1136 = vmatprep.mubr.bf16.mxu0 %v2075_v44  ;;  %v2150_v40 = vld [vmem:[%s2319_s12 + $0xb0] ss:$36 sps:$4 sm:$0xff]   ;;  %v2148_v41 = vld [vmem:[%s2609_s1 + $0x200] sm:$0xff]  }
  0x32   : > { %1201 = vmatprep.mubr.bf16.mxu1 %v2077_v45 }
  0x33   : > { %1875 = vmatpush3.bf16.msra.mxu0 %v2073_v42  ;;  %v2151_v42 = vld [vmem:[%s2319_s12 + $0x68] ss:$36 sps:$4 sm:$0xff]  }
  0x34   : > { %1915 = vmatpush3.bf16.msra.mxu1 %v2074_v43  ;;  %1876 = vmatprep.subr.bf16.mxu0 %v2081_v48  ;;  %v2152_v43 = vld [vmem:[%s2319_s12 + $0xf8] ss:$36 sps:$4 sm:$0xff]   ;;  %s1620_s12 = sshll.u32 %s2622_s27, 2 }
  0x35   : > { %1916 = vmatprep.subr.bf16.mxu1 %v2082_v49  ;;  %s2540_s21 = scalar_lea.vmem %s2611_s3, %s1620_s12  ;;  %s286_s24 = scalar_lea.vmem %s2612_s4, %s1620_s12 }
  0x36   : > { %1137 = vmatmul.mubr.bf16.gmra.mxu0 %v2079_v46 }
  0x37   : > { %1202 = vmatmul.mubr.bf16.gmra.mxu1 %v2080_v47  ;;  %1877 = vmatpush3.bf16.msra.mxu0 %v2083_v50 }
  0x38   : > { %1917 = vmatpush3.bf16.msra.mxu1 %v2084_v51  ;;  %1878 = vmatprep.subr.bf16.mxu0 %v2085_v52 }
  0x39   : > { %1918 = vmatprep.subr.bf16.mxu1 %v2086_v53  ;;  %1144 = vmatprep.mubr.bf16.mxu0 %v2089_v56 }
  0x3a   : > { %1209 = vmatprep.mubr.bf16.mxu1 %v2091_v57 }
  0x3b   : > { %1879 = vmatpush3.bf16.msra.mxu0 %v2087_v54 }
  0x3c   : > { %1919 = vmatpush3.bf16.msra.mxu1 %v2088_v55  ;;  %1880 = vmatprep.subr.bf16.mxu0 %v2095_v60 }
  0x3d   : > { %1920 = vmatprep.subr.bf16.mxu1 %v2096_v61 }
  0x3e   : > { %1145 = vmatmul.mubr.bf16.gmra.mxu0 %v2093_v58 }
  0x3f   : > { %1210 = vmatmul.mubr.bf16.gmra.mxu1 %v2094_v59  ;;  %1881 = vmatpush3.bf16.msra.mxu0 %v2097_v62 }
  0x40   : > { %1921 = vmatpush3.bf16.msra.mxu1 %v2098_v63  ;;  %1882 = vmatprep.subr.bf16.mxu0 %v2099_v0 }
  0x41   : > { %1922 = vmatprep.subr.bf16.mxu1 %v2100_v1  ;;  %1152 = vmatprep.mubr.bf16.mxu0 %v2103_v4 }
  0x42   : > { %1217 = vmatprep.mubr.bf16.mxu1 %v2105_v5 }
  0x43   : > { %1883 = vmatpush3.bf16.msra.mxu0 %v2101_v2 }
  0x44   : > { %1923 = vmatpush3.bf16.msra.mxu1 %v2102_v3  ;;  %1884 = vmatprep.subr.bf16.mxu0 %v2109_v8 }
  0x45   : > { %1924 = vmatprep.subr.bf16.mxu1 %v2110_v9 }
  0x46   : > { %1153 = vmatmul.mubr.bf16.gmra.mxu0 %v2107_v6 }
  0x47   : > { %1218 = vmatmul.mubr.bf16.gmra.mxu1 %v2108_v7  ;;  %1885 = vmatpush3.bf16.msra.mxu0 %v2111_v10 }
  0x48   : > { %1925 = vmatpush3.bf16.msra.mxu1 %v2112_v11  ;;  %1886 = vmatprep.subr.bf16.mxu0 %v2113_v12 }
  0x49   : > { %1926 = vmatprep.subr.bf16.mxu1 %v2114_v13  ;;  %1258 = vmatprep.mubr.bf16.mxu0 %v2119_v17 }
  0x4a   : > { %1323 = vmatprep.mubr.bf16.mxu1 %v2122_v19 }
  0x4b   : > { %1887 = vmatpush3.bf16.msra.mxu0 %v2115_v14 }
  0x4c   : > { %1927 = vmatpush3.bf16.msra.mxu1 %v2116_v15  ;;  %1964 = vmatprep.subr.bf16.mxu0 %v2123_v20 }
  0x4d   : > { %1988 = vmatprep.subr.bf16.mxu1 %v2123_v20 }
  0x4e   : > { %1259 = vmatmul.mubr.bf16.vlgmr.msra.gmra.mxu0 %v2117_v16 }
  0x4f   : > { %1324 = vmatmul.mubr.bf16.vlgmr.msra.gmra.mxu1 %v2120_v18  ;;  %1965 = vmatpush3.bf16.msra.mxu0 %v2123_v20 }
  0x50   : > { %1996 = vmatpush3.bf16.msra.mxu1 %v2123_v20  ;;  %1966 = vmatprep.subr.bf16.mxu0 %v2124_v21 }
  0x51   : > { %1989 = vmatprep.subr.bf16.mxu1 %v2124_v21  ;;  %1266 = vmatprep.mubr.bf16.mxu0 %v2125_v22 }
  0x52   : > { %1331 = vmatprep.mubr.bf16.mxu1 %v2127_v23 }
  0x53   : > { %1967 = vmatpush3.bf16.msra.mxu0 %v2124_v21 }
  0x54   : > { %1997 = vmatpush3.bf16.msra.mxu1 %v2124_v21  ;;  %1968 = vmatprep.subr.bf16.mxu0 %v2131_v26 }
  0x55   : > { %1990 = vmatprep.subr.bf16.mxu1 %v2131_v26 }
  0x56   : > { %1267 = vmatmul.mubr.bf16.gmra.mxu0 %v2129_v24 }
  0x57   : > { %1332 = vmatmul.mubr.bf16.gmra.mxu1 %v2130_v25  ;;  %1274 = vmatprep.mubr.bf16.mxu0 %v2133_v27 }
  0x58   : > { %1969 = vmatpush3.bf16.msra.mxu0 %v2131_v26  ;;  %1339 = vmatprep.mubr.bf16.mxu1 %v2135_v28 }
  0x59   : > { %1998 = vmatpush3.bf16.msra.mxu1 %v2131_v26  ;;  %1970 = vmatprep.subr.bf16.mxu0 %v2132_v29 }
  0x5a   : > { %1991 = vmatprep.subr.bf16.mxu1 %v2132_v29 }
  0x5c   : > { %1971 = vmatpush3.bf16.msra.mxu0 %v2132_v29 }
  0x5d   : > { %1999 = vmatpush3.bf16.msra.mxu1 %v2132_v29  ;;  %1972 = vmatprep.subr.bf16.mxu0 %v2139_v32 }
  0x5e   : > { %1275 = vmatmul.mubr.bf16.gmra.mxu0 %v2137_v30  ;;  %1992 = vmatprep.subr.bf16.mxu1 %v2139_v32  ;;  %v1623_v30 = vld [vmem:[%s2610_s2] ss:$0 sm:$0xff] }
  0x5f   : > { %1340 = vmatmul.mubr.bf16.gmra.mxu1 %v2138_v31  ;;  %1282 = vmatprep.mubr.bf16.mxu0 %v2141_v33 }
  0x60   : > { %1973 = vmatpush3.bf16.msra.mxu0 %v2139_v32  ;;  %1347 = vmatprep.mubr.bf16.mxu1 %v2143_v34 }
  0x61   : > { %2000 = vmatpush3.bf16.msra.mxu1 %v2139_v32  ;;  %1974 = vmatprep.subr.bf16.mxu0 %v2140_v35 }
  0x62   : > { %1993 = vmatprep.subr.bf16.mxu1 %v2140_v35 }
  0x64   : > { %1975 = vmatpush3.bf16.msra.mxu0 %v2140_v35 }
  0x65   : > { %2001 = vmatpush3.bf16.msra.mxu1 %v2140_v35  ;;  %1976 = vmatprep.subr.bf16.mxu0 %v2147_v37 }
  0x66   : > { %1283 = vmatmul.mubr.bf16.gmra.mxu0 %v2145_v36  ;;  %1994 = vmatprep.subr.bf16.mxu1 %v2147_v37 }
  0x67   : > { %1348 = vmatmul.mubr.bf16.gmra.mxu1 %v2146_v38  ;;  %1980 = vmatprep.mubr.bf16.mxu0 %v2149_v39  ;;  %v2547_v39 = vld [vmem:[%s2540_s21 + $0x8] sm:$0xff]  }
  0x68   : > { %1977 = vmatpush3.bf16.msra.mxu0 %v2147_v37  ;;  %1984 = vmatprep.mubr.bf16.mxu1 %v2150_v40 }
  0x69   : > { %2002 = vmatpush3.bf16.msra.mxu1 %v2147_v37  ;;  %1978 = vmatprep.subr.bf16.mxu0 %v2148_v41 }
  0x6a   : > { %1995 = vmatprep.subr.bf16.mxu1 %v2148_v41 }
  0x6c   : > { %1979 = vmatpush3.bf16.msra.mxu0 %v2148_v41 }
  0x6d   : > { %2003 = vmatpush3.bf16.msra.mxu1 %v2148_v41  ;;  %v2550_v41 = vld [vmem:[%s2540_s21 + $0x18] sm:$0xff]  }
  0x6f   : > { %1981 = vmatmul.mubr.bf16.vlgmr.msra.gmra.mxu0 %v2151_v42 }
  0x70   : > { %1985 = vmatmul.mubr.bf16.vlgmr.msra.gmra.mxu1 %v2152_v43 }
  0xee   : > { %v1808_v44 = vpop.f32.mrf.mxu0 }
  0xef   : > { %v2483_v45 = vpop.f32.mrf.mxu1 }
  0xf0   : > { %v1809_v46 = vpop.f32.mrf.mxu0 }
  0xf1   : > { %v1849_v47 = vpop.f32.mrf.mxu1  ;;  %v1810_v27 = vadd.f32 %v1809_v46, %v1808_v44 }
  0xf2   : > { %v1811_v48 = vpop.f32.mrf.mxu0  ;;  %v1850_v42 = vadd.f32 %v1849_v47, %v2483_v45 }
  0xf3   : > { %v2485_v49 = vpop.f32.mrf.mxu1  ;;  %v1131_v35 = vadd.f32 %v1810_v27, %v1623_v30 }
  0xf4   : > { %v1812_v50 = vpop.f32.mrf.mxu0 }
  0xf5   : > { %v2487_v51 = vpop.f32.mrf.mxu1  ;;  %v1813_v36 = vadd.f32 %v1812_v50, %v1811_v48  ;;  %v1196_v48 = vadd.f32 %v1850_v42, %v1131_v35 }
  0xf6   : > { %v1814_v52 = vpop.f32.mrf.mxu0  ;;  %v1853_v45 = vadd.f32 %v2487_v51, %v2485_v49 }
  0xf7   : > { %v2489_v53 = vpop.f32.mrf.mxu1  ;;  %v1134_v50 = vadd.f32 %v1813_v36, %v1623_v30 }
  0xf8   : > { %v1815_v54 = vpop.f32.mrf.mxu0 }
  0xf9   : > { %v2491_v55 = vpop.f32.mrf.mxu1  ;;  %v1816_v31 = vadd.f32 %v1815_v54, %v1814_v52 }
  0xfa   : > { %v1817_v56 = vpop.f32.mrf.mxu0 }
  0xfb   : > { %v2493_v57 = vpop.f32.mrf.mxu1  ;;  %v1139_v43 = vadd.f32 %v1816_v31, %v1623_v30 }
  0xfc   : > { %v1818_v58 = vpop.f32.mrf.mxu0 }
  0xfd   : > { %v2495_v59 = vpop.f32.mrf.mxu1  ;;  %v1819_v40 = vadd.f32 %v1818_v58, %v1817_v56  ;;  %v1199_v58 = vadd.f32 %v1853_v45, %v1134_v50  ;;  %v1787_v45 = vld [vmem:[%s2540_s21 + $0x10] sm:$0xff]  }
  0xfe   : > { %v1820_v60 = vpop.f32.mrf.mxu0 }
  0xff   : > { %v2497_v61 = vpop.f32.mrf.mxu1  ;;  %v1142_v47 = vadd.f32 %v1819_v40, %v1623_v30 }
 0x100   : > { %v1821_v62 = vpop.f32.mrf.mxu0 }
 0x101   : > { %v2499_v63 = vpop.f32.mrf.mxu1  ;;  %v1822_v44 = vadd.f32 %v1821_v62, %v1820_v60 }
 0x102   : > { %v2501_v0 = vpop.f32.mrf.mxu0  ;;  %v1862_v49 = vadd.f32 %v2499_v63, %v2497_v61 }
 0x103   : > { %v2503_v1 = vpop.f32.mrf.mxu1 }
 0x104   : > { %v1824_v2 = vpop.f32.mrf.mxu0 }
 0x105   : > { %v2505_v3 = vpop.f32.mrf.mxu1  ;;  %v1825_v31 = vadd.f32 %v1824_v2, %v2501_v0 }
 0x106   : > { %v1826_v4 = vpop.f32.mrf.mxu0 }
 0x107   : > { %v1866_v5 = vpop.f32.mrf.mxu1 }
 0x108   : > { %v1827_v6 = vpop.f32.mrf.mxu0 }
 0x109   : > { %v1867_v7 = vpop.f32.mrf.mxu1  ;;  %v1828_v34 = vadd.f32 %v1827_v6, %v1826_v4  ;;  %v1856_v6 = vadd.f32 %v2491_v55, %v2489_v53  ;;  %v1859_v53 = vadd.f32 %v2495_v59, %v2493_v57  ;;  %v1150_v57 = vadd.f32 %v1825_v31, %v1623_v30 }
 0x10a   : > { %v1829_v8 = vpop.f32.mrf.mxu0  ;;  %v1868_v60 = vadd.f32 %v1867_v7, %v1866_v5 }
 0x10b   : > { %v2507_v9 = vpop.f32.mrf.mxu1  ;;  %v1207_v2 = vadd.f32 %v1859_v53, %v1142_v47  ;;  %v2615_v53 = vunpack.c.l.bf16 %v2547_v39 }
 0x10c   : > { %v1830_v10 = vpop.f32.mrf.mxu0 }
 0x10d   : > { %v2509_v11 = vpop.f32.mrf.mxu1  ;;  %v1831_v46 = vadd.f32 %v1830_v10, %v1829_v8  ;;  %v1204_v8 = vadd.f32 %v1856_v6, %v1139_v43  ;;  %v1147_v10 = vadd.f32 %v1822_v44, %v1623_v30 }
 0x10e   : > { %v1888_v12 = vpop.f32.mrf.mxu0  ;;  %v1871_v51 = vadd.f32 %v2509_v11, %v2507_v9  ;;  %v1751_v11 = vld [vmem:[%s2540_s21] sm:$0xff]  }
 0x10f   : > { %v2511_v13 = vpop.f32.mrf.mxu1  ;;  %v1212_v43 = vadd.f32 %v1862_v49, %v1147_v10  ;;  %v1752_v6 = vunpack.c.l.bf16 %v1751_v11 }
 0x110   : > { %v1889_v14 = vpop.f32.mrf.mxu0 }
 0x111   : > { %v2513_v15 = vpop.f32.mrf.mxu1  ;;  %v1890_v42 = vadd.f32 %v1889_v14, %v1888_v12 }
 0x112   : > { %v2515_v16 = vpop.f32.mrf.mxu0 }
 0x113   : > { %v2517_v17 = vpop.f32.mrf.mxu1  ;;  %v1261_v44 = vadd.f32 %v1890_v42, %v1196_v48 }
 0x114   : > { %v2519_v18 = vpop.f32.mrf.mxu0 }
 0x115   : > { %v2521_v19 = vpop.f32.mrf.mxu1  ;;  %v1893_v61 = vadd.f32 %v2519_v18, %v2515_v16 }
 0x116   : > { %2613 = vst [vmem:[#allocation2_spill] sm:$0xff] %v2521_v19  ;;  %v1894_v20 = vpop.f32.mrf.mxu0  ;;  %v1155_v19 = vadd.f32 %v1828_v34, %v1623_v30  ;;  %v1158_v34 = vadd.f32 %v1831_v46, %v1623_v30  ;;  %v1930_v46 = vadd.f32 %v2513_v15, %v2511_v13 }
 0x117   : > { %v2523_v21 = vpop.f32.mrf.mxu1 }
 0x118   : > { %v1895_v22 = vpop.f32.mrf.mxu0  ;;  %v1220_v55 = vadd.f32 %v1868_v60, %v1155_v19  ;;  %v1223_v59 = vadd.f32 %v1871_v51, %v1158_v34  ;;  %v1760_v34 = vunpack.c.l.bf16 %v1787_v45 }
 0x119   : > { %v2525_v23 = vpop.f32.mrf.mxu1  ;;  %v1896_v62 = vadd.f32 %v1895_v22, %v1894_v20 }
 0x11a   : > { %v1897_v24 = vpop.f32.mrf.mxu0  ;;  %v1936_v63 = vadd.f32 %v2525_v23, %v2523_v21 }
 0x11b   : > { %v2527_v25 = vpop.f32.mrf.mxu1  ;;  %v1269_v20 = vadd.f32 %v1896_v62, %v1204_v8 }
 0x11c   : > { %v1898_v26 = vpop.f32.mrf.mxu0 }
 0x11d   : > { %v2530_v28 = vpop.f32.mrf.mxu1  ;;  %v1899_v22 = vadd.f32 %v1898_v26, %v1897_v24  ;;  %v1334_v50 = vadd.f32 %v1936_v63, %v1269_v20  ;;  %v2614_v8 = vld [vmem:[#allocation2_spill] sm:$0xff] }
 0x11e   : > { %v1900_v29 = vpop.f32.mrf.mxu0  ;;  %v1933_v10 = vadd.f32 %v2614_v8, %v2517_v17  ;;  %v1753_v17 = vunpack.c.h.bf16 %v1751_v11 }
 0x11f   : > { %v2542_v32 = vpop.f32.mrf.mxu1 }
 0x120   : > { %v1901_v33 = vpop.f32.mrf.mxu0 }
 0x121   : > { %v2544_v37 = vpop.f32.mrf.mxu1  ;;  %v1902_v5 = vadd.f32 %v1901_v33, %v1900_v29  ;;  %v1865_v29 = vadd.f32 %v2505_v3, %v2503_v1  ;;  %v1939_v1 = vadd.f32 %v2530_v28, %v2527_v25 }
 0x122   : > { %v1903_v38 = vpop.f32.mrf.mxu0  ;;  %v1942_v18 = vadd.f32 %v2544_v37, %v2542_v32 }
 0x123   : > { %v2553_v52 = vpop.f32.mrf.mxu1  ;;  %v1277_v24 = vadd.f32 %v1902_v5, %v1212_v43  ;;  %v1215_v16 = vadd.f32 %v1865_v29, %v1150_v57  ;;  %v2616_v5 = vunpack.c.l.bf16 %v2550_v41 }
 0x124   : > { %v1904_v54 = vpop.f32.mrf.mxu0 }
 0x125   : > { %v2558_v27 = vpop.f32.mrf.mxu1  ;;  %v1905_v26 = vadd.f32 %v1904_v54, %v1903_v38  ;;  %v1326_v54 = vadd.f32 %v1930_v46, %v1261_v44  ;;  %v1342_v60 = vadd.f32 %v1942_v18, %v1277_v24 }
 0x126   : > { %v1906_v56 = vpop.f32.mrf.mxu0  ;;  %v1945_v25 = vadd.f32 %v2558_v27, %v2553_v52  ;;  %v1761_v52 = vunpack.c.h.bf16 %v1787_v45 }
 0x127   : > { %v1946_v35 = vpop.f32.mrf.mxu1  ;;  %v1280_v47 = vadd.f32 %v1905_v26, %v1215_v16 }
 0x128   : > { %v1907_v36 = vpop.f32.mrf.mxu0 }
 0x129   : > { %v1908_v4 = vadd.f32 %v1907_v36, %v1906_v56  ;;  %v1947_v7 = vpop.f32.mrf.mxu1  ;;  %v1264_v56 = vadd.f32 %v1893_v61, %v1199_v58  ;;  %v1757_v58 = vunpack.c.h.bf16 %v2547_v39  ;;  %v1765_v36 = vunpack.c.h.bf16 %v2550_v41 }
 0x12a   : > { %v1909_v0 = vpop.f32.mrf.mxu0  ;;  %v1948_v12 = vadd.f32 %v1947_v7, %v1946_v35  ;;  %v1345_v20 = vadd.f32 %v1945_v25, %v1280_v47 }
 0x12b   : > { %v1285_v40 = vadd.f32 %v1908_v4, %v1220_v55  ;;  %v1949_v14 = vpop.f32.mrf.mxu1  ;;  %v1272_v4 = vadd.f32 %v1899_v22, %v1207_v2  ;;  %v1329_v51 = vadd.f32 %v1933_v10, %v1264_v56 }
 0x12c   : > { %v1910_v19 = vpop.f32.mrf.mxu0 }
 0x12d   : > { %v1911_v9 = vadd.f32 %v1910_v19, %v1909_v0  ;;  %v1950_v33 = vpop.f32.mrf.mxu1  ;;  %v1350_v30 = vadd.f32 %v1948_v12, %v1285_v40  ;;  %v1337_v31 = vadd.f32 %v1939_v1, %v1272_v4 }
 0x12e   : > { %v1951_v21 = vadd.f32 %v1950_v33, %v1949_v14 }
 0x12f   : > { %v1288_v48 = vadd.f32 %v1911_v9, %v1223_v59  ;;  %v1982_v23 = vpop.f32.mrf.mxu0 }
 0x130   : > { %v1399_v3 = vadd.f32 %v1982_v23, %v1334_v50  ;;  %v1986_v38 = vpop.f32.mrf.mxu1 }
 0x131   : > { %v1415_v13 = vadd.f32 %v1986_v38, %v1350_v30  ;;  %v1390_v15 = vpop.f32.mrf.mxu0  ;;  %v1353_v62 = vadd.f32 %v1951_v21, %v1288_v48 }
 0x132   : > { %v1391_v32 = vadd.f32 %v1390_v15, %v1326_v54  ;;  %v1406_v37 = vpop.f32.mrf.mxu1  ;;  %v1439_v55 = vadd.f32 %v2615_v53, %v1399_v3 }
 0x133   : > { %v1407_v28 = vadd.f32 %v1406_v37, %v1342_v60  ;;  %v1983_v35 = vpop.f32.mrf.mxu0  ;;  %v1443_v7 = vadd.f32 %v2616_v5, %v1415_v13 }
 0x134   : > { %v1402_v42 = vadd.f32 %v1983_v35, %v1337_v31  ;;  %v1987_v49 = vpop.f32.mrf.mxu1  ;;  %v1437_v27 = vadd.f32 %v1752_v6, %v1391_v32  ;;  %v1447_v12 = vmax.f32 %v1439_v55, 0.0 }
 0x135   : > { %v1418_v0 = vadd.f32 %v1987_v49, %v1353_v62  ;;  %v1393_v2 = vpop.f32.mrf.mxu0  ;;  %v1441_v57 = vadd.f32 %v1760_v34, %v1407_v28  ;;  %v1451_v44 = vmax.f32 %v1443_v7, 0.0 }
 0x136   : > { %v1440_v22 = vadd.f32 %v1757_v58, %v1402_v42  ;;  %v1394_v40 = vadd.f32 %v1393_v2, %v1329_v51  ;;  %v1409_v43 = vpop.f32.mrf.mxu1  ;;  %v1445_v63 = vmax.f32 %v1437_v27, 0.0 }
 0x137   : > { %v1444_v59 = vadd.f32 %v1765_v36, %v1418_v0  ;;  %v1410_v39 = vadd.f32 %v1409_v43, %v1345_v20  ;;  %v1449_v29 = vmax.f32 %v1441_v57, 0.0 }
 0x138   : > { %v1448_v14 = vmax.f32 %v1440_v22, 0.0  ;;  %v1438_v19 = vadd.f32 %v1753_v17, %v1394_v40 }
 0x139   : > { %v1452_v41 = vmax.f32 %v1444_v59, 0.0  ;;  %v1442_v61 = vadd.f32 %v1761_v52, %v1410_v39 }
 0x13a   : > { %v1774_v9 = vpack.c.bf16 %v1448_v14, %v1447_v12  ;;  %v1446_v11 = vmax.f32 %v1438_v19, 0.0 }
 0x13b   : > { %v1784_v24 = vpack.c.bf16 %v1452_v41, %v1451_v44  ;;  %v1450_v26 = vmax.f32 %v1442_v61, 0.0 }
 0x13c   : > { %1789 = vst [vmem:[%s286_s24 + $0x8] sm:$0xff] %v1774_v9   ;;  %v1769_v33 = vpack.c.bf16 %v1446_v11, %v1445_v63 }
 0x13d   : > { %1791 = vst [vmem:[%s286_s24 + $0x18] sm:$0xff] %v1784_v24   ;;  %v1779_v30 = vpack.c.bf16 %v1450_v26, %v1449_v29 }
 0x13e   : > { %1770 = vst [vmem:[%s286_s24] sm:$0xff] %v1769_v33  }
 0x13f   : > { %1790 = vst [vmem:[%s286_s24 + $0x10] sm:$0xff] %v1779_v30  }
 0x140 PF: > { %s14_s17 = sadd.s32 1, %s2175_s17   ;;  %s2617_s15 = smov %s2171_s16 }
 0x141   : > { %p11_p5 = scmp.ge.s32.totalorder %s14_s17, 4   ;;  %s2618_s16 = smov %s2620_s18 }
 0x143   :  { %13 = sbr.rel (!%p11_p5) target bundleno = 2 (0x2), region = 75 }

// kernel: resnet_forward.10
= control target key start
LH: loop header
LB: loop body
LE: loop exit
PB: predicated region body
PF: predicated region fallthrough
CT: control target
= control target key end

     0   :  { %s4427_s15 = smov 0   ;;  %s4429_s16 = smov 0   ;;  %s5572_s0 = inlined_call_operand.vmem [shape: bf16[32,1152], index: 0, kind: input, shape index: {}]   ;;  %s5573_s1 = inlined_call_operand.vmem [shape: bf16[1152,1024], index: 1, kind: input, shape index: {}]   ;;  %s5574_s2 = inlined_call_operand.vmem [shape: f32[1,1024], index: 2, kind: input, shape index: {}]   ;;  %s5575_s3 = inlined_call_operand.vmem [shape: f32[1,1024], index: 3, kind: input, shape index: {}]   ;;  %s5576_s4 = inlined_call_operand.vmem [shape: bf16[32,1024], index: 4, kind: output, shape index: {}]  }
   0x1   :  { %s4431_s17 = smov 0   ;;  %s4433_s18 = smov 0  }
   0x2   :  { %s4435_s19 = smov 0  }
   0x3 LB: > { %s23_s20 = sadd.s32 1, %s4395_s18  ;;  %s3515_s21 = sadd.s32 4294967295, %s4399_s19   ;;  %s4399_s19 = sphi %s4435_s19, %s14_s19   ;;  %s4395_s18 = sphi %s4433_s18, %s5581_s18   ;;  %s4391_s17 = sphi %s4431_s17, %s5580_s17   ;;  %s4387_s16 = sphi %s4429_s16, %s5579_s16   ;;  %s4383_s15 = sphi %s4427_s15, %s5578_s15  }
   0x4   : > { %p24_p0 = scmp.ge.s32.totalorder %s23_s20, 2  ;;  %p66_p1 = scmp.ne.s32.totalorder %s4387_s16, %s4383_s15 }
   0x5   : > { %p67_p2 = scmp.eq.s32.totalorder %s4399_s19, 0  ;;  %p150_p4 = scmp.eq.s32.totalorder %s3515_s21, 1 }
   0x6   : > { %s5583_s20 = smov (%p24_p0, %s23_s20), 0  ;;  %s59_s23 = sadd.s32 1, %s4387_s16 }
   0x7   : > { %p68_p3 = por %p67_p2, %p66_p1  ;;  %s56_s22 = ssub.s32 %s4395_s18, %s5583_s20 }
   0x8   : > { %p57_p5 = scmp.eq.s32.totalorder %s56_s22, 0  ;;  %p4462_p6 = por %p150_p4, %p66_p1 }
   0x9   : > { %p3519_p7 = scmp.ge.s32.totalorder %s4399_s19, 2 }
   0xa   : > { %s4467_s25 = scalar_select %p57_p5, %s4387_s16, %s59_s23  }
   0xb   : > { %182 = sbr.rel (%p3519_p7) target bundleno = 164 (0xa4), region = 20 }
  0x10   : > { %185 = sbr.rel (!%p68_p3) target bundleno = 164 (0xa4), region = 24  ;;  %s187_s26 = sand.u32 (%p68_p3), 1, %s4387_s16  }
  0x11   : > { %s3845_s27 = sshll.u32 (%p68_p3), %s4395_s18, 4  ;;  %s3855_s28 = smul.u32 (%p68_p3), 2304, %s187_s26 }
  0x12   : > { %s4475_s5 = scalar_lea.vmem (%p68_p3), %s5573_s1, %s3845_s27 }
  0x13   : > { %v205_v0 = vld [vmem:[%s4475_s5] sm:$0xff] (%p68_p3)  ;;  %v207_v1 = vld [vmem:[%s4475_s5 + $0x8] sm:$0xff] (%p68_p3)  ;;  %s4483_s6 = scalar_lea.vmem (%p68_p3), [#allocation2], %s3855_s28 }
  0x14   : > { %v209_v2 = vld [vmem:[%s4475_s5 + $0x20] sm:$0xff] (%p68_p3)  ;;  %v211_v3 = vld [vmem:[%s4475_s5 + $0x28] sm:$0xff] (%p68_p3)  ;;  %206 = vst [vmem:[%s4483_s6] sm:$0xff] (%p68_p3), %v205_v0  ;;  %208 = vst [vmem:[%s4483_s6 + $0x8] sm:$0xff] (%p68_p3), %v207_v1 }
  0x15   : > { %v213_v4 = vld [vmem:[%s4475_s5 + $0x40] sm:$0xff]  ;;  %v215_v5 = vld [vmem:[%s4475_s5 + $0x48] sm:$0xff]  ;;  %210 = vst [vmem:[%s4483_s6 + $0x10] sm:$0xff] %v209_v2  ;;  %212 = vst [vmem:[%s4483_s6 + $0x18] sm:$0xff] %v211_v3 }
  0x16   : > { %214 = vst [vmem:[%s4483_s6 + $0x20] sm:$0xff] %v213_v4  ;;  %216 = vst [vmem:[%s4483_s6 + $0x28] sm:$0xff] %v215_v5  ;;  %v217_v6 = vld [vmem:[%s4475_s5 + $0x60] sm:$0xff]  ;;  %v219_v7 = vld [vmem:[%s4475_s5 + $0x68] sm:$0xff] }
  0x17   : > { %v221_v8 = vld [vmem:[%s4475_s5 + $0x80] sm:$0xff]  ;;  %218 = vst [vmem:[%s4483_s6 + $0x30] sm:$0xff] %v217_v6  ;;  %220 = vst [vmem:[%s4483_s6 + $0x38] sm:$0xff] %v219_v7  ;;  %v223_v9 = vld [vmem:[%s4475_s5 + $0x88] sm:$0xff] }
  0x18   : > { %222 = vst [vmem:[%s4483_s6 + $0x40] sm:$0xff] %v221_v8  ;;  %v225_v10 = vld [vmem:[%s4475_s5 + $0xa0] sm:$0xff]  ;;  %v227_v11 = vld [vmem:[%s4475_s5 + $0xa8] sm:$0xff]  ;;  %224 = vst [vmem:[%s4483_s6 + $0x48] sm:$0xff] %v223_v9 }
  0x19   : > { %226 = vst [vmem:[%s4483_s6 + $0x50] sm:$0xff] %v225_v10  ;;  %228 = vst [vmem:[%s4483_s6 + $0x58] sm:$0xff] %v227_v11  ;;  %v229_v12 = vld [vmem:[%s4475_s5 + $0xc0] sm:$0xff]  ;;  %v231_v13 = vld [vmem:[%s4475_s5 + $0xc8] sm:$0xff] }
  0x1a   : > { %v233_v14 = vld [vmem:[%s4475_s5 + $0xe0] sm:$0xff]  ;;  %230 = vst [vmem:[%s4483_s6 + $0x60] sm:$0xff] %v229_v12  ;;  %232 = vst [vmem:[%s4483_s6 + $0x68] sm:$0xff] %v231_v13  ;;  %v235_v15 = vld [vmem:[%s4475_s5 + $0xe8] sm:$0xff] }
  0x1b   : > { %234 = vst [vmem:[%s4483_s6 + $0x70] sm:$0xff] %v233_v14  ;;  %v237_v16 = vld [vmem:[%s4475_s5 + $0x100] sm:$0xff]  ;;  %v239_v17 = vld [vmem:[%s4475_s5 + $0x108] sm:$0xff]  ;;  %236 = vst [vmem:[%s4483_s6 + $0x78] sm:$0xff] %v235_v15 }
  0x1c   : > { %238 = vst [vmem:[%s4483_s6 + $0x80] sm:$0xff] %v237_v16  ;;  %240 = vst [vmem:[%s4483_s6 + $0x88] sm:$0xff] %v239_v17  ;;  %v241_v18 = vld [vmem:[%s4475_s5 + $0x120] sm:$0xff]  ;;  %v243_v19 = vld [vmem:[%s4475_s5 + $0x128] sm:$0xff] }
  0x1d   : > { %v245_v20 = vld [vmem:[%s4475_s5 + $0x140] sm:$0xff]  ;;  %242 = vst [vmem:[%s4483_s6 + $0x90] sm:$0xff] %v241_v18  ;;  %244 = vst [vmem:[%s4483_s6 + $0x98] sm:$0xff] %v243_v19  ;;  %v247_v21 = vld [vmem:[%s4475_s5 + $0x148] sm:$0xff] }
  0x1e   : > { %246 = vst [vmem:[%s4483_s6 + $0xa0] sm:$0xff] %v245_v20  ;;  %v249_v22 = vld [vmem:[%s4475_s5 + $0x160] sm:$0xff]  ;;  %v251_v23 = vld [vmem:[%s4475_s5 + $0x168] sm:$0xff]  ;;  %248 = vst [vmem:[%s4483_s6 + $0xa8] sm:$0xff] %v247_v21 }
  0x1f   : > { %250 = vst [vmem:[%s4483_s6 + $0xb0] sm:$0xff] %v249_v22  ;;  %252 = vst [vmem:[%s4483_s6 + $0xb8] sm:$0xff] %v251_v23  ;;  %v253_v24 = vld [vmem:[%s4475_s5 + $0x180] sm:$0xff]  ;;  %v255_v25 = vld [vmem:[%s4475_s5 + $0x188] sm:$0xff] }
  0x20   : > { %v257_v26 = vld [vmem:[%s4475_s5 + $0x1a0] sm:$0xff]  ;;  %254 = vst [vmem:[%s4483_s6 + $0xc0] sm:$0xff] %v253_v24  ;;  %256 = vst [vmem:[%s4483_s6 + $0xc8] sm:$0xff] %v255_v25  ;;  %v259_v27 = vld [vmem:[%s4475_s5 + $0x1a8] sm:$0xff] }
  0x21   : > { %258 = vst [vmem:[%s4483_s6 + $0xd0] sm:$0xff] %v257_v26  ;;  %v261_v28 = vld [vmem:[%s4475_s5 + $0x1c0] sm:$0xff]  ;;  %v263_v29 = vld [vmem:[%s4475_s5 + $0x1c8] sm:$0xff]  ;;  %260 = vst [vmem:[%s4483_s6 + $0xd8] sm:$0xff] %v259_v27 }
  0x22   : > { %262 = vst [vmem:[%s4483_s6 + $0xe0] sm:$0xff] %v261_v28  ;;  %264 = vst [vmem:[%s4483_s6 + $0xe8] sm:$0xff] %v263_v29  ;;  %v265_v30 = vld [vmem:[%s4475_s5 + $0x1e0] sm:$0xff]  ;;  %v267_v31 = vld [vmem:[%s4475_s5 + $0x1e8] sm:$0xff] }
  0x23   : > { %v269_v32 = vld [vmem:[%s4475_s5 + $0x200] sm:$0xff]  ;;  %266 = vst [vmem:[%s4483_s6 + $0xf0] sm:$0xff] %v265_v30  ;;  %268 = vst [vmem:[%s4483_s6 + $0xf8] sm:$0xff] %v267_v31  ;;  %v271_v33 = vld [vmem:[%s4475_s5 + $0x208] sm:$0xff] }
  0x24   : > { %270 = vst [vmem:[%s4483_s6 + $0x100] sm:$0xff] %v269_v32  ;;  %v273_v34 = vld [vmem:[%s4475_s5 + $0x220] sm:$0xff]  ;;  %v275_v35 = vld [vmem:[%s4475_s5 + $0x228] sm:$0xff]  ;;  %272 = vst [vmem:[%s4483_s6 + $0x108] sm:$0xff] %v271_v33 }
  0x25   : > { %274 = vst [vmem:[%s4483_s6 + $0x110] sm:$0xff] %v273_v34  ;;  %276 = vst [vmem:[%s4483_s6 + $0x118] sm:$0xff] %v275_v35  ;;  %v277_v36 = vld [vmem:[%s4475_s5 + $0x240] sm:$0xff]  ;;  %v279_v37 = vld [vmem:[%s4475_s5 + $0x248] sm:$0xff] }
  0x26   : > { %v281_v38 = vld [vmem:[%s4475_s5 + $0x260] sm:$0xff]  ;;  %278 = vst [vmem:[%s4483_s6 + $0x120] sm:$0xff] %v277_v36  ;;  %280 = vst [vmem:[%s4483_s6 + $0x128] sm:$0xff] %v279_v37  ;;  %v283_v39 = vld [vmem:[%s4475_s5 + $0x268] sm:$0xff] }
  0x27   : > { %282 = vst [vmem:[%s4483_s6 + $0x130] sm:$0xff] %v281_v38  ;;  %v285_v40 = vld [vmem:[%s4475_s5 + $0x280] sm:$0xff]  ;;  %v287_v41 = vld [vmem:[%s4475_s5 + $0x288] sm:$0xff]  ;;  %284 = vst [vmem:[%s4483_s6 + $0x138] sm:$0xff] %v283_v39 }
  0x28   : > { %286 = vst [vmem:[%s4483_s6 + $0x140] sm:$0xff] %v285_v40  ;;  %288 = vst [vmem:[%s4483_s6 + $0x148] sm:$0xff] %v287_v41  ;;  %v289_v42 = vld [vmem:[%s4475_s5 + $0x2a0] sm:$0xff]  ;;  %v291_v43 = vld [vmem:[%s4475_s5 + $0x2a8] sm:$0xff] }
  0x29   : > { %v293_v44 = vld [vmem:[%s4475_s5 + $0x2c0] sm:$0xff]  ;;  %290 = vst [vmem:[%s4483_s6 + $0x150] sm:$0xff] %v289_v42  ;;  %292 = vst [vmem:[%s4483_s6 + $0x158] sm:$0xff] %v291_v43  ;;  %v295_v45 = vld [vmem:[%s4475_s5 + $0x2c8] sm:$0xff] }
  0x2a   : > { %294 = vst [vmem:[%s4483_s6 + $0x160] sm:$0xff] %v293_v44  ;;  %v297_v46 = vld [vmem:[%s4475_s5 + $0x2e0] sm:$0xff]  ;;  %v299_v47 = vld [vmem:[%s4475_s5 + $0x2e8] sm:$0xff]  ;;  %296 = vst [vmem:[%s4483_s6 + $0x168] sm:$0xff] %v295_v45 }
  0x2b   : > { %298 = vst [vmem:[%s4483_s6 + $0x170] sm:$0xff] %v297_v46  ;;  %300 = vst [vmem:[%s4483_s6 + $0x178] sm:$0xff] %v299_v47  ;;  %v301_v48 = vld [vmem:[%s4475_s5 + $0x300] sm:$0xff]  ;;  %v303_v49 = vld [vmem:[%s4475_s5 + $0x308] sm:$0xff] }
  0x2c   : > { %v305_v50 = vld [vmem:[%s4475_s5 + $0x320] sm:$0xff]  ;;  %302 = vst [vmem:[%s4483_s6 + $0x180] sm:$0xff] %v301_v48  ;;  %304 = vst [vmem:[%s4483_s6 + $0x188] sm:$0xff] %v303_v49  ;;  %v307_v51 = vld [vmem:[%s4475_s5 + $0x328] sm:$0xff] }
  0x2d   : > { %306 = vst [vmem:[%s4483_s6 + $0x190] sm:$0xff] %v305_v50  ;;  %v309_v52 = vld [vmem:[%s4475_s5 + $0x340] sm:$0xff]  ;;  %v311_v53 = vld [vmem:[%s4475_s5 + $0x348] sm:$0xff]  ;;  %308 = vst [vmem:[%s4483_s6 + $0x198] sm:$0xff] %v307_v51 }
  0x2e   : > { %310 = vst [vmem:[%s4483_s6 + $0x1a0] sm:$0xff] %v309_v52  ;;  %312 = vst [vmem:[%s4483_s6 + $0x1a8] sm:$0xff] %v311_v53  ;;  %v313_v54 = vld [vmem:[%s4475_s5 + $0x360] sm:$0xff]  ;;  %v315_v55 = vld [vmem:[%s4475_s5 + $0x368] sm:$0xff] }
  0x2f   : > { %v317_v56 = vld [vmem:[%s4475_s5 + $0x380] sm:$0xff]  ;;  %314 = vst [vmem:[%s4483_s6 + $0x1b0] sm:$0xff] %v313_v54  ;;  %316 = vst [vmem:[%s4483_s6 + $0x1b8] sm:$0xff] %v315_v55  ;;  %v319_v57 = vld [vmem:[%s4475_s5 + $0x388] sm:$0xff] }
  0x30   : > { %318 = vst [vmem:[%s4483_s6 + $0x1c0] sm:$0xff] %v317_v56  ;;  %v321_v58 = vld [vmem:[%s4475_s5 + $0x3a0] sm:$0xff]  ;;  %v323_v59 = vld [vmem:[%s4475_s5 + $0x3a8] sm:$0xff]  ;;  %320 = vst [vmem:[%s4483_s6 + $0x1c8] sm:$0xff] %v319_v57 }
  0x31   : > { %322 = vst [vmem:[%s4483_s6 + $0x1d0] sm:$0xff] %v321_v58  ;;  %324 = vst [vmem:[%s4483_s6 + $0x1d8] sm:$0xff] %v323_v59  ;;  %v325_v60 = vld [vmem:[%s4475_s5 + $0x3c0] sm:$0xff]  ;;  %v327_v61 = vld [vmem:[%s4475_s5 + $0x3c8] sm:$0xff] }
  0x32   : > { %v329_v62 = vld [vmem:[%s4475_s5 + $0x3e0] sm:$0xff]  ;;  %326 = vst [vmem:[%s4483_s6 + $0x1e0] sm:$0xff] %v325_v60  ;;  %328 = vst [vmem:[%s4483_s6 + $0x1e8] sm:$0xff] %v327_v61  ;;  %v331_v63 = vld [vmem:[%s4475_s5 + $0x3e8] sm:$0xff] }
  0x33   : > { %330 = vst [vmem:[%s4483_s6 + $0x1f0] sm:$0xff] %v329_v62  ;;  %v333_v0 = vld [vmem:[%s4475_s5 + $0x400] sm:$0xff]  ;;  %v335_v1 = vld [vmem:[%s4475_s5 + $0x408] sm:$0xff]  ;;  %332 = vst [vmem:[%s4483_s6 + $0x1f8] sm:$0xff] %v331_v63 }
  0x34   : > { %334 = vst [vmem:[%s4483_s6 + $0x200] sm:$0xff] %v333_v0  ;;  %336 = vst [vmem:[%s4483_s6 + $0x208] sm:$0xff] %v335_v1  ;;  %v337_v2 = vld [vmem:[%s4475_s5 + $0x420] sm:$0xff]  ;;  %v339_v3 = vld [vmem:[%s4475_s5 + $0x428] sm:$0xff] }
  0x35   : > { %v341_v4 = vld [vmem:[%s4475_s5 + $0x440] sm:$0xff]  ;;  %338 = vst [vmem:[%s4483_s6 + $0x210] sm:$0xff] %v337_v2  ;;  %340 = vst [vmem:[%s4483_s6 + $0x218] sm:$0xff] %v339_v3  ;;  %v343_v5 = vld [vmem:[%s4475_s5 + $0x448] sm:$0xff] }
  0x36   : > { %342 = vst [vmem:[%s4483_s6 + $0x220] sm:$0xff] %v341_v4  ;;  %v345_v6 = vld [vmem:[%s4475_s5 + $0x460] sm:$0xff]  ;;  %v347_v7 = vld [vmem:[%s4475_s5 + $0x468] sm:$0xff]  ;;  %344 = vst [vmem:[%s4483_s6 + $0x228] sm:$0xff] %v343_v5 }
  0x37   : > { %346 = vst [vmem:[%s4483_s6 + $0x230] sm:$0xff] %v345_v6  ;;  %348 = vst [vmem:[%s4483_s6 + $0x238] sm:$0xff] %v347_v7  ;;  %v349_v8 = vld [vmem:[%s4475_s5 + $0x480] sm:$0xff]  ;;  %v351_v9 = vld [vmem:[%s4475_s5 + $0x488] sm:$0xff] }
  0x38   : > { %v353_v10 = vld [vmem:[%s4475_s5 + $0x4a0] sm:$0xff]  ;;  %350 = vst [vmem:[%s4483_s6 + $0x240] sm:$0xff] %v349_v8  ;;  %352 = vst [vmem:[%s4483_s6 + $0x248] sm:$0xff] %v351_v9  ;;  %v355_v11 = vld [vmem:[%s4475_s5 + $0x4a8] sm:$0xff] }
  0x39   : > { %354 = vst [vmem:[%s4483_s6 + $0x250] sm:$0xff] %v353_v10  ;;  %v357_v12 = vld [vmem:[%s4475_s5 + $0x4c0] sm:$0xff]  ;;  %v359_v13 = vld [vmem:[%s4475_s5 + $0x4c8] sm:$0xff]  ;;  %356 = vst [vmem:[%s4483_s6 + $0x258] sm:$0xff] %v355_v11 }
  0x3a   : > { %358 = vst [vmem:[%s4483_s6 + $0x260] sm:$0xff] %v357_v12  ;;  %360 = vst [vmem:[%s4483_s6 + $0x268] sm:$0xff] %v359_v13  ;;  %v361_v14 = vld [vmem:[%s4475_s5 + $0x4e0] sm:$0xff]  ;;  %v363_v15 = vld [vmem:[%s4475_s5 + $0x4e8] sm:$0xff] }
  0x3b   : > { %v365_v16 = vld [vmem:[%s4475_s5 + $0x500] sm:$0xff]  ;;  %362 = vst [vmem:[%s4483_s6 + $0x270] sm:$0xff] %v361_v14  ;;  %364 = vst [vmem:[%s4483_s6 + $0x278] sm:$0xff] %v363_v15  ;;  %v367_v17 = vld [vmem:[%s4475_s5 + $0x508] sm:$0xff] }
  0x3c   : > { %366 = vst [vmem:[%s4483_s6 + $0x280] sm:$0xff] %v365_v16  ;;  %v369_v18 = vld [vmem:[%s4475_s5 + $0x520] sm:$0xff]  ;;  %v371_v19 = vld [vmem:[%s4475_s5 + $0x528] sm:$0xff]  ;;  %368 = vst [vmem:[%s4483_s6 + $0x288] sm:$0xff] %v367_v17 }
  0x3d   : > { %370 = vst [vmem:[%s4483_s6 + $0x290] sm:$0xff] %v369_v18  ;;  %372 = vst [vmem:[%s4483_s6 + $0x298] sm:$0xff] %v371_v19  ;;  %v373_v20 = vld [vmem:[%s4475_s5 + $0x540] sm:$0xff]  ;;  %v375_v21 = vld [vmem:[%s4475_s5 + $0x548] sm:$0xff] }
  0x3e   : > { %v377_v22 = vld [vmem:[%s4475_s5 + $0x560] sm:$0xff]  ;;  %374 = vst [vmem:[%s4483_s6 + $0x2a0] sm:$0xff] %v373_v20  ;;  %376 = vst [vmem:[%s4483_s6 + $0x2a8] sm:$0xff] %v375_v21  ;;  %v379_v23 = vld [vmem:[%s4475_s5 + $0x568] sm:$0xff] }
  0x3f   : > { %378 = vst [vmem:[%s4483_s6 + $0x2b0] sm:$0xff] %v377_v22  ;;  %v381_v24 = vld [vmem:[%s4475_s5 + $0x580] sm:$0xff]  ;;  %v383_v25 = vld [vmem:[%s4475_s5 + $0x588] sm:$0xff]  ;;  %380 = vst [vmem:[%s4483_s6 + $0x2b8] sm:$0xff] %v379_v23 }
  0x40   : > { %382 = vst [vmem:[%s4483_s6 + $0x2c0] sm:$0xff] %v381_v24  ;;  %384 = vst [vmem:[%s4483_s6 + $0x2c8] sm:$0xff] %v383_v25  ;;  %v385_v26 = vld [vmem:[%s4475_s5 + $0x5a0] sm:$0xff]  ;;  %v387_v27 = vld [vmem:[%s4475_s5 + $0x5a8] sm:$0xff] }
  0x41   : > { %v389_v28 = vld [vmem:[%s4475_s5 + $0x5c0] sm:$0xff]  ;;  %386 = vst [vmem:[%s4483_s6 + $0x2d0] sm:$0xff] %v385_v26  ;;  %388 = vst [vmem:[%s4483_s6 + $0x2d8] sm:$0xff] %v387_v27  ;;  %v391_v29 = vld [vmem:[%s4475_s5 + $0x5c8] sm:$0xff] }
  0x42   : > { %390 = vst [vmem:[%s4483_s6 + $0x2e0] sm:$0xff] %v389_v28  ;;  %v393_v30 = vld [vmem:[%s4475_s5 + $0x5e0] sm:$0xff]  ;;  %v395_v31 = vld [vmem:[%s4475_s5 + $0x5e8] sm:$0xff]  ;;  %392 = vst [vmem:[%s4483_s6 + $0x2e8] sm:$0xff] %v391_v29 }
  0x43   : > { %394 = vst [vmem:[%s4483_s6 + $0x2f0] sm:$0xff] %v393_v30  ;;  %396 = vst [vmem:[%s4483_s6 + $0x2f8] sm:$0xff] %v395_v31  ;;  %v397_v32 = vld [vmem:[%s4475_s5 + $0x600] sm:$0xff]  ;;  %v399_v33 = vld [vmem:[%s4475_s5 + $0x608] sm:$0xff] }
  0x44   : > { %v401_v34 = vld [vmem:[%s4475_s5 + $0x620] sm:$0xff]  ;;  %398 = vst [vmem:[%s4483_s6 + $0x300] sm:$0xff] %v397_v32  ;;  %400 = vst [vmem:[%s4483_s6 + $0x308] sm:$0xff] %v399_v33  ;;  %v403_v35 = vld [vmem:[%s4475_s5 + $0x628] sm:$0xff] }
  0x45   : > { %402 = vst [vmem:[%s4483_s6 + $0x310] sm:$0xff] %v401_v34  ;;  %v405_v36 = vld [vmem:[%s4475_s5 + $0x640] sm:$0xff]  ;;  %v407_v37 = vld [vmem:[%s4475_s5 + $0x648] sm:$0xff]  ;;  %404 = vst [vmem:[%s4483_s6 + $0x318] sm:$0xff] %v403_v35 }
  0x46   : > { %406 = vst [vmem:[%s4483_s6 + $0x320] sm:$0xff] %v405_v36  ;;  %408 = vst [vmem:[%s4483_s6 + $0x328] sm:$0xff] %v407_v37  ;;  %v409_v38 = vld [vmem:[%s4475_s5 + $0x660] sm:$0xff]  ;;  %v411_v39 = vld [vmem:[%s4475_s5 + $0x668] sm:$0xff] }
  0x47   : > { %v413_v40 = vld [vmem:[%s4475_s5 + $0x680] sm:$0xff]  ;;  %410 = vst [vmem:[%s4483_s6 + $0x330] sm:$0xff] %v409_v38  ;;  %412 = vst [vmem:[%s4483_s6 + $0x338] sm:$0xff] %v411_v39  ;;  %v415_v41 = vld [vmem:[%s4475_s5 + $0x688] sm:$0xff] }
  0x48   : > { %414 = vst [vmem:[%s4483_s6 + $0x340] sm:$0xff] %v413_v40  ;;  %v417_v42 = vld [vmem:[%s4475_s5 + $0x6a0] sm:$0xff]  ;;  %v419_v43 = vld [vmem:[%s4475_s5 + $0x6a8] sm:$0xff]  ;;  %416 = vst [vmem:[%s4483_s6 + $0x348] sm:$0xff] %v415_v41 }
  0x49   : > { %418 = vst [vmem:[%s4483_s6 + $0x350] sm:$0xff] %v417_v42  ;;  %420 = vst [vmem:[%s4483_s6 + $0x358] sm:$0xff] %v419_v43  ;;  %v421_v44 = vld [vmem:[%s4475_s5 + $0x6c0] sm:$0xff]  ;;  %v423_v45 = vld [vmem:[%s4475_s5 + $0x6c8] sm:$0xff] }
  0x4a   : > { %v425_v46 = vld [vmem:[%s4475_s5 + $0x6e0] sm:$0xff]  ;;  %422 = vst [vmem:[%s4483_s6 + $0x360] sm:$0xff] %v421_v44  ;;  %424 = vst [vmem:[%s4483_s6 + $0x368] sm:$0xff] %v423_v45  ;;  %v427_v47 = vld [vmem:[%s4475_s5 + $0x6e8] sm:$0xff] }
  0x4b   : > { %426 = vst [vmem:[%s4483_s6 + $0x370] sm:$0xff] %v425_v46  ;;  %v429_v48 = vld [vmem:[%s4475_s5 + $0x700] sm:$0xff]  ;;  %v431_v49 = vld [vmem:[%s4475_s5 + $0x708] sm:$0xff]  ;;  %428 = vst [vmem:[%s4483_s6 + $0x378] sm:$0xff] %v427_v47 }
  0x4c   : > { %430 = vst [vmem:[%s4483_s6 + $0x380] sm:$0xff] %v429_v48  ;;  %432 = vst [vmem:[%s4483_s6 + $0x388] sm:$0xff] %v431_v49  ;;  %v433_v50 = vld [vmem:[%s4475_s5 + $0x720] sm:$0xff]  ;;  %v435_v51 = vld [vmem:[%s4475_s5 + $0x728] sm:$0xff] }
  0x4d   : > { %v437_v52 = vld [vmem:[%s4475_s5 + $0x740] sm:$0xff]  ;;  %434 = vst [vmem:[%s4483_s6 + $0x390] sm:$0xff] %v433_v50  ;;  %436 = vst [vmem:[%s4483_s6 + $0x398] sm:$0xff] %v435_v51  ;;  %v439_v53 = vld [vmem:[%s4475_s5 + $0x748] sm:$0xff] }
  0x4e   : > { %438 = vst [vmem:[%s4483_s6 + $0x3a0] sm:$0xff] %v437_v52  ;;  %v441_v54 = vld [vmem:[%s4475_s5 + $0x760] sm:$0xff]  ;;  %v443_v55 = vld [vmem:[%s4475_s5 + $0x768] sm:$0xff]  ;;  %440 = vst [vmem:[%s4483_s6 + $0x3a8] sm:$0xff] %v439_v53 }
  0x4f   : > { %442 = vst [vmem:[%s4483_s6 + $0x3b0] sm:$0xff] %v441_v54  ;;  %444 = vst [vmem:[%s4483_s6 + $0x3b8] sm:$0xff] %v443_v55  ;;  %v445_v56 = vld [vmem:[%s4475_s5 + $0x780] sm:$0xff]  ;;  %v447_v57 = vld [vmem:[%s4475_s5 + $0x788] sm:$0xff] }
  0x50   : > { %v449_v58 = vld [vmem:[%s4475_s5 + $0x7a0] sm:$0xff]  ;;  %446 = vst [vmem:[%s4483_s6 + $0x3c0] sm:$0xff] %v445_v56  ;;  %448 = vst [vmem:[%s4483_s6 + $0x3c8] sm:$0xff] %v447_v57  ;;  %v451_v59 = vld [vmem:[%s4475_s5 + $0x7a8] sm:$0xff] }
  0x51   : > { %450 = vst [vmem:[%s4483_s6 + $0x3d0] sm:$0xff] %v449_v58  ;;  %v453_v60 = vld [vmem:[%s4475_s5 + $0x7c0] sm:$0xff]  ;;  %v455_v61 = vld [vmem:[%s4475_s5 + $0x7c8] sm:$0xff]  ;;  %452 = vst [vmem:[%s4483_s6 + $0x3d8] sm:$0xff] %v451_v59 }
  0x52   : > { %454 = vst [vmem:[%s4483_s6 + $0x3e0] sm:$0xff] %v453_v60  ;;  %456 = vst [vmem:[%s4483_s6 + $0x3e8] sm:$0xff] %v455_v61  ;;  %v457_v62 = vld [vmem:[%s4475_s5 + $0x7e0] sm:$0xff]  ;;  %v459_v63 = vld [vmem:[%s4475_s5 + $0x7e8] sm:$0xff] }
  0x53   : > { %v461_v0 = vld [vmem:[%s4475_s5 + $0x800] sm:$0xff]  ;;  %458 = vst [vmem:[%s4483_s6 + $0x3f0] sm:$0xff] %v457_v62  ;;  %460 = vst [vmem:[%s4483_s6 + $0x3f8] sm:$0xff] %v459_v63  ;;  %v463_v1 = vld [vmem:[%s4475_s5 + $0x808] sm:$0xff] }
  0x54   : > { %462 = vst [vmem:[%s4483_s6 + $0x400] sm:$0xff] %v461_v0  ;;  %v465_v2 = vld [vmem:[%s4475_s5 + $0x820] sm:$0xff]  ;;  %v467_v3 = vld [vmem:[%s4475_s5 + $0x828] sm:$0xff]  ;;  %464 = vst [vmem:[%s4483_s6 + $0x408] sm:$0xff] %v463_v1 }
  0x55   : > { %466 = vst [vmem:[%s4483_s6 + $0x410] sm:$0xff] %v465_v2  ;;  %468 = vst [vmem:[%s4483_s6 + $0x418] sm:$0xff] %v467_v3  ;;  %v469_v4 = vld [vmem:[%s4475_s5 + $0x840] sm:$0xff]  ;;  %v471_v5 = vld [vmem:[%s4475_s5 + $0x848] sm:$0xff] }
  0x56   : > { %v473_v6 = vld [vmem:[%s4475_s5 + $0x860] sm:$0xff]  ;;  %470 = vst [vmem:[%s4483_s6 + $0x420] sm:$0xff] %v469_v4  ;;  %472 = vst [vmem:[%s4483_s6 + $0x428] sm:$0xff] %v471_v5  ;;  %v475_v7 = vld [vmem:[%s4475_s5 + $0x868] sm:$0xff] }
  0x57   : > { %474 = vst [vmem:[%s4483_s6 + $0x430] sm:$0xff] %v473_v6  ;;  %v477_v8 = vld [vmem:[%s4475_s5 + $0x880] sm:$0xff]  ;;  %v479_v9 = vld [vmem:[%s4475_s5 + $0x888] sm:$0xff]  ;;  %476 = vst [vmem:[%s4483_s6 + $0x438] sm:$0xff] %v475_v7 }
  0x58   : > { %478 = vst [vmem:[%s4483_s6 + $0x440] sm:$0xff] %v477_v8  ;;  %480 = vst [vmem:[%s4483_s6 + $0x448] sm:$0xff] %v479_v9  ;;  %v481_v10 = vld [vmem:[%s4475_s5 + $0x8a0] sm:$0xff]  ;;  %v483_v11 = vld [vmem:[%s4475_s5 + $0x8a8] sm:$0xff] }
  0x59   : > { %v485_v12 = vld [vmem:[%s4475_s5 + $0x8c0] sm:$0xff]  ;;  %482 = vst [vmem:[%s4483_s6 + $0x450] sm:$0xff] %v481_v10  ;;  %484 = vst [vmem:[%s4483_s6 + $0x458] sm:$0xff] %v483_v11  ;;  %v487_v13 = vld [vmem:[%s4475_s5 + $0x8c8] sm:$0xff] }
  0x5a   : > { %486 = vst [vmem:[%s4483_s6 + $0x460] sm:$0xff] %v485_v12  ;;  %v489_v14 = vld [vmem:[%s4475_s5 + $0x8e0] sm:$0xff]  ;;  %v491_v15 = vld [vmem:[%s4475_s5 + $0x8e8] sm:$0xff]  ;;  %488 = vst [vmem:[%s4483_s6 + $0x468] sm:$0xff] %v487_v13 }
  0x5b   : > { %490 = vst [vmem:[%s4483_s6 + $0x470] sm:$0xff] %v489_v14  ;;  %492 = vst [vmem:[%s4483_s6 + $0x478] sm:$0xff] %v491_v15  ;;  %v493_v16 = vld [vmem:[%s4475_s5 + $0x900] sm:$0xff]  ;;  %v495_v17 = vld [vmem:[%s4475_s5 + $0x908] sm:$0xff] }
  0x5c   : > { %v497_v18 = vld [vmem:[%s4475_s5 + $0x920] sm:$0xff]  ;;  %494 = vst [vmem:[%s4483_s6 + $0x480] sm:$0xff] %v493_v16  ;;  %496 = vst [vmem:[%s4483_s6 + $0x488] sm:$0xff] %v495_v17  ;;  %v499_v19 = vld [vmem:[%s4475_s5 + $0x928] sm:$0xff] }
  0x5d   : > { %498 = vst [vmem:[%s4483_s6 + $0x490] sm:$0xff] %v497_v18  ;;  %v501_v20 = vld [vmem:[%s4475_s5 + $0x940] sm:$0xff]  ;;  %v503_v21 = vld [vmem:[%s4475_s5 + $0x948] sm:$0xff]  ;;  %500 = vst [vmem:[%s4483_s6 + $0x498] sm:$0xff] %v499_v19 }
  0x5e   : > { %502 = vst [vmem:[%s4483_s6 + $0x4a0] sm:$0xff] %v501_v20  ;;  %504 = vst [vmem:[%s4483_s6 + $0x4a8] sm:$0xff] %v503_v21  ;;  %v505_v22 = vld [vmem:[%s4475_s5 + $0x960] sm:$0xff]  ;;  %v507_v23 = vld [vmem:[%s4475_s5 + $0x968] sm:$0xff] }
  0x5f   : > { %v509_v24 = vld [vmem:[%s4475_s5 + $0x980] sm:$0xff]  ;;  %506 = vst [vmem:[%s4483_s6 + $0x4b0] sm:$0xff] %v505_v22  ;;  %508 = vst [vmem:[%s4483_s6 + $0x4b8] sm:$0xff] %v507_v23  ;;  %v511_v25 = vld [vmem:[%s4475_s5 + $0x988] sm:$0xff] }
  0x60   : > { %510 = vst [vmem:[%s4483_s6 + $0x4c0] sm:$0xff] %v509_v24  ;;  %v513_v26 = vld [vmem:[%s4475_s5 + $0x9a0] sm:$0xff]  ;;  %v515_v27 = vld [vmem:[%s4475_s5 + $0x9a8] sm:$0xff]  ;;  %512 = vst [vmem:[%s4483_s6 + $0x4c8] sm:$0xff] %v511_v25 }
  0x61   : > { %514 = vst [vmem:[%s4483_s6 + $0x4d0] sm:$0xff] %v513_v26  ;;  %516 = vst [vmem:[%s4483_s6 + $0x4d8] sm:$0xff] %v515_v27  ;;  %v517_v28 = vld [vmem:[%s4475_s5 + $0x9c0] sm:$0xff]  ;;  %v519_v29 = vld [vmem:[%s4475_s5 + $0x9c8] sm:$0xff] }
  0x62   : > { %v521_v30 = vld [vmem:[%s4475_s5 + $0x9e0] sm:$0xff]  ;;  %518 = vst [vmem:[%s4483_s6 + $0x4e0] sm:$0xff] %v517_v28  ;;  %520 = vst [vmem:[%s4483_s6 + $0x4e8] sm:$0xff] %v519_v29  ;;  %v523_v31 = vld [vmem:[%s4475_s5 + $0x9e8] sm:$0xff] }
  0x63   : > { %522 = vst [vmem:[%s4483_s6 + $0x4f0] sm:$0xff] %v521_v30  ;;  %v525_v32 = vld [vmem:[%s4475_s5 + $0xa00] sm:$0xff]  ;;  %v527_v33 = vld [vmem:[%s4475_s5 + $0xa08] sm:$0xff]  ;;  %524 = vst [vmem:[%s4483_s6 + $0x4f8] sm:$0xff] %v523_v31 }
  0x64   : > { %526 = vst [vmem:[%s4483_s6 + $0x500] sm:$0xff] %v525_v32  ;;  %528 = vst [vmem:[%s4483_s6 + $0x508] sm:$0xff] %v527_v33  ;;  %v529_v34 = vld [vmem:[%s4475_s5 + $0xa20] sm:$0xff]  ;;  %v531_v35 = vld [vmem:[%s4475_s5 + $0xa28] sm:$0xff] }
  0x65   : > { %v533_v36 = vld [vmem:[%s4475_s5 + $0xa40] sm:$0xff]  ;;  %530 = vst [vmem:[%s4483_s6 + $0x510] sm:$0xff] %v529_v34  ;;  %532 = vst [vmem:[%s4483_s6 + $0x518] sm:$0xff] %v531_v35  ;;  %v535_v37 = vld [vmem:[%s4475_s5 + $0xa48] sm:$0xff] }
  0x66   : > { %534 = vst [vmem:[%s4483_s6 + $0x520] sm:$0xff] %v533_v36  ;;  %v537_v38 = vld [vmem:[%s4475_s5 + $0xa60] sm:$0xff]  ;;  %v539_v39 = vld [vmem:[%s4475_s5 + $0xa68] sm:$0xff]  ;;  %536 = vst [vmem:[%s4483_s6 + $0x528] sm:$0xff] %v535_v37 }
  0x67   : > { %538 = vst [vmem:[%s4483_s6 + $0x530] sm:$0xff] %v537_v38  ;;  %540 = vst [vmem:[%s4483_s6 + $0x538] sm:$0xff] %v539_v39  ;;  %v541_v40 = vld [vmem:[%s4475_s5 + $0xa80] sm:$0xff]  ;;  %v543_v41 = vld [vmem:[%s4475_s5 + $0xa88] sm:$0xff] }
  0x68   : > { %v545_v42 = vld [vmem:[%s4475_s5 + $0xaa0] sm:$0xff]  ;;  %542 = vst [vmem:[%s4483_s6 + $0x540] sm:$0xff] %v541_v40  ;;  %544 = vst [vmem:[%s4483_s6 + $0x548] sm:$0xff] %v543_v41  ;;  %v547_v43 = vld [vmem:[%s4475_s5 + $0xaa8] sm:$0xff] }
  0x69   : > { %546 = vst [vmem:[%s4483_s6 + $0x550] sm:$0xff] %v545_v42  ;;  %v549_v44 = vld [vmem:[%s4475_s5 + $0xac0] sm:$0xff]  ;;  %v551_v45 = vld [vmem:[%s4475_s5 + $0xac8] sm:$0xff]  ;;  %548 = vst [vmem:[%s4483_s6 + $0x558] sm:$0xff] %v547_v43 }
  0x6a   : > { %550 = vst [vmem:[%s4483_s6 + $0x560] sm:$0xff] %v549_v44  ;;  %552 = vst [vmem:[%s4483_s6 + $0x568] sm:$0xff] %v551_v45  ;;  %v553_v46 = vld [vmem:[%s4475_s5 + $0xae0] sm:$0xff]  ;;  %v555_v47 = vld [vmem:[%s4475_s5 + $0xae8] sm:$0xff] }
  0x6b   : > { %v557_v48 = vld [vmem:[%s4475_s5 + $0xb00] sm:$0xff]  ;;  %554 = vst [vmem:[%s4483_s6 + $0x570] sm:$0xff] %v553_v46  ;;  %556 = vst [vmem:[%s4483_s6 + $0x578] sm:$0xff] %v555_v47  ;;  %v559_v49 = vld [vmem:[%s4475_s5 + $0xb08] sm:$0xff] }
  0x6c   : > { %558 = vst [vmem:[%s4483_s6 + $0x580] sm:$0xff] %v557_v48  ;;  %v561_v50 = vld [vmem:[%s4475_s5 + $0xb20] sm:$0xff]  ;;  %v563_v51 = vld [vmem:[%s4475_s5 + $0xb28] sm:$0xff]  ;;  %560 = vst [vmem:[%s4483_s6 + $0x588] sm:$0xff] %v559_v49 }
  0x6d   : > { %562 = vst [vmem:[%s4483_s6 + $0x590] sm:$0xff] %v561_v50  ;;  %564 = vst [vmem:[%s4483_s6 + $0x598] sm:$0xff] %v563_v51  ;;  %v565_v52 = vld [vmem:[%s4475_s5 + $0xb40] sm:$0xff]  ;;  %v567_v53 = vld [vmem:[%s4475_s5 + $0xb48] sm:$0xff] }
  0x6e   : > { %v569_v54 = vld [vmem:[%s4475_s5 + $0xb60] sm:$0xff]  ;;  %566 = vst [vmem:[%s4483_s6 + $0x5a0] sm:$0xff] %v565_v52  ;;  %568 = vst [vmem:[%s4483_s6 + $0x5a8] sm:$0xff] %v567_v53  ;;  %v571_v55 = vld [vmem:[%s4475_s5 + $0xb68] sm:$0xff] }
  0x6f   : > { %570 = vst [vmem:[%s4483_s6 + $0x5b0] sm:$0xff] %v569_v54  ;;  %v573_v56 = vld [vmem:[%s4475_s5 + $0xb80] sm:$0xff]  ;;  %v575_v57 = vld [vmem:[%s4475_s5 + $0xb88] sm:$0xff]  ;;  %572 = vst [vmem:[%s4483_s6 + $0x5b8] sm:$0xff] %v571_v55 }
  0x70   : > { %574 = vst [vmem:[%s4483_s6 + $0x5c0] sm:$0xff] %v573_v56  ;;  %576 = vst [vmem:[%s4483_s6 + $0x5c8] sm:$0xff] %v575_v57  ;;  %v577_v58 = vld [vmem:[%s4475_s5 + $0xba0] sm:$0xff]  ;;  %v579_v59 = vld [vmem:[%s4475_s5 + $0xba8] sm:$0xff] }
  0x71   : > { %v581_v60 = vld [vmem:[%s4475_s5 + $0xbc0] sm:$0xff]  ;;  %578 = vst [vmem:[%s4483_s6 + $0x5d0] sm:$0xff] %v577_v58  ;;  %580 = vst [vmem:[%s4483_s6 + $0x5d8] sm:$0xff] %v579_v59  ;;  %v583_v61 = vld [vmem:[%s4475_s5 + $0xbc8] sm:$0xff] }
  0x72   : > { %582 = vst [vmem:[%s4483_s6 + $0x5e0] sm:$0xff] %v581_v60  ;;  %v585_v62 = vld [vmem:[%s4475_s5 + $0xbe0] sm:$0xff]  ;;  %v587_v63 = vld [vmem:[%s4475_s5 + $0xbe8] sm:$0xff]  ;;  %584 = vst [vmem:[%s4483_s6 + $0x5e8] sm:$0xff] %v583_v61 }
  0x73   : > { %586 = vst [vmem:[%s4483_s6 + $0x5f0] sm:$0xff] %v585_v62  ;;  %588 = vst [vmem:[%s4483_s6 + $0x5f8] sm:$0xff] %v587_v63  ;;  %v589_v0 = vld [vmem:[%s4475_s5 + $0xc00] sm:$0xff]  ;;  %v591_v1 = vld [vmem:[%s4475_s5 + $0xc08] sm:$0xff] }
  0x74   : > { %v593_v2 = vld [vmem:[%s4475_s5 + $0xc20] sm:$0xff]  ;;  %590 = vst [vmem:[%s4483_s6 + $0x600] sm:$0xff] %v589_v0  ;;  %592 = vst [vmem:[%s4483_s6 + $0x608] sm:$0xff] %v591_v1  ;;  %v595_v3 = vld [vmem:[%s4475_s5 + $0xc28] sm:$0xff] }
  0x75   : > { %594 = vst [vmem:[%s4483_s6 + $0x610] sm:$0xff] %v593_v2  ;;  %v597_v4 = vld [vmem:[%s4475_s5 + $0xc40] sm:$0xff]  ;;  %v599_v5 = vld [vmem:[%s4475_s5 + $0xc48] sm:$0xff]  ;;  %596 = vst [vmem:[%s4483_s6 + $0x618] sm:$0xff] %v595_v3 }
  0x76   : > { %598 = vst [vmem:[%s4483_s6 + $0x620] sm:$0xff] %v597_v4  ;;  %600 = vst [vmem:[%s4483_s6 + $0x628] sm:$0xff] %v599_v5  ;;  %v601_v6 = vld [vmem:[%s4475_s5 + $0xc60] sm:$0xff]  ;;  %v603_v7 = vld [vmem:[%s4475_s5 + $0xc68] sm:$0xff] }
  0x77   : > { %v605_v8 = vld [vmem:[%s4475_s5 + $0xc80] sm:$0xff]  ;;  %602 = vst [vmem:[%s4483_s6 + $0x630] sm:$0xff] %v601_v6  ;;  %604 = vst [vmem:[%s4483_s6 + $0x638] sm:$0xff] %v603_v7  ;;  %v607_v9 = vld [vmem:[%s4475_s5 + $0xc88] sm:$0xff] }
  0x78   : > { %606 = vst [vmem:[%s4483_s6 + $0x640] sm:$0xff] %v605_v8  ;;  %v609_v10 = vld [vmem:[%s4475_s5 + $0xca0] sm:$0xff]  ;;  %v611_v11 = vld [vmem:[%s4475_s5 + $0xca8] sm:$0xff]  ;;  %608 = vst [vmem:[%s4483_s6 + $0x648] sm:$0xff] %v607_v9 }
  0x79   : > { %610 = vst [vmem:[%s4483_s6 + $0x650] sm:$0xff] %v609_v10  ;;  %612 = vst [vmem:[%s4483_s6 + $0x658] sm:$0xff] %v611_v11  ;;  %v613_v12 = vld [vmem:[%s4475_s5 + $0xcc0] sm:$0xff]  ;;  %v615_v13 = vld [vmem:[%s4475_s5 + $0xcc8] sm:$0xff] }
  0x7a   : > { %v617_v14 = vld [vmem:[%s4475_s5 + $0xce0] sm:$0xff]  ;;  %614 = vst [vmem:[%s4483_s6 + $0x660] sm:$0xff] %v613_v12  ;;  %616 = vst [vmem:[%s4483_s6 + $0x668] sm:$0xff] %v615_v13  ;;  %v619_v15 = vld [vmem:[%s4475_s5 + $0xce8] sm:$0xff] }
  0x7b   : > { %618 = vst [vmem:[%s4483_s6 + $0x670] sm:$0xff] %v617_v14  ;;  %v621_v16 = vld [vmem:[%s4475_s5 + $0xd00] sm:$0xff]  ;;  %v623_v17 = vld [vmem:[%s4475_s5 + $0xd08] sm:$0xff]  ;;  %620 = vst [vmem:[%s4483_s6 + $0x678] sm:$0xff] %v619_v15 }
  0x7c   : > { %622 = vst [vmem:[%s4483_s6 + $0x680] sm:$0xff] %v621_v16  ;;  %624 = vst [vmem:[%s4483_s6 + $0x688] sm:$0xff] %v623_v17  ;;  %v625_v18 = vld [vmem:[%s4475_s5 + $0xd20] sm:$0xff]  ;;  %v627_v19 = vld [vmem:[%s4475_s5 + $0xd28] sm:$0xff] }
  0x7d   : > { %v629_v20 = vld [vmem:[%s4475_s5 + $0xd40] sm:$0xff]  ;;  %626 = vst [vmem:[%s4483_s6 + $0x690] sm:$0xff] %v625_v18  ;;  %628 = vst [vmem:[%s4483_s6 + $0x698] sm:$0xff] %v627_v19  ;;  %v631_v21 = vld [vmem:[%s4475_s5 + $0xd48] sm:$0xff] }
  0x7e   : > { %630 = vst [vmem:[%s4483_s6 + $0x6a0] sm:$0xff] %v629_v20  ;;  %v633_v22 = vld [vmem:[%s4475_s5 + $0xd60] sm:$0xff]  ;;  %v635_v23 = vld [vmem:[%s4475_s5 + $0xd68] sm:$0xff]  ;;  %632 = vst [vmem:[%s4483_s6 + $0x6a8] sm:$0xff] %v631_v21 }
  0x7f   : > { %634 = vst [vmem:[%s4483_s6 + $0x6b0] sm:$0xff] %v633_v22  ;;  %636 = vst [vmem:[%s4483_s6 + $0x6b8] sm:$0xff] %v635_v23  ;;  %v637_v24 = vld [vmem:[%s4475_s5 + $0xd80] sm:$0xff]  ;;  %v639_v25 = vld [vmem:[%s4475_s5 + $0xd88] sm:$0xff] }
  0x80   : > { %v641_v26 = vld [vmem:[%s4475_s5 + $0xda0] sm:$0xff]  ;;  %638 = vst [vmem:[%s4483_s6 + $0x6c0] sm:$0xff] %v637_v24  ;;  %640 = vst [vmem:[%s4483_s6 + $0x6c8] sm:$0xff] %v639_v25  ;;  %v643_v27 = vld [vmem:[%s4475_s5 + $0xda8] sm:$0xff] }
  0x81   : > { %642 = vst [vmem:[%s4483_s6 + $0x6d0] sm:$0xff] %v641_v26  ;;  %v645_v28 = vld [vmem:[%s4475_s5 + $0xdc0] sm:$0xff]  ;;  %v647_v29 = vld [vmem:[%s4475_s5 + $0xdc8] sm:$0xff]  ;;  %644 = vst [vmem:[%s4483_s6 + $0x6d8] sm:$0xff] %v643_v27 }
  0x82   : > { %646 = vst [vmem:[%s4483_s6 + $0x6e0] sm:$0xff] %v645_v28  ;;  %648 = vst [vmem:[%s4483_s6 + $0x6e8] sm:$0xff] %v647_v29  ;;  %v649_v30 = vld [vmem:[%s4475_s5 + $0xde0] sm:$0xff]  ;;  %v651_v31 = vld [vmem:[%s4475_s5 + $0xde8] sm:$0xff] }
  0x83   : > { %v653_v32 = vld [vmem:[%s4475_s5 + $0xe00] sm:$0xff]  ;;  %650 = vst [vmem:[%s4483_s6 + $0x6f0] sm:$0xff] %v649_v30  ;;  %652 = vst [vmem:[%s4483_s6 + $0x6f8] sm:$0xff] %v651_v31  ;;  %v655_v33 = vld [vmem:[%s4475_s5 + $0xe08] sm:$0xff] }
  0x84   : > { %654 = vst [vmem:[%s4483_s6 + $0x700] sm:$0xff] %v653_v32  ;;  %v657_v34 = vld [vmem:[%s4475_s5 + $0xe20] sm:$0xff]  ;;  %v659_v35 = vld [vmem:[%s4475_s5 + $0xe28] sm:$0xff]  ;;  %656 = vst [vmem:[%s4483_s6 + $0x708] sm:$0xff] %v655_v33 }
  0x85   : > { %658 = vst [vmem:[%s4483_s6 + $0x710] sm:$0xff] %v657_v34  ;;  %660 = vst [vmem:[%s4483_s6 + $0x718] sm:$0xff] %v659_v35  ;;  %v661_v36 = vld [vmem:[%s4475_s5 + $0xe40] sm:$0xff]  ;;  %v663_v37 = vld [vmem:[%s4475_s5 + $0xe48] sm:$0xff] }
  0x86   : > { %v665_v38 = vld [vmem:[%s4475_s5 + $0xe60] sm:$0xff]  ;;  %662 = vst [vmem:[%s4483_s6 + $0x720] sm:$0xff] %v661_v36  ;;  %664 = vst [vmem:[%s4483_s6 + $0x728] sm:$0xff] %v663_v37  ;;  %v667_v39 = vld [vmem:[%s4475_s5 + $0xe68] sm:$0xff] }
  0x87   : > { %666 = vst [vmem:[%s4483_s6 + $0x730] sm:$0xff] %v665_v38  ;;  %v669_v40 = vld [vmem:[%s4475_s5 + $0xe80] sm:$0xff]  ;;  %v671_v41 = vld [vmem:[%s4475_s5 + $0xe88] sm:$0xff]  ;;  %668 = vst [vmem:[%s4483_s6 + $0x738] sm:$0xff] %v667_v39 }
  0x88   : > { %670 = vst [vmem:[%s4483_s6 + $0x740] sm:$0xff] %v669_v40  ;;  %672 = vst [vmem:[%s4483_s6 + $0x748] sm:$0xff] %v671_v41  ;;  %v673_v42 = vld [vmem:[%s4475_s5 + $0xea0] sm:$0xff]  ;;  %v675_v43 = vld [vmem:[%s4475_s5 + $0xea8] sm:$0xff] }
  0x89   : > { %v677_v44 = vld [vmem:[%s4475_s5 + $0xec0] sm:$0xff]  ;;  %674 = vst [vmem:[%s4483_s6 + $0x750] sm:$0xff] %v673_v42  ;;  %676 = vst [vmem:[%s4483_s6 + $0x758] sm:$0xff] %v675_v43  ;;  %v679_v45 = vld [vmem:[%s4475_s5 + $0xec8] sm:$0xff] }
  0x8a   : > { %678 = vst [vmem:[%s4483_s6 + $0x760] sm:$0xff] %v677_v44  ;;  %v681_v46 = vld [vmem:[%s4475_s5 + $0xee0] sm:$0xff]  ;;  %v683_v47 = vld [vmem:[%s4475_s5 + $0xee8] sm:$0xff]  ;;  %680 = vst [vmem:[%s4483_s6 + $0x768] sm:$0xff] %v679_v45 }
  0x8b   : > { %682 = vst [vmem:[%s4483_s6 + $0x770] sm:$0xff] %v681_v46  ;;  %684 = vst [vmem:[%s4483_s6 + $0x778] sm:$0xff] %v683_v47  ;;  %v685_v48 = vld [vmem:[%s4475_s5 + $0xf00] sm:$0xff]  ;;  %v687_v49 = vld [vmem:[%s4475_s5 + $0xf08] sm:$0xff] }
  0x8c   : > { %v689_v50 = vld [vmem:[%s4475_s5 + $0xf20] sm:$0xff]  ;;  %686 = vst [vmem:[%s4483_s6 + $0x780] sm:$0xff] %v685_v48  ;;  %688 = vst [vmem:[%s4483_s6 + $0x788] sm:$0xff] %v687_v49  ;;  %v691_v51 = vld [vmem:[%s4475_s5 + $0xf28] sm:$0xff] }
  0x8d   : > { %690 = vst [vmem:[%s4483_s6 + $0x790] sm:$0xff] %v689_v50  ;;  %v693_v52 = vld [vmem:[%s4475_s5 + $0xf40] sm:$0xff]  ;;  %v695_v53 = vld [vmem:[%s4475_s5 + $0xf48] sm:$0xff]  ;;  %692 = vst [vmem:[%s4483_s6 + $0x798] sm:$0xff] %v691_v51 }
  0x8e   : > { %694 = vst [vmem:[%s4483_s6 + $0x7a0] sm:$0xff] %v693_v52  ;;  %696 = vst [vmem:[%s4483_s6 + $0x7a8] sm:$0xff] %v695_v53  ;;  %v697_v54 = vld [vmem:[%s4475_s5 + $0xf60] sm:$0xff]  ;;  %v699_v55 = vld [vmem:[%s4475_s5 + $0xf68] sm:$0xff] }
  0x8f   : > { %v701_v56 = vld [vmem:[%s4475_s5 + $0xf80] sm:$0xff]  ;;  %698 = vst [vmem:[%s4483_s6 + $0x7b0] sm:$0xff] %v697_v54  ;;  %700 = vst [vmem:[%s4483_s6 + $0x7b8] sm:$0xff] %v699_v55  ;;  %v703_v57 = vld [vmem:[%s4475_s5 + $0xf88] sm:$0xff] }
  0x90   : > { %702 = vst [vmem:[%s4483_s6 + $0x7c0] sm:$0xff] %v701_v56  ;;  %v705_v58 = vld [vmem:[%s4475_s5 + $0xfa0] sm:$0xff]  ;;  %v707_v59 = vld [vmem:[%s4475_s5 + $0xfa8] sm:$0xff]  ;;  %704 = vst [vmem:[%s4483_s6 + $0x7c8] sm:$0xff] %v703_v57 }
  0x91   : > { %706 = vst [vmem:[%s4483_s6 + $0x7d0] sm:$0xff] %v705_v58  ;;  %708 = vst [vmem:[%s4483_s6 + $0x7d8] sm:$0xff] %v707_v59  ;;  %v709_v60 = vld [vmem:[%s4475_s5 + $0xfc0] sm:$0xff]  ;;  %v711_v61 = vld [vmem:[%s4475_s5 + $0xfc8] sm:$0xff] }
  0x92   : > { %v713_v62 = vld [vmem:[%s4475_s5 + $0xfe0] sm:$0xff]  ;;  %710 = vst [vmem:[%s4483_s6 + $0x7e0] sm:$0xff] %v709_v60  ;;  %712 = vst [vmem:[%s4483_s6 + $0x7e8] sm:$0xff] %v711_v61  ;;  %v715_v63 = vld [vmem:[%s4475_s5 + $0xfe8] sm:$0xff] }
  0x93   : > { %714 = vst [vmem:[%s4483_s6 + $0x7f0] sm:$0xff] %v713_v62  ;;  %v717_v0 = vld [vmem:[%s4475_s5 + $0x1000] sm:$0xff]  ;;  %v719_v1 = vld [vmem:[%s4475_s5 + $0x1008] sm:$0xff]  ;;  %716 = vst [vmem:[%s4483_s6 + $0x7f8] sm:$0xff] %v715_v63 }
  0x94   : > { %718 = vst [vmem:[%s4483_s6 + $0x800] sm:$0xff] %v717_v0  ;;  %720 = vst [vmem:[%s4483_s6 + $0x808] sm:$0xff] %v719_v1  ;;  %v721_v2 = vld [vmem:[%s4475_s5 + $0x1020] sm:$0xff]  ;;  %v723_v3 = vld [vmem:[%s4475_s5 + $0x1028] sm:$0xff] }
  0x95   : > { %v725_v4 = vld [vmem:[%s4475_s5 + $0x1040] sm:$0xff]  ;;  %722 = vst [vmem:[%s4483_s6 + $0x810] sm:$0xff] %v721_v2  ;;  %724 = vst [vmem:[%s4483_s6 + $0x818] sm:$0xff] %v723_v3  ;;  %v727_v5 = vld [vmem:[%s4475_s5 + $0x1048] sm:$0xff] }
  0x96   : > { %726 = vst [vmem:[%s4483_s6 + $0x820] sm:$0xff] %v725_v4  ;;  %v729_v6 = vld [vmem:[%s4475_s5 + $0x1060] sm:$0xff]  ;;  %v731_v7 = vld [vmem:[%s4475_s5 + $0x1068] sm:$0xff]  ;;  %728 = vst [vmem:[%s4483_s6 + $0x828] sm:$0xff] %v727_v5 }
  0x97   : > { %730 = vst [vmem:[%s4483_s6 + $0x830] sm:$0xff] %v729_v6  ;;  %732 = vst [vmem:[%s4483_s6 + $0x838] sm:$0xff] %v731_v7  ;;  %v733_v8 = vld [vmem:[%s4475_s5 + $0x1080] sm:$0xff]  ;;  %v735_v9 = vld [vmem:[%s4475_s5 + $0x1088] sm:$0xff] }
  0x98   : > { %v737_v10 = vld [vmem:[%s4475_s5 + $0x10a0] sm:$0xff]  ;;  %734 = vst [vmem:[%s4483_s6 + $0x840] sm:$0xff] %v733_v8  ;;  %736 = vst [vmem:[%s4483_s6 + $0x848] sm:$0xff] %v735_v9  ;;  %v739_v11 = vld [vmem:[%s4475_s5 + $0x10a8] sm:$0xff] }
  0x99   : > { %738 = vst [vmem:[%s4483_s6 + $0x850] sm:$0xff] %v737_v10  ;;  %v741_v12 = vld [vmem:[%s4475_s5 + $0x10c0] sm:$0xff]  ;;  %v743_v13 = vld [vmem:[%s4475_s5 + $0x10c8] sm:$0xff]  ;;  %740 = vst [vmem:[%s4483_s6 + $0x858] sm:$0xff] %v739_v11 }
  0x9a   : > { %742 = vst [vmem:[%s4483_s6 + $0x860] sm:$0xff] %v741_v12  ;;  %744 = vst [vmem:[%s4483_s6 + $0x868] sm:$0xff] %v743_v13  ;;  %v745_v14 = vld [vmem:[%s4475_s5 + $0x10e0] sm:$0xff]  ;;  %v747_v15 = vld [vmem:[%s4475_s5 + $0x10e8] sm:$0xff] }
  0x9b   : > { %v749_v16 = vld [vmem:[%s4475_s5 + $0x1100] sm:$0xff]  ;;  %746 = vst [vmem:[%s4483_s6 + $0x870] sm:$0xff] %v745_v14  ;;  %748 = vst [vmem:[%s4483_s6 + $0x878] sm:$0xff] %v747_v15  ;;  %v751_v17 = vld [vmem:[%s4475_s5 + $0x1108] sm:$0xff] }
  0x9c   : > { %750 = vst [vmem:[%s4483_s6 + $0x880] sm:$0xff] %v749_v16  ;;  %v753_v18 = vld [vmem:[%s4475_s5 + $0x1120] sm:$0xff]  ;;  %v755_v19 = vld [vmem:[%s4475_s5 + $0x1128] sm:$0xff]  ;;  %752 = vst [vmem:[%s4483_s6 + $0x888] sm:$0xff] %v751_v17 }
  0x9d   : > { %754 = vst [vmem:[%s4483_s6 + $0x890] sm:$0xff] %v753_v18  ;;  %756 = vst [vmem:[%s4483_s6 + $0x898] sm:$0xff] %v755_v19  ;;  %v757_v20 = vld [vmem:[%s4475_s5 + $0x1140] sm:$0xff]  ;;  %v759_v21 = vld [vmem:[%s4475_s5 + $0x1148] sm:$0xff] }
  0x9e   : > { %v761_v22 = vld [vmem:[%s4475_s5 + $0x1160] sm:$0xff]  ;;  %758 = vst [vmem:[%s4483_s6 + $0x8a0] sm:$0xff] %v757_v20  ;;  %760 = vst [vmem:[%s4483_s6 + $0x8a8] sm:$0xff] %v759_v21  ;;  %v763_v23 = vld [vmem:[%s4475_s5 + $0x1168] sm:$0xff] }
  0x9f   : > { %762 = vst [vmem:[%s4483_s6 + $0x8b0] sm:$0xff] %v761_v22  ;;  %v765_v24 = vld [vmem:[%s4475_s5 + $0x1180] sm:$0xff]  ;;  %v767_v25 = vld [vmem:[%s4475_s5 + $0x1188] sm:$0xff]  ;;  %764 = vst [vmem:[%s4483_s6 + $0x8b8] sm:$0xff] %v763_v23 }
  0xa0   : > { %766 = vst [vmem:[%s4483_s6 + $0x8c0] sm:$0xff] %v765_v24  ;;  %768 = vst [vmem:[%s4483_s6 + $0x8c8] sm:$0xff] %v767_v25  ;;  %v769_v26 = vld [vmem:[%s4475_s5 + $0x11a0] sm:$0xff]  ;;  %v771_v27 = vld [vmem:[%s4475_s5 + $0x11a8] sm:$0xff] }
  0xa1   : > { %v773_v28 = vld [vmem:[%s4475_s5 + $0x11c0] sm:$0xff]  ;;  %770 = vst [vmem:[%s4483_s6 + $0x8d0] sm:$0xff] %v769_v26  ;;  %772 = vst [vmem:[%s4483_s6 + $0x8d8] sm:$0xff] %v771_v27  ;;  %v775_v29 = vld [vmem:[%s4475_s5 + $0x11c8] sm:$0xff] }
  0xa2   : > { %774 = vst [vmem:[%s4483_s6 + $0x8e0] sm:$0xff] %v773_v28  ;;  %v777_v30 = vld [vmem:[%s4475_s5 + $0x11e0] sm:$0xff]  ;;  %v779_v31 = vld [vmem:[%s4475_s5 + $0x11e8] sm:$0xff]  ;;  %776 = vst [vmem:[%s4483_s6 + $0x8e8] sm:$0xff] %v775_v29 }
  0xa3   : > { %778 = vst [vmem:[%s4483_s6 + $0x8f0] sm:$0xff] %v777_v30  ;;  %780 = vst [vmem:[%s4483_s6 + $0x8f8] sm:$0xff] %v779_v31 }
  0xa4 PF: > { %p3522_p8 = scmp.ge.s32.totalorder %s4399_s19, 1  ;;  %p801_p9 = scmp.lt.s32.totalorder %s4399_s19, 3 }
  0xa6   : > { %p802_p10 = pnand %p3522_p8, %p801_p9 }
  0xa7   : > { %s808_s7 = sand.u32 (!%p802_p10), 1, %s4383_s15  }
  0xa8   : > { %805 = sbr.rel (%p802_p10) target bundleno = 688 (0x2b0), region = 55  ;;  %s3523_s14 = sshll.u32 (!%p802_p10), %s808_s7, 6 }
  0xa9   : > { %s3856_s8 = smul.u32 (!%p802_p10), 2304, %s808_s7  ;;  %s5499_s15 = scalar_lea.vmem (!%p802_p10), [#allocation3], %s3523_s14 }
  0xab   : > { %s5066_s13 = scalar_lea.vmem (!%p802_p10), [#allocation2], %s3856_s8 }
  0xad   : > { %v3996_v32 = vld [vmem:[%s5572_s0 + $0x4] ss:$36 sps:$4 sm:$0xff]   ;;  %v3999_v33 = vld [vmem:[%s5572_s0 + $0xc] ss:$36 sps:$4 sm:$0xff]   ;;  %s3854_s7 = sshll.u32 (%p4462_p6), %s4391_s17, 4 }
  0xae   : > { %2761 = vmatprep.mubr.bf16.mxu0 %v3996_v32  ;;  %v3898_v34 = vld [vmem:[%s5066_s13 + $0xe4] ss:$16 sps:$4 sm:$0xff]   ;;  %2814 = vmatprep.mubr.bf16.mxu1 %v3999_v33  ;;  %v3902_v36 = vld [vmem:[%s5066_s13 + $0xe0] ss:$16 sps:$4 sm:$0xff]   ;;  %s3382_s23 = scalar_lea.vmem (%p4462_p6), %s5576_s4, %s3854_s7 }
  0xaf   : > { %v3900_v35 = vld [vmem:[%s5066_s13 + $0x2e4] ss:$16 sps:$4 sm:$0xff]   ;;  %2729 = vmatprep.subr.bf16.mxu0 %v3898_v34  ;;  %v3903_v37 = vld [vmem:[%s5066_s13 + $0x2e0] ss:$16 sps:$4 sm:$0xff]  }
  0xb0   : > { %2782 = vmatprep.subr.bf16.mxu1 %v3900_v35  ;;  %v3904_v38 = vld [vmem:[%s5066_s13 + $0xc4] ss:$16 sps:$4 sm:$0xff]   ;;  %2730 = vmatpush1.bf16.msra.mxu0 %v3902_v36  ;;  %v3908_v40 = vld [vmem:[%s5066_s13 + $0xc0] ss:$16 sps:$4 sm:$0xff]  }
  0xb1   : > { %2783 = vmatpush1.bf16.msra.mxu1 %v3903_v37  ;;  %v3906_v39 = vld [vmem:[%s5066_s13 + $0x2c4] ss:$16 sps:$4 sm:$0xff]   ;;  %2731 = vmatprep.subr.bf16.mxu0 %v3904_v38  ;;  %v3909_v41 = vld [vmem:[%s5066_s13 + $0x2c0] ss:$16 sps:$4 sm:$0xff]   ;;  %v3997_v37 = vld [vmem:[%s5572_s0 + $0x8] ss:$36 sps:$4 sm:$0xff]  }
  0xb2   : > { %2784 = vmatprep.subr.bf16.mxu1 %v3906_v39  ;;  %v3910_v42 = vld [vmem:[%s5066_s13 + $0xa4] ss:$16 sps:$4 sm:$0xff]   ;;  %v3914_v44 = vld [vmem:[%s5066_s13 + $0xa0] ss:$16 sps:$4 sm:$0xff]  }
  0xb3   : > { %v3912_v43 = vld [vmem:[%s5066_s13 + $0x2a4] ss:$16 sps:$4 sm:$0xff]   ;;  %v3915_v45 = vld [vmem:[%s5066_s13 + $0x2a0] ss:$16 sps:$4 sm:$0xff]  }
  0xb4   : > { %2732 = vmatpush1.bf16.msra.mxu0 %v3908_v40  ;;  %v3916_v46 = vld [vmem:[%s5066_s13 + $0x84] ss:$16 sps:$4 sm:$0xff]   ;;  %v3920_v48 = vld [vmem:[%s5066_s13 + $0x80] ss:$16 sps:$4 sm:$0xff]  }
  0xb5   : > { %2785 = vmatpush1.bf16.msra.mxu1 %v3909_v41  ;;  %2733 = vmatprep.subr.bf16.mxu0 %v3910_v42  ;;  %v3918_v47 = vld [vmem:[%s5066_s13 + $0x284] ss:$16 sps:$4 sm:$0xff]   ;;  %v3921_v49 = vld [vmem:[%s5066_s13 + $0x280] ss:$16 sps:$4 sm:$0xff]  }
  0xb6   : > { %2786 = vmatprep.subr.bf16.mxu1 %v3912_v43  ;;  %v3922_v50 = vld [vmem:[%s5066_s13 + $0x64] ss:$16 sps:$4 sm:$0xff]   ;;  %v3926_v52 = vld [vmem:[%s5066_s13 + $0x60] ss:$16 sps:$4 sm:$0xff]  }
  0xb7   : > { %v3924_v51 = vld [vmem:[%s5066_s13 + $0x264] ss:$16 sps:$4 sm:$0xff]   ;;  %v3927_v53 = vld [vmem:[%s5066_s13 + $0x260] ss:$16 sps:$4 sm:$0xff]  }
  0xb8   : > { %2734 = vmatpush1.bf16.msra.mxu0 %v3914_v44  ;;  %v3928_v54 = vld [vmem:[%s5066_s13 + $0x44] ss:$16 sps:$4 sm:$0xff]   ;;  %v3932_v56 = vld [vmem:[%s5066_s13 + $0x40] ss:$16 sps:$4 sm:$0xff]  }
  0xb9   : > { %2787 = vmatpush1.bf16.msra.mxu1 %v3915_v45  ;;  %2735 = vmatprep.subr.bf16.mxu0 %v3916_v46  ;;  %v3930_v55 = vld [vmem:[%s5066_s13 + $0x244] ss:$16 sps:$4 sm:$0xff]   ;;  %v3933_v57 = vld [vmem:[%s5066_s13 + $0x240] ss:$16 sps:$4 sm:$0xff]  }
  0xba   : > { %2788 = vmatprep.subr.bf16.mxu1 %v3918_v47  ;;  %v3934_v58 = vld [vmem:[%s5066_s13 + $0x24] ss:$16 sps:$4 sm:$0xff]   ;;  %v3938_v60 = vld [vmem:[%s5066_s13 + $0x20] ss:$16 sps:$4 sm:$0xff]   ;;  %v5160_v47 = vld [vmem:[%s5572_s0 + $0x48] ss:$36 sps:$4 sm:$0xff]  }
  0xbb   : > { %v3936_v59 = vld [vmem:[%s5066_s13 + $0x224] ss:$16 sps:$4 sm:$0xff]   ;;  %v3939_v61 = vld [vmem:[%s5066_s13 + $0x220] ss:$16 sps:$4 sm:$0xff]  }
  0xbc   : > { %2736 = vmatpush1.bf16.msra.mxu0 %v3920_v48  ;;  %v3940_v62 = vld [vmem:[%s5066_s13 + $0x4] ss:$16 sps:$4 sm:$0xff]   ;;  %v3944_v0 = vld [vmem:[%s5066_s13] ss:$16 sps:$4 sm:$0xff]  }
  0xbd   : > { %2789 = vmatpush1.bf16.msra.mxu1 %v3921_v49  ;;  %2737 = vmatprep.subr.bf16.mxu0 %v3922_v50  ;;  %v3942_v63 = vld [vmem:[%s5066_s13 + $0x204] ss:$16 sps:$4 sm:$0xff]   ;;  %v3945_v1 = vld [vmem:[%s5066_s13 + $0x200] ss:$16 sps:$4 sm:$0xff]  }
  0xbe   : > { %2790 = vmatprep.subr.bf16.mxu1 %v3924_v51  ;;  %v3946_v2 = vld [vmem:[%s5066_s13 + $0x1e4] ss:$16 sps:$4 sm:$0xff]   ;;  %v3950_v4 = vld [vmem:[%s5066_s13 + $0x1e0] ss:$16 sps:$4 sm:$0xff]  }
  0xbf   : > { %v3948_v3 = vld [vmem:[%s5066_s13 + $0x3e4] ss:$16 sps:$4 sm:$0xff]   ;;  %v3951_v5 = vld [vmem:[%s5066_s13 + $0x3e0] ss:$16 sps:$4 sm:$0xff]  }
  0xc0   : > { %2738 = vmatpush1.bf16.msra.mxu0 %v3926_v52  ;;  %v3952_v6 = vld [vmem:[%s5066_s13 + $0x1c4] ss:$16 sps:$4 sm:$0xff]   ;;  %v3956_v8 = vld [vmem:[%s5066_s13 + $0x1c0] ss:$16 sps:$4 sm:$0xff]  }
  0xc1   : > { %2791 = vmatpush1.bf16.msra.mxu1 %v3927_v53  ;;  %2739 = vmatprep.subr.bf16.mxu0 %v3928_v54  ;;  %v3954_v7 = vld [vmem:[%s5066_s13 + $0x3c4] ss:$16 sps:$4 sm:$0xff]   ;;  %v3957_v9 = vld [vmem:[%s5066_s13 + $0x3c0] ss:$16 sps:$4 sm:$0xff]  }
  0xc2   : > { %2792 = vmatprep.subr.bf16.mxu1 %v3930_v55  ;;  %v3958_v10 = vld [vmem:[%s5066_s13 + $0x1a4] ss:$16 sps:$4 sm:$0xff]   ;;  %v3962_v12 = vld [vmem:[%s5066_s13 + $0x1a0] ss:$16 sps:$4 sm:$0xff]  }
  0xc3   : > { %v3960_v11 = vld [vmem:[%s5066_s13 + $0x3a4] ss:$16 sps:$4 sm:$0xff]   ;;  %v3963_v13 = vld [vmem:[%s5066_s13 + $0x3a0] ss:$16 sps:$4 sm:$0xff]  }
  0xc4   : > { %2740 = vmatpush1.bf16.msra.mxu0 %v3932_v56  ;;  %v3964_v14 = vld [vmem:[%s5066_s13 + $0x184] ss:$16 sps:$4 sm:$0xff]   ;;  %v3968_v16 = vld [vmem:[%s5066_s13 + $0x180] ss:$16 sps:$4 sm:$0xff]  }
  0xc5   : > { %2793 = vmatpush1.bf16.msra.mxu1 %v3933_v57  ;;  %2741 = vmatprep.subr.bf16.mxu0 %v3934_v58  ;;  %v3966_v15 = vld [vmem:[%s5066_s13 + $0x384] ss:$16 sps:$4 sm:$0xff]   ;;  %v3969_v17 = vld [vmem:[%s5066_s13 + $0x380] ss:$16 sps:$4 sm:$0xff]  }
  0xc6   : > { %2794 = vmatprep.subr.bf16.mxu1 %v3936_v59  ;;  %v3970_v18 = vld [vmem:[%s5066_s13 + $0x164] ss:$16 sps:$4 sm:$0xff]   ;;  %v3974_v20 = vld [vmem:[%s5066_s13 + $0x160] ss:$16 sps:$4 sm:$0xff]  }
  0xc7   : > { %v3972_v19 = vld [vmem:[%s5066_s13 + $0x364] ss:$16 sps:$4 sm:$0xff]   ;;  %v3975_v21 = vld [vmem:[%s5066_s13 + $0x360] ss:$16 sps:$4 sm:$0xff]  }
  0xc8   : > { %2742 = vmatpush1.bf16.msra.mxu0 %v3938_v60  ;;  %v3976_v22 = vld [vmem:[%s5066_s13 + $0x144] ss:$16 sps:$4 sm:$0xff]   ;;  %v3980_v24 = vld [vmem:[%s5066_s13 + $0x140] ss:$16 sps:$4 sm:$0xff]  }
  0xc9   : > { %2795 = vmatpush1.bf16.msra.mxu1 %v3939_v61  ;;  %2743 = vmatprep.subr.bf16.mxu0 %v3940_v62  ;;  %v3978_v23 = vld [vmem:[%s5066_s13 + $0x344] ss:$16 sps:$4 sm:$0xff]   ;;  %v3981_v25 = vld [vmem:[%s5066_s13 + $0x340] ss:$16 sps:$4 sm:$0xff]  }
  0xca   : > { %2796 = vmatprep.subr.bf16.mxu1 %v3942_v63  ;;  %v3982_v26 = vld [vmem:[%s5066_s13 + $0x124] ss:$16 sps:$4 sm:$0xff]   ;;  %v3986_v28 = vld [vmem:[%s5066_s13 + $0x120] ss:$16 sps:$4 sm:$0xff]  }
  0xcb   : > { %v3984_v27 = vld [vmem:[%s5066_s13 + $0x324] ss:$16 sps:$4 sm:$0xff]   ;;  %v3987_v29 = vld [vmem:[%s5066_s13 + $0x320] ss:$16 sps:$4 sm:$0xff]  }
  0xcc   : > { %2744 = vmatpush1.bf16.msra.mxu0 %v3944_v0  ;;  %v3988_v30 = vld [vmem:[%s5066_s13 + $0x104] ss:$16 sps:$4 sm:$0xff]   ;;  %v3992_v32 = vld [vmem:[%s5066_s13 + $0x100] ss:$16 sps:$4 sm:$0xff]  }
  0xcd   : > { %2797 = vmatpush1.bf16.msra.mxu1 %v3945_v1  ;;  %2745 = vmatprep.subr.bf16.mxu0 %v3946_v2  ;;  %v3990_v31 = vld [vmem:[%s5066_s13 + $0x304] ss:$16 sps:$4 sm:$0xff]   ;;  %v3993_v33 = vld [vmem:[%s5066_s13 + $0x300] ss:$16 sps:$4 sm:$0xff]  }
  0xce   : > { %2798 = vmatprep.subr.bf16.mxu1 %v3948_v3  ;;  %v4002_v34 = vld [vmem:[%s5066_s13 + $0x4e4] ss:$16 sps:$4 sm:$0xff]   ;;  %v4000_v38 = vld [vmem:[%s5066_s13 + $0x4e0] ss:$16 sps:$4 sm:$0xff]  }
  0xcf   : > { %v4005_v35 = vld [vmem:[%s5066_s13 + $0x6e4] ss:$16 sps:$4 sm:$0xff]   ;;  %v4003_v39 = vld [vmem:[%s5066_s13 + $0x6e0] ss:$16 sps:$4 sm:$0xff]  }
  0xd0   : > { %2746 = vmatpush2.bf16.msra.mxu0 %v3950_v4  ;;  %v5137_v36 = vld [vmem:[%s5572_s0] ss:$36 sps:$4 sm:$0xff]   ;;  %v5149_v42 = vld [vmem:[%s5572_s0 + $0x4c] ss:$36 sps:$4 sm:$0xff]   ;;  %v4081_v56 = vld [vmem:[%s5572_s0 + $0x54] ss:$36 sps:$4 sm:$0xff]  }
  0xd1   : > { %2799 = vmatpush2.bf16.msra.mxu1 %v3951_v5  ;;  %2747 = vmatprep.subr.bf16.mxu0 %v3952_v6  ;;  %v4008_v40 = vld [vmem:[%s5066_s13 + $0x4c4] ss:$16 sps:$4 sm:$0xff]   ;;  %v4006_v43 = vld [vmem:[%s5066_s13 + $0x4c0] ss:$16 sps:$4 sm:$0xff]  }
  0xd2   : > { %2800 = vmatprep.subr.bf16.mxu1 %v3954_v7  ;;  %v4011_v41 = vld [vmem:[%s5066_s13 + $0x6c4] ss:$16 sps:$4 sm:$0xff]   ;;  %v4009_v44 = vld [vmem:[%s5066_s13 + $0x6c0] ss:$16 sps:$4 sm:$0xff]  }
  0xd3   : > { %v4014_v45 = vld [vmem:[%s5066_s13 + $0x4a4] ss:$16 sps:$4 sm:$0xff]   ;;  %v4012_v48 = vld [vmem:[%s5066_s13 + $0x4a0] ss:$16 sps:$4 sm:$0xff]  }
  0xd4   : > { %2748 = vmatpush2.bf16.msra.mxu0 %v3956_v8  ;;  %v4017_v46 = vld [vmem:[%s5066_s13 + $0x6a4] ss:$16 sps:$4 sm:$0xff]   ;;  %v4015_v49 = vld [vmem:[%s5066_s13 + $0x6a0] ss:$16 sps:$4 sm:$0xff]  }
  0xd5   : > { %2801 = vmatpush2.bf16.msra.mxu1 %v3957_v9  ;;  %2749 = vmatprep.subr.bf16.mxu0 %v3958_v10  ;;  %v4020_v50 = vld [vmem:[%s5066_s13 + $0x484] ss:$16 sps:$4 sm:$0xff]   ;;  %v4018_v52 = vld [vmem:[%s5066_s13 + $0x480] ss:$16 sps:$4 sm:$0xff]  }
  0xd6   : > { %2802 = vmatprep.subr.bf16.mxu1 %v3960_v11  ;;  %v4023_v51 = vld [vmem:[%s5066_s13 + $0x684] ss:$16 sps:$4 sm:$0xff]   ;;  %v4021_v53 = vld [vmem:[%s5066_s13 + $0x680] ss:$16 sps:$4 sm:$0xff]  }
  0xd7   : > { %v4026_v54 = vld [vmem:[%s5066_s13 + $0x464] ss:$16 sps:$4 sm:$0xff]   ;;  %v4024_v57 = vld [vmem:[%s5066_s13 + $0x460] ss:$16 sps:$4 sm:$0xff]  }
  0xd8   : > { %2750 = vmatpush2.bf16.msra.mxu0 %v3962_v12  ;;  %v4029_v55 = vld [vmem:[%s5066_s13 + $0x664] ss:$16 sps:$4 sm:$0xff]   ;;  %v4027_v58 = vld [vmem:[%s5066_s13 + $0x660] ss:$16 sps:$4 sm:$0xff]  }
  0xd9   : > { %2803 = vmatpush2.bf16.msra.mxu1 %v3963_v13  ;;  %2751 = vmatprep.subr.bf16.mxu0 %v3964_v14  ;;  %v4032_v59 = vld [vmem:[%s5066_s13 + $0x444] ss:$16 sps:$4 sm:$0xff]   ;;  %v4030_v62 = vld [vmem:[%s5066_s13 + $0x440] ss:$16 sps:$4 sm:$0xff]  }
  0xda   : > { %2804 = vmatprep.subr.bf16.mxu1 %v3966_v15  ;;  %v4035_v60 = vld [vmem:[%s5066_s13 + $0x644] ss:$16 sps:$4 sm:$0xff]   ;;  %v4033_v63 = vld [vmem:[%s5066_s13 + $0x640] ss:$16 sps:$4 sm:$0xff]  }
  0xdb   : > { %v4089_v61 = vld [vmem:[%s5572_s0 + $0x50] ss:$36 sps:$4 sm:$0xff]   ;;  %v5197_v7 = vld [vmem:[%s5572_s0 + $0x1c] ss:$36 sps:$4 sm:$0xff]  }
  0xdc   : > { %2752 = vmatpush2.bf16.msra.mxu0 %v3968_v16  ;;  %v4038_v0 = vld [vmem:[%s5066_s13 + $0x424] ss:$16 sps:$4 sm:$0xff]   ;;  %v4036_v2 = vld [vmem:[%s5066_s13 + $0x420] ss:$16 sps:$4 sm:$0xff]  }
  0xdd   : > { %2805 = vmatpush2.bf16.msra.mxu1 %v3969_v17  ;;  %2753 = vmatprep.subr.bf16.mxu0 %v3970_v18  ;;  %v4041_v1 = vld [vmem:[%s5066_s13 + $0x624] ss:$16 sps:$4 sm:$0xff]   ;;  %v4039_v3 = vld [vmem:[%s5066_s13 + $0x620] ss:$16 sps:$4 sm:$0xff]  }
  0xde   : > { %2806 = vmatprep.subr.bf16.mxu1 %v3972_v19  ;;  %v4044_v4 = vld [vmem:[%s5066_s13 + $0x404] ss:$16 sps:$4 sm:$0xff]   ;;  %v4042_v8 = vld [vmem:[%s5066_s13 + $0x400] ss:$16 sps:$4 sm:$0xff]  }
  0xdf   : > { %v5191_v5 = vld [vmem:[%s5572_s0 + $0x14] ss:$36 sps:$4 sm:$0xff]   ;;  %v4045_v9 = vld [vmem:[%s5066_s13 + $0x600] ss:$16 sps:$4 sm:$0xff]  }
  0xe0   : > { %2754 = vmatpush2.bf16.msra.mxu0 %v3974_v20  ;;  %v4047_v6 = vld [vmem:[%s5066_s13 + $0x604] ss:$16 sps:$4 sm:$0xff]   ;;  %v4048_v12 = vld [vmem:[%s5066_s13 + $0x5e0] ss:$16 sps:$4 sm:$0xff]  }
  0xe1   : > { %2807 = vmatpush2.bf16.msra.mxu1 %v3975_v21  ;;  %2755 = vmatprep.subr.bf16.mxu0 %v3976_v22  ;;  %v4050_v10 = vld [vmem:[%s5066_s13 + $0x5e4] ss:$16 sps:$4 sm:$0xff]   ;;  %v4051_v13 = vld [vmem:[%s5066_s13 + $0x7e0] ss:$16 sps:$4 sm:$0xff]  }
  0xe2   : > { %2808 = vmatprep.subr.bf16.mxu1 %v3978_v23  ;;  %v4053_v11 = vld [vmem:[%s5066_s13 + $0x7e4] ss:$16 sps:$4 sm:$0xff]   ;;  %v4054_v16 = vld [vmem:[%s5066_s13 + $0x5c0] ss:$16 sps:$4 sm:$0xff]  }
  0xe3   : > { %v4056_v14 = vld [vmem:[%s5066_s13 + $0x5c4] ss:$16 sps:$4 sm:$0xff]   ;;  %v4057_v17 = vld [vmem:[%s5066_s13 + $0x7c0] ss:$16 sps:$4 sm:$0xff]  }
  0xe4   : > { %2756 = vmatpush2.bf16.msra.mxu0 %v3980_v24  ;;  %v4059_v15 = vld [vmem:[%s5066_s13 + $0x7c4] ss:$16 sps:$4 sm:$0xff]   ;;  %v4060_v20 = vld [vmem:[%s5066_s13 + $0x5a0] ss:$16 sps:$4 sm:$0xff]  }
  0xe5   : > { %2809 = vmatpush2.bf16.msra.mxu1 %v3981_v25  ;;  %2757 = vmatprep.subr.bf16.mxu0 %v3982_v26  ;;  %v4062_v18 = vld [vmem:[%s5066_s13 + $0x5a4] ss:$16 sps:$4 sm:$0xff]   ;;  %v4063_v21 = vld [vmem:[%s5066_s13 + $0x7a0] ss:$16 sps:$4 sm:$0xff]  }
  0xe6   : > { %2810 = vmatprep.subr.bf16.mxu1 %v3984_v27  ;;  %v4065_v19 = vld [vmem:[%s5066_s13 + $0x7a4] ss:$16 sps:$4 sm:$0xff]   ;;  %v4066_v24 = vld [vmem:[%s5066_s13 + $0x580] ss:$16 sps:$4 sm:$0xff]  }
  0xe7   : > { %v4068_v22 = vld [vmem:[%s5066_s13 + $0x584] ss:$16 sps:$4 sm:$0xff]   ;;  %v4069_v25 = vld [vmem:[%s5066_s13 + $0x780] ss:$16 sps:$4 sm:$0xff]  }
  0xe8   : > { %2758 = vmatpush2.bf16.msra.mxu0 %v3986_v28  ;;  %v4071_v23 = vld [vmem:[%s5066_s13 + $0x784] ss:$16 sps:$4 sm:$0xff]   ;;  %v4072_v28 = vld [vmem:[%s5066_s13 + $0x560] ss:$16 sps:$4 sm:$0xff]  }
  0xe9   : > { %2811 = vmatpush2.bf16.msra.mxu1 %v3987_v29  ;;  %2759 = vmatprep.subr.bf16.mxu0 %v3988_v30  ;;  %v4074_v26 = vld [vmem:[%s5066_s13 + $0x564] ss:$16 sps:$4 sm:$0xff]   ;;  %v4075_v29 = vld [vmem:[%s5066_s13 + $0x760] ss:$16 sps:$4 sm:$0xff]  }
  0xea   : > { %2812 = vmatprep.subr.bf16.mxu1 %v3990_v31  ;;  %v4077_v27 = vld [vmem:[%s5066_s13 + $0x764] ss:$16 sps:$4 sm:$0xff]  }
  0xeb   : > { %v4085_v30 = vld [vmem:[%s5066_s13 + $0x544] ss:$16 sps:$4 sm:$0xff]  }
  0xec   : > { %2760 = vmatpush2.bf16.msra.mxu0 %v3992_v32  ;;  %v4088_v31 = vld [vmem:[%s5066_s13 + $0x744] ss:$16 sps:$4 sm:$0xff]   ;;  %v4083_v32 = vld [vmem:[%s5066_s13 + $0x540] ss:$16 sps:$4 sm:$0xff]  }
  0xed   : > { %2813 = vmatpush2.bf16.msra.mxu1 %v3993_v33  ;;  %2835 = vmatprep.subr.bf16.mxu0 %v4002_v34  ;;  %v4086_v33 = vld [vmem:[%s5066_s13 + $0x740] ss:$16 sps:$4 sm:$0xff]   ;;  %v4092_v34 = vld [vmem:[%s5066_s13 + $0x524] ss:$16 sps:$4 sm:$0xff]  }
  0xee   : > { %2888 = vmatprep.subr.bf16.mxu1 %v4005_v35  ;;  %v4095_v35 = vld [vmem:[%s5066_s13 + $0x724] ss:$16 sps:$4 sm:$0xff]  }
  0xef   : > { %2762 = vmatmul.mubr.bf16.vlgmr.msra.gmra.mxu0 %v5137_v36 }
  0xf0   : > { %2815 = vmatmul.mubr.bf16.vlgmr.msra.gmra.mxu1 %v3997_v37  ;;  %2836 = vmatpush1.bf16.msra.mxu0 %v4000_v38  ;;  %v4090_v37 = vld [vmem:[%s5066_s13 + $0x520] ss:$16 sps:$4 sm:$0xff]  }
  0xf1   : > { %2889 = vmatpush1.bf16.msra.mxu1 %v4003_v39  ;;  %2837 = vmatprep.subr.bf16.mxu0 %v4008_v40  ;;  %v4093_v38 = vld [vmem:[%s5066_s13 + $0x720] ss:$16 sps:$4 sm:$0xff]   ;;  %v4098_v39 = vld [vmem:[%s5066_s13 + $0x504] ss:$16 sps:$4 sm:$0xff]  }
  0xf2   : > { %2890 = vmatprep.subr.bf16.mxu1 %v4011_v41  ;;  %2771 = vmatprep.mubr.bf16.mxu0 %v5149_v42  ;;  %v4101_v40 = vld [vmem:[%s5066_s13 + $0x704] ss:$16 sps:$4 sm:$0xff]   ;;  %v4096_v41 = vld [vmem:[%s5066_s13 + $0x500] ss:$16 sps:$4 sm:$0xff]  }
  0xf3   : > { %2824 = vmatprep.mubr.bf16.mxu1 %v4081_v56  ;;  %v4117_v56 = vld [vmem:[%s5066_s13 + $0xc8] ss:$16 sps:$4 sm:$0xff]  }
  0xf4   : > { %2838 = vmatpush1.bf16.msra.mxu0 %v4006_v43  ;;  %v4099_v43 = vld [vmem:[%s5066_s13 + $0x700] ss:$16 sps:$4 sm:$0xff]  }
  0xf5   : > { %2891 = vmatpush1.bf16.msra.mxu1 %v4009_v44  ;;  %2839 = vmatprep.subr.bf16.mxu0 %v4014_v45  ;;  %v4110_v44 = vld [vmem:[%s5066_s13 + $0x8e4] ss:$16 sps:$4 sm:$0xff]  }
  0xf6   : > { %2892 = vmatprep.subr.bf16.mxu1 %v4017_v46  ;;  %v5239_v45 = vld [vmem:[%s5572_s0 + $0x10] ss:$36 sps:$4 sm:$0xff]   ;;  %v4113_v46 = vld [vmem:[%s5066_s13 + $0xec] ss:$16 sps:$4 sm:$0xff]  }
  0xf7   : > { %2772 = vmatmul.mubr.bf16.gmra.mxu0 %v5160_v47 }
  0xf8   : > { %2840 = vmatpush1.bf16.msra.mxu0 %v4012_v48  ;;  %2825 = vmatmul.mubr.bf16.gmra.mxu1 %v4089_v61  ;;  %v5245_v48 = vld [vmem:[%s5572_s0 + $0x18] ss:$36 sps:$4 sm:$0xff]   ;;  %v5278_v61 = vld [vmem:[%s5572_s0 + $0x60] ss:$36 sps:$4 sm:$0xff]  }
  0xf9   : > { %2893 = vmatpush1.bf16.msra.mxu1 %v4015_v49  ;;  %2841 = vmatprep.subr.bf16.mxu0 %v4020_v50  ;;  %v4108_v49 = vld [vmem:[%s5066_s13 + $0x8e0] ss:$16 sps:$4 sm:$0xff]   ;;  %v4111_v50 = vld [vmem:[%s5066_s13 + $0xe8] ss:$16 sps:$4 sm:$0xff]  }
  0xfa   : > { %2894 = vmatprep.subr.bf16.mxu1 %v4023_v51  ;;  %2867 = vmatprep.mubr.bf16.mxu0 %v5191_v5  ;;  %v4116_v51 = vld [vmem:[%s5066_s13 + $0x8c4] ss:$16 sps:$4 sm:$0xff]  }
  0xfb   : > { %2920 = vmatprep.mubr.bf16.mxu1 %v5197_v7 }
  0xfc   : > { %2842 = vmatpush1.bf16.msra.mxu0 %v4018_v52  ;;  %v4119_v52 = vld [vmem:[%s5066_s13 + $0xcc] ss:$16 sps:$4 sm:$0xff]  }
  0xfd   : > { %2895 = vmatpush1.bf16.msra.mxu1 %v4021_v53  ;;  %2843 = vmatprep.subr.bf16.mxu0 %v4026_v54  ;;  %v5254_v53 = vld [vmem:[%s5572_s0 + $0x5c] ss:$36 sps:$4 sm:$0xff]   ;;  %v5259_v54 = vld [vmem:[%s5572_s0 + $0x64] ss:$36 sps:$4 sm:$0xff]  }
  0xfe   : > { %2896 = vmatprep.subr.bf16.mxu1 %v4029_v55  ;;  %v4114_v55 = vld [vmem:[%s5066_s13 + $0x8c0] ss:$16 sps:$4 sm:$0xff]  }
 0x100   : > { %2844 = vmatpush1.bf16.msra.mxu0 %v4024_v57  ;;  %v4125_v57 = vld [vmem:[%s5066_s13 + $0x8a4] ss:$16 sps:$4 sm:$0xff]  }
 0x101   : > { %2897 = vmatpush1.bf16.msra.mxu1 %v4027_v58  ;;  %2845 = vmatprep.subr.bf16.mxu0 %v4032_v59  ;;  %v4128_v58 = vld [vmem:[%s5066_s13 + $0xac] ss:$16 sps:$4 sm:$0xff]  }
 0x102   : > { %2898 = vmatprep.subr.bf16.mxu1 %v4035_v60  ;;  %v5271_v59 = vld [vmem:[%s5572_s0 + $0x58] ss:$36 sps:$4 sm:$0xff]   ;;  %v4123_v60 = vld [vmem:[%s5066_s13 + $0x8a0] ss:$16 sps:$4 sm:$0xff]  }
 0x104   : > { %2846 = vmatpush1.bf16.msra.mxu0 %v4030_v62  ;;  %v4126_v62 = vld [vmem:[%s5066_s13 + $0xa8] ss:$16 sps:$4 sm:$0xff]  }
 0x105   : > { %2899 = vmatpush1.bf16.msra.mxu1 %v4033_v63  ;;  %2847 = vmatprep.subr.bf16.mxu0 %v4038_v0  ;;  %v4134_v63 = vld [vmem:[%s5066_s13 + $0x884] ss:$16 sps:$4 sm:$0xff]   ;;  %v4137_v0 = vld [vmem:[%s5066_s13 + $0x8c] ss:$16 sps:$4 sm:$0xff]  }
 0x106   : > { %2900 = vmatprep.subr.bf16.mxu1 %v4041_v1  ;;  %v4132_v1 = vld [vmem:[%s5066_s13 + $0x880] ss:$16 sps:$4 sm:$0xff]  }
 0x108   : > { %2848 = vmatpush1.bf16.msra.mxu0 %v4036_v2  ;;  %v4135_v2 = vld [vmem:[%s5066_s13 + $0x88] ss:$16 sps:$4 sm:$0xff]  }
 0x109   : > { %2901 = vmatpush1.bf16.msra.mxu1 %v4039_v3  ;;  %2849 = vmatprep.subr.bf16.mxu0 %v4044_v4  ;;  %v4140_v3 = vld [vmem:[%s5066_s13 + $0x864] ss:$16 sps:$4 sm:$0xff]   ;;  %v4143_v4 = vld [vmem:[%s5066_s13 + $0x6c] ss:$16 sps:$4 sm:$0xff]  }
 0x10a   : > { %2902 = vmatprep.subr.bf16.mxu1 %v4047_v6  ;;  %v4401_v6 = vmov 0  }
 0x10c   : > { %2850 = vmatpush1.bf16.msra.mxu0 %v4042_v8  ;;  %v4356_v8 = vld [vmem:[%s5572_s0 + $0x4] ss:$36 sps:$4 sm:$0xff]  }
 0x10d   : > { %2903 = vmatpush1.bf16.msra.mxu1 %v4045_v9  ;;  %2851 = vmatprep.subr.bf16.mxu0 %v4050_v10  ;;  %v4138_v9 = vld [vmem:[%s5066_s13 + $0x860] ss:$16 sps:$4 sm:$0xff]   ;;  %v4141_v10 = vld [vmem:[%s5066_s13 + $0x68] ss:$16 sps:$4 sm:$0xff]  }
 0x10e   : > { %2904 = vmatprep.subr.bf16.mxu1 %v4053_v11  ;;  %v4146_v11 = vld [vmem:[%s5066_s13 + $0x844] ss:$16 sps:$4 sm:$0xff]  }
 0x110   : > { %2852 = vmatpush2.bf16.msra.mxu0 %v4048_v12  ;;  %v4149_v12 = vld [vmem:[%s5066_s13 + $0x4c] ss:$16 sps:$4 sm:$0xff]  }
 0x111   : > { %2905 = vmatpush2.bf16.msra.mxu1 %v4051_v13  ;;  %2853 = vmatprep.subr.bf16.mxu0 %v4056_v14  ;;  %v4144_v13 = vld [vmem:[%s5066_s13 + $0x840] ss:$16 sps:$4 sm:$0xff]   ;;  %v4147_v14 = vld [vmem:[%s5066_s13 + $0x48] ss:$16 sps:$4 sm:$0xff]  }
 0x112   : > { %2906 = vmatprep.subr.bf16.mxu1 %v4059_v15  ;;  %v4152_v15 = vld [vmem:[%s5066_s13 + $0x824] ss:$16 sps:$4 sm:$0xff]  }
 0x114   : > { %2854 = vmatpush2.bf16.msra.mxu0 %v4054_v16  ;;  %v4155_v16 = vld [vmem:[%s5066_s13 + $0x2c] ss:$16 sps:$4 sm:$0xff]  }
 0x115   : > { %2907 = vmatpush2.bf16.msra.mxu1 %v4057_v17  ;;  %2855 = vmatprep.subr.bf16.mxu0 %v4062_v18  ;;  %v4150_v17 = vld [vmem:[%s5066_s13 + $0x820] ss:$16 sps:$4 sm:$0xff]   ;;  %v4153_v18 = vld [vmem:[%s5066_s13 + $0x28] ss:$16 sps:$4 sm:$0xff]  }
 0x116   : > { %2908 = vmatprep.subr.bf16.mxu1 %v4065_v19  ;;  %v4158_v19 = vld [vmem:[%s5066_s13 + $0x804] ss:$16 sps:$4 sm:$0xff]  }
 0x118   : > { %2856 = vmatpush2.bf16.msra.mxu0 %v4060_v20  ;;  %v4161_v20 = vld [vmem:[%s5066_s13 + $0xc] ss:$16 sps:$4 sm:$0xff]  }
 0x119   : > { %2909 = vmatpush2.bf16.msra.mxu1 %v4063_v21  ;;  %2857 = vmatprep.subr.bf16.mxu0 %v4068_v22  ;;  %v4156_v21 = vld [vmem:[%s5066_s13 + $0x800] ss:$16 sps:$4 sm:$0xff]   ;;  %v4159_v22 = vld [vmem:[%s5066_s13 + $0x8] ss:$16 sps:$4 sm:$0xff]  }
 0x11a   : > { %2910 = vmatprep.subr.bf16.mxu1 %v4071_v23  ;;  %v4165_v23 = vld [vmem:[%s5066_s13 + $0x1ec] ss:$16 sps:$4 sm:$0xff]  }
 0x11c   : > { %2858 = vmatpush2.bf16.msra.mxu0 %v4066_v24  ;;  %v4168_v24 = vld [vmem:[%s5066_s13 + $0x2ec] ss:$16 sps:$4 sm:$0xff]  }
 0x11d   : > { %2911 = vmatpush2.bf16.msra.mxu1 %v4069_v25  ;;  %2859 = vmatprep.subr.bf16.mxu0 %v4074_v26  ;;  %v5312_v25 = vld [vmem:[%s5572_s0 + $0x20] ss:$36 sps:$4 sm:$0xff]   ;;  %v4163_v26 = vld [vmem:[%s5066_s13 + $0x1e8] ss:$16 sps:$4 sm:$0xff]  }
 0x11e   : > { %2912 = vmatprep.subr.bf16.mxu1 %v4077_v27  ;;  %v4166_v27 = vld [vmem:[%s5066_s13 + $0x2e8] ss:$16 sps:$4 sm:$0xff]  }
 0x120   : > { %2860 = vmatpush2.bf16.msra.mxu0 %v4072_v28  ;;  %v4171_v28 = vld [vmem:[%s5066_s13 + $0x1cc] ss:$16 sps:$4 sm:$0xff]  }
 0x121   : > { %2913 = vmatpush2.bf16.msra.mxu1 %v4075_v29  ;;  %2861 = vmatprep.subr.bf16.mxu0 %v4085_v30  ;;  %v4174_v29 = vld [vmem:[%s5066_s13 + $0x2cc] ss:$16 sps:$4 sm:$0xff]   ;;  %v4169_v30 = vld [vmem:[%s5066_s13 + $0x1c8] ss:$16 sps:$4 sm:$0xff]  }
 0x122   : > { %2914 = vmatprep.subr.bf16.mxu1 %v4088_v31  ;;  %v4172_v31 = vld [vmem:[%s5066_s13 + $0x2c8] ss:$16 sps:$4 sm:$0xff]  }
 0x124   : > { %2862 = vmatpush2.bf16.msra.mxu0 %v4083_v32  ;;  %v4178_v32 = vld [vmem:[%s5066_s13 + $0x1ac] ss:$16 sps:$4 sm:$0xff]  }
 0x125   : > { %2915 = vmatpush2.bf16.msra.mxu1 %v4086_v33  ;;  %2863 = vmatprep.subr.bf16.mxu0 %v4092_v34  ;;  %v4181_v33 = vld [vmem:[%s5066_s13 + $0x2ac] ss:$16 sps:$4 sm:$0xff]  }
 0x126   : > { %2916 = vmatprep.subr.bf16.mxu1 %v4095_v35  ;;  %v5327_v34 = vld [vmem:[%s5572_s0 + $0x68] ss:$36 sps:$4 sm:$0xff]  }
 0x127   : > { %v4176_v35 = vld [vmem:[%s5066_s13 + $0x1a8] ss:$16 sps:$4 sm:$0xff]  }
 0x128   : > { %2864 = vmatpush2.bf16.msra.mxu0 %v4090_v37  ;;  %v4179_v37 = vld [vmem:[%s5066_s13 + $0x2a8] ss:$16 sps:$4 sm:$0xff]  }
 0x129   : > { %2917 = vmatpush2.bf16.msra.mxu1 %v4093_v38  ;;  %2865 = vmatprep.subr.bf16.mxu0 %v4098_v39  ;;  %v4184_v38 = vld [vmem:[%s5066_s13 + $0x18c] ss:$16 sps:$4 sm:$0xff]  }
 0x12a   : > { %2918 = vmatprep.subr.bf16.mxu1 %v4101_v40  ;;  %v4187_v39 = vld [vmem:[%s5066_s13 + $0x28c] ss:$16 sps:$4 sm:$0xff]   ;;  %v4182_v40 = vld [vmem:[%s5066_s13 + $0x188] ss:$16 sps:$4 sm:$0xff]  }
 0x12c   : > { %2866 = vmatpush2.bf16.msra.mxu0 %v4096_v41  ;;  %v4185_v41 = vld [vmem:[%s5066_s13 + $0x288] ss:$16 sps:$4 sm:$0xff]  }
 0x12d   : > { %2919 = vmatpush2.bf16.msra.mxu1 %v4099_v43  ;;  %2941 = vmatprep.subr.bf16.mxu0 %v4110_v44  ;;  %v4190_v43 = vld [vmem:[%s5066_s13 + $0x16c] ss:$16 sps:$4 sm:$0xff]  }
 0x12e   : > { %2994 = vmatprep.subr.bf16.mxu1 %v4113_v46  ;;  %v4193_v44 = vld [vmem:[%s5066_s13 + $0x26c] ss:$16 sps:$4 sm:$0xff]  }
 0x12f   : > { %2868 = vmatmul.mubr.bf16.vlgmr.msra.gmra.mxu0 %v5239_v45  ;;  %v4357_v46 = vld [vmem:[%s5572_s0 + $0xc] ss:$36 sps:$4 sm:$0xff]  }
 0x130   : > { %2921 = vmatmul.mubr.bf16.vlgmr.msra.gmra.mxu1 %v5245_v48  ;;  %2942 = vmatpush1.bf16.msra.mxu0 %v4108_v49  ;;  %v4188_v49 = vld [vmem:[%s5066_s13 + $0x168] ss:$16 sps:$4 sm:$0xff]  }
 0x131   : > { %2995 = vmatpush1.bf16.msra.mxu1 %v4111_v50  ;;  %2943 = vmatprep.subr.bf16.mxu0 %v4116_v51  ;;  %v4191_v50 = vld [vmem:[%s5066_s13 + $0x268] ss:$16 sps:$4 sm:$0xff]   ;;  %v4196_v51 = vld [vmem:[%s5066_s13 + $0x14c] ss:$16 sps:$4 sm:$0xff]  }
 0x132   : > { %2996 = vmatprep.subr.bf16.mxu1 %v4119_v52  ;;  %2877 = vmatprep.mubr.bf16.mxu0 %v5254_v53  ;;  %v4199_v52 = vld [vmem:[%s5066_s13 + $0x24c] ss:$16 sps:$4 sm:$0xff]  }
 0x133   : > { %2930 = vmatprep.mubr.bf16.mxu1 %v5259_v54 }
 0x134   : > { %2944 = vmatpush1.bf16.msra.mxu0 %v4114_v55  ;;  %v4194_v55 = vld [vmem:[%s5066_s13 + $0x148] ss:$16 sps:$4 sm:$0xff]  }
 0x135   : > { %2997 = vmatpush1.bf16.msra.mxu1 %v4117_v56  ;;  %2945 = vmatprep.subr.bf16.mxu0 %v4125_v57  ;;  %v4197_v56 = vld [vmem:[%s5066_s13 + $0x248] ss:$16 sps:$4 sm:$0xff]   ;;  %v4202_v57 = vld [vmem:[%s5066_s13 + $0x12c] ss:$16 sps:$4 sm:$0xff]  }
 0x136   : > { %2998 = vmatprep.subr.bf16.mxu1 %v4128_v58  ;;  %v4205_v58 = vld [vmem:[%s5066_s13 + $0x22c] ss:$16 sps:$4 sm:$0xff]  }
 0x137   : > { %2878 = vmatmul.mubr.bf16.gmra.mxu0 %v5271_v59 }
 0x138   : > { %2931 = vmatmul.mubr.bf16.gmra.mxu1 %v5278_v61  ;;  %2946 = vmatpush1.bf16.msra.mxu0 %v4123_v60  ;;  %v4200_v60 = vld [vmem:[%s5066_s13 + $0x128] ss:$16 sps:$4 sm:$0xff]  }
 0x139   : > { %2999 = vmatpush1.bf16.msra.mxu1 %v4126_v62  ;;  %2947 = vmatprep.subr.bf16.mxu0 %v4134_v63  ;;  %v4203_v62 = vld [vmem:[%s5066_s13 + $0x228] ss:$16 sps:$4 sm:$0xff]   ;;  %v4208_v63 = vld [vmem:[%s5066_s13 + $0x10c] ss:$16 sps:$4 sm:$0xff]  }
 0x13a   : > { %3000 = vmatprep.subr.bf16.mxu1 %v4137_v0  ;;  %2973 = vmatprep.mubr.bf16.mxu0 %v4401_v6  ;;  %v4211_v0 = vld [vmem:[%s5066_s13 + $0x20c] ss:$16 sps:$4 sm:$0xff]  }
 0x13b   : > { %3026 = vmatprep.mubr.bf16.mxu1 %v4356_v8  ;;  %v4212_v8 = vld [vmem:[%s5066_s13 + $0x3e8] ss:$16 sps:$4 sm:$0xff]  }
 0x13c   : > { %2948 = vmatpush1.bf16.msra.mxu0 %v4132_v1  ;;  %v4206_v1 = vld [vmem:[%s5066_s13 + $0x108] ss:$16 sps:$4 sm:$0xff]  }
 0x13d   : > { %3001 = vmatpush1.bf16.msra.mxu1 %v4135_v2  ;;  %2949 = vmatprep.subr.bf16.mxu0 %v4140_v3  ;;  %v4209_v2 = vld [vmem:[%s5066_s13 + $0x208] ss:$16 sps:$4 sm:$0xff]   ;;  %v4214_v3 = vld [vmem:[%s5066_s13 + $0x3ec] ss:$16 sps:$4 sm:$0xff]  }
 0x13e   : > { %3002 = vmatprep.subr.bf16.mxu1 %v4143_v4  ;;  %v4217_v4 = vld [vmem:[%s5066_s13 + $0x4ec] ss:$16 sps:$4 sm:$0xff]  }
 0x140   : > { %2950 = vmatpush1.bf16.msra.mxu0 %v4138_v9  ;;  %v4215_v9 = vld [vmem:[%s5066_s13 + $0x4e8] ss:$16 sps:$4 sm:$0xff]  }
 0x141   : > { %3003 = vmatpush1.bf16.msra.mxu1 %v4141_v10  ;;  %2951 = vmatprep.subr.bf16.mxu0 %v4146_v11  ;;  %v4220_v10 = vld [vmem:[%s5066_s13 + $0x3cc] ss:$16 sps:$4 sm:$0xff]  }
 0x142   : > { %3004 = vmatprep.subr.bf16.mxu1 %v4149_v12  ;;  %v4223_v11 = vld [vmem:[%s5066_s13 + $0x4cc] ss:$16 sps:$4 sm:$0xff]   ;;  %v4218_v12 = vld [vmem:[%s5066_s13 + $0x3c8] ss:$16 sps:$4 sm:$0xff]  }
 0x144   : > { %2952 = vmatpush1.bf16.msra.mxu0 %v4144_v13  ;;  %v4221_v13 = vld [vmem:[%s5066_s13 + $0x4c8] ss:$16 sps:$4 sm:$0xff]  }
 0x145   : > { %3005 = vmatpush1.bf16.msra.mxu1 %v4147_v14  ;;  %2953 = vmatprep.subr.bf16.mxu0 %v4152_v15  ;;  %v4226_v14 = vld [vmem:[%s5066_s13 + $0x3ac] ss:$16 sps:$4 sm:$0xff]  }
 0x146   : > { %3006 = vmatprep.subr.bf16.mxu1 %v4155_v16  ;;  %v4229_v15 = vld [vmem:[%s5066_s13 + $0x4ac] ss:$16 sps:$4 sm:$0xff]   ;;  %v4224_v16 = vld [vmem:[%s5066_s13 + $0x3a8] ss:$16 sps:$4 sm:$0xff]  }
 0x148   : > { %2954 = vmatpush1.bf16.msra.mxu0 %v4150_v17  ;;  %v4232_v17 = vld [vmem:[%s5066_s13 + $0x38c] ss:$16 sps:$4 sm:$0xff]  }
 0x149   : > { %3007 = vmatpush1.bf16.msra.mxu1 %v4153_v18  ;;  %2955 = vmatprep.subr.bf16.mxu0 %v4158_v19  ;;  %v4235_v18 = vld [vmem:[%s5066_s13 + $0x48c] ss:$16 sps:$4 sm:$0xff]   ;;  %v4230_v19 = vld [vmem:[%s5066_s13 + $0x388] ss:$16 sps:$4 sm:$0xff]  }
 0x14a   : > { %3008 = vmatprep.subr.bf16.mxu1 %v4161_v20  ;;  %v4238_v20 = vld [vmem:[%s5066_s13 + $0x36c] ss:$16 sps:$4 sm:$0xff]  }
 0x14c   : > { %2956 = vmatpush1.bf16.msra.mxu0 %v4156_v21  ;;  %v4241_v21 = vld [vmem:[%s5066_s13 + $0x46c] ss:$16 sps:$4 sm:$0xff]  }
 0x14d   : > { %3009 = vmatpush1.bf16.msra.mxu1 %v4159_v22  ;;  %3047 = vmatprep.subr.bf16.mxu0 %v4168_v24  ;;  %v4236_v22 = vld [vmem:[%s5066_s13 + $0x368] ss:$16 sps:$4 sm:$0xff]   ;;  %v4247_v24 = vld [vmem:[%s5066_s13 + $0x44c] ss:$16 sps:$4 sm:$0xff]  }
 0x14e   : > { %3010 = vmatprep.subr.bf16.mxu1 %v4165_v23  ;;  %v4244_v23 = vld [vmem:[%s5066_s13 + $0x34c] ss:$16 sps:$4 sm:$0xff]  }
 0x14f   : > { %2974 = vmatmul.mubr.bf16.vlgmr.msra.gmra.mxu0 %v5312_v25 }
 0x150   : > { %3048 = vmatpush1.bf16.msra.mxu0 %v4166_v27  ;;  %2983 = vmatprep.mubr.bf16.mxu0 %v4401_v6  ;;  %v4245_v27 = vld [vmem:[%s5066_s13 + $0x448] ss:$16 sps:$4 sm:$0xff]  }
 0x151   : > { %3011 = vmatpush2.bf16.msra.mxu1 %v4163_v26  ;;  %3049 = vmatprep.subr.bf16.mxu0 %v4174_v29  ;;  %v4242_v26 = vld [vmem:[%s5066_s13 + $0x348] ss:$16 sps:$4 sm:$0xff]  }
 0x152   : > { %3012 = vmatprep.subr.bf16.mxu1 %v4171_v28  ;;  %v4253_v28 = vld [vmem:[%s5066_s13 + $0x42c] ss:$16 sps:$4 sm:$0xff]   ;;  %v4248_v29 = vld [vmem:[%s5066_s13 + $0x328] ss:$16 sps:$4 sm:$0xff]  }
 0x154   : > { %3050 = vmatpush1.bf16.msra.mxu0 %v4172_v31  ;;  %v4256_v31 = vld [vmem:[%s5066_s13 + $0x30c] ss:$16 sps:$4 sm:$0xff]  }
 0x155   : > { %3013 = vmatpush2.bf16.msra.mxu1 %v4169_v30  ;;  %3051 = vmatprep.subr.bf16.mxu0 %v4181_v33  ;;  %v4251_v30 = vld [vmem:[%s5066_s13 + $0x428] ss:$16 sps:$4 sm:$0xff]  }
 0x156   : > { %3014 = vmatprep.subr.bf16.mxu1 %v4178_v32  ;;  %v4259_v32 = vld [vmem:[%s5066_s13 + $0x40c] ss:$16 sps:$4 sm:$0xff]   ;;  %v4254_v33 = vld [vmem:[%s5066_s13 + $0x308] ss:$16 sps:$4 sm:$0xff]  }
 0x157   : > { %2984 = vmatmul.mubr.bf16.gmra.mxu0 %v5327_v34 }
 0x158   : > { %3052 = vmatpush1.bf16.msra.mxu0 %v4179_v37  ;;  %3079 = vmatprep.mubr.bf16.mxu0 %v4357_v46  ;;  %v4262_v37 = vld [vmem:[%s5066_s13 + $0x5ec] ss:$16 sps:$4 sm:$0xff]   ;;  %v4266_v46 = vld [vmem:[%s5066_s13 + $0x5c8] ss:$16 sps:$4 sm:$0xff]  }
 0x159   : > { %3015 = vmatpush2.bf16.msra.mxu1 %v4176_v35  ;;  %3053 = vmatprep.subr.bf16.mxu0 %v4187_v39  ;;  %v4257_v35 = vld [vmem:[%s5066_s13 + $0x408] ss:$16 sps:$4 sm:$0xff]  }
 0x15a   : > { %3016 = vmatprep.subr.bf16.mxu1 %v4184_v38  ;;  %v4265_v38 = vld [vmem:[%s5066_s13 + $0x6ec] ss:$16 sps:$4 sm:$0xff]   ;;  %v4260_v39 = vld [vmem:[%s5066_s13 + $0x5e8] ss:$16 sps:$4 sm:$0xff]  }
 0x15c   : > { %3054 = vmatpush1.bf16.msra.mxu0 %v4185_v41  ;;  %v4268_v41 = vld [vmem:[%s5066_s13 + $0x5cc] ss:$16 sps:$4 sm:$0xff]  }
 0x15d   : > { %3017 = vmatpush2.bf16.msra.mxu1 %v4182_v40  ;;  %3055 = vmatprep.subr.bf16.mxu0 %v4193_v44  ;;  %v4263_v40 = vld [vmem:[%s5066_s13 + $0x6e8] ss:$16 sps:$4 sm:$0xff]  }
 0x15e   : > { %3018 = vmatprep.subr.bf16.mxu1 %v4190_v43  ;;  %v4271_v43 = vld [vmem:[%s5066_s13 + $0x6cc] ss:$16 sps:$4 sm:$0xff]  }
 0x15f   : > { %v4358_v44 = vld [vmem:[%s5572_s0 + $0x8] ss:$36 sps:$4 sm:$0xff]  }
 0x160   : > { %3056 = vmatpush1.bf16.msra.mxu0 %v4191_v50  ;;  %v4274_v50 = vld [vmem:[%s5066_s13 + $0x5ac] ss:$16 sps:$4 sm:$0xff]  }
 0x161   : > { %3019 = vmatpush2.bf16.msra.mxu1 %v4188_v49  ;;  %3057 = vmatprep.subr.bf16.mxu0 %v4199_v52  ;;  %v4269_v49 = vld [vmem:[%s5066_s13 + $0x6c8] ss:$16 sps:$4 sm:$0xff]  }
 0x162   : > { %3020 = vmatprep.subr.bf16.mxu1 %v4196_v51  ;;  %v4277_v51 = vld [vmem:[%s5066_s13 + $0x6ac] ss:$16 sps:$4 sm:$0xff]   ;;  %v4359_v52 = vld [vmem:[%s5572_s0 + $0x54] ss:$36 sps:$4 sm:$0xff]  }
 0x164   : > { %3058 = vmatpush1.bf16.msra.mxu0 %v4197_v56  ;;  %v4275_v56 = vld [vmem:[%s5066_s13 + $0x6a8] ss:$16 sps:$4 sm:$0xff]  }
 0x165   : > { %3021 = vmatpush2.bf16.msra.mxu1 %v4194_v55  ;;  %3059 = vmatprep.subr.bf16.mxu0 %v4205_v58  ;;  %v4272_v55 = vld [vmem:[%s5066_s13 + $0x5a8] ss:$16 sps:$4 sm:$0xff]   ;;  %v4283_v58 = vld [vmem:[%s5066_s13 + $0x68c] ss:$16 sps:$4 sm:$0xff]  }
 0x166   : > { %3022 = vmatprep.subr.bf16.mxu1 %v4202_v57  ;;  %v4280_v57 = vld [vmem:[%s5066_s13 + $0x58c] ss:$16 sps:$4 sm:$0xff]  }
 0x168   : > { %3060 = vmatpush1.bf16.msra.mxu0 %v4203_v62  ;;  %v4278_v62 = vld [vmem:[%s5066_s13 + $0x588] ss:$16 sps:$4 sm:$0xff]  }
 0x169   : > { %3023 = vmatpush2.bf16.msra.mxu1 %v4200_v60  ;;  %3061 = vmatprep.subr.bf16.mxu0 %v4211_v0  ;;  %v4360_v60 = vld [vmem:[%s5572_s0 + $0x50] ss:$36 sps:$4 sm:$0xff]   ;;  %v4286_v0 = vld [vmem:[%s5066_s13 + $0x56c] ss:$16 sps:$4 sm:$0xff]  }
 0x16a   : > { %3024 = vmatprep.subr.bf16.mxu1 %v4208_v63  ;;  %v4281_v63 = vld [vmem:[%s5066_s13 + $0x688] ss:$16 sps:$4 sm:$0xff]  }
 0x16c   : > { %3062 = vmatpush1.bf16.msra.mxu0 %v4209_v2  ;;  %v4284_v2 = vld [vmem:[%s5066_s13 + $0x568] ss:$16 sps:$4 sm:$0xff]  }
 0x16d   : > { %3025 = vmatpush2.bf16.msra.mxu1 %v4206_v1  ;;  %3063 = vmatprep.subr.bf16.mxu0 %v4214_v3  ;;  %v4289_v1 = vld [vmem:[%s5066_s13 + $0x66c] ss:$16 sps:$4 sm:$0xff]   ;;  %v4287_v3 = vld [vmem:[%s5066_s13 + $0x668] ss:$16 sps:$4 sm:$0xff]  }
 0x16e   : > { %3100 = vmatprep.subr.bf16.mxu1 %v4217_v4  ;;  %v4292_v4 = vld [vmem:[%s5066_s13 + $0x54c] ss:$16 sps:$4 sm:$0xff]  }
 0x170   : > { %3027 = vmatmul.mubr.bf16.vlgmr.msra.gmra.mxu1 %v5137_v36  ;;  %3064 = vmatpush2.bf16.msra.mxu0 %v4212_v8  ;;  %v4227_v36 = vld [vmem:[%s5066_s13 + $0x4a8] ss:$16 sps:$4 sm:$0xff]   ;;  %v4295_v8 = vld [vmem:[%s5066_s13 + $0x64c] ss:$16 sps:$4 sm:$0xff]  }
 0x171   : > { %3101 = vmatpush1.bf16.msra.mxu1 %v4215_v9  ;;  %3065 = vmatprep.subr.bf16.mxu0 %v4220_v10  ;;  %v4290_v9 = vld [vmem:[%s5066_s13 + $0x548] ss:$16 sps:$4 sm:$0xff]  }
 0x172   : > { %3102 = vmatprep.subr.bf16.mxu1 %v4223_v11  ;;  %3036 = vmatprep.mubr.bf16.mxu1 %v5149_v42  ;;  %v4233_v42 = vld [vmem:[%s5066_s13 + $0x488] ss:$16 sps:$4 sm:$0xff]   ;;  %v4301_v11 = vld [vmem:[%s5066_s13 + $0x62c] ss:$16 sps:$4 sm:$0xff]  }
 0x173   : > { %v4293_v10 = vld [vmem:[%s5066_s13 + $0x648] ss:$16 sps:$4 sm:$0xff]  }
 0x174   : > { %3066 = vmatpush2.bf16.msra.mxu0 %v4218_v12  ;;  %v4296_v12 = vld [vmem:[%s5066_s13 + $0x528] ss:$16 sps:$4 sm:$0xff]  }
 0x175   : > { %3103 = vmatpush1.bf16.msra.mxu1 %v4221_v13  ;;  %3067 = vmatprep.subr.bf16.mxu0 %v4226_v14  ;;  %v4299_v13 = vld [vmem:[%s5066_s13 + $0x628] ss:$16 sps:$4 sm:$0xff]   ;;  %v4304_v14 = vld [vmem:[%s5066_s13 + $0x50c] ss:$16 sps:$4 sm:$0xff]  }
 0x176   : > { %3104 = vmatprep.subr.bf16.mxu1 %v4229_v15  ;;  %v4307_v15 = vld [vmem:[%s5066_s13 + $0x60c] ss:$16 sps:$4 sm:$0xff]  }
 0x178   : > { %3037 = vmatmul.mubr.bf16.gmra.mxu1 %v5160_v47  ;;  %3068 = vmatpush2.bf16.msra.mxu0 %v4224_v16  ;;  %v4239_v47 = vld [vmem:[%s5066_s13 + $0x468] ss:$16 sps:$4 sm:$0xff]  }
 0x179   : > { %3105 = vmatpush1.bf16.msra.mxu1 %v4227_v36  ;;  %3069 = vmatprep.subr.bf16.mxu0 %v4232_v17  ;;  %v4302_v16 = vld [vmem:[%s5066_s13 + $0x508] ss:$16 sps:$4 sm:$0xff]   ;;  %v4310_v17 = vld [vmem:[%s5066_s13 + $0x7ec] ss:$16 sps:$4 sm:$0xff]  }
 0x17a   : > { %3106 = vmatprep.subr.bf16.mxu1 %v4235_v18  ;;  %3132 = vmatprep.mubr.bf16.mxu1 %v5191_v5  ;;  %v4250_v5 = vld [vmem:[%s5066_s13 + $0x32c] ss:$16 sps:$4 sm:$0xff]   ;;  %v4305_v36 = vld [vmem:[%s5066_s13 + $0x608] ss:$16 sps:$4 sm:$0xff]  }
 0x17b   : > { %v4313_v18 = vld [vmem:[%s5066_s13 + $0x8ec] ss:$16 sps:$4 sm:$0xff]  }
 0x17c   : > { %3070 = vmatpush2.bf16.msra.mxu0 %v4230_v19  ;;  %v4308_v19 = vld [vmem:[%s5066_s13 + $0x7e8] ss:$16 sps:$4 sm:$0xff]  }
 0x17d   : > { %3107 = vmatpush1.bf16.msra.mxu1 %v4233_v42  ;;  %3071 = vmatprep.subr.bf16.mxu0 %v4238_v20  ;;  %v4311_v42 = vld [vmem:[%s5066_s13 + $0x8e8] ss:$16 sps:$4 sm:$0xff]   ;;  %v4316_v20 = vld [vmem:[%s5066_s13 + $0x7cc] ss:$16 sps:$4 sm:$0xff]  }
 0x17e   : > { %3108 = vmatprep.subr.bf16.mxu1 %v4241_v21  ;;  %v4319_v21 = vld [vmem:[%s5066_s13 + $0x8cc] ss:$16 sps:$4 sm:$0xff]  }
 0x180   : > { %3072 = vmatpush2.bf16.msra.mxu0 %v4236_v22  ;;  %v4314_v22 = vld [vmem:[%s5066_s13 + $0x7c8] ss:$16 sps:$4 sm:$0xff]  }
 0x181   : > { %3109 = vmatpush1.bf16.msra.mxu1 %v4239_v47  ;;  %3073 = vmatprep.subr.bf16.mxu0 %v4244_v23  ;;  %v4317_v47 = vld [vmem:[%s5066_s13 + $0x8c8] ss:$16 sps:$4 sm:$0xff]   ;;  %v4322_v23 = vld [vmem:[%s5066_s13 + $0x7ac] ss:$16 sps:$4 sm:$0xff]  }
 0x182   : > { %3110 = vmatprep.subr.bf16.mxu1 %v4247_v24  ;;  %v4325_v24 = vld [vmem:[%s5066_s13 + $0x8ac] ss:$16 sps:$4 sm:$0xff]  }
 0x184   : > { %3074 = vmatpush2.bf16.msra.mxu0 %v4242_v26  ;;  %v4320_v26 = vld [vmem:[%s5066_s13 + $0x7a8] ss:$16 sps:$4 sm:$0xff]  }
 0x185   : > { %3111 = vmatpush1.bf16.msra.mxu1 %v4245_v27  ;;  %3075 = vmatprep.subr.bf16.mxu0 %v4250_v5  ;;  %v4328_v27 = vld [vmem:[%s5066_s13 + $0x78c] ss:$16 sps:$4 sm:$0xff]  }
 0x186   : > { %3112 = vmatprep.subr.bf16.mxu1 %v4253_v28  ;;  %v4331_v5 = vld [vmem:[%s5066_s13 + $0x88c] ss:$16 sps:$4 sm:$0xff]   ;;  %v4326_v28 = vld [vmem:[%s5066_s13 + $0x788] ss:$16 sps:$4 sm:$0xff]  }
 0x188   : > { %3076 = vmatpush2.bf16.msra.mxu0 %v4248_v29  ;;  %v4334_v29 = vld [vmem:[%s5066_s13 + $0x76c] ss:$16 sps:$4 sm:$0xff]  }
 0x189   : > { %3113 = vmatpush1.bf16.msra.mxu1 %v4251_v30  ;;  %3077 = vmatprep.subr.bf16.mxu0 %v4256_v31  ;;  %v4337_v30 = vld [vmem:[%s5066_s13 + $0x86c] ss:$16 sps:$4 sm:$0xff]   ;;  %v4332_v31 = vld [vmem:[%s5066_s13 + $0x768] ss:$16 sps:$4 sm:$0xff]  }
 0x18a   : > { %3114 = vmatprep.subr.bf16.mxu1 %v4259_v32  ;;  %v4340_v32 = vld [vmem:[%s5066_s13 + $0x74c] ss:$16 sps:$4 sm:$0xff]  }
 0x18c   : > { %3078 = vmatpush2.bf16.msra.mxu0 %v4254_v33  ;;  %v4343_v33 = vld [vmem:[%s5066_s13 + $0x84c] ss:$16 sps:$4 sm:$0xff]  }
 0x18d   : > { %3115 = vmatpush1.bf16.msra.mxu1 %v4257_v35  ;;  %3153 = vmatprep.subr.bf16.mxu0 %v4265_v38  ;;  %v4338_v35 = vld [vmem:[%s5066_s13 + $0x748] ss:$16 sps:$4 sm:$0xff]   ;;  %v4346_v38 = vld [vmem:[%s5066_s13 + $0x72c] ss:$16 sps:$4 sm:$0xff]  }
 0x18e   : > { %3116 = vmatprep.subr.bf16.mxu1 %v4262_v37  ;;  %v4341_v37 = vld [vmem:[%s5066_s13 + $0x848] ss:$16 sps:$4 sm:$0xff]  }
 0x18f   : > { %3080 = vmatmul.mubr.bf16.vlgmr.msra.gmra.mxu0 %v4358_v44  ;;  %v4355_v44 = vld [vmem:[%s5066_s13 + $0x80c] ss:$16 sps:$4 sm:$0xff]  }
 0x190   : > { %3154 = vmatpush1.bf16.msra.mxu0 %v4263_v40  ;;  %3089 = vmatprep.mubr.bf16.mxu0 %v4359_v52  ;;  %v4344_v40 = vld [vmem:[%s5066_s13 + $0x728] ss:$16 sps:$4 sm:$0xff]  }
 0x191   : > { %3117 = vmatpush2.bf16.msra.mxu1 %v4260_v39  ;;  %3155 = vmatprep.subr.bf16.mxu0 %v4271_v43  ;;  %v4349_v39 = vld [vmem:[%s5066_s13 + $0x82c] ss:$16 sps:$4 sm:$0xff]  }
 0x192   : > { %3118 = vmatprep.subr.bf16.mxu1 %v4268_v41  ;;  %v4347_v41 = vld [vmem:[%s5066_s13 + $0x828] ss:$16 sps:$4 sm:$0xff]   ;;  %v4352_v43 = vld [vmem:[%s5066_s13 + $0x70c] ss:$16 sps:$4 sm:$0xff]  }
 0x194   : > { %3156 = vmatpush1.bf16.msra.mxu0 %v4269_v49  ;;  %v4353_v49 = vld [vmem:[%s5066_s13 + $0x808] ss:$16 sps:$4 sm:$0xff]  }
 0x195   : > { %3119 = vmatpush2.bf16.msra.mxu1 %v4266_v46  ;;  %3157 = vmatprep.subr.bf16.mxu0 %v4277_v51  ;;  %v4350_v46 = vld [vmem:[%s5066_s13 + $0x708] ss:$16 sps:$4 sm:$0xff]  }
 0x196   : > { %3120 = vmatprep.subr.bf16.mxu1 %v4274_v50 }
 0x197   : > { %3090 = vmatmul.mubr.bf16.gmra.mxu0 %v4360_v60 }
 0x198   : > { %3158 = vmatpush1.bf16.msra.mxu0 %v4275_v56  ;;  %3185 = vmatprep.mubr.bf16.mxu0 %v5197_v7  ;;  %v4298_v7 = vld [vmem:[%s5066_s13 + $0x52c] ss:$16 sps:$4 sm:$0xff]  }
 0x199   : > { %3121 = vmatpush2.bf16.msra.mxu1 %v4272_v55  ;;  %3159 = vmatprep.subr.bf16.mxu0 %v4283_v58 }
 0x19a   : > { %3122 = vmatprep.subr.bf16.mxu1 %v4280_v57 }
 0x19c   : > { %3160 = vmatpush1.bf16.msra.mxu0 %v4281_v63 }
 0x19d   : > { %3123 = vmatpush2.bf16.msra.mxu1 %v4278_v62  ;;  %3161 = vmatprep.subr.bf16.mxu0 %v4289_v1  ;;  %v1177_v1 = vlaneseq }
 0x19e   : > { %3124 = vmatprep.subr.bf16.mxu1 %v4286_v0 }
 0x1a0   : > { %3162 = vmatpush1.bf16.msra.mxu0 %v4287_v3 }
 0x1a1   : > { %3125 = vmatpush2.bf16.msra.mxu1 %v4284_v2  ;;  %3163 = vmatprep.subr.bf16.mxu0 %v4295_v8 }
 0x1a2   : > { %3126 = vmatprep.subr.bf16.mxu1 %v4292_v4 }
 0x1a4   : > { %3164 = vmatpush1.bf16.msra.mxu0 %v4293_v10 }
 0x1a5   : > { %3127 = vmatpush2.bf16.msra.mxu1 %v4290_v9  ;;  %3165 = vmatprep.subr.bf16.mxu0 %v4301_v11 }
 0x1a6   : > { %3128 = vmatprep.subr.bf16.mxu1 %v4298_v7 }
 0x1a8   : > { %3166 = vmatpush1.bf16.msra.mxu0 %v4299_v13 }
 0x1a9   : > { %3129 = vmatpush2.bf16.msra.mxu1 %v4296_v12  ;;  %3167 = vmatprep.subr.bf16.mxu0 %v4307_v15 }
 0x1aa   : > { %3130 = vmatprep.subr.bf16.mxu1 %v4304_v14 }
 0x1ac   : > { %3168 = vmatpush1.bf16.msra.mxu0 %v4305_v36 }
 0x1ad   : > { %3131 = vmatpush2.bf16.msra.mxu1 %v4302_v16  ;;  %3169 = vmatprep.subr.bf16.mxu0 %v4310_v17 }
 0x1ae   : > { %3206 = vmatprep.subr.bf16.mxu1 %v4313_v18 }
 0x1af   : > { %v2763_v50 = vpop.f32.mrf.mxu0 }
 0x1b0   : > { %3133 = vmatmul.mubr.bf16.vlgmr.msra.gmra.mxu1 %v5239_v45  ;;  %3170 = vmatpush2.bf16.msra.mxu0 %v4308_v19  ;;  %v4323_v45 = vld [vmem:[%s5066_s13 + $0x8a8] ss:$16 sps:$4 sm:$0xff]   ;;  %v2816_v56 = vpop.f32.mrf.mxu1 }
 0x1b1   : > { %3207 = vmatpush1.bf16.msra.mxu1 %v4311_v42  ;;  %3171 = vmatprep.subr.bf16.mxu0 %v4316_v20  ;;  %v2765_v51 = vpop.f32.mrf.mxu0 }
 0x1b2   : > { %3208 = vmatprep.subr.bf16.mxu1 %v4319_v21  ;;  %3142 = vmatprep.mubr.bf16.mxu1 %v5254_v53  ;;  %v4329_v53 = vld [vmem:[%s5066_s13 + $0x888] ss:$16 sps:$4 sm:$0xff]   ;;  %v2818_v58 = vpop.f32.mrf.mxu1 }
 0x1b3   : > { %v2767_v52 = vpop.f32.mrf.mxu0 }
 0x1b4   : > { %3172 = vmatpush2.bf16.msra.mxu0 %v4314_v22 }
 0x1b5   : > { %3209 = vmatpush1.bf16.msra.mxu1 %v4317_v47  ;;  %3173 = vmatprep.subr.bf16.mxu0 %v4322_v23  ;;  %v2769_v55 = vpop.f32.mrf.mxu0 }
 0x1b6   : > { %3210 = vmatprep.subr.bf16.mxu1 %v4325_v24 }
 0x1b7   : > { %v2773_v57 = vpop.f32.mrf.mxu0 }
 0x1b8   : > { %3143 = vmatmul.mubr.bf16.gmra.mxu1 %v5271_v59  ;;  %3174 = vmatpush2.bf16.msra.mxu0 %v4320_v26  ;;  %v4335_v59 = vld [vmem:[%s5066_s13 + $0x868] ss:$16 sps:$4 sm:$0xff]   ;;  %s3524_s13 = sshll.u32 %s4391_s17, 2 }
 0x1b9   : > { %3211 = vmatpush1.bf16.msra.mxu1 %v4323_v45  ;;  %3175 = vmatprep.subr.bf16.mxu0 %v4328_v27  ;;  %v2775_v60 = vpop.f32.mrf.mxu0  ;;  %p855_p11 = scmp.lt.s32.totalorder %s3524_s13, 7 }
 0x1ba   : > { %3212 = vmatprep.subr.bf16.mxu1 %v4331_v5  ;;  %3238 = vmatprep.mubr.bf16.mxu1 %v4401_v6 }
 0x1bb   : > { %v2777_v62 = vpop.f32.mrf.mxu0  ;;  %s5585_s13 = smov (!%p855_p11, %s3524_s13), 7 }
 0x1bc   : > { %3176 = vmatpush2.bf16.msra.mxu0 %v4326_v28  ;;  %s857_s9 = scalar_lea.vmem %s5574_s2, %s5585_s13  ;;  %s862_s12 = scalar_lea.vmem %s5575_s3, %s5585_s13 }
 0x1bd   : > { %3213 = vmatpush1.bf16.msra.mxu1 %v4329_v53  ;;  %3177 = vmatprep.subr.bf16.mxu0 %v4334_v29  ;;  %v2779_v63 = vpop.f32.mrf.mxu0  ;;  %v5482_v9 = vld [vmem:[%s857_s9] sm:$0xf] }
 0x1be   : > { %3214 = vmatprep.subr.bf16.mxu1 %v4337_v30  ;;  %v3259_v18 = vld [vmem:[%s862_s12] sm:$0xf] }
 0x1bf   : > { %vm3260_vm0 = vcmp.gt.f32.partialorder %v3259_v18, 0.0 }
 0x1c0   : > { %3178 = vmatpush2.bf16.msra.mxu0 %v4332_v31  ;;  %v5491_v27 = vsel %vm3260_vm0, 1, %v4401_v6 }
 0x1c1   : > { %3215 = vmatpush1.bf16.msra.mxu1 %v4335_v59  ;;  %3179 = vmatprep.subr.bf16.mxu0 %v4340_v32 }
 0x1c2   : > { %3216 = vmatprep.subr.bf16.mxu1 %v4343_v33 }
 0x1c4   : > { %3180 = vmatpush2.bf16.msra.mxu0 %v4338_v35 }
 0x1c5   : > { %3217 = vmatpush1.bf16.msra.mxu1 %v4341_v37  ;;  %3181 = vmatprep.subr.bf16.mxu0 %v4346_v38 }
 0x1c6   : > { %3218 = vmatprep.subr.bf16.mxu1 %v4349_v39 }
 0x1c8   : > { %3182 = vmatpush2.bf16.msra.mxu0 %v4344_v40 }
 0x1c9   : > { %3219 = vmatpush1.bf16.msra.mxu1 %v4347_v41  ;;  %3183 = vmatprep.subr.bf16.mxu0 %v4352_v43 }
 0x1ca   : > { %3220 = vmatprep.subr.bf16.mxu1 %v4355_v44 }
 0x1cc   : > { %3184 = vmatpush2.bf16.msra.mxu0 %v4350_v46 }
 0x1cd   : > { %3221 = vmatpush1.bf16.msra.mxu1 %v4353_v49 }
 0x1cf   : > { %3186 = vmatmul.mubr.bf16.vlgmr.msra.gmra.mxu0 %v5245_v48  ;;  %v2820_v48 = vpop.f32.mrf.mxu1 }
 0x1d0   : > { %3239 = vmatmul.mubr.bf16.vlgmr.msra.gmra.mxu1 %v5312_v25  ;;  %3195 = vmatprep.mubr.bf16.mxu0 %v5259_v54 }
 0x1d1   : > { %3248 = vmatprep.mubr.bf16.mxu1 %v4401_v6  ;;  %v2822_v25 = vpop.f32.mrf.mxu1 }
 0x1d3   : > { %v2826_v54 = vpop.f32.mrf.mxu1 }
 0x1d5   : > { %v2828_v2 = vpop.f32.mrf.mxu1 }
 0x1d7   : > { %3196 = vmatmul.mubr.bf16.gmra.mxu0 %v5278_v61  ;;  %v2830_v3 = vpop.f32.mrf.mxu1 }
 0x1d8   : > { %3249 = vmatmul.mubr.bf16.gmra.mxu1 %v5327_v34  ;;  %v5476_v34 = vshrl.u32 %v1177_v1, 7 }
 0x1d9   : > { %v2832_v10 = vpop.f32.mrf.mxu1 }
 0x1da   : > { %v1179_v8 = vsub.s32 0, %v5476_v34  ;;  %v1183_v11 = vsub.s32 1, %v5476_v34 }
 0x1dc   : > { %v1180_v13 = vrot.slane %v5482_v9, %v1179_v8  ;;  %v1184_v15 = vrot.slane %v5482_v9, %v1183_v11  ;;  %v3281_v38 = vrot.slane %v5491_v27, %v1179_v8  ;;  %v3285_v39 = vrot.slane %v5491_v27, %v1183_v11 }
 0x1de   : > { %v2764_v36 = vadd.f32 %v2763_v50, %v1180_v13  ;;  %v2766_v19 = vadd.f32 %v2765_v51, %v1184_v15  ;;  %v2768_v21 = vadd.f32 %v2767_v52, %v1180_v13  ;;  %v2770_v23 = vadd.f32 %v2769_v55, %v1184_v15 }
 0x1df   : > { %v2774_v26 = vadd.f32 %v2773_v57, %v1180_v13  ;;  %v2776_v31 = vadd.f32 %v2775_v60, %v1184_v15  ;;  %v2778_v35 = vadd.f32 %v2777_v62, %v1180_v13  ;;  %v2780_v43 = vadd.f32 %v2779_v63, %v1184_v15 }
 0x1e0   : > { %v2817_v20 = vadd.f32 %v2816_v56, %v2764_v36  ;;  %v2819_v47 = vadd.f32 %v2818_v58, %v2766_v19  ;;  %v2821_v5 = vadd.f32 %v2820_v48, %v2768_v21  ;;  %v2823_v30 = vadd.f32 %v2822_v25, %v2770_v23 }
 0x1e1   : > { %v2827_v33 = vadd.f32 %v2826_v54, %v2774_v26  ;;  %v2829_v50 = vadd.f32 %v2828_v2, %v2776_v31  ;;  %v2831_v56 = vadd.f32 %v2830_v3, %v2778_v35  ;;  %vm3294_vm1 = vcmp.eq.s32.totalorder %v3281_v38, 1 }
 0x1e2   : > { %vm3295_vm2 = vcmp.eq.s32.totalorder %v3285_v39, 1  ;;  %v2833_v25 = vadd.f32 %v2832_v10, %v2780_v43 }
 0x1ef   : > { %v2869_v0 = vpop.f32.mrf.mxu0 }
 0x1f0   : > { %v2922_v12 = vpop.f32.mrf.mxu1  ;;  %v2870_v24 = vadd.f32 %v2869_v0, %v2817_v20 }
 0x1f1   : > { %v2871_v61 = vpop.f32.mrf.mxu0 }
 0x1f2   : > { %v2924_v16 = vpop.f32.mrf.mxu1  ;;  %v2872_v28 = vadd.f32 %v2871_v61, %v2819_v47  ;;  %v2923_v59 = vadd.f32 %v2922_v12, %v2870_v24 }
 0x1f3   : > { %v2873_v4 = vpop.f32.mrf.mxu0 }
 0x1f4   : > { %v2926_v42 = vpop.f32.mrf.mxu1  ;;  %v2874_v32 = vadd.f32 %v2873_v4, %v2821_v5  ;;  %v2925_v40 = vadd.f32 %v2924_v16, %v2872_v28 }
 0x1f5   : > { %v2875_v7 = vpop.f32.mrf.mxu0 }
 0x1f6   : > { %v2928_v45 = vpop.f32.mrf.mxu1  ;;  %v2876_v41 = vadd.f32 %v2875_v7, %v2823_v30  ;;  %v2927_v51 = vadd.f32 %v2926_v42, %v2874_v32 }
 0x1f7   : > { %v2879_v14 = vpop.f32.mrf.mxu0 }
 0x1f8   : > { %v2932_v53 = vpop.f32.mrf.mxu1  ;;  %v2880_v44 = vadd.f32 %v2879_v14, %v2827_v33  ;;  %v2929_v58 = vadd.f32 %v2928_v45, %v2876_v41 }
 0x1f9   : > { %v2881_v17 = vpop.f32.mrf.mxu0 }
 0x1fa   : > { %v2934_v46 = vpop.f32.mrf.mxu1  ;;  %v2882_v60 = vadd.f32 %v2881_v17, %v2829_v50  ;;  %v2933_v54 = vadd.f32 %v2932_v53, %v2880_v44 }
 0x1fb   : > { %v2883_v22 = vpop.f32.mrf.mxu0 }
 0x1fc   : > { %v2884_v63 = vadd.f32 %v2883_v22, %v2831_v56  ;;  %v2936_v0 = vpop.f32.mrf.mxu1  ;;  %v2935_v11 = vadd.f32 %v2934_v46, %v2882_v60  ;;  %v1187_v56 = vsub.s32 2, %v5476_v34 }
 0x1fd   : > { %v2885_v29 = vpop.f32.mrf.mxu0 }
 0x1fe   : > { %v2886_v12 = vadd.f32 %v2885_v29, %v2833_v25  ;;  %v2937_v15 = vadd.f32 %v2936_v0, %v2884_v63  ;;  %v2938_v16 = vpop.f32.mrf.mxu1 }
 0x200   : > { %v2939_v21 = vadd.f32 %v2938_v16, %v2886_v12 }
 0x20f   : > { %v2975_v37 = vpop.f32.mrf.mxu0 }
 0x210   : > { %v2976_v6 = vadd.f32 %v2975_v37, %v2923_v59 }
 0x211   : > { %v2977_v49 = vpop.f32.mrf.mxu0 }
 0x212   : > { %v3261_v52 = vmax.f32 %v2976_v6, 0.0  ;;  %v2978_v55 = vadd.f32 %v2977_v49, %v2925_v40 }
 0x213   : > { %v2979_v57 = vpop.f32.mrf.mxu0 }
 0x214   : > { %v3262_v48 = vmax.f32 %v2978_v55, 0.0  ;;  %v2980_v62 = vadd.f32 %v2979_v57, %v2927_v51  ;;  %v3298_v2 = vsel %vm3294_vm1, %v3261_v52, %v2976_v6  ;;  %v1191_v57 = vsub.s32 3, %v5476_v34 }
 0x215   : > { %v2981_v1 = vpop.f32.mrf.mxu0  ;;  %v5516_v34 = vrot.slane %v5491_v27, %v1187_v56 }
 0x216   : > { %v3299_v61 = vsel %vm3295_vm2, %v3262_v48, %v2978_v55  ;;  %v3265_v4 = vmax.f32 %v2980_v62, 0.0  ;;  %v2982_v3 = vadd.f32 %v2981_v1, %v2929_v58  ;;  %v1188_v48 = vrot.slane %v5482_v9, %v1187_v56 }
 0x217   : > { %v3846_v8 = vpack.c.bf16 %v3299_v61, %v3298_v2  ;;  %v2985_v7 = vpop.f32.mrf.mxu0  ;;  %vm3296_vm3 = vcmp.eq.s32.totalorder %v5516_v34, 1 }
 0x218   : > { %v3266_v13 = vmax.f32 %v2982_v3, 0.0  ;;  %v2986_v14 = vadd.f32 %v2985_v7, %v2933_v54  ;;  %v3302_v36 = vsel %vm3294_vm1, %v3265_v4, %v2980_v62  ;;  %v1192_v62 = vrot.slane %v5482_v9, %v1191_v57 }
 0x219   : > { %3362 = vst [vmem:[%s5499_s15] sm:$0xff] %v3846_v8  ;;  %v2987_v10 = vpop.f32.mrf.mxu0 }
 0x21a   : > { %v3303_v17 = vsel %vm3295_vm2, %v3266_v13, %v2982_v3  ;;  %v3269_v18 = vmax.f32 %v2986_v14, 0.0  ;;  %v2988_v19 = vadd.f32 %v2987_v10, %v2935_v11 }
 0x21b   : > { %v3848_v42 = vpack.c.bf16 %v3303_v17, %v3302_v36  ;;  %v2989_v20 = vpop.f32.mrf.mxu0  ;;  %v5519_v17 = vrot.slane %v5491_v27, %v1191_v57 }
 0x21c   : > { %v3270_v22 = vmax.f32 %v2988_v19, 0.0  ;;  %v2990_v47 = vadd.f32 %v2989_v20, %v2937_v15  ;;  %v3306_v24 = vsel %vm3294_vm1, %v3269_v18, %v2986_v14 }
 0x21d   : > { %3364 = vst [vmem:[%s5499_s15 + $0x10] sm:$0xff] %v3848_v42  ;;  %v2991_v23 = vpop.f32.mrf.mxu0  ;;  %vm3297_vm4 = vcmp.eq.s32.totalorder %v5519_v17, 1 }
 0x21e   : > { %v3307_v26 = vsel %vm3295_vm2, %v3270_v22, %v2988_v19  ;;  %v3273_v45 = vmax.f32 %v2990_v47, 0.0  ;;  %v2992_v5 = vadd.f32 %v2991_v23, %v2939_v21 }
 0x21f   : > { %v3850_v28 = vpack.c.bf16 %v3307_v26, %v3306_v24 }
 0x220   : > { %v3274_v53 = vmax.f32 %v2992_v5, 0.0  ;;  %v3310_v29 = vsel %vm3294_vm1, %v3273_v45, %v2990_v47  ;;  %v3395_v34 = vld [vmem:[%s5499_s15] sm:$0xff] (%p4462_p6) }
 0x221   : > { %3366 = vst [vmem:[%s5499_s15 + $0x20] sm:$0xff] %v3850_v28  ;;  %3396 = vst [vmem:[%s3382_s23] sm:$0xff] (%p4462_p6), %v3395_v34 }
 0x222   : > { %v3311_v30 = vsel %vm3295_vm2, %v3274_v53, %v2992_v5 }
 0x223   : > { %v3852_v31 = vpack.c.bf16 %v3311_v30, %v3310_v29 }
 0x225   : > { %3368 = vst [vmem:[%s5499_s15 + $0x30] sm:$0xff] %v3852_v31 }
 0x230   : > { %v3028_v59 = vpop.f32.mrf.mxu1 }
 0x231   : > { %v3029_v63 = vadd.f32 %v3028_v59, %v1188_v48 }
 0x232   : > { %v3030_v32 = vpop.f32.mrf.mxu1 }
 0x233   : > { %v3031_v0 = vadd.f32 %v3030_v32, %v1192_v62 }
 0x234   : > { %v3032_v33 = vpop.f32.mrf.mxu1 }
 0x235   : > { %v3033_v4 = vadd.f32 %v3032_v33, %v1188_v48 }
 0x236   : > { %v3034_v35 = vpop.f32.mrf.mxu1 }
 0x237   : > { %v3035_v13 = vadd.f32 %v3034_v35, %v1192_v62 }
 0x238   : > { %v3038_v37 = vpop.f32.mrf.mxu1 }
 0x239   : > { %v3039_v7 = vadd.f32 %v3038_v37, %v1188_v48 }
 0x23a   : > { %v3040_v40 = vpop.f32.mrf.mxu1 }
 0x23b   : > { %v3041_v16 = vadd.f32 %v3040_v40, %v1192_v62 }
 0x23c   : > { %v3042_v41 = vpop.f32.mrf.mxu1 }
 0x23d   : > { %v3043_v22 = vadd.f32 %v3042_v41, %v1188_v48 }
 0x23e   : > { %v3044_v6 = vpop.f32.mrf.mxu1 }
 0x23f   : > { %v3045_v53 = vadd.f32 %v3044_v6, %v1192_v62 }
 0x24f   : > { %v3081_v44 = vpop.f32.mrf.mxu0 }
 0x250   : > { %v3082_v1 = vadd.f32 %v3081_v44, %v3029_v63 }
 0x251   : > { %v3083_v49 = vpop.f32.mrf.mxu0 }
 0x252   : > { %v3084_v3 = vadd.f32 %v3083_v49, %v3031_v0 }
 0x253   : > { %v3085_v51 = vpop.f32.mrf.mxu0 }
 0x254   : > { %v3086_v14 = vadd.f32 %v3085_v51, %v3033_v4 }
 0x255   : > { %v3087_v52 = vpop.f32.mrf.mxu0 }
 0x256   : > { %v3088_v18 = vadd.f32 %v3087_v52, %v3035_v13 }
 0x257   : > { %v3091_v39 = vpop.f32.mrf.mxu0 }
 0x258   : > { %v3092_v21 = vadd.f32 %v3091_v39, %v3039_v7 }
 0x259   : > { %v3093_v58 = vpop.f32.mrf.mxu0 }
 0x25a   : > { %v3094_v28 = vadd.f32 %v3093_v58, %v3041_v16 }
 0x25b   : > { %v3095_v25 = vpop.f32.mrf.mxu0 }
 0x25c   : > { %v3096_v33 = vadd.f32 %v3095_v25, %v3043_v22 }
 0x25d   : > { %v3097_v2 = vpop.f32.mrf.mxu0 }
 0x25e   : > { %v3098_v49 = vadd.f32 %v3097_v2, %v3045_v53 }
 0x270   : > { %v3134_v43 = vpop.f32.mrf.mxu1 }
 0x271   : > { %v3135_v8 = vadd.f32 %v3134_v43, %v3082_v1 }
 0x272   : > { %v3136_v46 = vpop.f32.mrf.mxu1 }
 0x273   : > { %v3137_v15 = vadd.f32 %v3136_v46, %v3084_v3 }
 0x274   : > { %v3138_v50 = vpop.f32.mrf.mxu1 }
 0x275   : > { %v3139_v19 = vadd.f32 %v3138_v50, %v3086_v14 }
 0x276   : > { %v3140_v38 = vpop.f32.mrf.mxu1 }
 0x277   : > { %v3141_v24 = vadd.f32 %v3140_v38, %v3088_v18  ;;  %v3403_v18 = vld [vmem:[%s5499_s15 + $0x20] sm:$0xff] (%p4462_p6) }
 0x278   : > { %v3144_v55 = vpop.f32.mrf.mxu1  ;;  %3404 = vst [vmem:[%s3382_s23 + $0x40] sm:$0xff] (%p4462_p6), %v3403_v18 }
 0x279   : > { %v3145_v30 = vadd.f32 %v3144_v55, %v3092_v21 }
 0x27a   : > { %v3146_v60 = vpop.f32.mrf.mxu1 }
 0x27b   : > { %v3147_v35 = vadd.f32 %v3146_v60, %v3094_v28 }
 0x27c   : > { %v3148_v54 = vpop.f32.mrf.mxu1 }
 0x27d   : > { %v3149_v52 = vadd.f32 %v3148_v54, %v3096_v33 }
 0x27e   : > { %v3150_v61 = vpop.f32.mrf.mxu1 }
 0x27f   : > { %v3151_v57 = vadd.f32 %v3150_v61, %v3098_v49 }
 0x28f   : > { %v3187_v11 = vpop.f32.mrf.mxu0 }
 0x290   : > { %v3240_v12 = vpop.f32.mrf.mxu1  ;;  %v3188_v9 = vadd.f32 %v3187_v11, %v3135_v8 }
 0x291   : > { %v3189_v10 = vpop.f32.mrf.mxu0 }
 0x292   : > { %v3242_v36 = vpop.f32.mrf.mxu1  ;;  %v3241_v42 = vadd.f32 %v3240_v12, %v3188_v9  ;;  %v3190_v20 = vadd.f32 %v3189_v10, %v3137_v15 }
 0x293   : > { %v3191_v47 = vpop.f32.mrf.mxu0 }
 0x294   : > { %v3244_v23 = vpop.f32.mrf.mxu1  ;;  %v3263_v26 = vmax.f32 %v3241_v42, 0.0  ;;  %v3243_v45 = vadd.f32 %v3242_v36, %v3190_v20  ;;  %v3192_v5 = vadd.f32 %v3191_v47, %v3139_v19  ;;  %v3399_v36 = vld [vmem:[%s5499_s15 + $0x10] sm:$0xff] (%p4462_p6) }
 0x295   : > { %v3193_v27 = vpop.f32.mrf.mxu0  ;;  %3400 = vst [vmem:[%s3382_s23 + $0x20] sm:$0xff] (%p4462_p6), %v3399_v36 }
 0x296   : > { %v3246_v29 = vpop.f32.mrf.mxu1  ;;  %v3264_v31 = vmax.f32 %v3243_v45, 0.0  ;;  %v3245_v59 = vadd.f32 %v3244_v23, %v3192_v5  ;;  %v3194_v32 = vadd.f32 %v3193_v27, %v3141_v24  ;;  %v3300_v37 = vsel %vm3296_vm3, %v3263_v26, %v3241_v42  ;;  %v3407_v42 = vld [vmem:[%s5499_s15 + $0x30] sm:$0xff] (%p4462_p6) }
 0x297   : > { %v3197_v40 = vpop.f32.mrf.mxu0  ;;  %3408 = vst [vmem:[%s3382_s23 + $0x60] sm:$0xff] (%p4462_p6), %v3407_v42 }
 0x298   : > { %v3250_v41 = vpop.f32.mrf.mxu1  ;;  %v3301_v43 = vsel %vm3297_vm4, %v3264_v31, %v3243_v45  ;;  %v3267_v6 = vmax.f32 %v3245_v59, 0.0  ;;  %v3247_v44 = vadd.f32 %v3246_v29, %v3194_v32  ;;  %v3198_v46 = vadd.f32 %v3197_v40, %v3145_v30 }
 0x299   : > { %v3847_v50 = vpack.c.bf16 %v3301_v43, %v3300_v37  ;;  %v3199_v51 = vpop.f32.mrf.mxu0 }
 0x29a   : > { %v3252_v38 = vpop.f32.mrf.mxu1  ;;  %v3268_v39 = vmax.f32 %v3247_v44, 0.0  ;;  %v3251_v55 = vadd.f32 %v3250_v41, %v3198_v46  ;;  %v3200_v56 = vadd.f32 %v3199_v51, %v3147_v35  ;;  %v3304_v58 = vsel %vm3296_vm3, %v3267_v6, %v3245_v59 }
 0x29b   : > { %3363 = vst [vmem:[%s5499_s15 + $0x8] sm:$0xff] %v3847_v50  ;;  %v3201_v60 = vpop.f32.mrf.mxu0 }
 0x29c   : > { %v3254_v48 = vpop.f32.mrf.mxu1  ;;  %v3305_v62 = vsel %vm3297_vm4, %v3268_v39, %v3247_v44  ;;  %v3271_v25 = vmax.f32 %v3251_v55, 0.0  ;;  %v3253_v63 = vadd.f32 %v3252_v38, %v3200_v56  ;;  %v3202_v0 = vadd.f32 %v3201_v60, %v3149_v52 }
 0x29d   : > { %v3849_v1 = vpack.c.bf16 %v3305_v62, %v3304_v58  ;;  %v3203_v54 = vpop.f32.mrf.mxu0 }
 0x29e   : > { %v3272_v2 = vmax.f32 %v3253_v63, 0.0  ;;  %v3255_v4 = vadd.f32 %v3254_v48, %v3202_v0  ;;  %v3204_v3 = vadd.f32 %v3203_v54, %v3151_v57  ;;  %v3256_v61 = vpop.f32.mrf.mxu1  ;;  %v3308_v8 = vsel %vm3296_vm3, %v3271_v25, %v3251_v55 }
 0x29f   : > { %3365 = vst [vmem:[%s5499_s15 + $0x18] sm:$0xff] %v3849_v1 }
 0x2a0   : > { %v3309_v7 = vsel %vm3297_vm4, %v3272_v2, %v3253_v63  ;;  %v3275_v11 = vmax.f32 %v3255_v4, 0.0  ;;  %v3257_v12 = vadd.f32 %v3256_v61, %v3204_v3 }
 0x2a1   : > { %v3851_v13 = vpack.c.bf16 %v3309_v7, %v3308_v8 }
 0x2a2   : > { %v3276_v14 = vmax.f32 %v3257_v12, 0.0  ;;  %v3312_v15 = vsel %vm3296_vm3, %v3275_v11, %v3255_v4  ;;  %v3397_v10 = vld [vmem:[%s5499_s15 + $0x8] sm:$0xff] (%p4462_p6) }
 0x2a3   : > { %3367 = vst [vmem:[%s5499_s15 + $0x28] sm:$0xff] %v3851_v13  ;;  %3376 = sbr.rel (!%p4462_p6) target bundleno = 688 (0x2b0), region = 63  ;;  %3398 = vst [vmem:[%s3382_s23 + $0x8] sm:$0xff] (%p4462_p6), %v3397_v10 }
 0x2a4   : > { %v3313_v9 = vsel %vm3297_vm4, %v3276_v14, %v3257_v12 }
 0x2a5   : > { %v3853_v16 = vpack.c.bf16 %v3313_v9, %v3312_v15 }
 0x2a6   : > { %v3401_v17 = vld [vmem:[%s5499_s15 + $0x18] sm:$0xff] (%p4462_p6) }
 0x2a7   : > { %3369 = vst [vmem:[%s5499_s15 + $0x38] sm:$0xff] %v3853_v16  ;;  %3402 = vst [vmem:[%s3382_s23 + $0x28] sm:$0xff] (%p4462_p6), %v3401_v17 }
 0x2aa   : > { %v3405_v19 = vld [vmem:[%s5499_s15 + $0x28] sm:$0xff] }
 0x2ab   : > { %3406 = vst [vmem:[%s3382_s23 + $0x48] sm:$0xff] %v3405_v19 }
 0x2ae   : > { %v3409_v20 = vld [vmem:[%s5499_s15 + $0x38] sm:$0xff] }
 0x2af   : > { %3410 = vst [vmem:[%s3382_s23 + $0x68] sm:$0xff] %v3409_v20 }
 0x2b0 PF: > { %s14_s19 = sadd.s32 1, %s4399_s19   ;;  %s5578_s15 = smov %s4387_s16 }
 0x2b1   : > { %p11_p12 = scmp.ge.s32.totalorder %s14_s19, 4   ;;  %s5579_s16 = smov %s4467_s25 }
 0x2b2   : > { %s5580_s17 = smov %s4395_s18  ;;  %s5581_s18 = smov %s5583_s20 }
 0x2b3   :  { %13 = sbr.rel (!%p11_p12) target bundleno = 3 (0x3), region = 126 }

// kernel: resnet_forward.11
= control target key start
LH: loop header
LB: loop body
LE: loop exit
PB: predicated region body
PF: predicated region fallthrough
CT: control target
= control target key end

     0   :  { %9 = vsyncpa [#allocation5], 0  ;;  %s14204_s0 = inlined_call_operand.vmem [shape: bf16[32,4608], index: 0, kind: input, shape index: {}]   ;;  %s14205_s1 = inlined_call_operand.vmem [shape: bf16[4608,512], index: 1, kind: input, shape index: {}]   ;;  %s14206_s2 = inlined_call_operand.vmem [shape: f32[1,512], index: 2, kind: input, shape index: {}]   ;;  %s14207_s3 = inlined_call_operand.vmem [shape: bf16[32,512], index: 3, kind: input, shape index: {}]   ;;  %s14208_s4 = inlined_call_operand.hbm [shape: f32[2,512], index: 4, kind: output, shape index: {}]  }
   0x1   :  { %11 = vsyncpa [#allocation5 + $0x1], 0  ;;  %s11906_s15 = smov 0   ;;  %s11908_s16 = smov 0  }
   0x2   :  { %s11910_s17 = smov 0   ;;  %s11912_s18 = smov 0  }
   0x3   :  { %s11914_s19 = smov 0   ;;  %s11916_s20 = smov 0  }
   0x4 LB: > { %s10101_s21 = sadd.s32 4294967295, %s11877_s20   ;;  %s10102_s22 = sadd.s32 4294967294, %s11877_s20   ;;  %s11877_s20 = sphi %s11916_s20, %s17_s20   ;;  %s11873_s19 = sphi %s11914_s19, %s14241_s19   ;;  %s11869_s18 = sphi %s11912_s18, %s14240_s18   ;;  %s11865_s17 = sphi %s11910_s17, %s14239_s17   ;;  %s11861_s16 = sphi %s11908_s16, %s14238_s16   ;;  %s11857_s15 = sphi %s11906_s15, %s14237_s15  }
   0x5   : > { %s26_s23 = sadd.s32 1, %s11873_s19  ;;  %s62_s24 = sadd.s32 1, %s11865_s17 }
   0x6   : > { %p27_p0 = scmp.ge.s32.totalorder %s26_s23, 2  ;;  %p69_p1 = scmp.ne.s32.totalorder %s11865_s17, %s11861_s16 }
   0x7   : > { %p70_p2 = scmp.eq.s32.totalorder %s11877_s20, 0  ;;  %p153_p3 = scmp.eq.s32.totalorder %s10101_s21, 1 }
   0x8   : > { %s14243_s23 = smov (%p27_p0, %s26_s23), 0  ;;  %p158_p6 = scmp.ne.s32.totalorder %s11861_s16, %s11857_s15 }
   0x9   : > { %p11945_p4 = por %p70_p2, %p69_p1  ;;  %p11949_p5 = por %p153_p3, %p69_p1 }
   0xa   : > { %s59_s27 = ssub.s32 %s11873_s19, %s14243_s23  ;;  %p159_p8 = scmp.eq.s32.totalorder %s10102_s22, 1 }
   0xb   : > { %p60_p7 = scmp.eq.s32.totalorder %s59_s27, 0  ;;  %p10105_p10 = scmp.ge.s32.totalorder %s11877_s20, 2 }
   0xc   : > { %p11960_p9 = por %p159_p8, %p158_p6 }
   0xd   : > { %s11958_s28 = scalar_select %p60_p7, %s11865_s17, %s62_s24  }
   0xe   : > { %185 = sbr.rel (%p10105_p10) target bundleno = 317 (0x13d), region = 20 }
  0x13   : > { %188 = sbr.rel (!%p11945_p4) target bundleno = 311 (0x137), region = 24  ;;  %s190_s30 = sand.u32 (%p11945_p4), 1, %s11865_s17  }
  0x14   : > { %s10768_s5 = sshll.u32 (%p11945_p4), %s11873_s19, 3  ;;  %s10771_s6 = smul.u32 (%p11945_p4), 4608, %s190_s30 }
  0x15   : > { %s11974_s9 = scalar_lea.vmem (%p11945_p4), %s14205_s1, %s10768_s5 }
  0x16   : > { %v1377_v0 = vld [vmem:[%s11974_s9] sm:$0xff] (%p11945_p4)  ;;  %v1379_v1 = vld [vmem:[%s11974_s9 + $0x10] sm:$0xff] (%p11945_p4)  ;;  %s11982_s10 = scalar_lea.vmem (%p11945_p4), [#allocation2], %s10771_s6 }
  0x17   : > { %v1381_v2 = vld [vmem:[%s11974_s9 + $0x20] sm:$0xff] (%p11945_p4)  ;;  %v1383_v3 = vld [vmem:[%s11974_s9 + $0x30] sm:$0xff] (%p11945_p4)  ;;  %1378 = vst [vmem:[%s11982_s10] sm:$0xff] (%p11945_p4), %v1377_v0  ;;  %1380 = vst [vmem:[%s11982_s10 + $0x8] sm:$0xff] (%p11945_p4), %v1379_v1 }
  0x18   : > { %v1385_v4 = vld [vmem:[%s11974_s9 + $0x40] sm:$0xff]  ;;  %v1387_v5 = vld [vmem:[%s11974_s9 + $0x50] sm:$0xff]  ;;  %1382 = vst [vmem:[%s11982_s10 + $0x10] sm:$0xff] %v1381_v2  ;;  %1384 = vst [vmem:[%s11982_s10 + $0x18] sm:$0xff] %v1383_v3 }
  0x19   : > { %1386 = vst [vmem:[%s11982_s10 + $0x20] sm:$0xff] %v1385_v4  ;;  %1388 = vst [vmem:[%s11982_s10 + $0x28] sm:$0xff] %v1387_v5  ;;  %v1389_v6 = vld [vmem:[%s11974_s9 + $0x60] sm:$0xff]  ;;  %v1391_v7 = vld [vmem:[%s11974_s9 + $0x70] sm:$0xff] }
  0x1a   : > { %v1393_v8 = vld [vmem:[%s11974_s9 + $0x80] sm:$0xff]  ;;  %1390 = vst [vmem:[%s11982_s10 + $0x30] sm:$0xff] %v1389_v6  ;;  %1392 = vst [vmem:[%s11982_s10 + $0x38] sm:$0xff] %v1391_v7  ;;  %v1395_v9 = vld [vmem:[%s11974_s9 + $0x90] sm:$0xff] }
  0x1b   : > { %1394 = vst [vmem:[%s11982_s10 + $0x40] sm:$0xff] %v1393_v8  ;;  %v1397_v10 = vld [vmem:[%s11974_s9 + $0xa0] sm:$0xff]  ;;  %v1399_v11 = vld [vmem:[%s11974_s9 + $0xb0] sm:$0xff]  ;;  %1396 = vst [vmem:[%s11982_s10 + $0x48] sm:$0xff] %v1395_v9 }
  0x1c   : > { %1398 = vst [vmem:[%s11982_s10 + $0x50] sm:$0xff] %v1397_v10  ;;  %1400 = vst [vmem:[%s11982_s10 + $0x58] sm:$0xff] %v1399_v11  ;;  %v1401_v12 = vld [vmem:[%s11974_s9 + $0xc0] sm:$0xff]  ;;  %v1403_v13 = vld [vmem:[%s11974_s9 + $0xd0] sm:$0xff] }
  0x1d   : > { %v1405_v14 = vld [vmem:[%s11974_s9 + $0xe0] sm:$0xff]  ;;  %1402 = vst [vmem:[%s11982_s10 + $0x60] sm:$0xff] %v1401_v12  ;;  %1404 = vst [vmem:[%s11982_s10 + $0x68] sm:$0xff] %v1403_v13  ;;  %v1407_v15 = vld [vmem:[%s11974_s9 + $0xf0] sm:$0xff] }
  0x1e   : > { %1406 = vst [vmem:[%s11982_s10 + $0x70] sm:$0xff] %v1405_v14  ;;  %v1409_v16 = vld [vmem:[%s11974_s9 + $0x100] sm:$0xff]  ;;  %v1411_v17 = vld [vmem:[%s11974_s9 + $0x110] sm:$0xff]  ;;  %1408 = vst [vmem:[%s11982_s10 + $0x78] sm:$0xff] %v1407_v15 }
  0x1f   : > { %1410 = vst [vmem:[%s11982_s10 + $0x80] sm:$0xff] %v1409_v16  ;;  %1412 = vst [vmem:[%s11982_s10 + $0x88] sm:$0xff] %v1411_v17  ;;  %v1413_v18 = vld [vmem:[%s11974_s9 + $0x120] sm:$0xff]  ;;  %v1415_v19 = vld [vmem:[%s11974_s9 + $0x130] sm:$0xff] }
  0x20   : > { %v1417_v20 = vld [vmem:[%s11974_s9 + $0x140] sm:$0xff]  ;;  %1414 = vst [vmem:[%s11982_s10 + $0x90] sm:$0xff] %v1413_v18  ;;  %1416 = vst [vmem:[%s11982_s10 + $0x98] sm:$0xff] %v1415_v19  ;;  %v1419_v21 = vld [vmem:[%s11974_s9 + $0x150] sm:$0xff] }
  0x21   : > { %1418 = vst [vmem:[%s11982_s10 + $0xa0] sm:$0xff] %v1417_v20  ;;  %v1421_v22 = vld [vmem:[%s11974_s9 + $0x160] sm:$0xff]  ;;  %v1423_v23 = vld [vmem:[%s11974_s9 + $0x170] sm:$0xff]  ;;  %1420 = vst [vmem:[%s11982_s10 + $0xa8] sm:$0xff] %v1419_v21 }
  0x22   : > { %1422 = vst [vmem:[%s11982_s10 + $0xb0] sm:$0xff] %v1421_v22  ;;  %1424 = vst [vmem:[%s11982_s10 + $0xb8] sm:$0xff] %v1423_v23  ;;  %v1425_v24 = vld [vmem:[%s11974_s9 + $0x180] sm:$0xff]  ;;  %v1427_v25 = vld [vmem:[%s11974_s9 + $0x190] sm:$0xff] }
  0x23   : > { %v1429_v26 = vld [vmem:[%s11974_s9 + $0x1a0] sm:$0xff]  ;;  %1426 = vst [vmem:[%s11982_s10 + $0xc0] sm:$0xff] %v1425_v24  ;;  %1428 = vst [vmem:[%s11982_s10 + $0xc8] sm:$0xff] %v1427_v25  ;;  %v1431_v27 = vld [vmem:[%s11974_s9 + $0x1b0] sm:$0xff] }
  0x24   : > { %1430 = vst [vmem:[%s11982_s10 + $0xd0] sm:$0xff] %v1429_v26  ;;  %v1433_v28 = vld [vmem:[%s11974_s9 + $0x1c0] sm:$0xff]  ;;  %v1435_v29 = vld [vmem:[%s11974_s9 + $0x1d0] sm:$0xff]  ;;  %1432 = vst [vmem:[%s11982_s10 + $0xd8] sm:$0xff] %v1431_v27 }
  0x25   : > { %1434 = vst [vmem:[%s11982_s10 + $0xe0] sm:$0xff] %v1433_v28  ;;  %1436 = vst [vmem:[%s11982_s10 + $0xe8] sm:$0xff] %v1435_v29  ;;  %v1437_v30 = vld [vmem:[%s11974_s9 + $0x1e0] sm:$0xff]  ;;  %v1439_v31 = vld [vmem:[%s11974_s9 + $0x1f0] sm:$0xff] }
  0x26   : > { %v1441_v32 = vld [vmem:[%s11974_s9 + $0x200] sm:$0xff]  ;;  %1438 = vst [vmem:[%s11982_s10 + $0xf0] sm:$0xff] %v1437_v30  ;;  %1440 = vst [vmem:[%s11982_s10 + $0xf8] sm:$0xff] %v1439_v31  ;;  %v1443_v33 = vld [vmem:[%s11974_s9 + $0x210] sm:$0xff] }
  0x27   : > { %1442 = vst [vmem:[%s11982_s10 + $0x100] sm:$0xff] %v1441_v32  ;;  %v1445_v34 = vld [vmem:[%s11974_s9 + $0x220] sm:$0xff]  ;;  %v1447_v35 = vld [vmem:[%s11974_s9 + $0x230] sm:$0xff]  ;;  %1444 = vst [vmem:[%s11982_s10 + $0x108] sm:$0xff] %v1443_v33 }
  0x28   : > { %1446 = vst [vmem:[%s11982_s10 + $0x110] sm:$0xff] %v1445_v34  ;;  %1448 = vst [vmem:[%s11982_s10 + $0x118] sm:$0xff] %v1447_v35  ;;  %v1449_v36 = vld [vmem:[%s11974_s9 + $0x240] sm:$0xff]  ;;  %v1451_v37 = vld [vmem:[%s11974_s9 + $0x250] sm:$0xff] }
  0x29   : > { %v1453_v38 = vld [vmem:[%s11974_s9 + $0x260] sm:$0xff]  ;;  %1450 = vst [vmem:[%s11982_s10 + $0x120] sm:$0xff] %v1449_v36  ;;  %1452 = vst [vmem:[%s11982_s10 + $0x128] sm:$0xff] %v1451_v37  ;;  %v1455_v39 = vld [vmem:[%s11974_s9 + $0x270] sm:$0xff] }
  0x2a   : > { %1454 = vst [vmem:[%s11982_s10 + $0x130] sm:$0xff] %v1453_v38  ;;  %v1457_v40 = vld [vmem:[%s11974_s9 + $0x280] sm:$0xff]  ;;  %v1459_v41 = vld [vmem:[%s11974_s9 + $0x290] sm:$0xff]  ;;  %1456 = vst [vmem:[%s11982_s10 + $0x138] sm:$0xff] %v1455_v39 }
  0x2b   : > { %1458 = vst [vmem:[%s11982_s10 + $0x140] sm:$0xff] %v1457_v40  ;;  %1460 = vst [vmem:[%s11982_s10 + $0x148] sm:$0xff] %v1459_v41  ;;  %v1461_v42 = vld [vmem:[%s11974_s9 + $0x2a0] sm:$0xff]  ;;  %v1463_v43 = vld [vmem:[%s11974_s9 + $0x2b0] sm:$0xff] }
  0x2c   : > { %v1465_v44 = vld [vmem:[%s11974_s9 + $0x2c0] sm:$0xff]  ;;  %1462 = vst [vmem:[%s11982_s10 + $0x150] sm:$0xff] %v1461_v42  ;;  %1464 = vst [vmem:[%s11982_s10 + $0x158] sm:$0xff] %v1463_v43  ;;  %v1467_v45 = vld [vmem:[%s11974_s9 + $0x2d0] sm:$0xff] }
  0x2d   : > { %1466 = vst [vmem:[%s11982_s10 + $0x160] sm:$0xff] %v1465_v44  ;;  %v1469_v46 = vld [vmem:[%s11974_s9 + $0x2e0] sm:$0xff]  ;;  %v1471_v47 = vld [vmem:[%s11974_s9 + $0x2f0] sm:$0xff]  ;;  %1468 = vst [vmem:[%s11982_s10 + $0x168] sm:$0xff] %v1467_v45 }
  0x2e   : > { %1470 = vst [vmem:[%s11982_s10 + $0x170] sm:$0xff] %v1469_v46  ;;  %1472 = vst [vmem:[%s11982_s10 + $0x178] sm:$0xff] %v1471_v47  ;;  %v1473_v48 = vld [vmem:[%s11974_s9 + $0x300] sm:$0xff]  ;;  %v1475_v49 = vld [vmem:[%s11974_s9 + $0x310] sm:$0xff] }
  0x2f   : > { %v1477_v50 = vld [vmem:[%s11974_s9 + $0x320] sm:$0xff]  ;;  %1474 = vst [vmem:[%s11982_s10 + $0x180] sm:$0xff] %v1473_v48  ;;  %1476 = vst [vmem:[%s11982_s10 + $0x188] sm:$0xff] %v1475_v49  ;;  %v1479_v51 = vld [vmem:[%s11974_s9 + $0x330] sm:$0xff] }
  0x30   : > { %1478 = vst [vmem:[%s11982_s10 + $0x190] sm:$0xff] %v1477_v50  ;;  %v1481_v52 = vld [vmem:[%s11974_s9 + $0x340] sm:$0xff]  ;;  %v1483_v53 = vld [vmem:[%s11974_s9 + $0x350] sm:$0xff]  ;;  %1480 = vst [vmem:[%s11982_s10 + $0x198] sm:$0xff] %v1479_v51 }
  0x31   : > { %1482 = vst [vmem:[%s11982_s10 + $0x1a0] sm:$0xff] %v1481_v52  ;;  %1484 = vst [vmem:[%s11982_s10 + $0x1a8] sm:$0xff] %v1483_v53  ;;  %v1485_v54 = vld [vmem:[%s11974_s9 + $0x360] sm:$0xff]  ;;  %v1487_v55 = vld [vmem:[%s11974_s9 + $0x370] sm:$0xff] }
  0x32   : > { %v1489_v56 = vld [vmem:[%s11974_s9 + $0x380] sm:$0xff]  ;;  %1486 = vst [vmem:[%s11982_s10 + $0x1b0] sm:$0xff] %v1485_v54  ;;  %1488 = vst [vmem:[%s11982_s10 + $0x1b8] sm:$0xff] %v1487_v55  ;;  %v1491_v57 = vld [vmem:[%s11974_s9 + $0x390] sm:$0xff] }
  0x33   : > { %1490 = vst [vmem:[%s11982_s10 + $0x1c0] sm:$0xff] %v1489_v56  ;;  %v1493_v58 = vld [vmem:[%s11974_s9 + $0x3a0] sm:$0xff]  ;;  %v1495_v59 = vld [vmem:[%s11974_s9 + $0x3b0] sm:$0xff]  ;;  %1492 = vst [vmem:[%s11982_s10 + $0x1c8] sm:$0xff] %v1491_v57 }
  0x34   : > { %1494 = vst [vmem:[%s11982_s10 + $0x1d0] sm:$0xff] %v1493_v58  ;;  %1496 = vst [vmem:[%s11982_s10 + $0x1d8] sm:$0xff] %v1495_v59  ;;  %v1497_v60 = vld [vmem:[%s11974_s9 + $0x3c0] sm:$0xff]  ;;  %v1499_v61 = vld [vmem:[%s11974_s9 + $0x3d0] sm:$0xff] }
  0x35   : > { %v1501_v62 = vld [vmem:[%s11974_s9 + $0x3e0] sm:$0xff]  ;;  %1498 = vst [vmem:[%s11982_s10 + $0x1e0] sm:$0xff] %v1497_v60  ;;  %1500 = vst [vmem:[%s11982_s10 + $0x1e8] sm:$0xff] %v1499_v61  ;;  %v1503_v63 = vld [vmem:[%s11974_s9 + $0x3f0] sm:$0xff] }
  0x36   : > { %1502 = vst [vmem:[%s11982_s10 + $0x1f0] sm:$0xff] %v1501_v62  ;;  %v1505_v0 = vld [vmem:[%s11974_s9 + $0x400] sm:$0xff]  ;;  %v1507_v1 = vld [vmem:[%s11974_s9 + $0x410] sm:$0xff]  ;;  %1504 = vst [vmem:[%s11982_s10 + $0x1f8] sm:$0xff] %v1503_v63 }
  0x37   : > { %1506 = vst [vmem:[%s11982_s10 + $0x200] sm:$0xff] %v1505_v0  ;;  %1508 = vst [vmem:[%s11982_s10 + $0x208] sm:$0xff] %v1507_v1  ;;  %v1509_v2 = vld [vmem:[%s11974_s9 + $0x420] sm:$0xff]  ;;  %v1511_v3 = vld [vmem:[%s11974_s9 + $0x430] sm:$0xff] }
  0x38   : > { %v1513_v4 = vld [vmem:[%s11974_s9 + $0x440] sm:$0xff]  ;;  %1510 = vst [vmem:[%s11982_s10 + $0x210] sm:$0xff] %v1509_v2  ;;  %1512 = vst [vmem:[%s11982_s10 + $0x218] sm:$0xff] %v1511_v3  ;;  %v1515_v5 = vld [vmem:[%s11974_s9 + $0x450] sm:$0xff] }
  0x39   : > { %1514 = vst [vmem:[%s11982_s10 + $0x220] sm:$0xff] %v1513_v4  ;;  %v1517_v6 = vld [vmem:[%s11974_s9 + $0x460] sm:$0xff]  ;;  %v1519_v7 = vld [vmem:[%s11974_s9 + $0x470] sm:$0xff]  ;;  %1516 = vst [vmem:[%s11982_s10 + $0x228] sm:$0xff] %v1515_v5 }
  0x3a   : > { %1518 = vst [vmem:[%s11982_s10 + $0x230] sm:$0xff] %v1517_v6  ;;  %1520 = vst [vmem:[%s11982_s10 + $0x238] sm:$0xff] %v1519_v7  ;;  %v1521_v8 = vld [vmem:[%s11974_s9 + $0x480] sm:$0xff]  ;;  %v1523_v9 = vld [vmem:[%s11974_s9 + $0x490] sm:$0xff] }
  0x3b   : > { %v1525_v10 = vld [vmem:[%s11974_s9 + $0x4a0] sm:$0xff]  ;;  %1522 = vst [vmem:[%s11982_s10 + $0x240] sm:$0xff] %v1521_v8  ;;  %1524 = vst [vmem:[%s11982_s10 + $0x248] sm:$0xff] %v1523_v9  ;;  %v1527_v11 = vld [vmem:[%s11974_s9 + $0x4b0] sm:$0xff] }
  0x3c   : > { %1526 = vst [vmem:[%s11982_s10 + $0x250] sm:$0xff] %v1525_v10  ;;  %v1529_v12 = vld [vmem:[%s11974_s9 + $0x4c0] sm:$0xff]  ;;  %v1531_v13 = vld [vmem:[%s11974_s9 + $0x4d0] sm:$0xff]  ;;  %1528 = vst [vmem:[%s11982_s10 + $0x258] sm:$0xff] %v1527_v11 }
  0x3d   : > { %1530 = vst [vmem:[%s11982_s10 + $0x260] sm:$0xff] %v1529_v12  ;;  %1532 = vst [vmem:[%s11982_s10 + $0x268] sm:$0xff] %v1531_v13  ;;  %v1533_v14 = vld [vmem:[%s11974_s9 + $0x4e0] sm:$0xff]  ;;  %v1535_v15 = vld [vmem:[%s11974_s9 + $0x4f0] sm:$0xff] }
  0x3e   : > { %v1537_v16 = vld [vmem:[%s11974_s9 + $0x500] sm:$0xff]  ;;  %1534 = vst [vmem:[%s11982_s10 + $0x270] sm:$0xff] %v1533_v14  ;;  %1536 = vst [vmem:[%s11982_s10 + $0x278] sm:$0xff] %v1535_v15  ;;  %v1539_v17 = vld [vmem:[%s11974_s9 + $0x510] sm:$0xff] }
  0x3f   : > { %1538 = vst [vmem:[%s11982_s10 + $0x280] sm:$0xff] %v1537_v16  ;;  %v1541_v18 = vld [vmem:[%s11974_s9 + $0x520] sm:$0xff]  ;;  %v1543_v19 = vld [vmem:[%s11974_s9 + $0x530] sm:$0xff]  ;;  %1540 = vst [vmem:[%s11982_s10 + $0x288] sm:$0xff] %v1539_v17 }
  0x40   : > { %1542 = vst [vmem:[%s11982_s10 + $0x290] sm:$0xff] %v1541_v18  ;;  %1544 = vst [vmem:[%s11982_s10 + $0x298] sm:$0xff] %v1543_v19  ;;  %v1545_v20 = vld [vmem:[%s11974_s9 + $0x540] sm:$0xff]  ;;  %v1547_v21 = vld [vmem:[%s11974_s9 + $0x550] sm:$0xff] }
  0x41   : > { %v1549_v22 = vld [vmem:[%s11974_s9 + $0x560] sm:$0xff]  ;;  %1546 = vst [vmem:[%s11982_s10 + $0x2a0] sm:$0xff] %v1545_v20  ;;  %1548 = vst [vmem:[%s11982_s10 + $0x2a8] sm:$0xff] %v1547_v21  ;;  %v1551_v23 = vld [vmem:[%s11974_s9 + $0x570] sm:$0xff] }
  0x42   : > { %1550 = vst [vmem:[%s11982_s10 + $0x2b0] sm:$0xff] %v1549_v22  ;;  %v1553_v24 = vld [vmem:[%s11974_s9 + $0x580] sm:$0xff]  ;;  %v1555_v25 = vld [vmem:[%s11974_s9 + $0x590] sm:$0xff]  ;;  %1552 = vst [vmem:[%s11982_s10 + $0x2b8] sm:$0xff] %v1551_v23 }
  0x43   : > { %1554 = vst [vmem:[%s11982_s10 + $0x2c0] sm:$0xff] %v1553_v24  ;;  %1556 = vst [vmem:[%s11982_s10 + $0x2c8] sm:$0xff] %v1555_v25  ;;  %v1557_v26 = vld [vmem:[%s11974_s9 + $0x5a0] sm:$0xff]  ;;  %v1559_v27 = vld [vmem:[%s11974_s9 + $0x5b0] sm:$0xff] }
  0x44   : > { %v1561_v28 = vld [vmem:[%s11974_s9 + $0x5c0] sm:$0xff]  ;;  %1558 = vst [vmem:[%s11982_s10 + $0x2d0] sm:$0xff] %v1557_v26  ;;  %1560 = vst [vmem:[%s11982_s10 + $0x2d8] sm:$0xff] %v1559_v27  ;;  %v1563_v29 = vld [vmem:[%s11974_s9 + $0x5d0] sm:$0xff] }
  0x45   : > { %1562 = vst [vmem:[%s11982_s10 + $0x2e0] sm:$0xff] %v1561_v28  ;;  %v1565_v30 = vld [vmem:[%s11974_s9 + $0x5e0] sm:$0xff]  ;;  %v1567_v31 = vld [vmem:[%s11974_s9 + $0x5f0] sm:$0xff]  ;;  %1564 = vst [vmem:[%s11982_s10 + $0x2e8] sm:$0xff] %v1563_v29 }
  0x46   : > { %1566 = vst [vmem:[%s11982_s10 + $0x2f0] sm:$0xff] %v1565_v30  ;;  %1568 = vst [vmem:[%s11982_s10 + $0x2f8] sm:$0xff] %v1567_v31  ;;  %v1569_v32 = vld [vmem:[%s11974_s9 + $0x600] sm:$0xff]  ;;  %v1571_v33 = vld [vmem:[%s11974_s9 + $0x610] sm:$0xff] }
  0x47   : > { %v1573_v34 = vld [vmem:[%s11974_s9 + $0x620] sm:$0xff]  ;;  %1570 = vst [vmem:[%s11982_s10 + $0x300] sm:$0xff] %v1569_v32  ;;  %1572 = vst [vmem:[%s11982_s10 + $0x308] sm:$0xff] %v1571_v33  ;;  %v1575_v35 = vld [vmem:[%s11974_s9 + $0x630] sm:$0xff] }
  0x48   : > { %1574 = vst [vmem:[%s11982_s10 + $0x310] sm:$0xff] %v1573_v34  ;;  %v1577_v36 = vld [vmem:[%s11974_s9 + $0x640] sm:$0xff]  ;;  %v1579_v37 = vld [vmem:[%s11974_s9 + $0x650] sm:$0xff]  ;;  %1576 = vst [vmem:[%s11982_s10 + $0x318] sm:$0xff] %v1575_v35 }
  0x49   : > { %1578 = vst [vmem:[%s11982_s10 + $0x320] sm:$0xff] %v1577_v36  ;;  %1580 = vst [vmem:[%s11982_s10 + $0x328] sm:$0xff] %v1579_v37  ;;  %v1581_v38 = vld [vmem:[%s11974_s9 + $0x660] sm:$0xff]  ;;  %v1583_v39 = vld [vmem:[%s11974_s9 + $0x670] sm:$0xff] }
  0x4a   : > { %v1585_v40 = vld [vmem:[%s11974_s9 + $0x680] sm:$0xff]  ;;  %1582 = vst [vmem:[%s11982_s10 + $0x330] sm:$0xff] %v1581_v38  ;;  %1584 = vst [vmem:[%s11982_s10 + $0x338] sm:$0xff] %v1583_v39  ;;  %v1587_v41 = vld [vmem:[%s11974_s9 + $0x690] sm:$0xff] }
  0x4b   : > { %1586 = vst [vmem:[%s11982_s10 + $0x340] sm:$0xff] %v1585_v40  ;;  %v1589_v42 = vld [vmem:[%s11974_s9 + $0x6a0] sm:$0xff]  ;;  %v1591_v43 = vld [vmem:[%s11974_s9 + $0x6b0] sm:$0xff]  ;;  %1588 = vst [vmem:[%s11982_s10 + $0x348] sm:$0xff] %v1587_v41 }
  0x4c   : > { %1590 = vst [vmem:[%s11982_s10 + $0x350] sm:$0xff] %v1589_v42  ;;  %1592 = vst [vmem:[%s11982_s10 + $0x358] sm:$0xff] %v1591_v43  ;;  %v1593_v44 = vld [vmem:[%s11974_s9 + $0x6c0] sm:$0xff]  ;;  %v1595_v45 = vld [vmem:[%s11974_s9 + $0x6d0] sm:$0xff] }
  0x4d   : > { %v1597_v46 = vld [vmem:[%s11974_s9 + $0x6e0] sm:$0xff]  ;;  %1594 = vst [vmem:[%s11982_s10 + $0x360] sm:$0xff] %v1593_v44  ;;  %1596 = vst [vmem:[%s11982_s10 + $0x368] sm:$0xff] %v1595_v45  ;;  %v1599_v47 = vld [vmem:[%s11974_s9 + $0x6f0] sm:$0xff] }
  0x4e   : > { %1598 = vst [vmem:[%s11982_s10 + $0x370] sm:$0xff] %v1597_v46  ;;  %v1601_v48 = vld [vmem:[%s11974_s9 + $0x700] sm:$0xff]  ;;  %v1603_v49 = vld [vmem:[%s11974_s9 + $0x710] sm:$0xff]  ;;  %1600 = vst [vmem:[%s11982_s10 + $0x378] sm:$0xff] %v1599_v47 }
  0x4f   : > { %1602 = vst [vmem:[%s11982_s10 + $0x380] sm:$0xff] %v1601_v48  ;;  %1604 = vst [vmem:[%s11982_s10 + $0x388] sm:$0xff] %v1603_v49  ;;  %v1605_v50 = vld [vmem:[%s11974_s9 + $0x720] sm:$0xff]  ;;  %v1607_v51 = vld [vmem:[%s11974_s9 + $0x730] sm:$0xff] }
  0x50   : > { %v1609_v52 = vld [vmem:[%s11974_s9 + $0x740] sm:$0xff]  ;;  %1606 = vst [vmem:[%s11982_s10 + $0x390] sm:$0xff] %v1605_v50  ;;  %1608 = vst [vmem:[%s11982_s10 + $0x398] sm:$0xff] %v1607_v51  ;;  %v1611_v53 = vld [vmem:[%s11974_s9 + $0x750] sm:$0xff] }
  0x51   : > { %1610 = vst [vmem:[%s11982_s10 + $0x3a0] sm:$0xff] %v1609_v52  ;;  %v1613_v54 = vld [vmem:[%s11974_s9 + $0x760] sm:$0xff]  ;;  %v1615_v55 = vld [vmem:[%s11974_s9 + $0x770] sm:$0xff]  ;;  %1612 = vst [vmem:[%s11982_s10 + $0x3a8] sm:$0xff] %v1611_v53 }
  0x52   : > { %1614 = vst [vmem:[%s11982_s10 + $0x3b0] sm:$0xff] %v1613_v54  ;;  %1616 = vst [vmem:[%s11982_s10 + $0x3b8] sm:$0xff] %v1615_v55  ;;  %v1617_v56 = vld [vmem:[%s11974_s9 + $0x780] sm:$0xff]  ;;  %v1619_v57 = vld [vmem:[%s11974_s9 + $0x790] sm:$0xff] }
  0x53   : > { %v1621_v58 = vld [vmem:[%s11974_s9 + $0x7a0] sm:$0xff]  ;;  %1618 = vst [vmem:[%s11982_s10 + $0x3c0] sm:$0xff] %v1617_v56  ;;  %1620 = vst [vmem:[%s11982_s10 + $0x3c8] sm:$0xff] %v1619_v57  ;;  %v1623_v59 = vld [vmem:[%s11974_s9 + $0x7b0] sm:$0xff] }
  0x54   : > { %1622 = vst [vmem:[%s11982_s10 + $0x3d0] sm:$0xff] %v1621_v58  ;;  %v1625_v60 = vld [vmem:[%s11974_s9 + $0x7c0] sm:$0xff]  ;;  %v1627_v61 = vld [vmem:[%s11974_s9 + $0x7d0] sm:$0xff]  ;;  %1624 = vst [vmem:[%s11982_s10 + $0x3d8] sm:$0xff] %v1623_v59 }
  0x55   : > { %1626 = vst [vmem:[%s11982_s10 + $0x3e0] sm:$0xff] %v1625_v60  ;;  %1628 = vst [vmem:[%s11982_s10 + $0x3e8] sm:$0xff] %v1627_v61  ;;  %v1629_v62 = vld [vmem:[%s11974_s9 + $0x7e0] sm:$0xff]  ;;  %v1631_v63 = vld [vmem:[%s11974_s9 + $0x7f0] sm:$0xff] }
  0x56   : > { %v1633_v0 = vld [vmem:[%s11974_s9 + $0x800] sm:$0xff]  ;;  %1630 = vst [vmem:[%s11982_s10 + $0x3f0] sm:$0xff] %v1629_v62  ;;  %1632 = vst [vmem:[%s11982_s10 + $0x3f8] sm:$0xff] %v1631_v63  ;;  %v1635_v1 = vld [vmem:[%s11974_s9 + $0x810] sm:$0xff] }
  0x57   : > { %1634 = vst [vmem:[%s11982_s10 + $0x400] sm:$0xff] %v1633_v0  ;;  %v1637_v2 = vld [vmem:[%s11974_s9 + $0x820] sm:$0xff]  ;;  %v1639_v3 = vld [vmem:[%s11974_s9 + $0x830] sm:$0xff]  ;;  %1636 = vst [vmem:[%s11982_s10 + $0x408] sm:$0xff] %v1635_v1 }
  0x58   : > { %1638 = vst [vmem:[%s11982_s10 + $0x410] sm:$0xff] %v1637_v2  ;;  %1640 = vst [vmem:[%s11982_s10 + $0x418] sm:$0xff] %v1639_v3  ;;  %v1641_v4 = vld [vmem:[%s11974_s9 + $0x840] sm:$0xff]  ;;  %v1643_v5 = vld [vmem:[%s11974_s9 + $0x850] sm:$0xff] }
  0x59   : > { %v1645_v6 = vld [vmem:[%s11974_s9 + $0x860] sm:$0xff]  ;;  %1642 = vst [vmem:[%s11982_s10 + $0x420] sm:$0xff] %v1641_v4  ;;  %1644 = vst [vmem:[%s11982_s10 + $0x428] sm:$0xff] %v1643_v5  ;;  %v1647_v7 = vld [vmem:[%s11974_s9 + $0x870] sm:$0xff] }
  0x5a   : > { %1646 = vst [vmem:[%s11982_s10 + $0x430] sm:$0xff] %v1645_v6  ;;  %v1649_v8 = vld [vmem:[%s11974_s9 + $0x880] sm:$0xff]  ;;  %v1651_v9 = vld [vmem:[%s11974_s9 + $0x890] sm:$0xff]  ;;  %1648 = vst [vmem:[%s11982_s10 + $0x438] sm:$0xff] %v1647_v7 }
  0x5b   : > { %1650 = vst [vmem:[%s11982_s10 + $0x440] sm:$0xff] %v1649_v8  ;;  %1652 = vst [vmem:[%s11982_s10 + $0x448] sm:$0xff] %v1651_v9  ;;  %v1653_v10 = vld [vmem:[%s11974_s9 + $0x8a0] sm:$0xff]  ;;  %v1655_v11 = vld [vmem:[%s11974_s9 + $0x8b0] sm:$0xff] }
  0x5c   : > { %v1657_v12 = vld [vmem:[%s11974_s9 + $0x8c0] sm:$0xff]  ;;  %1654 = vst [vmem:[%s11982_s10 + $0x450] sm:$0xff] %v1653_v10  ;;  %1656 = vst [vmem:[%s11982_s10 + $0x458] sm:$0xff] %v1655_v11  ;;  %v1659_v13 = vld [vmem:[%s11974_s9 + $0x8d0] sm:$0xff] }
  0x5d   : > { %1658 = vst [vmem:[%s11982_s10 + $0x460] sm:$0xff] %v1657_v12  ;;  %v1661_v14 = vld [vmem:[%s11974_s9 + $0x8e0] sm:$0xff]  ;;  %v1663_v15 = vld [vmem:[%s11974_s9 + $0x8f0] sm:$0xff]  ;;  %1660 = vst [vmem:[%s11982_s10 + $0x468] sm:$0xff] %v1659_v13 }
  0x5e   : > { %1662 = vst [vmem:[%s11982_s10 + $0x470] sm:$0xff] %v1661_v14  ;;  %1664 = vst [vmem:[%s11982_s10 + $0x478] sm:$0xff] %v1663_v15  ;;  %v1665_v16 = vld [vmem:[%s11974_s9 + $0x900] sm:$0xff]  ;;  %v1667_v17 = vld [vmem:[%s11974_s9 + $0x910] sm:$0xff] }
  0x5f   : > { %v1669_v18 = vld [vmem:[%s11974_s9 + $0x920] sm:$0xff]  ;;  %1666 = vst [vmem:[%s11982_s10 + $0x480] sm:$0xff] %v1665_v16  ;;  %1668 = vst [vmem:[%s11982_s10 + $0x488] sm:$0xff] %v1667_v17  ;;  %v1671_v19 = vld [vmem:[%s11974_s9 + $0x930] sm:$0xff] }
  0x60   : > { %1670 = vst [vmem:[%s11982_s10 + $0x490] sm:$0xff] %v1669_v18  ;;  %v1673_v20 = vld [vmem:[%s11974_s9 + $0x940] sm:$0xff]  ;;  %v1675_v21 = vld [vmem:[%s11974_s9 + $0x950] sm:$0xff]  ;;  %1672 = vst [vmem:[%s11982_s10 + $0x498] sm:$0xff] %v1671_v19 }
  0x61   : > { %1674 = vst [vmem:[%s11982_s10 + $0x4a0] sm:$0xff] %v1673_v20  ;;  %1676 = vst [vmem:[%s11982_s10 + $0x4a8] sm:$0xff] %v1675_v21  ;;  %v1677_v22 = vld [vmem:[%s11974_s9 + $0x960] sm:$0xff]  ;;  %v1679_v23 = vld [vmem:[%s11974_s9 + $0x970] sm:$0xff] }
  0x62   : > { %v1681_v24 = vld [vmem:[%s11974_s9 + $0x980] sm:$0xff]  ;;  %1678 = vst [vmem:[%s11982_s10 + $0x4b0] sm:$0xff] %v1677_v22  ;;  %1680 = vst [vmem:[%s11982_s10 + $0x4b8] sm:$0xff] %v1679_v23  ;;  %v1683_v25 = vld [vmem:[%s11974_s9 + $0x990] sm:$0xff] }
  0x63   : > { %1682 = vst [vmem:[%s11982_s10 + $0x4c0] sm:$0xff] %v1681_v24  ;;  %v1685_v26 = vld [vmem:[%s11974_s9 + $0x9a0] sm:$0xff]  ;;  %v1687_v27 = vld [vmem:[%s11974_s9 + $0x9b0] sm:$0xff]  ;;  %1684 = vst [vmem:[%s11982_s10 + $0x4c8] sm:$0xff] %v1683_v25 }
  0x64   : > { %1686 = vst [vmem:[%s11982_s10 + $0x4d0] sm:$0xff] %v1685_v26  ;;  %1688 = vst [vmem:[%s11982_s10 + $0x4d8] sm:$0xff] %v1687_v27  ;;  %v1689_v28 = vld [vmem:[%s11974_s9 + $0x9c0] sm:$0xff]  ;;  %v1691_v29 = vld [vmem:[%s11974_s9 + $0x9d0] sm:$0xff] }
  0x65   : > { %v1693_v30 = vld [vmem:[%s11974_s9 + $0x9e0] sm:$0xff]  ;;  %1690 = vst [vmem:[%s11982_s10 + $0x4e0] sm:$0xff] %v1689_v28  ;;  %1692 = vst [vmem:[%s11982_s10 + $0x4e8] sm:$0xff] %v1691_v29  ;;  %v1695_v31 = vld [vmem:[%s11974_s9 + $0x9f0] sm:$0xff] }
  0x66   : > { %1694 = vst [vmem:[%s11982_s10 + $0x4f0] sm:$0xff] %v1693_v30  ;;  %v1697_v32 = vld [vmem:[%s11974_s9 + $0xa00] sm:$0xff]  ;;  %v1699_v33 = vld [vmem:[%s11974_s9 + $0xa10] sm:$0xff]  ;;  %1696 = vst [vmem:[%s11982_s10 + $0x4f8] sm:$0xff] %v1695_v31 }
  0x67   : > { %1698 = vst [vmem:[%s11982_s10 + $0x500] sm:$0xff] %v1697_v32  ;;  %1700 = vst [vmem:[%s11982_s10 + $0x508] sm:$0xff] %v1699_v33  ;;  %v1701_v34 = vld [vmem:[%s11974_s9 + $0xa20] sm:$0xff]  ;;  %v1703_v35 = vld [vmem:[%s11974_s9 + $0xa30] sm:$0xff] }
  0x68   : > { %v1705_v36 = vld [vmem:[%s11974_s9 + $0xa40] sm:$0xff]  ;;  %1702 = vst [vmem:[%s11982_s10 + $0x510] sm:$0xff] %v1701_v34  ;;  %1704 = vst [vmem:[%s11982_s10 + $0x518] sm:$0xff] %v1703_v35  ;;  %v1707_v37 = vld [vmem:[%s11974_s9 + $0xa50] sm:$0xff] }
  0x69   : > { %1706 = vst [vmem:[%s11982_s10 + $0x520] sm:$0xff] %v1705_v36  ;;  %v1709_v38 = vld [vmem:[%s11974_s9 + $0xa60] sm:$0xff]  ;;  %v1711_v39 = vld [vmem:[%s11974_s9 + $0xa70] sm:$0xff]  ;;  %1708 = vst [vmem:[%s11982_s10 + $0x528] sm:$0xff] %v1707_v37 }
  0x6a   : > { %1710 = vst [vmem:[%s11982_s10 + $0x530] sm:$0xff] %v1709_v38  ;;  %1712 = vst [vmem:[%s11982_s10 + $0x538] sm:$0xff] %v1711_v39  ;;  %v1713_v40 = vld [vmem:[%s11974_s9 + $0xa80] sm:$0xff]  ;;  %v1715_v41 = vld [vmem:[%s11974_s9 + $0xa90] sm:$0xff] }
  0x6b   : > { %v1717_v42 = vld [vmem:[%s11974_s9 + $0xaa0] sm:$0xff]  ;;  %1714 = vst [vmem:[%s11982_s10 + $0x540] sm:$0xff] %v1713_v40  ;;  %1716 = vst [vmem:[%s11982_s10 + $0x548] sm:$0xff] %v1715_v41  ;;  %v1719_v43 = vld [vmem:[%s11974_s9 + $0xab0] sm:$0xff] }
  0x6c   : > { %1718 = vst [vmem:[%s11982_s10 + $0x550] sm:$0xff] %v1717_v42  ;;  %v1721_v44 = vld [vmem:[%s11974_s9 + $0xac0] sm:$0xff]  ;;  %v1723_v45 = vld [vmem:[%s11974_s9 + $0xad0] sm:$0xff]  ;;  %1720 = vst [vmem:[%s11982_s10 + $0x558] sm:$0xff] %v1719_v43 }
  0x6d   : > { %1722 = vst [vmem:[%s11982_s10 + $0x560] sm:$0xff] %v1721_v44  ;;  %1724 = vst [vmem:[%s11982_s10 + $0x568] sm:$0xff] %v1723_v45  ;;  %v1725_v46 = vld [vmem:[%s11974_s9 + $0xae0] sm:$0xff]  ;;  %v1727_v47 = vld [vmem:[%s11974_s9 + $0xaf0] sm:$0xff] }
  0x6e   : > { %v1729_v48 = vld [vmem:[%s11974_s9 + $0xb00] sm:$0xff]  ;;  %1726 = vst [vmem:[%s11982_s10 + $0x570] sm:$0xff] %v1725_v46  ;;  %1728 = vst [vmem:[%s11982_s10 + $0x578] sm:$0xff] %v1727_v47  ;;  %v1731_v49 = vld [vmem:[%s11974_s9 + $0xb10] sm:$0xff] }
  0x6f   : > { %1730 = vst [vmem:[%s11982_s10 + $0x580] sm:$0xff] %v1729_v48  ;;  %v1733_v50 = vld [vmem:[%s11974_s9 + $0xb20] sm:$0xff]  ;;  %v1735_v51 = vld [vmem:[%s11974_s9 + $0xb30] sm:$0xff]  ;;  %1732 = vst [vmem:[%s11982_s10 + $0x588] sm:$0xff] %v1731_v49 }
  0x70   : > { %1734 = vst [vmem:[%s11982_s10 + $0x590] sm:$0xff] %v1733_v50  ;;  %1736 = vst [vmem:[%s11982_s10 + $0x598] sm:$0xff] %v1735_v51  ;;  %v1737_v52 = vld [vmem:[%s11974_s9 + $0xb40] sm:$0xff]  ;;  %v1739_v53 = vld [vmem:[%s11974_s9 + $0xb50] sm:$0xff] }
  0x71   : > { %v1741_v54 = vld [vmem:[%s11974_s9 + $0xb60] sm:$0xff]  ;;  %1738 = vst [vmem:[%s11982_s10 + $0x5a0] sm:$0xff] %v1737_v52  ;;  %1740 = vst [vmem:[%s11982_s10 + $0x5a8] sm:$0xff] %v1739_v53  ;;  %v1743_v55 = vld [vmem:[%s11974_s9 + $0xb70] sm:$0xff] }
  0x72   : > { %1742 = vst [vmem:[%s11982_s10 + $0x5b0] sm:$0xff] %v1741_v54  ;;  %v1745_v56 = vld [vmem:[%s11974_s9 + $0xb80] sm:$0xff]  ;;  %v1747_v57 = vld [vmem:[%s11974_s9 + $0xb90] sm:$0xff]  ;;  %1744 = vst [vmem:[%s11982_s10 + $0x5b8] sm:$0xff] %v1743_v55 }
  0x73   : > { %1746 = vst [vmem:[%s11982_s10 + $0x5c0] sm:$0xff] %v1745_v56  ;;  %1748 = vst [vmem:[%s11982_s10 + $0x5c8] sm:$0xff] %v1747_v57  ;;  %v1749_v58 = vld [vmem:[%s11974_s9 + $0xba0] sm:$0xff]  ;;  %v1751_v59 = vld [vmem:[%s11974_s9 + $0xbb0] sm:$0xff] }
  0x74   : > { %v1753_v60 = vld [vmem:[%s11974_s9 + $0xbc0] sm:$0xff]  ;;  %1750 = vst [vmem:[%s11982_s10 + $0x5d0] sm:$0xff] %v1749_v58  ;;  %1752 = vst [vmem:[%s11982_s10 + $0x5d8] sm:$0xff] %v1751_v59  ;;  %v1755_v61 = vld [vmem:[%s11974_s9 + $0xbd0] sm:$0xff] }
  0x75   : > { %1754 = vst [vmem:[%s11982_s10 + $0x5e0] sm:$0xff] %v1753_v60  ;;  %v1757_v62 = vld [vmem:[%s11974_s9 + $0xbe0] sm:$0xff]  ;;  %v1759_v63 = vld [vmem:[%s11974_s9 + $0xbf0] sm:$0xff]  ;;  %1756 = vst [vmem:[%s11982_s10 + $0x5e8] sm:$0xff] %v1755_v61 }
  0x76   : > { %1758 = vst [vmem:[%s11982_s10 + $0x5f0] sm:$0xff] %v1757_v62  ;;  %1760 = vst [vmem:[%s11982_s10 + $0x5f8] sm:$0xff] %v1759_v63  ;;  %v1761_v0 = vld [vmem:[%s11974_s9 + $0xc00] sm:$0xff]  ;;  %v1763_v1 = vld [vmem:[%s11974_s9 + $0xc10] sm:$0xff] }
  0x77   : > { %v1765_v2 = vld [vmem:[%s11974_s9 + $0xc20] sm:$0xff]  ;;  %1762 = vst [vmem:[%s11982_s10 + $0x600] sm:$0xff] %v1761_v0  ;;  %1764 = vst [vmem:[%s11982_s10 + $0x608] sm:$0xff] %v1763_v1  ;;  %v1767_v3 = vld [vmem:[%s11974_s9 + $0xc30] sm:$0xff] }
  0x78   : > { %1766 = vst [vmem:[%s11982_s10 + $0x610] sm:$0xff] %v1765_v2  ;;  %v1769_v4 = vld [vmem:[%s11974_s9 + $0xc40] sm:$0xff]  ;;  %v1771_v5 = vld [vmem:[%s11974_s9 + $0xc50] sm:$0xff]  ;;  %1768 = vst [vmem:[%s11982_s10 + $0x618] sm:$0xff] %v1767_v3 }
  0x79   : > { %1770 = vst [vmem:[%s11982_s10 + $0x620] sm:$0xff] %v1769_v4  ;;  %1772 = vst [vmem:[%s11982_s10 + $0x628] sm:$0xff] %v1771_v5  ;;  %v1773_v6 = vld [vmem:[%s11974_s9 + $0xc60] sm:$0xff]  ;;  %v1775_v7 = vld [vmem:[%s11974_s9 + $0xc70] sm:$0xff] }
  0x7a   : > { %v1777_v8 = vld [vmem:[%s11974_s9 + $0xc80] sm:$0xff]  ;;  %1774 = vst [vmem:[%s11982_s10 + $0x630] sm:$0xff] %v1773_v6  ;;  %1776 = vst [vmem:[%s11982_s10 + $0x638] sm:$0xff] %v1775_v7  ;;  %v1779_v9 = vld [vmem:[%s11974_s9 + $0xc90] sm:$0xff] }
  0x7b   : > { %1778 = vst [vmem:[%s11982_s10 + $0x640] sm:$0xff] %v1777_v8  ;;  %v1781_v10 = vld [vmem:[%s11974_s9 + $0xca0] sm:$0xff]  ;;  %v1783_v11 = vld [vmem:[%s11974_s9 + $0xcb0] sm:$0xff]  ;;  %1780 = vst [vmem:[%s11982_s10 + $0x648] sm:$0xff] %v1779_v9 }
  0x7c   : > { %1782 = vst [vmem:[%s11982_s10 + $0x650] sm:$0xff] %v1781_v10  ;;  %1784 = vst [vmem:[%s11982_s10 + $0x658] sm:$0xff] %v1783_v11  ;;  %v1785_v12 = vld [vmem:[%s11974_s9 + $0xcc0] sm:$0xff]  ;;  %v1787_v13 = vld [vmem:[%s11974_s9 + $0xcd0] sm:$0xff] }
  0x7d   : > { %v1789_v14 = vld [vmem:[%s11974_s9 + $0xce0] sm:$0xff]  ;;  %1786 = vst [vmem:[%s11982_s10 + $0x660] sm:$0xff] %v1785_v12  ;;  %1788 = vst [vmem:[%s11982_s10 + $0x668] sm:$0xff] %v1787_v13  ;;  %v1791_v15 = vld [vmem:[%s11974_s9 + $0xcf0] sm:$0xff] }
  0x7e   : > { %1790 = vst [vmem:[%s11982_s10 + $0x670] sm:$0xff] %v1789_v14  ;;  %v1793_v16 = vld [vmem:[%s11974_s9 + $0xd00] sm:$0xff]  ;;  %v1795_v17 = vld [vmem:[%s11974_s9 + $0xd10] sm:$0xff]  ;;  %1792 = vst [vmem:[%s11982_s10 + $0x678] sm:$0xff] %v1791_v15 }
  0x7f   : > { %1794 = vst [vmem:[%s11982_s10 + $0x680] sm:$0xff] %v1793_v16  ;;  %1796 = vst [vmem:[%s11982_s10 + $0x688] sm:$0xff] %v1795_v17  ;;  %v1797_v18 = vld [vmem:[%s11974_s9 + $0xd20] sm:$0xff]  ;;  %v1799_v19 = vld [vmem:[%s11974_s9 + $0xd30] sm:$0xff] }
  0x80   : > { %v1801_v20 = vld [vmem:[%s11974_s9 + $0xd40] sm:$0xff]  ;;  %1798 = vst [vmem:[%s11982_s10 + $0x690] sm:$0xff] %v1797_v18  ;;  %1800 = vst [vmem:[%s11982_s10 + $0x698] sm:$0xff] %v1799_v19  ;;  %v1803_v21 = vld [vmem:[%s11974_s9 + $0xd50] sm:$0xff] }
  0x81   : > { %1802 = vst [vmem:[%s11982_s10 + $0x6a0] sm:$0xff] %v1801_v20  ;;  %v1805_v22 = vld [vmem:[%s11974_s9 + $0xd60] sm:$0xff]  ;;  %v1807_v23 = vld [vmem:[%s11974_s9 + $0xd70] sm:$0xff]  ;;  %1804 = vst [vmem:[%s11982_s10 + $0x6a8] sm:$0xff] %v1803_v21 }
  0x82   : > { %1806 = vst [vmem:[%s11982_s10 + $0x6b0] sm:$0xff] %v1805_v22  ;;  %1808 = vst [vmem:[%s11982_s10 + $0x6b8] sm:$0xff] %v1807_v23  ;;  %v1809_v24 = vld [vmem:[%s11974_s9 + $0xd80] sm:$0xff]  ;;  %v1811_v25 = vld [vmem:[%s11974_s9 + $0xd90] sm:$0xff] }
  0x83   : > { %v1813_v26 = vld [vmem:[%s11974_s9 + $0xda0] sm:$0xff]  ;;  %1810 = vst [vmem:[%s11982_s10 + $0x6c0] sm:$0xff] %v1809_v24  ;;  %1812 = vst [vmem:[%s11982_s10 + $0x6c8] sm:$0xff] %v1811_v25  ;;  %v1815_v27 = vld [vmem:[%s11974_s9 + $0xdb0] sm:$0xff] }
  0x84   : > { %1814 = vst [vmem:[%s11982_s10 + $0x6d0] sm:$0xff] %v1813_v26  ;;  %v1817_v28 = vld [vmem:[%s11974_s9 + $0xdc0] sm:$0xff]  ;;  %v1819_v29 = vld [vmem:[%s11974_s9 + $0xdd0] sm:$0xff]  ;;  %1816 = vst [vmem:[%s11982_s10 + $0x6d8] sm:$0xff] %v1815_v27 }
  0x85   : > { %1818 = vst [vmem:[%s11982_s10 + $0x6e0] sm:$0xff] %v1817_v28  ;;  %1820 = vst [vmem:[%s11982_s10 + $0x6e8] sm:$0xff] %v1819_v29  ;;  %v1821_v30 = vld [vmem:[%s11974_s9 + $0xde0] sm:$0xff]  ;;  %v1823_v31 = vld [vmem:[%s11974_s9 + $0xdf0] sm:$0xff] }
  0x86   : > { %v1825_v32 = vld [vmem:[%s11974_s9 + $0xe00] sm:$0xff]  ;;  %1822 = vst [vmem:[%s11982_s10 + $0x6f0] sm:$0xff] %v1821_v30  ;;  %1824 = vst [vmem:[%s11982_s10 + $0x6f8] sm:$0xff] %v1823_v31  ;;  %v1827_v33 = vld [vmem:[%s11974_s9 + $0xe10] sm:$0xff] }
  0x87   : > { %1826 = vst [vmem:[%s11982_s10 + $0x700] sm:$0xff] %v1825_v32  ;;  %v1829_v34 = vld [vmem:[%s11974_s9 + $0xe20] sm:$0xff]  ;;  %v1831_v35 = vld [vmem:[%s11974_s9 + $0xe30] sm:$0xff]  ;;  %1828 = vst [vmem:[%s11982_s10 + $0x708] sm:$0xff] %v1827_v33 }
  0x88   : > { %1830 = vst [vmem:[%s11982_s10 + $0x710] sm:$0xff] %v1829_v34  ;;  %1832 = vst [vmem:[%s11982_s10 + $0x718] sm:$0xff] %v1831_v35  ;;  %v1833_v36 = vld [vmem:[%s11974_s9 + $0xe40] sm:$0xff]  ;;  %v1835_v37 = vld [vmem:[%s11974_s9 + $0xe50] sm:$0xff] }
  0x89   : > { %v1837_v38 = vld [vmem:[%s11974_s9 + $0xe60] sm:$0xff]  ;;  %1834 = vst [vmem:[%s11982_s10 + $0x720] sm:$0xff] %v1833_v36  ;;  %1836 = vst [vmem:[%s11982_s10 + $0x728] sm:$0xff] %v1835_v37  ;;  %v1839_v39 = vld [vmem:[%s11974_s9 + $0xe70] sm:$0xff] }
  0x8a   : > { %1838 = vst [vmem:[%s11982_s10 + $0x730] sm:$0xff] %v1837_v38  ;;  %v1841_v40 = vld [vmem:[%s11974_s9 + $0xe80] sm:$0xff]  ;;  %v1843_v41 = vld [vmem:[%s11974_s9 + $0xe90] sm:$0xff]  ;;  %1840 = vst [vmem:[%s11982_s10 + $0x738] sm:$0xff] %v1839_v39 }
  0x8b   : > { %1842 = vst [vmem:[%s11982_s10 + $0x740] sm:$0xff] %v1841_v40  ;;  %1844 = vst [vmem:[%s11982_s10 + $0x748] sm:$0xff] %v1843_v41  ;;  %v1845_v42 = vld [vmem:[%s11974_s9 + $0xea0] sm:$0xff]  ;;  %v1847_v43 = vld [vmem:[%s11974_s9 + $0xeb0] sm:$0xff] }
  0x8c   : > { %v1849_v44 = vld [vmem:[%s11974_s9 + $0xec0] sm:$0xff]  ;;  %1846 = vst [vmem:[%s11982_s10 + $0x750] sm:$0xff] %v1845_v42  ;;  %1848 = vst [vmem:[%s11982_s10 + $0x758] sm:$0xff] %v1847_v43  ;;  %v1851_v45 = vld [vmem:[%s11974_s9 + $0xed0] sm:$0xff] }
  0x8d   : > { %1850 = vst [vmem:[%s11982_s10 + $0x760] sm:$0xff] %v1849_v44  ;;  %v1853_v46 = vld [vmem:[%s11974_s9 + $0xee0] sm:$0xff]  ;;  %v1855_v47 = vld [vmem:[%s11974_s9 + $0xef0] sm:$0xff]  ;;  %1852 = vst [vmem:[%s11982_s10 + $0x768] sm:$0xff] %v1851_v45 }
  0x8e   : > { %1854 = vst [vmem:[%s11982_s10 + $0x770] sm:$0xff] %v1853_v46  ;;  %1856 = vst [vmem:[%s11982_s10 + $0x778] sm:$0xff] %v1855_v47  ;;  %v1857_v48 = vld [vmem:[%s11974_s9 + $0xf00] sm:$0xff]  ;;  %v1859_v49 = vld [vmem:[%s11974_s9 + $0xf10] sm:$0xff] }
  0x8f   : > { %v1861_v50 = vld [vmem:[%s11974_s9 + $0xf20] sm:$0xff]  ;;  %1858 = vst [vmem:[%s11982_s10 + $0x780] sm:$0xff] %v1857_v48  ;;  %1860 = vst [vmem:[%s11982_s10 + $0x788] sm:$0xff] %v1859_v49  ;;  %v1863_v51 = vld [vmem:[%s11974_s9 + $0xf30] sm:$0xff] }
  0x90   : > { %1862 = vst [vmem:[%s11982_s10 + $0x790] sm:$0xff] %v1861_v50  ;;  %v1865_v52 = vld [vmem:[%s11974_s9 + $0xf40] sm:$0xff]  ;;  %v1867_v53 = vld [vmem:[%s11974_s9 + $0xf50] sm:$0xff]  ;;  %1864 = vst [vmem:[%s11982_s10 + $0x798] sm:$0xff] %v1863_v51 }
  0x91   : > { %1866 = vst [vmem:[%s11982_s10 + $0x7a0] sm:$0xff] %v1865_v52  ;;  %1868 = vst [vmem:[%s11982_s10 + $0x7a8] sm:$0xff] %v1867_v53  ;;  %v1869_v54 = vld [vmem:[%s11974_s9 + $0xf60] sm:$0xff]  ;;  %v1871_v55 = vld [vmem:[%s11974_s9 + $0xf70] sm:$0xff] }
  0x92   : > { %v1873_v56 = vld [vmem:[%s11974_s9 + $0xf80] sm:$0xff]  ;;  %1870 = vst [vmem:[%s11982_s10 + $0x7b0] sm:$0xff] %v1869_v54  ;;  %1872 = vst [vmem:[%s11982_s10 + $0x7b8] sm:$0xff] %v1871_v55  ;;  %v1875_v57 = vld [vmem:[%s11974_s9 + $0xf90] sm:$0xff] }
  0x93   : > { %1874 = vst [vmem:[%s11982_s10 + $0x7c0] sm:$0xff] %v1873_v56  ;;  %v1877_v58 = vld [vmem:[%s11974_s9 + $0xfa0] sm:$0xff]  ;;  %v1879_v59 = vld [vmem:[%s11974_s9 + $0xfb0] sm:$0xff]  ;;  %1876 = vst [vmem:[%s11982_s10 + $0x7c8] sm:$0xff] %v1875_v57 }
  0x94   : > { %1878 = vst [vmem:[%s11982_s10 + $0x7d0] sm:$0xff] %v1877_v58  ;;  %1880 = vst [vmem:[%s11982_s10 + $0x7d8] sm:$0xff] %v1879_v59  ;;  %v1881_v60 = vld [vmem:[%s11974_s9 + $0xfc0] sm:$0xff]  ;;  %v1883_v61 = vld [vmem:[%s11974_s9 + $0xfd0] sm:$0xff] }
  0x95   : > { %v1885_v62 = vld [vmem:[%s11974_s9 + $0xfe0] sm:$0xff]  ;;  %1882 = vst [vmem:[%s11982_s10 + $0x7e0] sm:$0xff] %v1881_v60  ;;  %1884 = vst [vmem:[%s11982_s10 + $0x7e8] sm:$0xff] %v1883_v61  ;;  %v1887_v63 = vld [vmem:[%s11974_s9 + $0xff0] sm:$0xff] }
  0x96   : > { %1886 = vst [vmem:[%s11982_s10 + $0x7f0] sm:$0xff] %v1885_v62  ;;  %v1889_v0 = vld [vmem:[%s11974_s9 + $0x1000] sm:$0xff]  ;;  %v1891_v1 = vld [vmem:[%s11974_s9 + $0x1010] sm:$0xff]  ;;  %1888 = vst [vmem:[%s11982_s10 + $0x7f8] sm:$0xff] %v1887_v63 }
  0x97   : > { %1890 = vst [vmem:[%s11982_s10 + $0x800] sm:$0xff] %v1889_v0  ;;  %1892 = vst [vmem:[%s11982_s10 + $0x808] sm:$0xff] %v1891_v1  ;;  %v1893_v2 = vld [vmem:[%s11974_s9 + $0x1020] sm:$0xff]  ;;  %v1895_v3 = vld [vmem:[%s11974_s9 + $0x1030] sm:$0xff] }
  0x98   : > { %v1897_v4 = vld [vmem:[%s11974_s9 + $0x1040] sm:$0xff]  ;;  %1894 = vst [vmem:[%s11982_s10 + $0x810] sm:$0xff] %v1893_v2  ;;  %1896 = vst [vmem:[%s11982_s10 + $0x818] sm:$0xff] %v1895_v3  ;;  %v1899_v5 = vld [vmem:[%s11974_s9 + $0x1050] sm:$0xff] }
  0x99   : > { %1898 = vst [vmem:[%s11982_s10 + $0x820] sm:$0xff] %v1897_v4  ;;  %v1901_v6 = vld [vmem:[%s11974_s9 + $0x1060] sm:$0xff]  ;;  %v1903_v7 = vld [vmem:[%s11974_s9 + $0x1070] sm:$0xff]  ;;  %1900 = vst [vmem:[%s11982_s10 + $0x828] sm:$0xff] %v1899_v5 }
  0x9a   : > { %1902 = vst [vmem:[%s11982_s10 + $0x830] sm:$0xff] %v1901_v6  ;;  %1904 = vst [vmem:[%s11982_s10 + $0x838] sm:$0xff] %v1903_v7  ;;  %v1905_v8 = vld [vmem:[%s11974_s9 + $0x1080] sm:$0xff]  ;;  %v1907_v9 = vld [vmem:[%s11974_s9 + $0x1090] sm:$0xff] }
  0x9b   : > { %v1909_v10 = vld [vmem:[%s11974_s9 + $0x10a0] sm:$0xff]  ;;  %1906 = vst [vmem:[%s11982_s10 + $0x840] sm:$0xff] %v1905_v8  ;;  %1908 = vst [vmem:[%s11982_s10 + $0x848] sm:$0xff] %v1907_v9  ;;  %v1911_v11 = vld [vmem:[%s11974_s9 + $0x10b0] sm:$0xff] }
  0x9c   : > { %1910 = vst [vmem:[%s11982_s10 + $0x850] sm:$0xff] %v1909_v10  ;;  %v1913_v12 = vld [vmem:[%s11974_s9 + $0x10c0] sm:$0xff]  ;;  %v1915_v13 = vld [vmem:[%s11974_s9 + $0x10d0] sm:$0xff]  ;;  %1912 = vst [vmem:[%s11982_s10 + $0x858] sm:$0xff] %v1911_v11 }
  0x9d   : > { %1914 = vst [vmem:[%s11982_s10 + $0x860] sm:$0xff] %v1913_v12  ;;  %1916 = vst [vmem:[%s11982_s10 + $0x868] sm:$0xff] %v1915_v13  ;;  %v1917_v14 = vld [vmem:[%s11974_s9 + $0x10e0] sm:$0xff]  ;;  %v1919_v15 = vld [vmem:[%s11974_s9 + $0x10f0] sm:$0xff] }
  0x9e   : > { %v1921_v16 = vld [vmem:[%s11974_s9 + $0x1100] sm:$0xff]  ;;  %1918 = vst [vmem:[%s11982_s10 + $0x870] sm:$0xff] %v1917_v14  ;;  %1920 = vst [vmem:[%s11982_s10 + $0x878] sm:$0xff] %v1919_v15  ;;  %v1923_v17 = vld [vmem:[%s11974_s9 + $0x1110] sm:$0xff] }
  0x9f   : > { %1922 = vst [vmem:[%s11982_s10 + $0x880] sm:$0xff] %v1921_v16  ;;  %v1925_v18 = vld [vmem:[%s11974_s9 + $0x1120] sm:$0xff]  ;;  %v1927_v19 = vld [vmem:[%s11974_s9 + $0x1130] sm:$0xff]  ;;  %1924 = vst [vmem:[%s11982_s10 + $0x888] sm:$0xff] %v1923_v17 }
  0xa0   : > { %1926 = vst [vmem:[%s11982_s10 + $0x890] sm:$0xff] %v1925_v18  ;;  %1928 = vst [vmem:[%s11982_s10 + $0x898] sm:$0xff] %v1927_v19  ;;  %v1929_v20 = vld [vmem:[%s11974_s9 + $0x1140] sm:$0xff]  ;;  %v1931_v21 = vld [vmem:[%s11974_s9 + $0x1150] sm:$0xff] }
  0xa1   : > { %v1933_v22 = vld [vmem:[%s11974_s9 + $0x1160] sm:$0xff]  ;;  %1930 = vst [vmem:[%s11982_s10 + $0x8a0] sm:$0xff] %v1929_v20  ;;  %1932 = vst [vmem:[%s11982_s10 + $0x8a8] sm:$0xff] %v1931_v21  ;;  %v1935_v23 = vld [vmem:[%s11974_s9 + $0x1170] sm:$0xff] }
  0xa2   : > { %1934 = vst [vmem:[%s11982_s10 + $0x8b0] sm:$0xff] %v1933_v22  ;;  %v1937_v24 = vld [vmem:[%s11974_s9 + $0x1180] sm:$0xff]  ;;  %v1939_v25 = vld [vmem:[%s11974_s9 + $0x1190] sm:$0xff]  ;;  %1936 = vst [vmem:[%s11982_s10 + $0x8b8] sm:$0xff] %v1935_v23 }
  0xa3   : > { %1938 = vst [vmem:[%s11982_s10 + $0x8c0] sm:$0xff] %v1937_v24  ;;  %1940 = vst [vmem:[%s11982_s10 + $0x8c8] sm:$0xff] %v1939_v25  ;;  %v1941_v26 = vld [vmem:[%s11974_s9 + $0x11a0] sm:$0xff]  ;;  %v1943_v27 = vld [vmem:[%s11974_s9 + $0x11b0] sm:$0xff] }
  0xa4   : > { %v1945_v28 = vld [vmem:[%s11974_s9 + $0x11c0] sm:$0xff]  ;;  %1942 = vst [vmem:[%s11982_s10 + $0x8d0] sm:$0xff] %v1941_v26  ;;  %1944 = vst [vmem:[%s11982_s10 + $0x8d8] sm:$0xff] %v1943_v27  ;;  %v1947_v29 = vld [vmem:[%s11974_s9 + $0x11d0] sm:$0xff] }
  0xa5   : > { %1946 = vst [vmem:[%s11982_s10 + $0x8e0] sm:$0xff] %v1945_v28  ;;  %v1949_v30 = vld [vmem:[%s11974_s9 + $0x11e0] sm:$0xff]  ;;  %v1951_v31 = vld [vmem:[%s11974_s9 + $0x11f0] sm:$0xff]  ;;  %1948 = vst [vmem:[%s11982_s10 + $0x8e8] sm:$0xff] %v1947_v29 }
  0xa6   : > { %1950 = vst [vmem:[%s11982_s10 + $0x8f0] sm:$0xff] %v1949_v30  ;;  %1952 = vst [vmem:[%s11982_s10 + $0x8f8] sm:$0xff] %v1951_v31  ;;  %v1953_v32 = vld [vmem:[%s11974_s9 + $0x1200] sm:$0xff]  ;;  %v1955_v33 = vld [vmem:[%s11974_s9 + $0x1210] sm:$0xff] }
  0xa7   : > { %v1957_v34 = vld [vmem:[%s11974_s9 + $0x1220] sm:$0xff]  ;;  %1954 = vst [vmem:[%s11982_s10 + $0x900] sm:$0xff] %v1953_v32  ;;  %1956 = vst [vmem:[%s11982_s10 + $0x908] sm:$0xff] %v1955_v33  ;;  %v1959_v35 = vld [vmem:[%s11974_s9 + $0x1230] sm:$0xff] }
  0xa8   : > { %1958 = vst [vmem:[%s11982_s10 + $0x910] sm:$0xff] %v1957_v34  ;;  %v1961_v36 = vld [vmem:[%s11974_s9 + $0x1240] sm:$0xff]  ;;  %v1963_v37 = vld [vmem:[%s11974_s9 + $0x1250] sm:$0xff]  ;;  %1960 = vst [vmem:[%s11982_s10 + $0x918] sm:$0xff] %v1959_v35 }
  0xa9   : > { %1962 = vst [vmem:[%s11982_s10 + $0x920] sm:$0xff] %v1961_v36  ;;  %1964 = vst [vmem:[%s11982_s10 + $0x928] sm:$0xff] %v1963_v37  ;;  %v1965_v38 = vld [vmem:[%s11974_s9 + $0x1260] sm:$0xff]  ;;  %v1967_v39 = vld [vmem:[%s11974_s9 + $0x1270] sm:$0xff] }
  0xaa   : > { %v1969_v40 = vld [vmem:[%s11974_s9 + $0x1280] sm:$0xff]  ;;  %1966 = vst [vmem:[%s11982_s10 + $0x930] sm:$0xff] %v1965_v38  ;;  %1968 = vst [vmem:[%s11982_s10 + $0x938] sm:$0xff] %v1967_v39  ;;  %v1971_v41 = vld [vmem:[%s11974_s9 + $0x1290] sm:$0xff] }
  0xab   : > { %1970 = vst [vmem:[%s11982_s10 + $0x940] sm:$0xff] %v1969_v40  ;;  %v1973_v42 = vld [vmem:[%s11974_s9 + $0x12a0] sm:$0xff]  ;;  %v1975_v43 = vld [vmem:[%s11974_s9 + $0x12b0] sm:$0xff]  ;;  %1972 = vst [vmem:[%s11982_s10 + $0x948] sm:$0xff] %v1971_v41 }
  0xac   : > { %1974 = vst [vmem:[%s11982_s10 + $0x950] sm:$0xff] %v1973_v42  ;;  %1976 = vst [vmem:[%s11982_s10 + $0x958] sm:$0xff] %v1975_v43  ;;  %v1977_v44 = vld [vmem:[%s11974_s9 + $0x12c0] sm:$0xff]  ;;  %v1979_v45 = vld [vmem:[%s11974_s9 + $0x12d0] sm:$0xff] }
  0xad   : > { %v1981_v46 = vld [vmem:[%s11974_s9 + $0x12e0] sm:$0xff]  ;;  %1978 = vst [vmem:[%s11982_s10 + $0x960] sm:$0xff] %v1977_v44  ;;  %1980 = vst [vmem:[%s11982_s10 + $0x968] sm:$0xff] %v1979_v45  ;;  %v1983_v47 = vld [vmem:[%s11974_s9 + $0x12f0] sm:$0xff] }
  0xae   : > { %1982 = vst [vmem:[%s11982_s10 + $0x970] sm:$0xff] %v1981_v46  ;;  %v1985_v48 = vld [vmem:[%s11974_s9 + $0x1300] sm:$0xff]  ;;  %v1987_v49 = vld [vmem:[%s11974_s9 + $0x1310] sm:$0xff]  ;;  %1984 = vst [vmem:[%s11982_s10 + $0x978] sm:$0xff] %v1983_v47 }
  0xaf   : > { %1986 = vst [vmem:[%s11982_s10 + $0x980] sm:$0xff] %v1985_v48  ;;  %1988 = vst [vmem:[%s11982_s10 + $0x988] sm:$0xff] %v1987_v49  ;;  %v1989_v50 = vld [vmem:[%s11974_s9 + $0x1320] sm:$0xff]  ;;  %v1991_v51 = vld [vmem:[%s11974_s9 + $0x1330] sm:$0xff] }
  0xb0   : > { %v1993_v52 = vld [vmem:[%s11974_s9 + $0x1340] sm:$0xff]  ;;  %1990 = vst [vmem:[%s11982_s10 + $0x990] sm:$0xff] %v1989_v50  ;;  %1992 = vst [vmem:[%s11982_s10 + $0x998] sm:$0xff] %v1991_v51  ;;  %v1995_v53 = vld [vmem:[%s11974_s9 + $0x1350] sm:$0xff] }
  0xb1   : > { %1994 = vst [vmem:[%s11982_s10 + $0x9a0] sm:$0xff] %v1993_v52  ;;  %v1997_v54 = vld [vmem:[%s11974_s9 + $0x1360] sm:$0xff]  ;;  %v1999_v55 = vld [vmem:[%s11974_s9 + $0x1370] sm:$0xff]  ;;  %1996 = vst [vmem:[%s11982_s10 + $0x9a8] sm:$0xff] %v1995_v53 }
  0xb2   : > { %1998 = vst [vmem:[%s11982_s10 + $0x9b0] sm:$0xff] %v1997_v54  ;;  %2000 = vst [vmem:[%s11982_s10 + $0x9b8] sm:$0xff] %v1999_v55  ;;  %v2001_v56 = vld [vmem:[%s11974_s9 + $0x1380] sm:$0xff]  ;;  %v2003_v57 = vld [vmem:[%s11974_s9 + $0x1390] sm:$0xff] }
  0xb3   : > { %v2005_v58 = vld [vmem:[%s11974_s9 + $0x13a0] sm:$0xff]  ;;  %2002 = vst [vmem:[%s11982_s10 + $0x9c0] sm:$0xff] %v2001_v56  ;;  %2004 = vst [vmem:[%s11982_s10 + $0x9c8] sm:$0xff] %v2003_v57  ;;  %v2007_v59 = vld [vmem:[%s11974_s9 + $0x13b0] sm:$0xff] }
  0xb4   : > { %2006 = vst [vmem:[%s11982_s10 + $0x9d0] sm:$0xff] %v2005_v58  ;;  %v2009_v60 = vld [vmem:[%s11974_s9 + $0x13c0] sm:$0xff]  ;;  %v2011_v61 = vld [vmem:[%s11974_s9 + $0x13d0] sm:$0xff]  ;;  %2008 = vst [vmem:[%s11982_s10 + $0x9d8] sm:$0xff] %v2007_v59 }
  0xb5   : > { %2010 = vst [vmem:[%s11982_s10 + $0x9e0] sm:$0xff] %v2009_v60  ;;  %2012 = vst [vmem:[%s11982_s10 + $0x9e8] sm:$0xff] %v2011_v61  ;;  %v2013_v62 = vld [vmem:[%s11974_s9 + $0x13e0] sm:$0xff]  ;;  %v2015_v63 = vld [vmem:[%s11974_s9 + $0x13f0] sm:$0xff] }
  0xb6   : > { %v2017_v0 = vld [vmem:[%s11974_s9 + $0x1400] sm:$0xff]  ;;  %2014 = vst [vmem:[%s11982_s10 + $0x9f0] sm:$0xff] %v2013_v62  ;;  %2016 = vst [vmem:[%s11982_s10 + $0x9f8] sm:$0xff] %v2015_v63  ;;  %v2019_v1 = vld [vmem:[%s11974_s9 + $0x1410] sm:$0xff] }
  0xb7   : > { %2018 = vst [vmem:[%s11982_s10 + $0xa00] sm:$0xff] %v2017_v0  ;;  %v2021_v2 = vld [vmem:[%s11974_s9 + $0x1420] sm:$0xff]  ;;  %v2023_v3 = vld [vmem:[%s11974_s9 + $0x1430] sm:$0xff]  ;;  %2020 = vst [vmem:[%s11982_s10 + $0xa08] sm:$0xff] %v2019_v1 }
  0xb8   : > { %2022 = vst [vmem:[%s11982_s10 + $0xa10] sm:$0xff] %v2021_v2  ;;  %2024 = vst [vmem:[%s11982_s10 + $0xa18] sm:$0xff] %v2023_v3  ;;  %v2025_v4 = vld [vmem:[%s11974_s9 + $0x1440] sm:$0xff]  ;;  %v2027_v5 = vld [vmem:[%s11974_s9 + $0x1450] sm:$0xff] }
  0xb9   : > { %v2029_v6 = vld [vmem:[%s11974_s9 + $0x1460] sm:$0xff]  ;;  %2026 = vst [vmem:[%s11982_s10 + $0xa20] sm:$0xff] %v2025_v4  ;;  %2028 = vst [vmem:[%s11982_s10 + $0xa28] sm:$0xff] %v2027_v5  ;;  %v2031_v7 = vld [vmem:[%s11974_s9 + $0x1470] sm:$0xff] }
  0xba   : > { %2030 = vst [vmem:[%s11982_s10 + $0xa30] sm:$0xff] %v2029_v6  ;;  %v2033_v8 = vld [vmem:[%s11974_s9 + $0x1480] sm:$0xff]  ;;  %v2035_v9 = vld [vmem:[%s11974_s9 + $0x1490] sm:$0xff]  ;;  %2032 = vst [vmem:[%s11982_s10 + $0xa38] sm:$0xff] %v2031_v7 }
  0xbb   : > { %2034 = vst [vmem:[%s11982_s10 + $0xa40] sm:$0xff] %v2033_v8  ;;  %2036 = vst [vmem:[%s11982_s10 + $0xa48] sm:$0xff] %v2035_v9  ;;  %v2037_v10 = vld [vmem:[%s11974_s9 + $0x14a0] sm:$0xff]  ;;  %v2039_v11 = vld [vmem:[%s11974_s9 + $0x14b0] sm:$0xff] }
  0xbc   : > { %v2041_v12 = vld [vmem:[%s11974_s9 + $0x14c0] sm:$0xff]  ;;  %2038 = vst [vmem:[%s11982_s10 + $0xa50] sm:$0xff] %v2037_v10  ;;  %2040 = vst [vmem:[%s11982_s10 + $0xa58] sm:$0xff] %v2039_v11  ;;  %v2043_v13 = vld [vmem:[%s11974_s9 + $0x14d0] sm:$0xff] }
  0xbd   : > { %2042 = vst [vmem:[%s11982_s10 + $0xa60] sm:$0xff] %v2041_v12  ;;  %v2045_v14 = vld [vmem:[%s11974_s9 + $0x14e0] sm:$0xff]  ;;  %v2047_v15 = vld [vmem:[%s11974_s9 + $0x14f0] sm:$0xff]  ;;  %2044 = vst [vmem:[%s11982_s10 + $0xa68] sm:$0xff] %v2043_v13 }
  0xbe   : > { %2046 = vst [vmem:[%s11982_s10 + $0xa70] sm:$0xff] %v2045_v14  ;;  %2048 = vst [vmem:[%s11982_s10 + $0xa78] sm:$0xff] %v2047_v15  ;;  %v2049_v16 = vld [vmem:[%s11974_s9 + $0x1500] sm:$0xff]  ;;  %v2051_v17 = vld [vmem:[%s11974_s9 + $0x1510] sm:$0xff] }
  0xbf   : > { %v2053_v18 = vld [vmem:[%s11974_s9 + $0x1520] sm:$0xff]  ;;  %2050 = vst [vmem:[%s11982_s10 + $0xa80] sm:$0xff] %v2049_v16  ;;  %2052 = vst [vmem:[%s11982_s10 + $0xa88] sm:$0xff] %v2051_v17  ;;  %v2055_v19 = vld [vmem:[%s11974_s9 + $0x1530] sm:$0xff] }
  0xc0   : > { %2054 = vst [vmem:[%s11982_s10 + $0xa90] sm:$0xff] %v2053_v18  ;;  %v2057_v20 = vld [vmem:[%s11974_s9 + $0x1540] sm:$0xff]  ;;  %v2059_v21 = vld [vmem:[%s11974_s9 + $0x1550] sm:$0xff]  ;;  %2056 = vst [vmem:[%s11982_s10 + $0xa98] sm:$0xff] %v2055_v19 }
  0xc1   : > { %2058 = vst [vmem:[%s11982_s10 + $0xaa0] sm:$0xff] %v2057_v20  ;;  %2060 = vst [vmem:[%s11982_s10 + $0xaa8] sm:$0xff] %v2059_v21  ;;  %v2061_v22 = vld [vmem:[%s11974_s9 + $0x1560] sm:$0xff]  ;;  %v2063_v23 = vld [vmem:[%s11974_s9 + $0x1570] sm:$0xff] }
  0xc2   : > { %v2065_v24 = vld [vmem:[%s11974_s9 + $0x1580] sm:$0xff]  ;;  %2062 = vst [vmem:[%s11982_s10 + $0xab0] sm:$0xff] %v2061_v22  ;;  %2064 = vst [vmem:[%s11982_s10 + $0xab8] sm:$0xff] %v2063_v23  ;;  %v2067_v25 = vld [vmem:[%s11974_s9 + $0x1590] sm:$0xff] }
  0xc3   : > { %2066 = vst [vmem:[%s11982_s10 + $0xac0] sm:$0xff] %v2065_v24  ;;  %v2069_v26 = vld [vmem:[%s11974_s9 + $0x15a0] sm:$0xff]  ;;  %v2071_v27 = vld [vmem:[%s11974_s9 + $0x15b0] sm:$0xff]  ;;  %2068 = vst [vmem:[%s11982_s10 + $0xac8] sm:$0xff] %v2067_v25 }
  0xc4   : > { %2070 = vst [vmem:[%s11982_s10 + $0xad0] sm:$0xff] %v2069_v26  ;;  %2072 = vst [vmem:[%s11982_s10 + $0xad8] sm:$0xff] %v2071_v27  ;;  %v2073_v28 = vld [vmem:[%s11974_s9 + $0x15c0] sm:$0xff]  ;;  %v2075_v29 = vld [vmem:[%s11974_s9 + $0x15d0] sm:$0xff] }
  0xc5   : > { %v2077_v30 = vld [vmem:[%s11974_s9 + $0x15e0] sm:$0xff]  ;;  %2074 = vst [vmem:[%s11982_s10 + $0xae0] sm:$0xff] %v2073_v28  ;;  %2076 = vst [vmem:[%s11982_s10 + $0xae8] sm:$0xff] %v2075_v29  ;;  %v2079_v31 = vld [vmem:[%s11974_s9 + $0x15f0] sm:$0xff] }
  0xc6   : > { %2078 = vst [vmem:[%s11982_s10 + $0xaf0] sm:$0xff] %v2077_v30  ;;  %v2081_v32 = vld [vmem:[%s11974_s9 + $0x1600] sm:$0xff]  ;;  %v2083_v33 = vld [vmem:[%s11974_s9 + $0x1610] sm:$0xff]  ;;  %2080 = vst [vmem:[%s11982_s10 + $0xaf8] sm:$0xff] %v2079_v31 }
  0xc7   : > { %2082 = vst [vmem:[%s11982_s10 + $0xb00] sm:$0xff] %v2081_v32  ;;  %2084 = vst [vmem:[%s11982_s10 + $0xb08] sm:$0xff] %v2083_v33  ;;  %v2085_v34 = vld [vmem:[%s11974_s9 + $0x1620] sm:$0xff]  ;;  %v2087_v35 = vld [vmem:[%s11974_s9 + $0x1630] sm:$0xff] }
  0xc8   : > { %v2089_v36 = vld [vmem:[%s11974_s9 + $0x1640] sm:$0xff]  ;;  %2086 = vst [vmem:[%s11982_s10 + $0xb10] sm:$0xff] %v2085_v34  ;;  %2088 = vst [vmem:[%s11982_s10 + $0xb18] sm:$0xff] %v2087_v35  ;;  %v2091_v37 = vld [vmem:[%s11974_s9 + $0x1650] sm:$0xff] }
  0xc9   : > { %2090 = vst [vmem:[%s11982_s10 + $0xb20] sm:$0xff] %v2089_v36  ;;  %v2093_v38 = vld [vmem:[%s11974_s9 + $0x1660] sm:$0xff]  ;;  %v2095_v39 = vld [vmem:[%s11974_s9 + $0x1670] sm:$0xff]  ;;  %2092 = vst [vmem:[%s11982_s10 + $0xb28] sm:$0xff] %v2091_v37 }
  0xca   : > { %2094 = vst [vmem:[%s11982_s10 + $0xb30] sm:$0xff] %v2093_v38  ;;  %2096 = vst [vmem:[%s11982_s10 + $0xb38] sm:$0xff] %v2095_v39  ;;  %v2097_v40 = vld [vmem:[%s11974_s9 + $0x1680] sm:$0xff]  ;;  %v2099_v41 = vld [vmem:[%s11974_s9 + $0x1690] sm:$0xff] }
  0xcb   : > { %v2101_v42 = vld [vmem:[%s11974_s9 + $0x16a0] sm:$0xff]  ;;  %2098 = vst [vmem:[%s11982_s10 + $0xb40] sm:$0xff] %v2097_v40  ;;  %2100 = vst [vmem:[%s11982_s10 + $0xb48] sm:$0xff] %v2099_v41  ;;  %v2103_v43 = vld [vmem:[%s11974_s9 + $0x16b0] sm:$0xff] }
  0xcc   : > { %2102 = vst [vmem:[%s11982_s10 + $0xb50] sm:$0xff] %v2101_v42  ;;  %v2105_v44 = vld [vmem:[%s11974_s9 + $0x16c0] sm:$0xff]  ;;  %v2107_v45 = vld [vmem:[%s11974_s9 + $0x16d0] sm:$0xff]  ;;  %2104 = vst [vmem:[%s11982_s10 + $0xb58] sm:$0xff] %v2103_v43 }
  0xcd   : > { %2106 = vst [vmem:[%s11982_s10 + $0xb60] sm:$0xff] %v2105_v44  ;;  %2108 = vst [vmem:[%s11982_s10 + $0xb68] sm:$0xff] %v2107_v45  ;;  %v2109_v46 = vld [vmem:[%s11974_s9 + $0x16e0] sm:$0xff]  ;;  %v2111_v47 = vld [vmem:[%s11974_s9 + $0x16f0] sm:$0xff] }
  0xce   : > { %v2113_v48 = vld [vmem:[%s11974_s9 + $0x1700] sm:$0xff]  ;;  %2110 = vst [vmem:[%s11982_s10 + $0xb70] sm:$0xff] %v2109_v46  ;;  %2112 = vst [vmem:[%s11982_s10 + $0xb78] sm:$0xff] %v2111_v47  ;;  %v2115_v49 = vld [vmem:[%s11974_s9 + $0x1710] sm:$0xff] }
  0xcf   : > { %2114 = vst [vmem:[%s11982_s10 + $0xb80] sm:$0xff] %v2113_v48  ;;  %v2117_v50 = vld [vmem:[%s11974_s9 + $0x1720] sm:$0xff]  ;;  %v2119_v51 = vld [vmem:[%s11974_s9 + $0x1730] sm:$0xff]  ;;  %2116 = vst [vmem:[%s11982_s10 + $0xb88] sm:$0xff] %v2115_v49 }
  0xd0   : > { %2118 = vst [vmem:[%s11982_s10 + $0xb90] sm:$0xff] %v2117_v50  ;;  %2120 = vst [vmem:[%s11982_s10 + $0xb98] sm:$0xff] %v2119_v51  ;;  %v2121_v52 = vld [vmem:[%s11974_s9 + $0x1740] sm:$0xff]  ;;  %v2123_v53 = vld [vmem:[%s11974_s9 + $0x1750] sm:$0xff] }
  0xd1   : > { %v2125_v54 = vld [vmem:[%s11974_s9 + $0x1760] sm:$0xff]  ;;  %2122 = vst [vmem:[%s11982_s10 + $0xba0] sm:$0xff] %v2121_v52  ;;  %2124 = vst [vmem:[%s11982_s10 + $0xba8] sm:$0xff] %v2123_v53  ;;  %v2127_v55 = vld [vmem:[%s11974_s9 + $0x1770] sm:$0xff] }
  0xd2   : > { %2126 = vst [vmem:[%s11982_s10 + $0xbb0] sm:$0xff] %v2125_v54  ;;  %v2129_v56 = vld [vmem:[%s11974_s9 + $0x1780] sm:$0xff]  ;;  %v2131_v57 = vld [vmem:[%s11974_s9 + $0x1790] sm:$0xff]  ;;  %2128 = vst [vmem:[%s11982_s10 + $0xbb8] sm:$0xff] %v2127_v55 }
  0xd3   : > { %2130 = vst [vmem:[%s11982_s10 + $0xbc0] sm:$0xff] %v2129_v56  ;;  %2132 = vst [vmem:[%s11982_s10 + $0xbc8] sm:$0xff] %v2131_v57  ;;  %v2133_v58 = vld [vmem:[%s11974_s9 + $0x17a0] sm:$0xff]  ;;  %v2135_v59 = vld [vmem:[%s11974_s9 + $0x17b0] sm:$0xff] }
  0xd4   : > { %v2137_v60 = vld [vmem:[%s11974_s9 + $0x17c0] sm:$0xff]  ;;  %2134 = vst [vmem:[%s11982_s10 + $0xbd0] sm:$0xff] %v2133_v58  ;;  %2136 = vst [vmem:[%s11982_s10 + $0xbd8] sm:$0xff] %v2135_v59  ;;  %v2139_v61 = vld [vmem:[%s11974_s9 + $0x17d0] sm:$0xff] }
  0xd5   : > { %2138 = vst [vmem:[%s11982_s10 + $0xbe0] sm:$0xff] %v2137_v60  ;;  %v2141_v62 = vld [vmem:[%s11974_s9 + $0x17e0] sm:$0xff]  ;;  %v2143_v63 = vld [vmem:[%s11974_s9 + $0x17f0] sm:$0xff]  ;;  %2140 = vst [vmem:[%s11982_s10 + $0xbe8] sm:$0xff] %v2139_v61 }
  0xd6   : > { %2142 = vst [vmem:[%s11982_s10 + $0xbf0] sm:$0xff] %v2141_v62  ;;  %2144 = vst [vmem:[%s11982_s10 + $0xbf8] sm:$0xff] %v2143_v63  ;;  %v2145_v0 = vld [vmem:[%s11974_s9 + $0x1800] sm:$0xff]  ;;  %v2147_v1 = vld [vmem:[%s11974_s9 + $0x1810] sm:$0xff] }
  0xd7   : > { %v2149_v2 = vld [vmem:[%s11974_s9 + $0x1820] sm:$0xff]  ;;  %2146 = vst [vmem:[%s11982_s10 + $0xc00] sm:$0xff] %v2145_v0  ;;  %2148 = vst [vmem:[%s11982_s10 + $0xc08] sm:$0xff] %v2147_v1  ;;  %v2151_v3 = vld [vmem:[%s11974_s9 + $0x1830] sm:$0xff] }
  0xd8   : > { %2150 = vst [vmem:[%s11982_s10 + $0xc10] sm:$0xff] %v2149_v2  ;;  %v2153_v4 = vld [vmem:[%s11974_s9 + $0x1840] sm:$0xff]  ;;  %v2155_v5 = vld [vmem:[%s11974_s9 + $0x1850] sm:$0xff]  ;;  %2152 = vst [vmem:[%s11982_s10 + $0xc18] sm:$0xff] %v2151_v3 }
  0xd9   : > { %2154 = vst [vmem:[%s11982_s10 + $0xc20] sm:$0xff] %v2153_v4  ;;  %2156 = vst [vmem:[%s11982_s10 + $0xc28] sm:$0xff] %v2155_v5  ;;  %v2157_v6 = vld [vmem:[%s11974_s9 + $0x1860] sm:$0xff]  ;;  %v2159_v7 = vld [vmem:[%s11974_s9 + $0x1870] sm:$0xff] }
  0xda   : > { %v2161_v8 = vld [vmem:[%s11974_s9 + $0x1880] sm:$0xff]  ;;  %2158 = vst [vmem:[%s11982_s10 + $0xc30] sm:$0xff] %v2157_v6  ;;  %2160 = vst [vmem:[%s11982_s10 + $0xc38] sm:$0xff] %v2159_v7  ;;  %v2163_v9 = vld [vmem:[%s11974_s9 + $0x1890] sm:$0xff] }
  0xdb   : > { %2162 = vst [vmem:[%s11982_s10 + $0xc40] sm:$0xff] %v2161_v8  ;;  %v2165_v10 = vld [vmem:[%s11974_s9 + $0x18a0] sm:$0xff]  ;;  %v2167_v11 = vld [vmem:[%s11974_s9 + $0x18b0] sm:$0xff]  ;;  %2164 = vst [vmem:[%s11982_s10 + $0xc48] sm:$0xff] %v2163_v9 }
  0xdc   : > { %2166 = vst [vmem:[%s11982_s10 + $0xc50] sm:$0xff] %v2165_v10  ;;  %2168 = vst [vmem:[%s11982_s10 + $0xc58] sm:$0xff] %v2167_v11  ;;  %v2169_v12 = vld [vmem:[%s11974_s9 + $0x18c0] sm:$0xff]  ;;  %v2171_v13 = vld [vmem:[%s11974_s9 + $0x18d0] sm:$0xff] }
  0xdd   : > { %v2173_v14 = vld [vmem:[%s11974_s9 + $0x18e0] sm:$0xff]  ;;  %2170 = vst [vmem:[%s11982_s10 + $0xc60] sm:$0xff] %v2169_v12  ;;  %2172 = vst [vmem:[%s11982_s10 + $0xc68] sm:$0xff] %v2171_v13  ;;  %v2175_v15 = vld [vmem:[%s11974_s9 + $0x18f0] sm:$0xff] }
  0xde   : > { %2174 = vst [vmem:[%s11982_s10 + $0xc70] sm:$0xff] %v2173_v14  ;;  %v2177_v16 = vld [vmem:[%s11974_s9 + $0x1900] sm:$0xff]  ;;  %v2179_v17 = vld [vmem:[%s11974_s9 + $0x1910] sm:$0xff]  ;;  %2176 = vst [vmem:[%s11982_s10 + $0xc78] sm:$0xff] %v2175_v15 }
  0xdf   : > { %2178 = vst [vmem:[%s11982_s10 + $0xc80] sm:$0xff] %v2177_v16  ;;  %2180 = vst [vmem:[%s11982_s10 + $0xc88] sm:$0xff] %v2179_v17  ;;  %v2181_v18 = vld [vmem:[%s11974_s9 + $0x1920] sm:$0xff]  ;;  %v2183_v19 = vld [vmem:[%s11974_s9 + $0x1930] sm:$0xff] }
  0xe0   : > { %v2185_v20 = vld [vmem:[%s11974_s9 + $0x1940] sm:$0xff]  ;;  %2182 = vst [vmem:[%s11982_s10 + $0xc90] sm:$0xff] %v2181_v18  ;;  %2184 = vst [vmem:[%s11982_s10 + $0xc98] sm:$0xff] %v2183_v19  ;;  %v2187_v21 = vld [vmem:[%s11974_s9 + $0x1950] sm:$0xff] }
  0xe1   : > { %2186 = vst [vmem:[%s11982_s10 + $0xca0] sm:$0xff] %v2185_v20  ;;  %v2189_v22 = vld [vmem:[%s11974_s9 + $0x1960] sm:$0xff]  ;;  %v2191_v23 = vld [vmem:[%s11974_s9 + $0x1970] sm:$0xff]  ;;  %2188 = vst [vmem:[%s11982_s10 + $0xca8] sm:$0xff] %v2187_v21 }
  0xe2   : > { %2190 = vst [vmem:[%s11982_s10 + $0xcb0] sm:$0xff] %v2189_v22  ;;  %2192 = vst [vmem:[%s11982_s10 + $0xcb8] sm:$0xff] %v2191_v23  ;;  %v2193_v24 = vld [vmem:[%s11974_s9 + $0x1980] sm:$0xff]  ;;  %v2195_v25 = vld [vmem:[%s11974_s9 + $0x1990] sm:$0xff] }
  0xe3   : > { %v2197_v26 = vld [vmem:[%s11974_s9 + $0x19a0] sm:$0xff]  ;;  %2194 = vst [vmem:[%s11982_s10 + $0xcc0] sm:$0xff] %v2193_v24  ;;  %2196 = vst [vmem:[%s11982_s10 + $0xcc8] sm:$0xff] %v2195_v25  ;;  %v2199_v27 = vld [vmem:[%s11974_s9 + $0x19b0] sm:$0xff] }
  0xe4   : > { %2198 = vst [vmem:[%s11982_s10 + $0xcd0] sm:$0xff] %v2197_v26  ;;  %v2201_v28 = vld [vmem:[%s11974_s9 + $0x19c0] sm:$0xff]  ;;  %v2203_v29 = vld [vmem:[%s11974_s9 + $0x19d0] sm:$0xff]  ;;  %2200 = vst [vmem:[%s11982_s10 + $0xcd8] sm:$0xff] %v2199_v27 }
  0xe5   : > { %2202 = vst [vmem:[%s11982_s10 + $0xce0] sm:$0xff] %v2201_v28  ;;  %2204 = vst [vmem:[%s11982_s10 + $0xce8] sm:$0xff] %v2203_v29  ;;  %v2205_v30 = vld [vmem:[%s11974_s9 + $0x19e0] sm:$0xff]  ;;  %v2207_v31 = vld [vmem:[%s11974_s9 + $0x19f0] sm:$0xff] }
  0xe6   : > { %v2209_v32 = vld [vmem:[%s11974_s9 + $0x1a00] sm:$0xff]  ;;  %2206 = vst [vmem:[%s11982_s10 + $0xcf0] sm:$0xff] %v2205_v30  ;;  %2208 = vst [vmem:[%s11982_s10 + $0xcf8] sm:$0xff] %v2207_v31  ;;  %v2211_v33 = vld [vmem:[%s11974_s9 + $0x1a10] sm:$0xff] }
  0xe7   : > { %2210 = vst [vmem:[%s11982_s10 + $0xd00] sm:$0xff] %v2209_v32  ;;  %v2213_v34 = vld [vmem:[%s11974_s9 + $0x1a20] sm:$0xff]  ;;  %v2215_v35 = vld [vmem:[%s11974_s9 + $0x1a30] sm:$0xff]  ;;  %2212 = vst [vmem:[%s11982_s10 + $0xd08] sm:$0xff] %v2211_v33 }
  0xe8   : > { %2214 = vst [vmem:[%s11982_s10 + $0xd10] sm:$0xff] %v2213_v34  ;;  %2216 = vst [vmem:[%s11982_s10 + $0xd18] sm:$0xff] %v2215_v35  ;;  %v2217_v36 = vld [vmem:[%s11974_s9 + $0x1a40] sm:$0xff]  ;;  %v2219_v37 = vld [vmem:[%s11974_s9 + $0x1a50] sm:$0xff] }
  0xe9   : > { %v2221_v38 = vld [vmem:[%s11974_s9 + $0x1a60] sm:$0xff]  ;;  %2218 = vst [vmem:[%s11982_s10 + $0xd20] sm:$0xff] %v2217_v36  ;;  %2220 = vst [vmem:[%s11982_s10 + $0xd28] sm:$0xff] %v2219_v37  ;;  %v2223_v39 = vld [vmem:[%s11974_s9 + $0x1a70] sm:$0xff] }
  0xea   : > { %2222 = vst [vmem:[%s11982_s10 + $0xd30] sm:$0xff] %v2221_v38  ;;  %v2225_v40 = vld [vmem:[%s11974_s9 + $0x1a80] sm:$0xff]  ;;  %v2227_v41 = vld [vmem:[%s11974_s9 + $0x1a90] sm:$0xff]  ;;  %2224 = vst [vmem:[%s11982_s10 + $0xd38] sm:$0xff] %v2223_v39 }
  0xeb   : > { %2226 = vst [vmem:[%s11982_s10 + $0xd40] sm:$0xff] %v2225_v40  ;;  %2228 = vst [vmem:[%s11982_s10 + $0xd48] sm:$0xff] %v2227_v41  ;;  %v2229_v42 = vld [vmem:[%s11974_s9 + $0x1aa0] sm:$0xff]  ;;  %v2231_v43 = vld [vmem:[%s11974_s9 + $0x1ab0] sm:$0xff] }
  0xec   : > { %v2233_v44 = vld [vmem:[%s11974_s9 + $0x1ac0] sm:$0xff]  ;;  %2230 = vst [vmem:[%s11982_s10 + $0xd50] sm:$0xff] %v2229_v42  ;;  %2232 = vst [vmem:[%s11982_s10 + $0xd58] sm:$0xff] %v2231_v43  ;;  %v2235_v45 = vld [vmem:[%s11974_s9 + $0x1ad0] sm:$0xff] }
  0xed   : > { %2234 = vst [vmem:[%s11982_s10 + $0xd60] sm:$0xff] %v2233_v44  ;;  %v2237_v46 = vld [vmem:[%s11974_s9 + $0x1ae0] sm:$0xff]  ;;  %v2239_v47 = vld [vmem:[%s11974_s9 + $0x1af0] sm:$0xff]  ;;  %2236 = vst [vmem:[%s11982_s10 + $0xd68] sm:$0xff] %v2235_v45 }
  0xee   : > { %2238 = vst [vmem:[%s11982_s10 + $0xd70] sm:$0xff] %v2237_v46  ;;  %2240 = vst [vmem:[%s11982_s10 + $0xd78] sm:$0xff] %v2239_v47  ;;  %v2241_v48 = vld [vmem:[%s11974_s9 + $0x1b00] sm:$0xff]  ;;  %v2243_v49 = vld [vmem:[%s11974_s9 + $0x1b10] sm:$0xff] }
  0xef   : > { %v2245_v50 = vld [vmem:[%s11974_s9 + $0x1b20] sm:$0xff]  ;;  %2242 = vst [vmem:[%s11982_s10 + $0xd80] sm:$0xff] %v2241_v48  ;;  %2244 = vst [vmem:[%s11982_s10 + $0xd88] sm:$0xff] %v2243_v49  ;;  %v2247_v51 = vld [vmem:[%s11974_s9 + $0x1b30] sm:$0xff] }
  0xf0   : > { %2246 = vst [vmem:[%s11982_s10 + $0xd90] sm:$0xff] %v2245_v50  ;;  %v2249_v52 = vld [vmem:[%s11974_s9 + $0x1b40] sm:$0xff]  ;;  %v2251_v53 = vld [vmem:[%s11974_s9 + $0x1b50] sm:$0xff]  ;;  %2248 = vst [vmem:[%s11982_s10 + $0xd98] sm:$0xff] %v2247_v51 }
  0xf1   : > { %2250 = vst [vmem:[%s11982_s10 + $0xda0] sm:$0xff] %v2249_v52  ;;  %2252 = vst [vmem:[%s11982_s10 + $0xda8] sm:$0xff] %v2251_v53  ;;  %v2253_v54 = vld [vmem:[%s11974_s9 + $0x1b60] sm:$0xff]  ;;  %v2255_v55 = vld [vmem:[%s11974_s9 + $0x1b70] sm:$0xff] }
  0xf2   : > { %v2257_v56 = vld [vmem:[%s11974_s9 + $0x1b80] sm:$0xff]  ;;  %2254 = vst [vmem:[%s11982_s10 + $0xdb0] sm:$0xff] %v2253_v54  ;;  %2256 = vst [vmem:[%s11982_s10 + $0xdb8] sm:$0xff] %v2255_v55  ;;  %v2259_v57 = vld [vmem:[%s11974_s9 + $0x1b90] sm:$0xff] }
  0xf3   : > { %2258 = vst [vmem:[%s11982_s10 + $0xdc0] sm:$0xff] %v2257_v56  ;;  %v2261_v58 = vld [vmem:[%s11974_s9 + $0x1ba0] sm:$0xff]  ;;  %v2263_v59 = vld [vmem:[%s11974_s9 + $0x1bb0] sm:$0xff]  ;;  %2260 = vst [vmem:[%s11982_s10 + $0xdc8] sm:$0xff] %v2259_v57 }
  0xf4   : > { %2262 = vst [vmem:[%s11982_s10 + $0xdd0] sm:$0xff] %v2261_v58  ;;  %2264 = vst [vmem:[%s11982_s10 + $0xdd8] sm:$0xff] %v2263_v59  ;;  %v2265_v60 = vld [vmem:[%s11974_s9 + $0x1bc0] sm:$0xff]  ;;  %v2267_v61 = vld [vmem:[%s11974_s9 + $0x1bd0] sm:$0xff] }
  0xf5   : > { %v2269_v62 = vld [vmem:[%s11974_s9 + $0x1be0] sm:$0xff]  ;;  %2266 = vst [vmem:[%s11982_s10 + $0xde0] sm:$0xff] %v2265_v60  ;;  %2268 = vst [vmem:[%s11982_s10 + $0xde8] sm:$0xff] %v2267_v61  ;;  %v2271_v63 = vld [vmem:[%s11974_s9 + $0x1bf0] sm:$0xff] }
  0xf6   : > { %2270 = vst [vmem:[%s11982_s10 + $0xdf0] sm:$0xff] %v2269_v62  ;;  %v2273_v0 = vld [vmem:[%s11974_s9 + $0x1c00] sm:$0xff]  ;;  %v2275_v1 = vld [vmem:[%s11974_s9 + $0x1c10] sm:$0xff]  ;;  %2272 = vst [vmem:[%s11982_s10 + $0xdf8] sm:$0xff] %v2271_v63 }
  0xf7   : > { %2274 = vst [vmem:[%s11982_s10 + $0xe00] sm:$0xff] %v2273_v0  ;;  %2276 = vst [vmem:[%s11982_s10 + $0xe08] sm:$0xff] %v2275_v1  ;;  %v2277_v2 = vld [vmem:[%s11974_s9 + $0x1c20] sm:$0xff]  ;;  %v2279_v3 = vld [vmem:[%s11974_s9 + $0x1c30] sm:$0xff] }
  0xf8   : > { %v2281_v4 = vld [vmem:[%s11974_s9 + $0x1c40] sm:$0xff]  ;;  %2278 = vst [vmem:[%s11982_s10 + $0xe10] sm:$0xff] %v2277_v2  ;;  %2280 = vst [vmem:[%s11982_s10 + $0xe18] sm:$0xff] %v2279_v3  ;;  %v2283_v5 = vld [vmem:[%s11974_s9 + $0x1c50] sm:$0xff] }
  0xf9   : > { %2282 = vst [vmem:[%s11982_s10 + $0xe20] sm:$0xff] %v2281_v4  ;;  %v2285_v6 = vld [vmem:[%s11974_s9 + $0x1c60] sm:$0xff]  ;;  %v2287_v7 = vld [vmem:[%s11974_s9 + $0x1c70] sm:$0xff]  ;;  %2284 = vst [vmem:[%s11982_s10 + $0xe28] sm:$0xff] %v2283_v5 }
  0xfa   : > { %2286 = vst [vmem:[%s11982_s10 + $0xe30] sm:$0xff] %v2285_v6  ;;  %2288 = vst [vmem:[%s11982_s10 + $0xe38] sm:$0xff] %v2287_v7  ;;  %v2289_v8 = vld [vmem:[%s11974_s9 + $0x1c80] sm:$0xff]  ;;  %v2291_v9 = vld [vmem:[%s11974_s9 + $0x1c90] sm:$0xff] }
  0xfb   : > { %v2293_v10 = vld [vmem:[%s11974_s9 + $0x1ca0] sm:$0xff]  ;;  %2290 = vst [vmem:[%s11982_s10 + $0xe40] sm:$0xff] %v2289_v8  ;;  %2292 = vst [vmem:[%s11982_s10 + $0xe48] sm:$0xff] %v2291_v9  ;;  %v2295_v11 = vld [vmem:[%s11974_s9 + $0x1cb0] sm:$0xff] }
  0xfc   : > { %2294 = vst [vmem:[%s11982_s10 + $0xe50] sm:$0xff] %v2293_v10  ;;  %v2297_v12 = vld [vmem:[%s11974_s9 + $0x1cc0] sm:$0xff]  ;;  %v2299_v13 = vld [vmem:[%s11974_s9 + $0x1cd0] sm:$0xff]  ;;  %2296 = vst [vmem:[%s11982_s10 + $0xe58] sm:$0xff] %v2295_v11 }
  0xfd   : > { %2298 = vst [vmem:[%s11982_s10 + $0xe60] sm:$0xff] %v2297_v12  ;;  %2300 = vst [vmem:[%s11982_s10 + $0xe68] sm:$0xff] %v2299_v13  ;;  %v2301_v14 = vld [vmem:[%s11974_s9 + $0x1ce0] sm:$0xff]  ;;  %v2303_v15 = vld [vmem:[%s11974_s9 + $0x1cf0] sm:$0xff] }
  0xfe   : > { %v2305_v16 = vld [vmem:[%s11974_s9 + $0x1d00] sm:$0xff]  ;;  %2302 = vst [vmem:[%s11982_s10 + $0xe70] sm:$0xff] %v2301_v14  ;;  %2304 = vst [vmem:[%s11982_s10 + $0xe78] sm:$0xff] %v2303_v15  ;;  %v2307_v17 = vld [vmem:[%s11974_s9 + $0x1d10] sm:$0xff] }
  0xff   : > { %2306 = vst [vmem:[%s11982_s10 + $0xe80] sm:$0xff] %v2305_v16  ;;  %v2309_v18 = vld [vmem:[%s11974_s9 + $0x1d20] sm:$0xff]  ;;  %v2311_v19 = vld [vmem:[%s11974_s9 + $0x1d30] sm:$0xff]  ;;  %2308 = vst [vmem:[%s11982_s10 + $0xe88] sm:$0xff] %v2307_v17 }
 0x100   : > { %2310 = vst [vmem:[%s11982_s10 + $0xe90] sm:$0xff] %v2309_v18  ;;  %2312 = vst [vmem:[%s11982_s10 + $0xe98] sm:$0xff] %v2311_v19  ;;  %v2313_v20 = vld [vmem:[%s11974_s9 + $0x1d40] sm:$0xff]  ;;  %v2315_v21 = vld [vmem:[%s11974_s9 + $0x1d50] sm:$0xff] }
 0x101   : > { %v2317_v22 = vld [vmem:[%s11974_s9 + $0x1d60] sm:$0xff]  ;;  %2314 = vst [vmem:[%s11982_s10 + $0xea0] sm:$0xff] %v2313_v20  ;;  %2316 = vst [vmem:[%s11982_s10 + $0xea8] sm:$0xff] %v2315_v21  ;;  %v2319_v23 = vld [vmem:[%s11974_s9 + $0x1d70] sm:$0xff] }
 0x102   : > { %2318 = vst [vmem:[%s11982_s10 + $0xeb0] sm:$0xff] %v2317_v22  ;;  %v2321_v24 = vld [vmem:[%s11974_s9 + $0x1d80] sm:$0xff]  ;;  %v2323_v25 = vld [vmem:[%s11974_s9 + $0x1d90] sm:$0xff]  ;;  %2320 = vst [vmem:[%s11982_s10 + $0xeb8] sm:$0xff] %v2319_v23 }
 0x103   : > { %2322 = vst [vmem:[%s11982_s10 + $0xec0] sm:$0xff] %v2321_v24  ;;  %2324 = vst [vmem:[%s11982_s10 + $0xec8] sm:$0xff] %v2323_v25  ;;  %v2325_v26 = vld [vmem:[%s11974_s9 + $0x1da0] sm:$0xff]  ;;  %v2327_v27 = vld [vmem:[%s11974_s9 + $0x1db0] sm:$0xff] }
 0x104   : > { %v2329_v28 = vld [vmem:[%s11974_s9 + $0x1dc0] sm:$0xff]  ;;  %2326 = vst [vmem:[%s11982_s10 + $0xed0] sm:$0xff] %v2325_v26  ;;  %2328 = vst [vmem:[%s11982_s10 + $0xed8] sm:$0xff] %v2327_v27  ;;  %v2331_v29 = vld [vmem:[%s11974_s9 + $0x1dd0] sm:$0xff] }
 0x105   : > { %2330 = vst [vmem:[%s11982_s10 + $0xee0] sm:$0xff] %v2329_v28  ;;  %v2333_v30 = vld [vmem:[%s11974_s9 + $0x1de0] sm:$0xff]  ;;  %v2335_v31 = vld [vmem:[%s11974_s9 + $0x1df0] sm:$0xff]  ;;  %2332 = vst [vmem:[%s11982_s10 + $0xee8] sm:$0xff] %v2331_v29 }
 0x106   : > { %2334 = vst [vmem:[%s11982_s10 + $0xef0] sm:$0xff] %v2333_v30  ;;  %2336 = vst [vmem:[%s11982_s10 + $0xef8] sm:$0xff] %v2335_v31  ;;  %v2337_v32 = vld [vmem:[%s11974_s9 + $0x1e00] sm:$0xff]  ;;  %v2339_v33 = vld [vmem:[%s11974_s9 + $0x1e10] sm:$0xff] }
 0x107   : > { %v2341_v34 = vld [vmem:[%s11974_s9 + $0x1e20] sm:$0xff]  ;;  %2338 = vst [vmem:[%s11982_s10 + $0xf00] sm:$0xff] %v2337_v32  ;;  %2340 = vst [vmem:[%s11982_s10 + $0xf08] sm:$0xff] %v2339_v33  ;;  %v2343_v35 = vld [vmem:[%s11974_s9 + $0x1e30] sm:$0xff] }
 0x108   : > { %2342 = vst [vmem:[%s11982_s10 + $0xf10] sm:$0xff] %v2341_v34  ;;  %v2345_v36 = vld [vmem:[%s11974_s9 + $0x1e40] sm:$0xff]  ;;  %v2347_v37 = vld [vmem:[%s11974_s9 + $0x1e50] sm:$0xff]  ;;  %2344 = vst [vmem:[%s11982_s10 + $0xf18] sm:$0xff] %v2343_v35 }
 0x109   : > { %2346 = vst [vmem:[%s11982_s10 + $0xf20] sm:$0xff] %v2345_v36  ;;  %2348 = vst [vmem:[%s11982_s10 + $0xf28] sm:$0xff] %v2347_v37  ;;  %v2349_v38 = vld [vmem:[%s11974_s9 + $0x1e60] sm:$0xff]  ;;  %v2351_v39 = vld [vmem:[%s11974_s9 + $0x1e70] sm:$0xff] }
 0x10a   : > { %v2353_v40 = vld [vmem:[%s11974_s9 + $0x1e80] sm:$0xff]  ;;  %2350 = vst [vmem:[%s11982_s10 + $0xf30] sm:$0xff] %v2349_v38  ;;  %2352 = vst [vmem:[%s11982_s10 + $0xf38] sm:$0xff] %v2351_v39  ;;  %v2355_v41 = vld [vmem:[%s11974_s9 + $0x1e90] sm:$0xff] }
 0x10b   : > { %2354 = vst [vmem:[%s11982_s10 + $0xf40] sm:$0xff] %v2353_v40  ;;  %v2357_v42 = vld [vmem:[%s11974_s9 + $0x1ea0] sm:$0xff]  ;;  %v2359_v43 = vld [vmem:[%s11974_s9 + $0x1eb0] sm:$0xff]  ;;  %2356 = vst [vmem:[%s11982_s10 + $0xf48] sm:$0xff] %v2355_v41 }
 0x10c   : > { %2358 = vst [vmem:[%s11982_s10 + $0xf50] sm:$0xff] %v2357_v42  ;;  %2360 = vst [vmem:[%s11982_s10 + $0xf58] sm:$0xff] %v2359_v43  ;;  %v2361_v44 = vld [vmem:[%s11974_s9 + $0x1ec0] sm:$0xff]  ;;  %v2363_v45 = vld [vmem:[%s11974_s9 + $0x1ed0] sm:$0xff] }
 0x10d   : > { %v2365_v46 = vld [vmem:[%s11974_s9 + $0x1ee0] sm:$0xff]  ;;  %2362 = vst [vmem:[%s11982_s10 + $0xf60] sm:$0xff] %v2361_v44  ;;  %2364 = vst [vmem:[%s11982_s10 + $0xf68] sm:$0xff] %v2363_v45  ;;  %v2367_v47 = vld [vmem:[%s11974_s9 + $0x1ef0] sm:$0xff] }
 0x10e   : > { %2366 = vst [vmem:[%s11982_s10 + $0xf70] sm:$0xff] %v2365_v46  ;;  %v2369_v48 = vld [vmem:[%s11974_s9 + $0x1f00] sm:$0xff]  ;;  %v2371_v49 = vld [vmem:[%s11974_s9 + $0x1f10] sm:$0xff]  ;;  %2368 = vst [vmem:[%s11982_s10 + $0xf78] sm:$0xff] %v2367_v47 }
 0x10f   : > { %2370 = vst [vmem:[%s11982_s10 + $0xf80] sm:$0xff] %v2369_v48  ;;  %2372 = vst [vmem:[%s11982_s10 + $0xf88] sm:$0xff] %v2371_v49  ;;  %v2373_v50 = vld [vmem:[%s11974_s9 + $0x1f20] sm:$0xff]  ;;  %v2375_v51 = vld [vmem:[%s11974_s9 + $0x1f30] sm:$0xff] }
 0x110   : > { %v2377_v52 = vld [vmem:[%s11974_s9 + $0x1f40] sm:$0xff]  ;;  %2374 = vst [vmem:[%s11982_s10 + $0xf90] sm:$0xff] %v2373_v50  ;;  %2376 = vst [vmem:[%s11982_s10 + $0xf98] sm:$0xff] %v2375_v51  ;;  %v2379_v53 = vld [vmem:[%s11974_s9 + $0x1f50] sm:$0xff] }
 0x111   : > { %2378 = vst [vmem:[%s11982_s10 + $0xfa0] sm:$0xff] %v2377_v52  ;;  %v2381_v54 = vld [vmem:[%s11974_s9 + $0x1f60] sm:$0xff]  ;;  %v2383_v55 = vld [vmem:[%s11974_s9 + $0x1f70] sm:$0xff]  ;;  %2380 = vst [vmem:[%s11982_s10 + $0xfa8] sm:$0xff] %v2379_v53 }
 0x112   : > { %2382 = vst [vmem:[%s11982_s10 + $0xfb0] sm:$0xff] %v2381_v54  ;;  %2384 = vst [vmem:[%s11982_s10 + $0xfb8] sm:$0xff] %v2383_v55  ;;  %v2385_v56 = vld [vmem:[%s11974_s9 + $0x1f80] sm:$0xff]  ;;  %v2387_v57 = vld [vmem:[%s11974_s9 + $0x1f90] sm:$0xff] }
 0x113   : > { %v2389_v58 = vld [vmem:[%s11974_s9 + $0x1fa0] sm:$0xff]  ;;  %2386 = vst [vmem:[%s11982_s10 + $0xfc0] sm:$0xff] %v2385_v56  ;;  %2388 = vst [vmem:[%s11982_s10 + $0xfc8] sm:$0xff] %v2387_v57  ;;  %v2391_v59 = vld [vmem:[%s11974_s9 + $0x1fb0] sm:$0xff] }
 0x114   : > { %2390 = vst [vmem:[%s11982_s10 + $0xfd0] sm:$0xff] %v2389_v58  ;;  %v2393_v60 = vld [vmem:[%s11974_s9 + $0x1fc0] sm:$0xff]  ;;  %v2395_v61 = vld [vmem:[%s11974_s9 + $0x1fd0] sm:$0xff]  ;;  %2392 = vst [vmem:[%s11982_s10 + $0xfd8] sm:$0xff] %v2391_v59 }
 0x115   : > { %2394 = vst [vmem:[%s11982_s10 + $0xfe0] sm:$0xff] %v2393_v60  ;;  %2396 = vst [vmem:[%s11982_s10 + $0xfe8] sm:$0xff] %v2395_v61  ;;  %v2397_v62 = vld [vmem:[%s11974_s9 + $0x1fe0] sm:$0xff]  ;;  %v2399_v63 = vld [vmem:[%s11974_s9 + $0x1ff0] sm:$0xff] }
 0x116   : > { %v2401_v0 = vld [vmem:[%s11974_s9 + $0x2000] sm:$0xff]  ;;  %2398 = vst [vmem:[%s11982_s10 + $0xff0] sm:$0xff] %v2397_v62  ;;  %2400 = vst [vmem:[%s11982_s10 + $0xff8] sm:$0xff] %v2399_v63  ;;  %v2403_v1 = vld [vmem:[%s11974_s9 + $0x2010] sm:$0xff] }
 0x117   : > { %2402 = vst [vmem:[%s11982_s10 + $0x1000] sm:$0xff] %v2401_v0  ;;  %v2405_v2 = vld [vmem:[%s11974_s9 + $0x2020] sm:$0xff]  ;;  %v2407_v3 = vld [vmem:[%s11974_s9 + $0x2030] sm:$0xff]  ;;  %2404 = vst [vmem:[%s11982_s10 + $0x1008] sm:$0xff] %v2403_v1 }
 0x118   : > { %2406 = vst [vmem:[%s11982_s10 + $0x1010] sm:$0xff] %v2405_v2  ;;  %2408 = vst [vmem:[%s11982_s10 + $0x1018] sm:$0xff] %v2407_v3  ;;  %v2409_v4 = vld [vmem:[%s11974_s9 + $0x2040] sm:$0xff]  ;;  %v2411_v5 = vld [vmem:[%s11974_s9 + $0x2050] sm:$0xff] }
 0x119   : > { %v2413_v6 = vld [vmem:[%s11974_s9 + $0x2060] sm:$0xff]  ;;  %2410 = vst [vmem:[%s11982_s10 + $0x1020] sm:$0xff] %v2409_v4  ;;  %2412 = vst [vmem:[%s11982_s10 + $0x1028] sm:$0xff] %v2411_v5  ;;  %v2415_v7 = vld [vmem:[%s11974_s9 + $0x2070] sm:$0xff] }
 0x11a   : > { %2414 = vst [vmem:[%s11982_s10 + $0x1030] sm:$0xff] %v2413_v6  ;;  %v2417_v8 = vld [vmem:[%s11974_s9 + $0x2080] sm:$0xff]  ;;  %v2419_v9 = vld [vmem:[%s11974_s9 + $0x2090] sm:$0xff]  ;;  %2416 = vst [vmem:[%s11982_s10 + $0x1038] sm:$0xff] %v2415_v7 }
 0x11b   : > { %2418 = vst [vmem:[%s11982_s10 + $0x1040] sm:$0xff] %v2417_v8  ;;  %2420 = vst [vmem:[%s11982_s10 + $0x1048] sm:$0xff] %v2419_v9  ;;  %v2421_v10 = vld [vmem:[%s11974_s9 + $0x20a0] sm:$0xff]  ;;  %v2423_v11 = vld [vmem:[%s11974_s9 + $0x20b0] sm:$0xff] }
 0x11c   : > { %v2425_v12 = vld [vmem:[%s11974_s9 + $0x20c0] sm:$0xff]  ;;  %2422 = vst [vmem:[%s11982_s10 + $0x1050] sm:$0xff] %v2421_v10  ;;  %2424 = vst [vmem:[%s11982_s10 + $0x1058] sm:$0xff] %v2423_v11  ;;  %v2427_v13 = vld [vmem:[%s11974_s9 + $0x20d0] sm:$0xff] }
 0x11d   : > { %2426 = vst [vmem:[%s11982_s10 + $0x1060] sm:$0xff] %v2425_v12  ;;  %v2429_v14 = vld [vmem:[%s11974_s9 + $0x20e0] sm:$0xff]  ;;  %v2431_v15 = vld [vmem:[%s11974_s9 + $0x20f0] sm:$0xff]  ;;  %2428 = vst [vmem:[%s11982_s10 + $0x1068] sm:$0xff] %v2427_v13 }
 0x11e   : > { %2430 = vst [vmem:[%s11982_s10 + $0x1070] sm:$0xff] %v2429_v14  ;;  %2432 = vst [vmem:[%s11982_s10 + $0x1078] sm:$0xff] %v2431_v15  ;;  %v2433_v16 = vld [vmem:[%s11974_s9 + $0x2100] sm:$0xff]  ;;  %v2435_v17 = vld [vmem:[%s11974_s9 + $0x2110] sm:$0xff] }
 0x11f   : > { %v2437_v18 = vld [vmem:[%s11974_s9 + $0x2120] sm:$0xff]  ;;  %2434 = vst [vmem:[%s11982_s10 + $0x1080] sm:$0xff] %v2433_v16  ;;  %2436 = vst [vmem:[%s11982_s10 + $0x1088] sm:$0xff] %v2435_v17  ;;  %v2439_v19 = vld [vmem:[%s11974_s9 + $0x2130] sm:$0xff] }
 0x120   : > { %2438 = vst [vmem:[%s11982_s10 + $0x1090] sm:$0xff] %v2437_v18  ;;  %v2441_v20 = vld [vmem:[%s11974_s9 + $0x2140] sm:$0xff]  ;;  %v2443_v21 = vld [vmem:[%s11974_s9 + $0x2150] sm:$0xff]  ;;  %2440 = vst [vmem:[%s11982_s10 + $0x1098] sm:$0xff] %v2439_v19 }
 0x121   : > { %2442 = vst [vmem:[%s11982_s10 + $0x10a0] sm:$0xff] %v2441_v20  ;;  %2444 = vst [vmem:[%s11982_s10 + $0x10a8] sm:$0xff] %v2443_v21  ;;  %v2445_v22 = vld [vmem:[%s11974_s9 + $0x2160] sm:$0xff]  ;;  %v2447_v23 = vld [vmem:[%s11974_s9 + $0x2170] sm:$0xff] }
 0x122   : > { %v2449_v24 = vld [vmem:[%s11974_s9 + $0x2180] sm:$0xff]  ;;  %2446 = vst [vmem:[%s11982_s10 + $0x10b0] sm:$0xff] %v2445_v22  ;;  %2448 = vst [vmem:[%s11982_s10 + $0x10b8] sm:$0xff] %v2447_v23  ;;  %v2451_v25 = vld [vmem:[%s11974_s9 + $0x2190] sm:$0xff] }
 0x123   : > { %2450 = vst [vmem:[%s11982_s10 + $0x10c0] sm:$0xff] %v2449_v24  ;;  %v2453_v26 = vld [vmem:[%s11974_s9 + $0x21a0] sm:$0xff]  ;;  %v2455_v27 = vld [vmem:[%s11974_s9 + $0x21b0] sm:$0xff]  ;;  %2452 = vst [vmem:[%s11982_s10 + $0x10c8] sm:$0xff] %v2451_v25 }
 0x124   : > { %2454 = vst [vmem:[%s11982_s10 + $0x10d0] sm:$0xff] %v2453_v26  ;;  %2456 = vst [vmem:[%s11982_s10 + $0x10d8] sm:$0xff] %v2455_v27  ;;  %v2457_v28 = vld [vmem:[%s11974_s9 + $0x21c0] sm:$0xff]  ;;  %v2459_v29 = vld [vmem:[%s11974_s9 + $0x21d0] sm:$0xff] }
 0x125   : > { %v2461_v30 = vld [vmem:[%s11974_s9 + $0x21e0] sm:$0xff]  ;;  %2458 = vst [vmem:[%s11982_s10 + $0x10e0] sm:$0xff] %v2457_v28  ;;  %2460 = vst [vmem:[%s11982_s10 + $0x10e8] sm:$0xff] %v2459_v29  ;;  %v2463_v31 = vld [vmem:[%s11974_s9 + $0x21f0] sm:$0xff] }
 0x126   : > { %2462 = vst [vmem:[%s11982_s10 + $0x10f0] sm:$0xff] %v2461_v30  ;;  %v2465_v32 = vld [vmem:[%s11974_s9 + $0x2200] sm:$0xff]  ;;  %v2467_v33 = vld [vmem:[%s11974_s9 + $0x2210] sm:$0xff]  ;;  %2464 = vst [vmem:[%s11982_s10 + $0x10f8] sm:$0xff] %v2463_v31 }
 0x127   : > { %2466 = vst [vmem:[%s11982_s10 + $0x1100] sm:$0xff] %v2465_v32  ;;  %2468 = vst [vmem:[%s11982_s10 + $0x1108] sm:$0xff] %v2467_v33  ;;  %v2469_v34 = vld [vmem:[%s11974_s9 + $0x2220] sm:$0xff]  ;;  %v2471_v35 = vld [vmem:[%s11974_s9 + $0x2230] sm:$0xff] }
 0x128   : > { %v2473_v36 = vld [vmem:[%s11974_s9 + $0x2240] sm:$0xff]  ;;  %2470 = vst [vmem:[%s11982_s10 + $0x1110] sm:$0xff] %v2469_v34  ;;  %2472 = vst [vmem:[%s11982_s10 + $0x1118] sm:$0xff] %v2471_v35  ;;  %v2475_v37 = vld [vmem:[%s11974_s9 + $0x2250] sm:$0xff] }
 0x129   : > { %2474 = vst [vmem:[%s11982_s10 + $0x1120] sm:$0xff] %v2473_v36  ;;  %v2477_v38 = vld [vmem:[%s11974_s9 + $0x2260] sm:$0xff]  ;;  %v2479_v39 = vld [vmem:[%s11974_s9 + $0x2270] sm:$0xff]  ;;  %2476 = vst [vmem:[%s11982_s10 + $0x1128] sm:$0xff] %v2475_v37 }
 0x12a   : > { %2478 = vst [vmem:[%s11982_s10 + $0x1130] sm:$0xff] %v2477_v38  ;;  %2480 = vst [vmem:[%s11982_s10 + $0x1138] sm:$0xff] %v2479_v39  ;;  %v2481_v40 = vld [vmem:[%s11974_s9 + $0x2280] sm:$0xff]  ;;  %v2483_v41 = vld [vmem:[%s11974_s9 + $0x2290] sm:$0xff] }
 0x12b   : > { %v2485_v42 = vld [vmem:[%s11974_s9 + $0x22a0] sm:$0xff]  ;;  %2482 = vst [vmem:[%s11982_s10 + $0x1140] sm:$0xff] %v2481_v40  ;;  %2484 = vst [vmem:[%s11982_s10 + $0x1148] sm:$0xff] %v2483_v41  ;;  %v2487_v43 = vld [vmem:[%s11974_s9 + $0x22b0] sm:$0xff] }
 0x12c   : > { %2486 = vst [vmem:[%s11982_s10 + $0x1150] sm:$0xff] %v2485_v42  ;;  %v2489_v44 = vld [vmem:[%s11974_s9 + $0x22c0] sm:$0xff]  ;;  %v2491_v45 = vld [vmem:[%s11974_s9 + $0x22d0] sm:$0xff]  ;;  %2488 = vst [vmem:[%s11982_s10 + $0x1158] sm:$0xff] %v2487_v43 }
 0x12d   : > { %2490 = vst [vmem:[%s11982_s10 + $0x1160] sm:$0xff] %v2489_v44  ;;  %2492 = vst [vmem:[%s11982_s10 + $0x1168] sm:$0xff] %v2491_v45  ;;  %v2493_v46 = vld [vmem:[%s11974_s9 + $0x22e0] sm:$0xff]  ;;  %v2495_v47 = vld [vmem:[%s11974_s9 + $0x22f0] sm:$0xff] }
 0x12e   : > { %v2497_v48 = vld [vmem:[%s11974_s9 + $0x2300] sm:$0xff]  ;;  %2494 = vst [vmem:[%s11982_s10 + $0x1170] sm:$0xff] %v2493_v46  ;;  %2496 = vst [vmem:[%s11982_s10 + $0x1178] sm:$0xff] %v2495_v47  ;;  %v2499_v49 = vld [vmem:[%s11974_s9 + $0x2310] sm:$0xff] }
 0x12f   : > { %2498 = vst [vmem:[%s11982_s10 + $0x1180] sm:$0xff] %v2497_v48  ;;  %v2501_v50 = vld [vmem:[%s11974_s9 + $0x2320] sm:$0xff]  ;;  %v2503_v51 = vld [vmem:[%s11974_s9 + $0x2330] sm:$0xff]  ;;  %2500 = vst [vmem:[%s11982_s10 + $0x1188] sm:$0xff] %v2499_v49 }
 0x130   : > { %2502 = vst [vmem:[%s11982_s10 + $0x1190] sm:$0xff] %v2501_v50  ;;  %2504 = vst [vmem:[%s11982_s10 + $0x1198] sm:$0xff] %v2503_v51  ;;  %v2505_v52 = vld [vmem:[%s11974_s9 + $0x2340] sm:$0xff]  ;;  %v2507_v53 = vld [vmem:[%s11974_s9 + $0x2350] sm:$0xff] }
 0x131   : > { %v2509_v54 = vld [vmem:[%s11974_s9 + $0x2360] sm:$0xff]  ;;  %2506 = vst [vmem:[%s11982_s10 + $0x11a0] sm:$0xff] %v2505_v52  ;;  %2508 = vst [vmem:[%s11982_s10 + $0x11a8] sm:$0xff] %v2507_v53  ;;  %v2511_v55 = vld [vmem:[%s11974_s9 + $0x2370] sm:$0xff] }
 0x132   : > { %2510 = vst [vmem:[%s11982_s10 + $0x11b0] sm:$0xff] %v2509_v54  ;;  %v2513_v56 = vld [vmem:[%s11974_s9 + $0x2380] sm:$0xff]  ;;  %v2515_v57 = vld [vmem:[%s11974_s9 + $0x2390] sm:$0xff]  ;;  %2512 = vst [vmem:[%s11982_s10 + $0x11b8] sm:$0xff] %v2511_v55 }
 0x133   : > { %2514 = vst [vmem:[%s11982_s10 + $0x11c0] sm:$0xff] %v2513_v56  ;;  %2516 = vst [vmem:[%s11982_s10 + $0x11c8] sm:$0xff] %v2515_v57  ;;  %v2517_v58 = vld [vmem:[%s11974_s9 + $0x23a0] sm:$0xff]  ;;  %v2519_v59 = vld [vmem:[%s11974_s9 + $0x23b0] sm:$0xff] }
 0x134   : > { %v2521_v60 = vld [vmem:[%s11974_s9 + $0x23c0] sm:$0xff]  ;;  %2518 = vst [vmem:[%s11982_s10 + $0x11d0] sm:$0xff] %v2517_v58  ;;  %2520 = vst [vmem:[%s11982_s10 + $0x11d8] sm:$0xff] %v2519_v59  ;;  %v2523_v61 = vld [vmem:[%s11974_s9 + $0x23d0] sm:$0xff] }
 0x135   : > { %2522 = vst [vmem:[%s11982_s10 + $0x11e0] sm:$0xff] %v2521_v60  ;;  %v2525_v62 = vld [vmem:[%s11974_s9 + $0x23e0] sm:$0xff]  ;;  %v2527_v63 = vld [vmem:[%s11974_s9 + $0x23f0] sm:$0xff]  ;;  %2524 = vst [vmem:[%s11982_s10 + $0x11e8] sm:$0xff] %v2523_v61 }
 0x136   : > { %2526 = vst [vmem:[%s11982_s10 + $0x11f0] sm:$0xff] %v2525_v62  ;;  %2528 = vst [vmem:[%s11982_s10 + $0x11f8] sm:$0xff] %v2527_v63 }
 0x137 PF: > { %4883 = sbr.rel (!%p11945_p4) target bundleno = 317 (0x13d), region = 80  ;;  %s4885_s11 = sand.u32 (%p11945_p4), 1, %s11865_s17  }
 0x138   : > { %s10769_s12 = sshll.u32 (%p11945_p4), %s11873_s19, 3  ;;  %s10108_s13 = sshll.u32 (%p11945_p4), %s4885_s11, 5 }
 0x139   : > { %s4893_s22 = scalar_lea.vmem (%p11945_p4), %s14207_s3, %s10769_s12  ;;  %s4887_s24 = scalar_lea.vmem (%p11945_p4), [#allocation3], %s10108_s13 }
 0x13a   : > { %v4928_v0 = vld [vmem:[%s4893_s22] sm:$0xff] (%p11945_p4)  ;;  %v4930_v1 = vld [vmem:[%s4893_s22 + $0x10] sm:$0xff] (%p11945_p4) }
 0x13b   : > { %v4932_v2 = vld [vmem:[%s4893_s22 + $0x20] sm:$0xff] (%p11945_p4)  ;;  %4929 = vst [vmem:[%s4887_s24] sm:$0xff] (%p11945_p4), %v4928_v0  ;;  %4931 = vst [vmem:[%s4887_s24 + $0x8] sm:$0xff] (%p11945_p4), %v4930_v1  ;;  %v4934_v3 = vld [vmem:[%s4893_s22 + $0x30] sm:$0xff] (%p11945_p4) }
 0x13c   : > { %4933 = vst [vmem:[%s4887_s24 + $0x10] sm:$0xff] %v4932_v2  ;;  %4935 = vst [vmem:[%s4887_s24 + $0x18] sm:$0xff] %v4934_v3 }
 0x13d PF: > { %p10111_p11 = scmp.ge.s32.totalorder %s11877_s20, 1  ;;  %p4940_p12 = scmp.lt.s32.totalorder %s11877_s20, 3 }
 0x13f   : > { %p4941_p13 = pnand %p10111_p11, %p4940_p12 }
 0x141   : > { %4944 = sbr.rel (%p4941_p13) target bundleno = 1161 (0x489), region = 118 }
 0x146   : > { %s13140_s25 = sand.u32 1, %s11861_s16   ;;  %v10927_v4 = vld [vmem:[%s14204_s0 + $0x4] ss:$144 sps:$4 sm:$0xff]   ;;  %v10930_v5 = vld [vmem:[%s14204_s0 + $0xc] ss:$144 sps:$4 sm:$0xff]   ;;  %s10114_s21 = sshll.u32 %s11869_s18, 1 }
 0x147   : > { %s10772_s27 = smul.u32 4608, %s13140_s25  ;;  %8941 = vmatprep.mubr.bf16.mxu0 %v10927_v4  ;;  %8994 = vmatprep.mubr.bf16.mxu1 %v10930_v5  ;;  %p5002_p0 = scmp.lt.s32.totalorder %s10114_s21, 3  ;;  %vm9949_vm0 = vcmask 1041409   ;;  %vm9951_vm1 = vcmask 1043459   ;;  %vm9953_vm2 = vcmask 1045509   ;;  %vm9955_vm3 = vcmask 1047559  }
 0x148   : > { %s10112_s12 = sshll.u32 %s13140_s25, 5  ;;  %s10113_s14 = sshll.u32 %s13140_s25, 2 }
 0x149   : > { %s13149_s8 = scalar_lea.vmem [#allocation2], %s10772_s27  ;;  %s14245_s21 = smov (!%p5002_p0, %s10114_s21), 3 }
 0x14a   : > { %v10829_v6 = vld [vmem:[%s13149_s8 + $0x74] ss:$8 sps:$4 sm:$0xff]   ;;  %v10833_v8 = vld [vmem:[%s13149_s8 + $0x70] ss:$8 sps:$4 sm:$0xff]   ;;  %v10835_v10 = vld [vmem:[%s13149_s8 + $0x64] ss:$8 sps:$4 sm:$0xff]   ;;  %s5004_s27 = scalar_lea.vmem %s14206_s2, %s14245_s21 }
 0x14b   : > { %v10831_v7 = vld [vmem:[%s13149_s8 + $0x174] ss:$8 sps:$4 sm:$0xff]   ;;  %8909 = vmatprep.subr.bf16.mxu0 %v10829_v6  ;;  %v10834_v9 = vld [vmem:[%s13149_s8 + $0x170] ss:$8 sps:$4 sm:$0xff]   ;;  %v10837_v11 = vld [vmem:[%s13149_s8 + $0x164] ss:$8 sps:$4 sm:$0xff]  }
 0x14c   : > { %8962 = vmatprep.subr.bf16.mxu1 %v10831_v7  ;;  %8910 = vmatpush1.bf16.msra.mxu0 %v10833_v8  ;;  %v10839_v12 = vld [vmem:[%s13149_s8 + $0x60] ss:$8 sps:$4 sm:$0xff]   ;;  %v10841_v14 = vld [vmem:[%s13149_s8 + $0x54] ss:$8 sps:$4 sm:$0xff]   ;;  %v10845_v16 = vld [vmem:[%s13149_s8 + $0x50] ss:$8 sps:$4 sm:$0xff]  }
 0x14d   : > { %8963 = vmatpush1.bf16.msra.mxu1 %v10834_v9  ;;  %8911 = vmatprep.subr.bf16.mxu0 %v10835_v10  ;;  %v10840_v13 = vld [vmem:[%s13149_s8 + $0x160] ss:$8 sps:$4 sm:$0xff]   ;;  %v10843_v15 = vld [vmem:[%s13149_s8 + $0x154] ss:$8 sps:$4 sm:$0xff]   ;;  %v10846_v17 = vld [vmem:[%s13149_s8 + $0x150] ss:$8 sps:$4 sm:$0xff]  }
 0x14e   : > { %8964 = vmatprep.subr.bf16.mxu1 %v10837_v11  ;;  %v10847_v18 = vld [vmem:[%s13149_s8 + $0x44] ss:$8 sps:$4 sm:$0xff]   ;;  %v10851_v20 = vld [vmem:[%s13149_s8 + $0x40] ss:$8 sps:$4 sm:$0xff]   ;;  %v10853_v22 = vld [vmem:[%s13149_s8 + $0x34] ss:$8 sps:$4 sm:$0xff]  }
 0x14f   : > { %v10849_v19 = vld [vmem:[%s13149_s8 + $0x144] ss:$8 sps:$4 sm:$0xff]   ;;  %v10852_v21 = vld [vmem:[%s13149_s8 + $0x140] ss:$8 sps:$4 sm:$0xff]   ;;  %v10855_v23 = vld [vmem:[%s13149_s8 + $0x134] ss:$8 sps:$4 sm:$0xff]  }
 0x150   : > { %8912 = vmatpush1.bf16.msra.mxu0 %v10839_v12  ;;  %v10857_v24 = vld [vmem:[%s13149_s8 + $0x30] ss:$8 sps:$4 sm:$0xff]   ;;  %v10859_v26 = vld [vmem:[%s13149_s8 + $0x24] ss:$8 sps:$4 sm:$0xff]   ;;  %v10863_v28 = vld [vmem:[%s13149_s8 + $0x20] ss:$8 sps:$4 sm:$0xff]  }
 0x151   : > { %8965 = vmatpush1.bf16.msra.mxu1 %v10840_v13  ;;  %8913 = vmatprep.subr.bf16.mxu0 %v10841_v14  ;;  %v10858_v25 = vld [vmem:[%s13149_s8 + $0x130] ss:$8 sps:$4 sm:$0xff]   ;;  %v10861_v27 = vld [vmem:[%s13149_s8 + $0x124] ss:$8 sps:$4 sm:$0xff]   ;;  %v10864_v29 = vld [vmem:[%s13149_s8 + $0x120] ss:$8 sps:$4 sm:$0xff]  }
 0x152   : > { %8966 = vmatprep.subr.bf16.mxu1 %v10843_v15  ;;  %v10865_v30 = vld [vmem:[%s13149_s8 + $0x14] ss:$8 sps:$4 sm:$0xff]   ;;  %v10869_v32 = vld [vmem:[%s13149_s8 + $0x10] ss:$8 sps:$4 sm:$0xff]   ;;  %v10871_v34 = vld [vmem:[%s13149_s8 + $0x4] ss:$8 sps:$4 sm:$0xff]  }
 0x153   : > { %v10867_v31 = vld [vmem:[%s13149_s8 + $0x114] ss:$8 sps:$4 sm:$0xff]   ;;  %v10870_v33 = vld [vmem:[%s13149_s8 + $0x110] ss:$8 sps:$4 sm:$0xff]   ;;  %v10873_v35 = vld [vmem:[%s13149_s8 + $0x104] ss:$8 sps:$4 sm:$0xff]  }
 0x154   : > { %8914 = vmatpush1.bf16.msra.mxu0 %v10845_v16  ;;  %v10875_v36 = vld [vmem:[%s13149_s8] ss:$8 sps:$4 sm:$0xff]   ;;  %v10877_v38 = vld [vmem:[%s13149_s8 + $0xf4] ss:$8 sps:$4 sm:$0xff]   ;;  %v10881_v40 = vld [vmem:[%s13149_s8 + $0xf0] ss:$8 sps:$4 sm:$0xff]  }
 0x155   : > { %8967 = vmatpush1.bf16.msra.mxu1 %v10846_v17  ;;  %8915 = vmatprep.subr.bf16.mxu0 %v10847_v18  ;;  %v10876_v37 = vld [vmem:[%s13149_s8 + $0x100] ss:$8 sps:$4 sm:$0xff]   ;;  %v10879_v39 = vld [vmem:[%s13149_s8 + $0x1f4] ss:$8 sps:$4 sm:$0xff]   ;;  %v10882_v41 = vld [vmem:[%s13149_s8 + $0x1f0] ss:$8 sps:$4 sm:$0xff]  }
 0x156   : > { %8968 = vmatprep.subr.bf16.mxu1 %v10849_v19  ;;  %v10883_v42 = vld [vmem:[%s13149_s8 + $0xe4] ss:$8 sps:$4 sm:$0xff]   ;;  %v10887_v44 = vld [vmem:[%s13149_s8 + $0xe0] ss:$8 sps:$4 sm:$0xff]   ;;  %v10889_v46 = vld [vmem:[%s13149_s8 + $0xd4] ss:$8 sps:$4 sm:$0xff]  }
 0x157   : > { %v10885_v43 = vld [vmem:[%s13149_s8 + $0x1e4] ss:$8 sps:$4 sm:$0xff]   ;;  %v10888_v45 = vld [vmem:[%s13149_s8 + $0x1e0] ss:$8 sps:$4 sm:$0xff]   ;;  %v10891_v47 = vld [vmem:[%s13149_s8 + $0x1d4] ss:$8 sps:$4 sm:$0xff]  }
 0x158   : > { %8916 = vmatpush1.bf16.msra.mxu0 %v10851_v20  ;;  %v10893_v48 = vld [vmem:[%s13149_s8 + $0xd0] ss:$8 sps:$4 sm:$0xff]   ;;  %v10895_v50 = vld [vmem:[%s13149_s8 + $0xc4] ss:$8 sps:$4 sm:$0xff]   ;;  %v10899_v52 = vld [vmem:[%s13149_s8 + $0xc0] ss:$8 sps:$4 sm:$0xff]  }
 0x159   : > { %8969 = vmatpush1.bf16.msra.mxu1 %v10852_v21  ;;  %8917 = vmatprep.subr.bf16.mxu0 %v10853_v22  ;;  %v10894_v49 = vld [vmem:[%s13149_s8 + $0x1d0] ss:$8 sps:$4 sm:$0xff]   ;;  %v10897_v51 = vld [vmem:[%s13149_s8 + $0x1c4] ss:$8 sps:$4 sm:$0xff]   ;;  %v10900_v53 = vld [vmem:[%s13149_s8 + $0x1c0] ss:$8 sps:$4 sm:$0xff]  }
 0x15a   : > { %8970 = vmatprep.subr.bf16.mxu1 %v10855_v23  ;;  %v10901_v54 = vld [vmem:[%s13149_s8 + $0xb4] ss:$8 sps:$4 sm:$0xff]   ;;  %v10905_v56 = vld [vmem:[%s13149_s8 + $0xb0] ss:$8 sps:$4 sm:$0xff]   ;;  %v10907_v58 = vld [vmem:[%s13149_s8 + $0xa4] ss:$8 sps:$4 sm:$0xff]  }
 0x15b   : > { %v10903_v55 = vld [vmem:[%s13149_s8 + $0x1b4] ss:$8 sps:$4 sm:$0xff]   ;;  %v10906_v57 = vld [vmem:[%s13149_s8 + $0x1b0] ss:$8 sps:$4 sm:$0xff]   ;;  %v10909_v59 = vld [vmem:[%s13149_s8 + $0x1a4] ss:$8 sps:$4 sm:$0xff]  }
 0x15c   : > { %8918 = vmatpush1.bf16.msra.mxu0 %v10857_v24  ;;  %v10911_v60 = vld [vmem:[%s13149_s8 + $0xa0] ss:$8 sps:$4 sm:$0xff]   ;;  %v10913_v62 = vld [vmem:[%s13149_s8 + $0x94] ss:$8 sps:$4 sm:$0xff]   ;;  %v10917_v0 = vld [vmem:[%s13149_s8 + $0x90] ss:$8 sps:$4 sm:$0xff]  }
 0x15d   : > { %8971 = vmatpush1.bf16.msra.mxu1 %v10858_v25  ;;  %8919 = vmatprep.subr.bf16.mxu0 %v10859_v26  ;;  %v10912_v61 = vld [vmem:[%s13149_s8 + $0x1a0] ss:$8 sps:$4 sm:$0xff]   ;;  %v10915_v63 = vld [vmem:[%s13149_s8 + $0x194] ss:$8 sps:$4 sm:$0xff]   ;;  %v10918_v1 = vld [vmem:[%s13149_s8 + $0x190] ss:$8 sps:$4 sm:$0xff]  }
 0x15e   : > { %8972 = vmatprep.subr.bf16.mxu1 %v10861_v27  ;;  %v10919_v2 = vld [vmem:[%s13149_s8 + $0x84] ss:$8 sps:$4 sm:$0xff]   ;;  %v10923_v4 = vld [vmem:[%s13149_s8 + $0x80] ss:$8 sps:$4 sm:$0xff]   ;;  %v10933_v6 = vld [vmem:[%s13149_s8 + $0x274] ss:$8 sps:$4 sm:$0xff]  }
 0x15f   : > { %v10921_v3 = vld [vmem:[%s13149_s8 + $0x184] ss:$8 sps:$4 sm:$0xff]   ;;  %v10924_v5 = vld [vmem:[%s13149_s8 + $0x180] ss:$8 sps:$4 sm:$0xff]   ;;  %v10936_v7 = vld [vmem:[%s13149_s8 + $0x374] ss:$8 sps:$4 sm:$0xff]  }
 0x160   : > { %8920 = vmatpush1.bf16.msra.mxu0 %v10863_v28  ;;  %v10925_v8 = vld [vmem:[%s14204_s0] ss:$144 sps:$4 sm:$0xff]   ;;  %v10928_v9 = vld [vmem:[%s14204_s0 + $0x8] ss:$144 sps:$4 sm:$0xff]   ;;  %v10939_v12 = vld [vmem:[%s13149_s8 + $0x264] ss:$8 sps:$4 sm:$0xff]  }
 0x161   : > { %8973 = vmatpush1.bf16.msra.mxu1 %v10864_v29  ;;  %8921 = vmatprep.subr.bf16.mxu0 %v10865_v30  ;;  %v10931_v10 = vld [vmem:[%s13149_s8 + $0x270] ss:$8 sps:$4 sm:$0xff]   ;;  %v10942_v13 = vld [vmem:[%s13149_s8 + $0x364] ss:$8 sps:$4 sm:$0xff]   ;;  %v10937_v15 = vld [vmem:[%s13149_s8 + $0x260] ss:$8 sps:$4 sm:$0xff]  }
 0x162   : > { %8974 = vmatprep.subr.bf16.mxu1 %v10867_v31  ;;  %v10934_v11 = vld [vmem:[%s13149_s8 + $0x370] ss:$8 sps:$4 sm:$0xff]   ;;  %v11009_v14 = vld [vmem:[%s14204_s0 + $0x124] ss:$144 sps:$4 sm:$0xff]   ;;  %v10940_v16 = vld [vmem:[%s13149_s8 + $0x360] ss:$8 sps:$4 sm:$0xff]  }
 0x163   : > { %v10945_v17 = vld [vmem:[%s13149_s8 + $0x254] ss:$8 sps:$4 sm:$0xff]   ;;  %v11011_v19 = vld [vmem:[%s14204_s0 + $0x120] ss:$144 sps:$4 sm:$0xff]   ;;  %v10951_v22 = vld [vmem:[%s13149_s8 + $0x244] ss:$8 sps:$4 sm:$0xff]  }
 0x164   : > { %8922 = vmatpush1.bf16.msra.mxu0 %v10869_v32  ;;  %v10948_v18 = vld [vmem:[%s13149_s8 + $0x354] ss:$8 sps:$4 sm:$0xff]   ;;  %v10943_v20 = vld [vmem:[%s13149_s8 + $0x250] ss:$8 sps:$4 sm:$0xff]   ;;  %v10954_v23 = vld [vmem:[%s13149_s8 + $0x344] ss:$8 sps:$4 sm:$0xff]  }
 0x165   : > { %8975 = vmatpush1.bf16.msra.mxu1 %v10870_v33  ;;  %8923 = vmatprep.subr.bf16.mxu0 %v10871_v34  ;;  %v10946_v21 = vld [vmem:[%s13149_s8 + $0x350] ss:$8 sps:$4 sm:$0xff]   ;;  %v10949_v24 = vld [vmem:[%s13149_s8 + $0x240] ss:$8 sps:$4 sm:$0xff]   ;;  %v10957_v26 = vld [vmem:[%s13149_s8 + $0x234] ss:$8 sps:$4 sm:$0xff]  }
 0x166   : > { %8976 = vmatprep.subr.bf16.mxu1 %v10873_v35  ;;  %v10952_v25 = vld [vmem:[%s13149_s8 + $0x340] ss:$8 sps:$4 sm:$0xff]   ;;  %v10960_v27 = vld [vmem:[%s13149_s8 + $0x334] ss:$8 sps:$4 sm:$0xff]   ;;  %v10955_v29 = vld [vmem:[%s13149_s8 + $0x230] ss:$8 sps:$4 sm:$0xff]  }
 0x167   : > { %v11012_v28 = vld [vmem:[%s14204_s0 + $0x12c] ss:$144 sps:$4 sm:$0xff]   ;;  %v10958_v30 = vld [vmem:[%s13149_s8 + $0x330] ss:$8 sps:$4 sm:$0xff]   ;;  %v10961_v34 = vld [vmem:[%s13149_s8 + $0x220] ss:$8 sps:$4 sm:$0xff]  }
 0x168   : > { %8924 = vmatpush1.bf16.msra.mxu0 %v10875_v36  ;;  %v10963_v31 = vld [vmem:[%s13149_s8 + $0x224] ss:$8 sps:$4 sm:$0xff]   ;;  %v11020_v33 = vld [vmem:[%s14204_s0 + $0x128] ss:$144 sps:$4 sm:$0xff]   ;;  %v10969_v36 = vld [vmem:[%s13149_s8 + $0x214] ss:$8 sps:$4 sm:$0xff]  }
 0x169   : > { %8977 = vmatpush1.bf16.msra.mxu1 %v10876_v37  ;;  %8925 = vmatprep.subr.bf16.mxu0 %v10877_v38  ;;  %v10966_v32 = vld [vmem:[%s13149_s8 + $0x324] ss:$8 sps:$4 sm:$0xff]   ;;  %v10964_v35 = vld [vmem:[%s13149_s8 + $0x320] ss:$8 sps:$4 sm:$0xff]   ;;  %v10972_v37 = vld [vmem:[%s13149_s8 + $0x314] ss:$8 sps:$4 sm:$0xff]  }
 0x16a   : > { %8978 = vmatprep.subr.bf16.mxu1 %v10879_v39  ;;  %v10967_v38 = vld [vmem:[%s13149_s8 + $0x210] ss:$8 sps:$4 sm:$0xff]   ;;  %s14135_s13 = scalar_lea.vmem [#allocation3], %s10112_s12  ;;  %s10770_s21 = sshll.u32 %s11869_s18, 6 }
 0x16b   : > { %v10970_v39 = vld [vmem:[%s13149_s8 + $0x310] ss:$8 sps:$4 sm:$0xff]   ;;  %s4992_s22 = scalar_lea.vmem [#allocation4], %s10113_s14  ;;  %s14162_s5 = scalar_lea.hbm %s14208_s4, %s10770_s21 }
 0x16c   : > { %8926 = vmatpush2.bf16.msra.mxu0 %v10881_v40  ;;  %v10975_v40 = vld [vmem:[%s13149_s8 + $0x204] ss:$8 sps:$4 sm:$0xff]   ;;  %s9974_s24 = sshll.u32 %s4992_s22, 4  ;;  %s9960_s6 = scalar_lea.sflag [#allocation5], %s13140_s25  ;;  %s9975_s24 = int_to_ptr.vmem [resolvable:$true] %s9974_s24 }
 0x16d   : > { %8979 = vmatpush2.bf16.msra.mxu1 %v10882_v41  ;;  %8927 = vmatprep.subr.bf16.mxu0 %v10883_v42  ;;  %v11035_v41 = vld [vmem:[%s14204_s0 + $0x14] ss:$144 sps:$4 sm:$0xff]   ;;  %s11801_s7 = scalar_lea.vmem %s9975_s24, 64  ;;  %s11880_s18 = smov [#allocation4]  }
 0x16e   : > { %8980 = vmatprep.subr.bf16.mxu1 %v10885_v43  ;;  %v10978_v42 = vld [vmem:[%s13149_s8 + $0x304] ss:$8 sps:$4 sm:$0xff]   ;;  %p11802_p1 = scmp.ne.s32.totalorder %s9975_s24, %s11801_s7 }
 0x16f   : > { %v11038_v43 = vld [vmem:[%s14204_s0 + $0x1c] ss:$144 sps:$4 sm:$0xff]  }
 0x170   : > { %8928 = vmatpush2.bf16.msra.mxu0 %v10887_v44  ;;  %v10973_v44 = vld [vmem:[%s13149_s8 + $0x200] ss:$8 sps:$4 sm:$0xff]   ;;  %p11803_p2 = pnand %p11802_p1, %p11949_p5 }
 0x171   : > { %8981 = vmatpush2.bf16.msra.mxu1 %v10888_v45  ;;  %8929 = vmatprep.subr.bf16.mxu0 %v10889_v46  ;;  %v10976_v45 = vld [vmem:[%s13149_s8 + $0x300] ss:$8 sps:$4 sm:$0xff]   ;;  %v10981_v46 = vld [vmem:[%s13149_s8 + $0x2f4] ss:$8 sps:$4 sm:$0xff]  }
 0x172   : > { %8982 = vmatprep.subr.bf16.mxu1 %v10891_v47  ;;  %v10984_v47 = vld [vmem:[%s13149_s8 + $0x3f4] ss:$8 sps:$4 sm:$0xff]   ;;  %p11804_p3 = pneg %p11803_p2 }
 0x174   : > { %8930 = vmatpush2.bf16.msra.mxu0 %v10893_v48  ;;  %v10979_v48 = vld [vmem:[%s13149_s8 + $0x2f0] ss:$8 sps:$4 sm:$0xff]  }
 0x175   : > { %8983 = vmatpush2.bf16.msra.mxu1 %v10894_v49  ;;  %8931 = vmatprep.subr.bf16.mxu0 %v10895_v50  ;;  %v10982_v49 = vld [vmem:[%s13149_s8 + $0x3f0] ss:$8 sps:$4 sm:$0xff]   ;;  %v10987_v50 = vld [vmem:[%s13149_s8 + $0x2e4] ss:$8 sps:$4 sm:$0xff]  }
 0x176   : > { %8984 = vmatprep.subr.bf16.mxu1 %v10897_v51  ;;  %v10990_v51 = vld [vmem:[%s13149_s8 + $0x3e4] ss:$8 sps:$4 sm:$0xff]  }
 0x178   : > { %8932 = vmatpush2.bf16.msra.mxu0 %v10899_v52  ;;  %v10985_v52 = vld [vmem:[%s13149_s8 + $0x2e0] ss:$8 sps:$4 sm:$0xff]  }
 0x179   : > { %8985 = vmatpush2.bf16.msra.mxu1 %v10900_v53  ;;  %8933 = vmatprep.subr.bf16.mxu0 %v10901_v54  ;;  %v10988_v53 = vld [vmem:[%s13149_s8 + $0x3e0] ss:$8 sps:$4 sm:$0xff]   ;;  %v10993_v54 = vld [vmem:[%s13149_s8 + $0x2d4] ss:$8 sps:$4 sm:$0xff]  }
 0x17a   : > { %8986 = vmatprep.subr.bf16.mxu1 %v10903_v55  ;;  %v10996_v55 = vld [vmem:[%s13149_s8 + $0x3d4] ss:$8 sps:$4 sm:$0xff]  }
 0x17c   : > { %8934 = vmatpush2.bf16.msra.mxu0 %v10905_v56  ;;  %v10991_v56 = vld [vmem:[%s13149_s8 + $0x2d0] ss:$8 sps:$4 sm:$0xff]  }
 0x17d   : > { %8987 = vmatpush2.bf16.msra.mxu1 %v10906_v57  ;;  %8935 = vmatprep.subr.bf16.mxu0 %v10907_v58  ;;  %v10994_v57 = vld [vmem:[%s13149_s8 + $0x3d0] ss:$8 sps:$4 sm:$0xff]   ;;  %v10999_v58 = vld [vmem:[%s13149_s8 + $0x2c4] ss:$8 sps:$4 sm:$0xff]  }
 0x17e   : > { %8988 = vmatprep.subr.bf16.mxu1 %v10909_v59  ;;  %v11002_v59 = vld [vmem:[%s13149_s8 + $0x3c4] ss:$8 sps:$4 sm:$0xff]  }
 0x180   : > { %8936 = vmatpush2.bf16.msra.mxu0 %v10911_v60  ;;  %v10997_v60 = vld [vmem:[%s13149_s8 + $0x2c0] ss:$8 sps:$4 sm:$0xff]  }
 0x181   : > { %8989 = vmatpush2.bf16.msra.mxu1 %v10912_v61  ;;  %8937 = vmatprep.subr.bf16.mxu0 %v10913_v62  ;;  %v11000_v61 = vld [vmem:[%s13149_s8 + $0x3c0] ss:$8 sps:$4 sm:$0xff]   ;;  %v11005_v62 = vld [vmem:[%s13149_s8 + $0x2b4] ss:$8 sps:$4 sm:$0xff]  }
 0x182   : > { %8990 = vmatprep.subr.bf16.mxu1 %v10915_v63  ;;  %v11008_v63 = vld [vmem:[%s13149_s8 + $0x3b4] ss:$8 sps:$4 sm:$0xff]  }
 0x184   : > { %8938 = vmatpush2.bf16.msra.mxu0 %v10917_v0  ;;  %v11003_v0 = vld [vmem:[%s13149_s8 + $0x2b0] ss:$8 sps:$4 sm:$0xff]  }
 0x185   : > { %8991 = vmatpush2.bf16.msra.mxu1 %v10918_v1  ;;  %8939 = vmatprep.subr.bf16.mxu0 %v10919_v2  ;;  %v11006_v1 = vld [vmem:[%s13149_s8 + $0x3b0] ss:$8 sps:$4 sm:$0xff]   ;;  %v11016_v2 = vld [vmem:[%s13149_s8 + $0x2a4] ss:$8 sps:$4 sm:$0xff]  }
 0x186   : > { %8992 = vmatprep.subr.bf16.mxu1 %v10921_v3  ;;  %v11019_v3 = vld [vmem:[%s13149_s8 + $0x3a4] ss:$8 sps:$4 sm:$0xff]  }
 0x188   : > { %8940 = vmatpush2.bf16.msra.mxu0 %v10923_v4  ;;  %v11014_v4 = vld [vmem:[%s13149_s8 + $0x2a0] ss:$8 sps:$4 sm:$0xff]  }
 0x189   : > { %8993 = vmatpush2.bf16.msra.mxu1 %v10924_v5  ;;  %9015 = vmatprep.subr.bf16.mxu0 %v10933_v6  ;;  %v11017_v5 = vld [vmem:[%s13149_s8 + $0x3a0] ss:$8 sps:$4 sm:$0xff]   ;;  %v11023_v6 = vld [vmem:[%s13149_s8 + $0x294] ss:$8 sps:$4 sm:$0xff]  }
 0x18a   : > { %9068 = vmatprep.subr.bf16.mxu1 %v10936_v7  ;;  %v11026_v7 = vld [vmem:[%s13149_s8 + $0x394] ss:$8 sps:$4 sm:$0xff]  }
 0x18b   : > { %8942 = vmatmul.mubr.bf16.vlgmr.msra.gmra.mxu0 %v10925_v8  ;;  %v11021_v8 = vld [vmem:[%s13149_s8 + $0x290] ss:$8 sps:$4 sm:$0xff]  }
 0x18c   : > { %8995 = vmatmul.mubr.bf16.vlgmr.msra.gmra.mxu1 %v10928_v9  ;;  %9016 = vmatpush1.bf16.msra.mxu0 %v10931_v10  ;;  %v11024_v9 = vld [vmem:[%s13149_s8 + $0x390] ss:$8 sps:$4 sm:$0xff]   ;;  %v11029_v10 = vld [vmem:[%s13149_s8 + $0x284] ss:$8 sps:$4 sm:$0xff]  }
 0x18d   : > { %9069 = vmatpush1.bf16.msra.mxu1 %v10934_v11  ;;  %9017 = vmatprep.subr.bf16.mxu0 %v10939_v12  ;;  %v11032_v11 = vld [vmem:[%s13149_s8 + $0x384] ss:$8 sps:$4 sm:$0xff]   ;;  %v11027_v12 = vld [vmem:[%s13149_s8 + $0x280] ss:$8 sps:$4 sm:$0xff]  }
 0x18e   : > { %9070 = vmatprep.subr.bf16.mxu1 %v10942_v13  ;;  %8951 = vmatprep.mubr.bf16.mxu0 %v11009_v14  ;;  %v11030_v13 = vld [vmem:[%s13149_s8 + $0x380] ss:$8 sps:$4 sm:$0xff]   ;;  %v11041_v14 = vld [vmem:[%s13149_s8 + $0x474] ss:$8 sps:$4 sm:$0xff]  }
 0x18f   : > { %9004 = vmatprep.mubr.bf16.mxu1 %v11012_v28  ;;  %v11053_v28 = vld [vmem:[%s14204_s0 + $0x130] ss:$144 sps:$4 sm:$0xff]  }
 0x190   : > { %9018 = vmatpush1.bf16.msra.mxu0 %v10937_v15  ;;  %v11044_v15 = vld [vmem:[%s13149_s8 + $0x574] ss:$8 sps:$4 sm:$0xff]  }
 0x191   : > { %9071 = vmatpush1.bf16.msra.mxu1 %v10940_v16  ;;  %9019 = vmatprep.subr.bf16.mxu0 %v10945_v17  ;;  %v11033_v16 = vld [vmem:[%s14204_s0 + $0x10] ss:$144 sps:$4 sm:$0xff]   ;;  %v11036_v17 = vld [vmem:[%s14204_s0 + $0x18] ss:$144 sps:$4 sm:$0xff]  }
 0x192   : > { %9072 = vmatprep.subr.bf16.mxu1 %v10948_v18  ;;  %v11039_v18 = vld [vmem:[%s13149_s8 + $0x470] ss:$8 sps:$4 sm:$0xff]  }
 0x193   : > { %8952 = vmatmul.mubr.bf16.gmra.mxu0 %v11011_v19  ;;  %v11042_v19 = vld [vmem:[%s13149_s8 + $0x570] ss:$8 sps:$4 sm:$0xff]  }
 0x194   : > { %9020 = vmatpush1.bf16.msra.mxu0 %v10943_v20  ;;  %9005 = vmatmul.mubr.bf16.gmra.mxu1 %v11020_v33  ;;  %v11047_v20 = vld [vmem:[%s13149_s8 + $0x464] ss:$8 sps:$4 sm:$0xff]  }
 0x195   : > { %9073 = vmatpush1.bf16.msra.mxu1 %v10946_v21  ;;  %9021 = vmatprep.subr.bf16.mxu0 %v10951_v22  ;;  %v11050_v21 = vld [vmem:[%s13149_s8 + $0x564] ss:$8 sps:$4 sm:$0xff]  }
 0x196   : > { %9074 = vmatprep.subr.bf16.mxu1 %v10954_v23  ;;  %9047 = vmatprep.mubr.bf16.mxu0 %v11035_v41  ;;  %v11051_v22 = vld [vmem:[%s14204_s0 + $0x134] ss:$144 sps:$4 sm:$0xff]   ;;  %v11060_v23 = vld [vmem:[%s14204_s0 + $0x13c] ss:$144 sps:$4 sm:$0xff]   ;;  %v11072_v41 = vld [vmem:[%s13149_s8 + $0x530] ss:$8 sps:$4 sm:$0xff]  }
 0x197   : > { %9100 = vmatprep.mubr.bf16.mxu1 %v11038_v43  ;;  %v11068_v33 = vld [vmem:[%s13149_s8 + $0x544] ss:$8 sps:$4 sm:$0xff]  }
 0x198   : > { %9022 = vmatpush1.bf16.msra.mxu0 %v10949_v24  ;;  %v11045_v24 = vld [vmem:[%s13149_s8 + $0x460] ss:$8 sps:$4 sm:$0xff]   ;;  %v11080_v43 = vld [vmem:[%s13149_s8 + $0x524] ss:$8 sps:$4 sm:$0xff]  }
 0x199   : > { %9075 = vmatpush1.bf16.msra.mxu1 %v10952_v25  ;;  %9023 = vmatprep.subr.bf16.mxu0 %v10957_v26  ;;  %v11048_v25 = vld [vmem:[%s13149_s8 + $0x560] ss:$8 sps:$4 sm:$0xff]   ;;  %v11056_v26 = vld [vmem:[%s13149_s8 + $0x454] ss:$8 sps:$4 sm:$0xff]  }
 0x19a   : > { %9076 = vmatprep.subr.bf16.mxu1 %v10960_v27  ;;  %v11059_v27 = vld [vmem:[%s13149_s8 + $0x554] ss:$8 sps:$4 sm:$0xff]  }
 0x19c   : > { %9024 = vmatpush1.bf16.msra.mxu0 %v10955_v29  ;;  %v11054_v29 = vld [vmem:[%s13149_s8 + $0x450] ss:$8 sps:$4 sm:$0xff]  }
 0x19d   : > { %9077 = vmatpush1.bf16.msra.mxu1 %v10958_v30  ;;  %9025 = vmatprep.subr.bf16.mxu0 %v10963_v31  ;;  %v11057_v30 = vld [vmem:[%s13149_s8 + $0x550] ss:$8 sps:$4 sm:$0xff]  }
 0x19e   : > { %9078 = vmatprep.subr.bf16.mxu1 %v10966_v32  ;;  %v11062_v31 = vld [vmem:[%s14204_s0 + $0x138] ss:$144 sps:$4 sm:$0xff]   ;;  %v11065_v32 = vld [vmem:[%s13149_s8 + $0x444] ss:$8 sps:$4 sm:$0xff]  }
 0x1a0   : > { %9026 = vmatpush1.bf16.msra.mxu0 %v10961_v34  ;;  %v11143_v34 = vld [vmem:[%s14204_s0 + $0x24] ss:$144 sps:$4 sm:$0xff]  }
 0x1a1   : > { %9079 = vmatpush1.bf16.msra.mxu1 %v10964_v35  ;;  %9027 = vmatprep.subr.bf16.mxu0 %v10969_v36  ;;  %v11146_v35 = vld [vmem:[%s14204_s0 + $0x2c] ss:$144 sps:$4 sm:$0xff]   ;;  %v11063_v36 = vld [vmem:[%s13149_s8 + $0x440] ss:$8 sps:$4 sm:$0xff]  }
 0x1a2   : > { %9080 = vmatprep.subr.bf16.mxu1 %v10972_v37  ;;  %v11066_v37 = vld [vmem:[%s13149_s8 + $0x540] ss:$8 sps:$4 sm:$0xff]  }
 0x1a4   : > { %9028 = vmatpush1.bf16.msra.mxu0 %v10967_v38  ;;  %v11071_v38 = vld [vmem:[%s13149_s8 + $0x434] ss:$8 sps:$4 sm:$0xff]  }
 0x1a5   : > { %9081 = vmatpush1.bf16.msra.mxu1 %v10970_v39  ;;  %9029 = vmatprep.subr.bf16.mxu0 %v10975_v40  ;;  %v11074_v39 = vld [vmem:[%s13149_s8 + $0x534] ss:$8 sps:$4 sm:$0xff]   ;;  %v11069_v40 = vld [vmem:[%s13149_s8 + $0x430] ss:$8 sps:$4 sm:$0xff]  }
 0x1a6   : > { %9082 = vmatprep.subr.bf16.mxu1 %v10978_v42  ;;  %v11077_v42 = vld [vmem:[%s13149_s8 + $0x424] ss:$8 sps:$4 sm:$0xff]  }
 0x1a8   : > { %9030 = vmatpush1.bf16.msra.mxu0 %v10973_v44  ;;  %v11075_v44 = vld [vmem:[%s13149_s8 + $0x420] ss:$8 sps:$4 sm:$0xff]  }
 0x1a9   : > { %9083 = vmatpush1.bf16.msra.mxu1 %v10976_v45  ;;  %9031 = vmatprep.subr.bf16.mxu0 %v10981_v46  ;;  %v11078_v45 = vld [vmem:[%s13149_s8 + $0x520] ss:$8 sps:$4 sm:$0xff]   ;;  %v11083_v46 = vld [vmem:[%s13149_s8 + $0x414] ss:$8 sps:$4 sm:$0xff]  }
 0x1aa   : > { %9084 = vmatprep.subr.bf16.mxu1 %v10984_v47  ;;  %v11086_v47 = vld [vmem:[%s13149_s8 + $0x514] ss:$8 sps:$4 sm:$0xff]  }
 0x1ac   : > { %9032 = vmatpush2.bf16.msra.mxu0 %v10979_v48  ;;  %v11081_v48 = vld [vmem:[%s13149_s8 + $0x410] ss:$8 sps:$4 sm:$0xff]  }
 0x1ad   : > { %9085 = vmatpush2.bf16.msra.mxu1 %v10982_v49  ;;  %9033 = vmatprep.subr.bf16.mxu0 %v10987_v50  ;;  %v11084_v49 = vld [vmem:[%s13149_s8 + $0x510] ss:$8 sps:$4 sm:$0xff]   ;;  %v11089_v50 = vld [vmem:[%s13149_s8 + $0x404] ss:$8 sps:$4 sm:$0xff]  }
 0x1ae   : > { %9086 = vmatprep.subr.bf16.mxu1 %v10990_v51  ;;  %v11092_v51 = vld [vmem:[%s13149_s8 + $0x504] ss:$8 sps:$4 sm:$0xff]  }
 0x1b0   : > { %9034 = vmatpush2.bf16.msra.mxu0 %v10985_v52  ;;  %v11087_v52 = vld [vmem:[%s13149_s8 + $0x400] ss:$8 sps:$4 sm:$0xff]  }
 0x1b1   : > { %9087 = vmatpush2.bf16.msra.mxu1 %v10988_v53  ;;  %9035 = vmatprep.subr.bf16.mxu0 %v10993_v54  ;;  %v11090_v53 = vld [vmem:[%s13149_s8 + $0x500] ss:$8 sps:$4 sm:$0xff]   ;;  %v11095_v54 = vld [vmem:[%s13149_s8 + $0x4f4] ss:$8 sps:$4 sm:$0xff]  }
 0x1b2   : > { %9088 = vmatprep.subr.bf16.mxu1 %v10996_v55  ;;  %v11098_v55 = vld [vmem:[%s13149_s8 + $0x5f4] ss:$8 sps:$4 sm:$0xff]  }
 0x1b4   : > { %9036 = vmatpush2.bf16.msra.mxu0 %v10991_v56  ;;  %v11093_v56 = vld [vmem:[%s13149_s8 + $0x4f0] ss:$8 sps:$4 sm:$0xff]  }
 0x1b5   : > { %9089 = vmatpush2.bf16.msra.mxu1 %v10994_v57  ;;  %9037 = vmatprep.subr.bf16.mxu0 %v10999_v58  ;;  %v11096_v57 = vld [vmem:[%s13149_s8 + $0x5f0] ss:$8 sps:$4 sm:$0xff]   ;;  %v11101_v58 = vld [vmem:[%s13149_s8 + $0x4e4] ss:$8 sps:$4 sm:$0xff]  }
 0x1b6   : > { %9090 = vmatprep.subr.bf16.mxu1 %v11002_v59  ;;  %v11104_v59 = vld [vmem:[%s13149_s8 + $0x5e4] ss:$8 sps:$4 sm:$0xff]  }
 0x1b8   : > { %9038 = vmatpush2.bf16.msra.mxu0 %v10997_v60  ;;  %v11099_v60 = vld [vmem:[%s13149_s8 + $0x4e0] ss:$8 sps:$4 sm:$0xff]  }
 0x1b9   : > { %9091 = vmatpush2.bf16.msra.mxu1 %v11000_v61  ;;  %9039 = vmatprep.subr.bf16.mxu0 %v11005_v62  ;;  %v11102_v61 = vld [vmem:[%s13149_s8 + $0x5e0] ss:$8 sps:$4 sm:$0xff]   ;;  %v11107_v62 = vld [vmem:[%s13149_s8 + $0x4d4] ss:$8 sps:$4 sm:$0xff]  }
 0x1ba   : > { %9092 = vmatprep.subr.bf16.mxu1 %v11008_v63  ;;  %v11110_v63 = vld [vmem:[%s13149_s8 + $0x5d4] ss:$8 sps:$4 sm:$0xff]  }
 0x1bc   : > { %9040 = vmatpush2.bf16.msra.mxu0 %v11003_v0  ;;  %v11105_v0 = vld [vmem:[%s13149_s8 + $0x4d0] ss:$8 sps:$4 sm:$0xff]  }
 0x1bd   : > { %9093 = vmatpush2.bf16.msra.mxu1 %v11006_v1  ;;  %9041 = vmatprep.subr.bf16.mxu0 %v11016_v2  ;;  %v11108_v1 = vld [vmem:[%s13149_s8 + $0x5d0] ss:$8 sps:$4 sm:$0xff]   ;;  %v11113_v2 = vld [vmem:[%s13149_s8 + $0x4c4] ss:$8 sps:$4 sm:$0xff]  }
 0x1be   : > { %9094 = vmatprep.subr.bf16.mxu1 %v11019_v3  ;;  %v11116_v3 = vld [vmem:[%s13149_s8 + $0x5c4] ss:$8 sps:$4 sm:$0xff]  }
 0x1c0   : > { %9042 = vmatpush2.bf16.msra.mxu0 %v11014_v4  ;;  %v11111_v4 = vld [vmem:[%s13149_s8 + $0x4c0] ss:$8 sps:$4 sm:$0xff]  }
 0x1c1   : > { %9095 = vmatpush2.bf16.msra.mxu1 %v11017_v5  ;;  %9043 = vmatprep.subr.bf16.mxu0 %v11023_v6  ;;  %v11114_v5 = vld [vmem:[%s13149_s8 + $0x5c0] ss:$8 sps:$4 sm:$0xff]   ;;  %v11119_v6 = vld [vmem:[%s13149_s8 + $0x4b4] ss:$8 sps:$4 sm:$0xff]  }
 0x1c2   : > { %9096 = vmatprep.subr.bf16.mxu1 %v11026_v7  ;;  %v11122_v7 = vld [vmem:[%s13149_s8 + $0x5b4] ss:$8 sps:$4 sm:$0xff]  }
 0x1c4   : > { %9044 = vmatpush2.bf16.msra.mxu0 %v11021_v8  ;;  %v11117_v8 = vld [vmem:[%s13149_s8 + $0x4b0] ss:$8 sps:$4 sm:$0xff]  }
 0x1c5   : > { %9097 = vmatpush2.bf16.msra.mxu1 %v11024_v9  ;;  %9045 = vmatprep.subr.bf16.mxu0 %v11029_v10  ;;  %v11120_v9 = vld [vmem:[%s13149_s8 + $0x5b0] ss:$8 sps:$4 sm:$0xff]   ;;  %v11125_v10 = vld [vmem:[%s13149_s8 + $0x4a4] ss:$8 sps:$4 sm:$0xff]  }
 0x1c6   : > { %9098 = vmatprep.subr.bf16.mxu1 %v11032_v11  ;;  %v11128_v11 = vld [vmem:[%s13149_s8 + $0x5a4] ss:$8 sps:$4 sm:$0xff]  }
 0x1c8   : > { %9046 = vmatpush2.bf16.msra.mxu0 %v11027_v12  ;;  %v11123_v12 = vld [vmem:[%s13149_s8 + $0x4a0] ss:$8 sps:$4 sm:$0xff]  }
 0x1c9   : > { %9099 = vmatpush2.bf16.msra.mxu1 %v11030_v13  ;;  %9121 = vmatprep.subr.bf16.mxu0 %v11041_v14  ;;  %v11126_v13 = vld [vmem:[%s13149_s8 + $0x5a0] ss:$8 sps:$4 sm:$0xff]   ;;  %v11131_v14 = vld [vmem:[%s13149_s8 + $0x494] ss:$8 sps:$4 sm:$0xff]  }
 0x1ca   : > { %9174 = vmatprep.subr.bf16.mxu1 %v11044_v15  ;;  %v11134_v15 = vld [vmem:[%s13149_s8 + $0x594] ss:$8 sps:$4 sm:$0xff]  }
 0x1cb   : > { %9048 = vmatmul.mubr.bf16.vlgmr.msra.gmra.mxu0 %v11033_v16  ;;  %v11129_v16 = vld [vmem:[%s13149_s8 + $0x490] ss:$8 sps:$4 sm:$0xff]  }
 0x1cc   : > { %9101 = vmatmul.mubr.bf16.vlgmr.msra.gmra.mxu1 %v11036_v17  ;;  %9122 = vmatpush1.bf16.msra.mxu0 %v11039_v18  ;;  %v11132_v17 = vld [vmem:[%s13149_s8 + $0x590] ss:$8 sps:$4 sm:$0xff]   ;;  %v11137_v18 = vld [vmem:[%s13149_s8 + $0x484] ss:$8 sps:$4 sm:$0xff]  }
 0x1cd   : > { %9175 = vmatpush1.bf16.msra.mxu1 %v11042_v19  ;;  %9123 = vmatprep.subr.bf16.mxu0 %v11047_v20  ;;  %v11140_v19 = vld [vmem:[%s13149_s8 + $0x584] ss:$8 sps:$4 sm:$0xff]   ;;  %v11135_v20 = vld [vmem:[%s13149_s8 + $0x480] ss:$8 sps:$4 sm:$0xff]  }
 0x1ce   : > { %9176 = vmatprep.subr.bf16.mxu1 %v11050_v21  ;;  %9057 = vmatprep.mubr.bf16.mxu0 %v11051_v22  ;;  %v11138_v21 = vld [vmem:[%s13149_s8 + $0x580] ss:$8 sps:$4 sm:$0xff]   ;;  %v11149_v22 = vld [vmem:[%s13149_s8 + $0x674] ss:$8 sps:$4 sm:$0xff]  }
 0x1cf   : > { %9110 = vmatprep.mubr.bf16.mxu1 %v11060_v23  ;;  %v11152_v23 = vld [vmem:[%s13149_s8 + $0x774] ss:$8 sps:$4 sm:$0xff]  }
 0x1d0   : > { %9124 = vmatpush1.bf16.msra.mxu0 %v11045_v24  ;;  %v11141_v24 = vld [vmem:[%s14204_s0 + $0x20] ss:$144 sps:$4 sm:$0xff]  }
 0x1d1   : > { %9177 = vmatpush1.bf16.msra.mxu1 %v11048_v25  ;;  %9125 = vmatprep.subr.bf16.mxu0 %v11056_v26  ;;  %v11144_v25 = vld [vmem:[%s14204_s0 + $0x28] ss:$144 sps:$4 sm:$0xff]  }
 0x1d2   : > { %9178 = vmatprep.subr.bf16.mxu1 %v11059_v27  ;;  %v11147_v26 = vld [vmem:[%s13149_s8 + $0x670] ss:$8 sps:$4 sm:$0xff]  }
 0x1d3   : > { %9058 = vmatmul.mubr.bf16.gmra.mxu0 %v11053_v28  ;;  %v11150_v27 = vld [vmem:[%s13149_s8 + $0x770] ss:$8 sps:$4 sm:$0xff]   ;;  %v11155_v28 = vld [vmem:[%s13149_s8 + $0x664] ss:$8 sps:$4 sm:$0xff]  }
 0x1d4   : > { %9111 = vmatmul.mubr.bf16.gmra.mxu1 %v11062_v31  ;;  %9126 = vmatpush1.bf16.msra.mxu0 %v11054_v29  ;;  %v11158_v29 = vld [vmem:[%s13149_s8 + $0x764] ss:$8 sps:$4 sm:$0xff]  }
 0x1d5   : > { %9179 = vmatpush1.bf16.msra.mxu1 %v11057_v30  ;;  %9127 = vmatprep.subr.bf16.mxu0 %v11065_v32  ;;  %v11159_v30 = vld [vmem:[%s14204_s0 + $0x144] ss:$144 sps:$4 sm:$0xff]   ;;  %v11168_v31 = vld [vmem:[%s14204_s0 + $0x14c] ss:$144 sps:$4 sm:$0xff]   ;;  %v11153_v32 = vld [vmem:[%s13149_s8 + $0x660] ss:$8 sps:$4 sm:$0xff]  }
 0x1d6   : > { %9180 = vmatprep.subr.bf16.mxu1 %v11068_v33  ;;  %9153 = vmatprep.mubr.bf16.mxu0 %v11143_v34  ;;  %v11156_v33 = vld [vmem:[%s13149_s8 + $0x760] ss:$8 sps:$4 sm:$0xff]   ;;  %v11164_v34 = vld [vmem:[%s13149_s8 + $0x654] ss:$8 sps:$4 sm:$0xff]  }
 0x1d7   : > { %9206 = vmatprep.mubr.bf16.mxu1 %v11146_v35  ;;  %v11167_v35 = vld [vmem:[%s13149_s8 + $0x754] ss:$8 sps:$4 sm:$0xff]  }
 0x1d8   : > { %9128 = vmatpush1.bf16.msra.mxu0 %v11063_v36  ;;  %v11161_v36 = vld [vmem:[%s14204_s0 + $0x140] ss:$144 sps:$4 sm:$0xff]  }
 0x1d9   : > { %9181 = vmatpush1.bf16.msra.mxu1 %v11066_v37  ;;  %9129 = vmatprep.subr.bf16.mxu0 %v11071_v38  ;;  %v11162_v37 = vld [vmem:[%s13149_s8 + $0x650] ss:$8 sps:$4 sm:$0xff]  }
 0x1da   : > { %9182 = vmatprep.subr.bf16.mxu1 %v11074_v39  ;;  %v11170_v38 = vld [vmem:[%s14204_s0 + $0x148] ss:$144 sps:$4 sm:$0xff]  }
 0x1db   : > { %v11165_v39 = vld [vmem:[%s13149_s8 + $0x750] ss:$8 sps:$4 sm:$0xff]  }
 0x1dc   : > { %9130 = vmatpush1.bf16.msra.mxu0 %v11069_v40  ;;  %v11173_v40 = vld [vmem:[%s13149_s8 + $0x644] ss:$8 sps:$4 sm:$0xff]  }
 0x1dd   : > { %9183 = vmatpush1.bf16.msra.mxu1 %v11072_v41  ;;  %9131 = vmatprep.subr.bf16.mxu0 %v11077_v42  ;;  %v11176_v41 = vld [vmem:[%s13149_s8 + $0x744] ss:$8 sps:$4 sm:$0xff]  }
 0x1de   : > { %9184 = vmatprep.subr.bf16.mxu1 %v11080_v43  ;;  %v11251_v42 = vld [vmem:[%s14204_s0 + $0x34] ss:$144 sps:$4 sm:$0xff]   ;;  %v11254_v43 = vld [vmem:[%s14204_s0 + $0x3c] ss:$144 sps:$4 sm:$0xff]  }
 0x1e0   : > { %9132 = vmatpush1.bf16.msra.mxu0 %v11075_v44  ;;  %v11171_v44 = vld [vmem:[%s13149_s8 + $0x640] ss:$8 sps:$4 sm:$0xff]  }
 0x1e1   : > { %9185 = vmatpush1.bf16.msra.mxu1 %v11078_v45  ;;  %9133 = vmatprep.subr.bf16.mxu0 %v11083_v46  ;;  %v11174_v45 = vld [vmem:[%s13149_s8 + $0x740] ss:$8 sps:$4 sm:$0xff]   ;;  %v11179_v46 = vld [vmem:[%s13149_s8 + $0x634] ss:$8 sps:$4 sm:$0xff]  }
 0x1e2   : > { %9186 = vmatprep.subr.bf16.mxu1 %v11086_v47  ;;  %v11182_v47 = vld [vmem:[%s13149_s8 + $0x734] ss:$8 sps:$4 sm:$0xff]  }
 0x1e4   : > { %9134 = vmatpush1.bf16.msra.mxu0 %v11081_v48  ;;  %v11177_v48 = vld [vmem:[%s13149_s8 + $0x630] ss:$8 sps:$4 sm:$0xff]  }
 0x1e5   : > { %9187 = vmatpush1.bf16.msra.mxu1 %v11084_v49  ;;  %9135 = vmatprep.subr.bf16.mxu0 %v11089_v50  ;;  %v11180_v49 = vld [vmem:[%s13149_s8 + $0x730] ss:$8 sps:$4 sm:$0xff]   ;;  %v11185_v50 = vld [vmem:[%s13149_s8 + $0x624] ss:$8 sps:$4 sm:$0xff]  }
 0x1e6   : > { %9188 = vmatprep.subr.bf16.mxu1 %v11092_v51  ;;  %v11188_v51 = vld [vmem:[%s13149_s8 + $0x724] ss:$8 sps:$4 sm:$0xff]  }
 0x1e8   : > { %9136 = vmatpush1.bf16.msra.mxu0 %v11087_v52  ;;  %v11183_v52 = vld [vmem:[%s13149_s8 + $0x620] ss:$8 sps:$4 sm:$0xff]  }
 0x1e9   : > { %9189 = vmatpush1.bf16.msra.mxu1 %v11090_v53  ;;  %9137 = vmatprep.subr.bf16.mxu0 %v11095_v54  ;;  %v11186_v53 = vld [vmem:[%s13149_s8 + $0x720] ss:$8 sps:$4 sm:$0xff]   ;;  %v11191_v54 = vld [vmem:[%s13149_s8 + $0x614] ss:$8 sps:$4 sm:$0xff]  }
 0x1ea   : > { %9190 = vmatprep.subr.bf16.mxu1 %v11098_v55  ;;  %v11194_v55 = vld [vmem:[%s13149_s8 + $0x714] ss:$8 sps:$4 sm:$0xff]  }
 0x1ec   : > { %9138 = vmatpush2.bf16.msra.mxu0 %v11093_v56  ;;  %v11189_v56 = vld [vmem:[%s13149_s8 + $0x610] ss:$8 sps:$4 sm:$0xff]  }
 0x1ed   : > { %9191 = vmatpush2.bf16.msra.mxu1 %v11096_v57  ;;  %9139 = vmatprep.subr.bf16.mxu0 %v11101_v58  ;;  %v11192_v57 = vld [vmem:[%s13149_s8 + $0x710] ss:$8 sps:$4 sm:$0xff]   ;;  %v11197_v58 = vld [vmem:[%s13149_s8 + $0x604] ss:$8 sps:$4 sm:$0xff]  }
 0x1ee   : > { %9192 = vmatprep.subr.bf16.mxu1 %v11104_v59  ;;  %v11200_v59 = vld [vmem:[%s13149_s8 + $0x704] ss:$8 sps:$4 sm:$0xff]  }
 0x1f0   : > { %9140 = vmatpush2.bf16.msra.mxu0 %v11099_v60  ;;  %v11195_v60 = vld [vmem:[%s13149_s8 + $0x600] ss:$8 sps:$4 sm:$0xff]  }
 0x1f1   : > { %9193 = vmatpush2.bf16.msra.mxu1 %v11102_v61  ;;  %9141 = vmatprep.subr.bf16.mxu0 %v11107_v62  ;;  %v11198_v61 = vld [vmem:[%s13149_s8 + $0x700] ss:$8 sps:$4 sm:$0xff]   ;;  %v11203_v62 = vld [vmem:[%s13149_s8 + $0x6f4] ss:$8 sps:$4 sm:$0xff]  }
 0x1f2   : > { %9194 = vmatprep.subr.bf16.mxu1 %v11110_v63  ;;  %v11206_v63 = vld [vmem:[%s13149_s8 + $0x7f4] ss:$8 sps:$4 sm:$0xff]  }
 0x1f4   : > { %9142 = vmatpush2.bf16.msra.mxu0 %v11105_v0  ;;  %v11201_v0 = vld [vmem:[%s13149_s8 + $0x6f0] ss:$8 sps:$4 sm:$0xff]  }
 0x1f5   : > { %9195 = vmatpush2.bf16.msra.mxu1 %v11108_v1  ;;  %9143 = vmatprep.subr.bf16.mxu0 %v11113_v2  ;;  %v11204_v1 = vld [vmem:[%s13149_s8 + $0x7f0] ss:$8 sps:$4 sm:$0xff]   ;;  %v11209_v2 = vld [vmem:[%s13149_s8 + $0x6e4] ss:$8 sps:$4 sm:$0xff]  }
 0x1f6   : > { %9196 = vmatprep.subr.bf16.mxu1 %v11116_v3  ;;  %v11212_v3 = vld [vmem:[%s13149_s8 + $0x7e4] ss:$8 sps:$4 sm:$0xff]  }
 0x1f8   : > { %9144 = vmatpush2.bf16.msra.mxu0 %v11111_v4  ;;  %v11207_v4 = vld [vmem:[%s13149_s8 + $0x6e0] ss:$8 sps:$4 sm:$0xff]  }
 0x1f9   : > { %9197 = vmatpush2.bf16.msra.mxu1 %v11114_v5  ;;  %9145 = vmatprep.subr.bf16.mxu0 %v11119_v6  ;;  %v11210_v5 = vld [vmem:[%s13149_s8 + $0x7e0] ss:$8 sps:$4 sm:$0xff]   ;;  %v11215_v6 = vld [vmem:[%s13149_s8 + $0x6d4] ss:$8 sps:$4 sm:$0xff]  }
 0x1fa   : > { %9198 = vmatprep.subr.bf16.mxu1 %v11122_v7  ;;  %v11218_v7 = vld [vmem:[%s13149_s8 + $0x7d4] ss:$8 sps:$4 sm:$0xff]  }
 0x1fc   : > { %9146 = vmatpush2.bf16.msra.mxu0 %v11117_v8  ;;  %v11213_v8 = vld [vmem:[%s13149_s8 + $0x6d0] ss:$8 sps:$4 sm:$0xff]  }
 0x1fd   : > { %9199 = vmatpush2.bf16.msra.mxu1 %v11120_v9  ;;  %9147 = vmatprep.subr.bf16.mxu0 %v11125_v10  ;;  %v11216_v9 = vld [vmem:[%s13149_s8 + $0x7d0] ss:$8 sps:$4 sm:$0xff]   ;;  %v11221_v10 = vld [vmem:[%s13149_s8 + $0x6c4] ss:$8 sps:$4 sm:$0xff]  }
 0x1fe   : > { %9200 = vmatprep.subr.bf16.mxu1 %v11128_v11  ;;  %v11224_v11 = vld [vmem:[%s13149_s8 + $0x7c4] ss:$8 sps:$4 sm:$0xff]  }
 0x200   : > { %9148 = vmatpush2.bf16.msra.mxu0 %v11123_v12  ;;  %v11219_v12 = vld [vmem:[%s13149_s8 + $0x6c0] ss:$8 sps:$4 sm:$0xff]  }
 0x201   : > { %9201 = vmatpush2.bf16.msra.mxu1 %v11126_v13  ;;  %9149 = vmatprep.subr.bf16.mxu0 %v11131_v14  ;;  %v11222_v13 = vld [vmem:[%s13149_s8 + $0x7c0] ss:$8 sps:$4 sm:$0xff]   ;;  %v11227_v14 = vld [vmem:[%s13149_s8 + $0x6b4] ss:$8 sps:$4 sm:$0xff]  }
 0x202   : > { %9202 = vmatprep.subr.bf16.mxu1 %v11134_v15  ;;  %v11230_v15 = vld [vmem:[%s13149_s8 + $0x7b4] ss:$8 sps:$4 sm:$0xff]  }
 0x204   : > { %9150 = vmatpush2.bf16.msra.mxu0 %v11129_v16  ;;  %v11225_v16 = vld [vmem:[%s13149_s8 + $0x6b0] ss:$8 sps:$4 sm:$0xff]  }
 0x205   : > { %9203 = vmatpush2.bf16.msra.mxu1 %v11132_v17  ;;  %9151 = vmatprep.subr.bf16.mxu0 %v11137_v18  ;;  %v11228_v17 = vld [vmem:[%s13149_s8 + $0x7b0] ss:$8 sps:$4 sm:$0xff]   ;;  %v11233_v18 = vld [vmem:[%s13149_s8 + $0x6a4] ss:$8 sps:$4 sm:$0xff]  }
 0x206   : > { %9204 = vmatprep.subr.bf16.mxu1 %v11140_v19  ;;  %v11236_v19 = vld [vmem:[%s13149_s8 + $0x7a4] ss:$8 sps:$4 sm:$0xff]  }
 0x208   : > { %9152 = vmatpush2.bf16.msra.mxu0 %v11135_v20  ;;  %v11231_v20 = vld [vmem:[%s13149_s8 + $0x6a0] ss:$8 sps:$4 sm:$0xff]  }
 0x209   : > { %9205 = vmatpush2.bf16.msra.mxu1 %v11138_v21  ;;  %9227 = vmatprep.subr.bf16.mxu0 %v11149_v22  ;;  %v11234_v21 = vld [vmem:[%s13149_s8 + $0x7a0] ss:$8 sps:$4 sm:$0xff]   ;;  %v5659_v22 = vlaneseq }
 0x20a   : > { %9280 = vmatprep.subr.bf16.mxu1 %v11152_v23  ;;  %v11239_v23 = vld [vmem:[%s13149_s8 + $0x694] ss:$8 sps:$4 sm:$0xff]  }
 0x20b   : > { %9154 = vmatmul.mubr.bf16.vlgmr.msra.gmra.mxu0 %v11141_v24  ;;  %v11242_v24 = vld [vmem:[%s13149_s8 + $0x794] ss:$8 sps:$4 sm:$0xff]  }
 0x20c   : > { %9207 = vmatmul.mubr.bf16.vlgmr.msra.gmra.mxu1 %v11144_v25  ;;  %9228 = vmatpush1.bf16.msra.mxu0 %v11147_v26  ;;  %v11237_v25 = vld [vmem:[%s13149_s8 + $0x690] ss:$8 sps:$4 sm:$0xff]  }
 0x20d   : > { %9281 = vmatpush1.bf16.msra.mxu1 %v11150_v27  ;;  %9229 = vmatprep.subr.bf16.mxu0 %v11155_v28  ;;  %v11240_v26 = vld [vmem:[%s13149_s8 + $0x790] ss:$8 sps:$4 sm:$0xff]   ;;  %v13476_v27 = vshrl.u32 %v5659_v22, 7  ;;  %v11245_v28 = vld [vmem:[%s13149_s8 + $0x684] ss:$8 sps:$4 sm:$0xff]  }
 0x20e   : > { %9282 = vmatprep.subr.bf16.mxu1 %v11158_v29  ;;  %9163 = vmatprep.mubr.bf16.mxu0 %v11159_v30  ;;  %v11248_v29 = vld [vmem:[%s13149_s8 + $0x784] ss:$8 sps:$4 sm:$0xff]   ;;  %v11243_v30 = vld [vmem:[%s13149_s8 + $0x680] ss:$8 sps:$4 sm:$0xff]  }
 0x20f   : > { %9216 = vmatprep.mubr.bf16.mxu1 %v11168_v31  ;;  %14213 = vst [vmem:[#allocation7_spill] sm:$0xff] %v13476_v27  ;;  %v11246_v31 = vld [vmem:[%s13149_s8 + $0x780] ss:$8 sps:$4 sm:$0xff]   ;;  %v11296_v22 = vld [vmem:[%s13149_s8 + $0x924] ss:$8 sps:$4 sm:$0xff]  }
 0x210   : > { %9230 = vmatpush1.bf16.msra.mxu0 %v11153_v32  ;;  %v5657_v32 = vld [vmem:[%s5004_s27] sm:$0x3] }
 0x211   : > { %9283 = vmatpush1.bf16.msra.mxu1 %v11156_v33  ;;  %9231 = vmatprep.subr.bf16.mxu0 %v11164_v34  ;;  %v5661_v33 = vsub.s32 0, %v13476_v27  ;;  %v11257_v34 = vld [vmem:[%s13149_s8 + $0x874] ss:$8 sps:$4 sm:$0xff]  }
 0x212   : > { %9284 = vmatprep.subr.bf16.mxu1 %v11167_v35  ;;  %v11260_v35 = vld [vmem:[%s13149_s8 + $0x974] ss:$8 sps:$4 sm:$0xff]  }
 0x213   : > { %9164 = vmatmul.mubr.bf16.gmra.mxu0 %v11161_v36  ;;  %v11249_v36 = vld [vmem:[%s14204_s0 + $0x30] ss:$144 sps:$4 sm:$0xff]  }
 0x214   : > { %9217 = vmatmul.mubr.bf16.gmra.mxu1 %v11170_v38  ;;  %9232 = vmatpush1.bf16.msra.mxu0 %v11162_v37  ;;  %v11252_v37 = vld [vmem:[%s14204_s0 + $0x38] ss:$144 sps:$4 sm:$0xff]   ;;  %v5665_v38 = vsub.s32 1, %v13476_v27 }
 0x215   : > { %9285 = vmatpush1.bf16.msra.mxu1 %v11165_v39  ;;  %9233 = vmatprep.subr.bf16.mxu0 %v11173_v40  ;;  %v11255_v39 = vld [vmem:[%s13149_s8 + $0x870] ss:$8 sps:$4 sm:$0xff]   ;;  %v13496_v40 = vrot.slane %v5657_v32, %v5661_v33 }
 0x216   : > { %9286 = vmatprep.subr.bf16.mxu1 %v11176_v41  ;;  %9259 = vmatprep.mubr.bf16.mxu0 %v11251_v42  ;;  %v11258_v41 = vld [vmem:[%s13149_s8 + $0x970] ss:$8 sps:$4 sm:$0xff]   ;;  %v11263_v42 = vld [vmem:[%s13149_s8 + $0x864] ss:$8 sps:$4 sm:$0xff]  }
 0x217   : > { %9312 = vmatprep.mubr.bf16.mxu1 %v11254_v43  ;;  %v11266_v43 = vld [vmem:[%s13149_s8 + $0x964] ss:$8 sps:$4 sm:$0xff]  }
 0x218   : > { %9234 = vmatpush1.bf16.msra.mxu0 %v11171_v44  ;;  %v13501_v44 = vrot.slane %v5657_v32, %v5665_v38  ;;  %v11302_v32 = vld [vmem:[%s13149_s8 + $0x914] ss:$8 sps:$4 sm:$0xff]   ;;  %v11300_v38 = vld [vmem:[%s13149_s8 + $0x910] ss:$8 sps:$4 sm:$0xff]  }
 0x219   : > { %9287 = vmatpush1.bf16.msra.mxu1 %v11174_v45  ;;  %9235 = vmatprep.subr.bf16.mxu0 %v11179_v46  ;;  %v11267_v45 = vld [vmem:[%s14204_s0 + $0x154] ss:$144 sps:$4 sm:$0xff]   ;;  %v11276_v46 = vld [vmem:[%s14204_s0 + $0x15c] ss:$144 sps:$4 sm:$0xff]  }
 0x21a   : > { %9288 = vmatprep.subr.bf16.mxu1 %v11182_v47 }
 0x21c   : > { %9236 = vmatpush1.bf16.msra.mxu0 %v11177_v48 }
 0x21d   : > { %9289 = vmatpush1.bf16.msra.mxu1 %v11180_v49  ;;  %9237 = vmatprep.subr.bf16.mxu0 %v11185_v50  ;;  %v11261_v49 = vld [vmem:[%s13149_s8 + $0x860] ss:$8 sps:$4 sm:$0xff]  }
 0x21e   : > { %9290 = vmatprep.subr.bf16.mxu1 %v11188_v51  ;;  %v11264_v51 = vld [vmem:[%s13149_s8 + $0x960] ss:$8 sps:$4 sm:$0xff]  }
 0x220   : > { %9238 = vmatpush1.bf16.msra.mxu0 %v11183_v52 }
 0x221   : > { %9291 = vmatpush1.bf16.msra.mxu1 %v11186_v53  ;;  %9239 = vmatprep.subr.bf16.mxu0 %v11191_v54  ;;  %v11272_v54 = vld [vmem:[%s13149_s8 + $0x854] ss:$8 sps:$4 sm:$0xff]  }
 0x222   : > { %9292 = vmatprep.subr.bf16.mxu1 %v11194_v55  ;;  %v11275_v55 = vld [vmem:[%s13149_s8 + $0x954] ss:$8 sps:$4 sm:$0xff]  }
 0x224   : > { %9240 = vmatpush1.bf16.msra.mxu0 %v11189_v56 }
 0x225   : > { %9293 = vmatpush1.bf16.msra.mxu1 %v11192_v57  ;;  %9241 = vmatprep.subr.bf16.mxu0 %v11197_v58  ;;  %v11269_v58 = vld [vmem:[%s14204_s0 + $0x150] ss:$144 sps:$4 sm:$0xff]  }
 0x226   : > { %9294 = vmatprep.subr.bf16.mxu1 %v11200_v59  ;;  %v11270_v59 = vld [vmem:[%s13149_s8 + $0x850] ss:$8 sps:$4 sm:$0xff]  }
 0x228   : > { %9242 = vmatpush1.bf16.msra.mxu0 %v11195_v60 }
 0x229   : > { %9295 = vmatpush1.bf16.msra.mxu1 %v11198_v61  ;;  %9243 = vmatprep.subr.bf16.mxu0 %v11203_v62  ;;  %v11278_v62 = vld [vmem:[%s14204_s0 + $0x158] ss:$144 sps:$4 sm:$0xff]  }
 0x22a   : > { %9296 = vmatprep.subr.bf16.mxu1 %v11206_v63 }
 0x22c   : > { %9244 = vmatpush2.bf16.msra.mxu0 %v11201_v0 }
 0x22d   : > { %9297 = vmatpush2.bf16.msra.mxu1 %v11204_v1  ;;  %9245 = vmatprep.subr.bf16.mxu0 %v11209_v2  ;;  %v11273_v1 = vld [vmem:[%s13149_s8 + $0x950] ss:$8 sps:$4 sm:$0xff]  }
 0x22e   : > { %9298 = vmatprep.subr.bf16.mxu1 %v11212_v3  ;;  %v11281_v3 = vld [vmem:[%s13149_s8 + $0x844] ss:$8 sps:$4 sm:$0xff]  }
 0x230   : > { %9246 = vmatpush2.bf16.msra.mxu0 %v11207_v4  ;;  %v11284_v4 = vld [vmem:[%s13149_s8 + $0x944] ss:$8 sps:$4 sm:$0xff]  }
 0x231   : > { %9299 = vmatpush2.bf16.msra.mxu1 %v11210_v5  ;;  %9247 = vmatprep.subr.bf16.mxu0 %v11215_v6 }
 0x232   : > { %9300 = vmatprep.subr.bf16.mxu1 %v11218_v7  ;;  %v11359_v7 = vld [vmem:[%s14204_s0 + $0x44] ss:$144 sps:$4 sm:$0xff]  }
 0x234   : > { %9248 = vmatpush2.bf16.msra.mxu0 %v11213_v8  ;;  %v11362_v8 = vld [vmem:[%s14204_s0 + $0x4c] ss:$144 sps:$4 sm:$0xff]  }
 0x235   : > { %9301 = vmatpush2.bf16.msra.mxu1 %v11216_v9  ;;  %9249 = vmatprep.subr.bf16.mxu0 %v11221_v10  ;;  %v11279_v10 = vld [vmem:[%s13149_s8 + $0x840] ss:$8 sps:$4 sm:$0xff]  }
 0x236   : > { %9302 = vmatprep.subr.bf16.mxu1 %v11224_v11 }
 0x238   : > { %9250 = vmatpush2.bf16.msra.mxu0 %v11219_v12 }
 0x239   : > { %9303 = vmatpush2.bf16.msra.mxu1 %v11222_v13  ;;  %9251 = vmatprep.subr.bf16.mxu0 %v11227_v14  ;;  %v11282_v13 = vld [vmem:[%s13149_s8 + $0x940] ss:$8 sps:$4 sm:$0xff]   ;;  %v11287_v14 = vld [vmem:[%s13149_s8 + $0x834] ss:$8 sps:$4 sm:$0xff]  }
 0x23a   : > { %9304 = vmatprep.subr.bf16.mxu1 %v11230_v15  ;;  %v11290_v15 = vld [vmem:[%s13149_s8 + $0x934] ss:$8 sps:$4 sm:$0xff]  }
 0x23c   : > { %9252 = vmatpush2.bf16.msra.mxu0 %v11225_v16 }
 0x23d   : > { %9305 = vmatpush2.bf16.msra.mxu1 %v11228_v17  ;;  %9253 = vmatprep.subr.bf16.mxu0 %v11233_v18  ;;  %v11285_v17 = vld [vmem:[%s13149_s8 + $0x830] ss:$8 sps:$4 sm:$0xff]  }
 0x23e   : > { %9306 = vmatprep.subr.bf16.mxu1 %v11236_v19  ;;  %v11288_v19 = vld [vmem:[%s13149_s8 + $0x930] ss:$8 sps:$4 sm:$0xff]  }
 0x240   : > { %9254 = vmatpush2.bf16.msra.mxu0 %v11231_v20 }
 0x241   : > { %9307 = vmatpush2.bf16.msra.mxu1 %v11234_v21  ;;  %9255 = vmatprep.subr.bf16.mxu0 %v11239_v23  ;;  %v11293_v21 = vld [vmem:[%s13149_s8 + $0x824] ss:$8 sps:$4 sm:$0xff]  }
 0x242   : > { %9308 = vmatprep.subr.bf16.mxu1 %v11242_v24  ;;  %v11291_v24 = vld [vmem:[%s13149_s8 + $0x820] ss:$8 sps:$4 sm:$0xff]  }
 0x244   : > { %9256 = vmatpush2.bf16.msra.mxu0 %v11237_v25 }
 0x245   : > { %9309 = vmatpush2.bf16.msra.mxu1 %v11240_v26  ;;  %9257 = vmatprep.subr.bf16.mxu0 %v11245_v28  ;;  %v11294_v28 = vld [vmem:[%s13149_s8 + $0x920] ss:$8 sps:$4 sm:$0xff]  }
 0x246   : > { %9310 = vmatprep.subr.bf16.mxu1 %v11248_v29 }
 0x248   : > { %9258 = vmatpush2.bf16.msra.mxu0 %v11243_v30 }
 0x249   : > { %9311 = vmatpush2.bf16.msra.mxu1 %v11246_v31  ;;  %9333 = vmatprep.subr.bf16.mxu0 %v11257_v34  ;;  %v11299_v31 = vld [vmem:[%s13149_s8 + $0x814] ss:$8 sps:$4 sm:$0xff]  }
 0x24a   : > { %9386 = vmatprep.subr.bf16.mxu1 %v11260_v35 }
 0x24b   : > { %v8943_v47 = vpop.f32.mrf.mxu0  ;;  %9260 = vmatmul.mubr.bf16.vlgmr.msra.gmra.mxu0 %v11249_v36  ;;  %v11297_v36 = vld [vmem:[%s13149_s8 + $0x810] ss:$8 sps:$4 sm:$0xff]  }
 0x24c   : > { %v8996_v48 = vpop.f32.mrf.mxu1  ;;  %9313 = vmatmul.mubr.bf16.vlgmr.msra.gmra.mxu1 %v11252_v37  ;;  %v8944_v50 = vadd.f32 %v8943_v47, %v13496_v40  ;;  %9334 = vmatpush1.bf16.msra.mxu0 %v11255_v39  ;;  %v11314_v47 = vld [vmem:[%s13149_s8 + $0x9f4] ss:$8 sps:$4 sm:$0xff]  }
 0x24d   : > { %9387 = vmatpush1.bf16.msra.mxu1 %v11258_v41  ;;  %v8945_v52 = vpop.f32.mrf.mxu0  ;;  %9335 = vmatprep.subr.bf16.mxu0 %v11263_v42  ;;  %v11308_v41 = vld [vmem:[%s13149_s8 + $0x904] ss:$8 sps:$4 sm:$0xff]  }
 0x24e   : > { %v8998_v53 = vpop.f32.mrf.mxu1  ;;  %9388 = vmatprep.subr.bf16.mxu1 %v11266_v43  ;;  %v13514_v56 = vadd.f32 %v8996_v48, %v8944_v50  ;;  %v8946_v57 = vadd.f32 %v8945_v52, %v13501_v44  ;;  %9269 = vmatprep.mubr.bf16.mxu0 %v11267_v45  ;;  %v11306_v45 = vld [vmem:[%s13149_s8 + $0x900] ss:$8 sps:$4 sm:$0xff]   ;;  %v11309_v48 = vld [vmem:[%s13149_s8 + $0x8f0] ss:$8 sps:$4 sm:$0xff]   ;;  %v11317_v50 = vld [vmem:[%s13149_s8 + $0x8e4] ss:$8 sps:$4 sm:$0xff]  }
 0x24f   : > { %9322 = vmatprep.mubr.bf16.mxu1 %v11276_v46  ;;  %v8947_v60 = vpop.f32.mrf.mxu0  ;;  %v11311_v46 = vld [vmem:[%s13149_s8 + $0x8f4] ss:$8 sps:$4 sm:$0xff]   ;;  %v11315_v52 = vld [vmem:[%s13149_s8 + $0x8e0] ss:$8 sps:$4 sm:$0xff]  }
 0x250   : > { %v9000_v61 = vpop.f32.mrf.mxu1  ;;  %v13524_v63 = vadd.f32 %v8998_v53, %v8946_v57  ;;  %v8948_v0 = vadd.f32 %v8947_v60, %v13496_v40  ;;  %9336 = vmatpush1.bf16.msra.mxu0 %v11261_v49  ;;  %v11312_v49 = vld [vmem:[%s13149_s8 + $0x9f0] ss:$8 sps:$4 sm:$0xff]   ;;  %v11318_v53 = vld [vmem:[%s13149_s8 + $0x9e0] ss:$8 sps:$4 sm:$0xff]   ;;  %v11332_v60 = vld [vmem:[%s13149_s8 + $0x9c4] ss:$8 sps:$4 sm:$0xff]  }
 0x251   : > { %9389 = vmatpush1.bf16.msra.mxu1 %v11264_v51  ;;  %v8949_v2 = vpop.f32.mrf.mxu0  ;;  %9337 = vmatprep.subr.bf16.mxu0 %v11272_v54  ;;  %v11320_v51 = vld [vmem:[%s13149_s8 + $0x9e4] ss:$8 sps:$4 sm:$0xff]   ;;  %v11323_v54 = vld [vmem:[%s13149_s8 + $0x8d4] ss:$8 sps:$4 sm:$0xff]   ;;  %v11321_v57 = vld [vmem:[%s13149_s8 + $0x8d0] ss:$8 sps:$4 sm:$0xff]  }
 0x252   : > { %9390 = vmatprep.subr.bf16.mxu1 %v11275_v55  ;;  %v13530_v5 = vadd.f32 %v9000_v61, %v8948_v0  ;;  %v8950_v6 = vadd.f32 %v8949_v2, %v13501_v44  ;;  %v9002_v9 = vpop.f32.mrf.mxu1  ;;  %v11326_v55 = vld [vmem:[%s13149_s8 + $0x9d4] ss:$8 sps:$4 sm:$0xff]   ;;  %v11327_v61 = vld [vmem:[%s13149_s8 + $0x8c0] ss:$8 sps:$4 sm:$0xff]   ;;  %v11333_v2 = vld [vmem:[%s13149_s8 + $0x8b0] ss:$8 sps:$4 sm:$0xff]  }
 0x253   : > { %9270 = vmatmul.mubr.bf16.gmra.mxu0 %v11269_v58  ;;  %v8953_v11 = vpop.f32.mrf.mxu0  ;;  %v11324_v58 = vld [vmem:[%s13149_s8 + $0x9d0] ss:$8 sps:$4 sm:$0xff]   ;;  %v11335_v0 = vld [vmem:[%s13149_s8 + $0x8b4] ss:$8 sps:$4 sm:$0xff]  }
 0x254   : > { %9323 = vmatmul.mubr.bf16.gmra.mxu1 %v11278_v62  ;;  %v13540_v12 = vadd.f32 %v9002_v9, %v8950_v6  ;;  %9338 = vmatpush1.bf16.msra.mxu0 %v11270_v59  ;;  %v8954_v20 = vadd.f32 %v8953_v11, %v13496_v40  ;;  %v9006_v25 = vpop.f32.mrf.mxu1  ;;  %v11329_v59 = vld [vmem:[%s13149_s8 + $0x8c4] ss:$8 sps:$4 sm:$0xff]   ;;  %v11330_v62 = vld [vmem:[%s13149_s8 + $0x9c0] ss:$8 sps:$4 sm:$0xff]   ;;  %v11347_v9 = vld [vmem:[%s13149_s8 + $0x894] ss:$8 sps:$4 sm:$0xff]  }
 0x255   : > { %9391 = vmatpush1.bf16.msra.mxu1 %v11273_v1  ;;  %9339 = vmatprep.subr.bf16.mxu0 %v11281_v3  ;;  %v8955_v16 = vpop.f32.mrf.mxu0  ;;  %v11338_v1 = vld [vmem:[%s13149_s8 + $0x9b4] ss:$8 sps:$4 sm:$0xff]   ;;  %v11336_v3 = vld [vmem:[%s13149_s8 + $0x9b0] ss:$8 sps:$4 sm:$0xff]   ;;  %v11344_v6 = vld [vmem:[%s13149_s8 + $0x9a4] ss:$8 sps:$4 sm:$0xff]  }
 0x256   : > { %9392 = vmatprep.subr.bf16.mxu1 %v11284_v4  ;;  %9365 = vmatprep.mubr.bf16.mxu0 %v11359_v7  ;;  %v8956_v23 = vadd.f32 %v8955_v16, %v13501_v44  ;;  %v13553_v29 = vadd.f32 %v9006_v25, %v8954_v20  ;;  %v9008_v33 = vpop.f32.mrf.mxu1  ;;  %v11341_v4 = vld [vmem:[%s13149_s8 + $0x8a4] ss:$8 sps:$4 sm:$0xff]   ;;  %v11339_v7 = vld [vmem:[%s13149_s8 + $0x8a0] ss:$8 sps:$4 sm:$0xff]   ;;  %v11345_v11 = vld [vmem:[%s13149_s8 + $0x890] ss:$8 sps:$4 sm:$0xff]  }
 0x257   : > { %9418 = vmatprep.mubr.bf16.mxu1 %v11362_v8  ;;  %v8957_v18 = vpop.f32.mrf.mxu0  ;;  %v11342_v8 = vld [vmem:[%s13149_s8 + $0x9a0] ss:$8 sps:$4 sm:$0xff]   ;;  %v11374_v25 = vld [vmem:[%s13149_s8 + $0xb64] ss:$8 sps:$4 sm:$0xff]  }
 0x258   : > { %9340 = vmatpush1.bf16.msra.mxu0 %v11279_v10  ;;  %v8958_v30 = vadd.f32 %v8957_v18, %v13496_v40  ;;  %v13558_v34 = vadd.f32 %v9008_v33, %v8956_v23  ;;  %v9010_v37 = vpop.f32.mrf.mxu1  ;;  %v11305_v40 = vld [vmem:[%s13149_s8 + $0x804] ss:$8 sps:$4 sm:$0xff]   ;;  %v11350_v10 = vld [vmem:[%s13149_s8 + $0x994] ss:$8 sps:$4 sm:$0xff]   ;;  %v11351_v16 = vld [vmem:[%s13149_s8 + $0x880] ss:$8 sps:$4 sm:$0xff]  }
 0x259   : > { %9393 = vmatpush1.bf16.msra.mxu1 %v11282_v13  ;;  %9341 = vmatprep.subr.bf16.mxu0 %v11287_v14  ;;  %v8959_v26 = vpop.f32.mrf.mxu0  ;;  %v11348_v13 = vld [vmem:[%s13149_s8 + $0x990] ss:$8 sps:$4 sm:$0xff]   ;;  %v11353_v14 = vld [vmem:[%s13149_s8 + $0x884] ss:$8 sps:$4 sm:$0xff]   ;;  %v11365_v18 = vld [vmem:[%s13149_s8 + $0xa74] ss:$8 sps:$4 sm:$0xff]  }
 0x25a   : > { %9394 = vmatprep.subr.bf16.mxu1 %v11290_v15  ;;  %v8960_v35 = vadd.f32 %v8959_v26, %v13501_v44  ;;  %v13563_v39 = vadd.f32 %v9010_v37, %v8958_v30  ;;  %v9012_v42 = vpop.f32.mrf.mxu1  ;;  %v11303_v44 = vld [vmem:[%s13149_s8 + $0x800] ss:$8 sps:$4 sm:$0xff]   ;;  %v11356_v15 = vld [vmem:[%s13149_s8 + $0x984] ss:$8 sps:$4 sm:$0xff]   ;;  %v11366_v23 = vld [vmem:[%s13149_s8 + $0xb70] ss:$8 sps:$4 sm:$0xff]  }
 0x25b   : > { %v11357_v20 = vld [vmem:[%s14204_s0 + $0x40] ss:$144 sps:$4 sm:$0xff]   ;;  %v11375_v26 = vld [vmem:[%s14204_s0 + $0x164] ss:$144 sps:$4 sm:$0xff]  }
 0x25c   : > { %9342 = vmatpush1.bf16.msra.mxu0 %v11285_v17  ;;  %v13567_v43 = vadd.f32 %v9012_v42, %v8960_v35  ;;  %v11354_v17 = vld [vmem:[%s13149_s8 + $0x980] ss:$8 sps:$4 sm:$0xff]  }
 0x25d   : > { %9395 = vmatpush1.bf16.msra.mxu1 %v11288_v19  ;;  %9343 = vmatprep.subr.bf16.mxu0 %v11293_v21  ;;  %v11368_v19 = vld [vmem:[%s13149_s8 + $0xb74] ss:$8 sps:$4 sm:$0xff]   ;;  %v11360_v21 = vld [vmem:[%s14204_s0 + $0x48] ss:$144 sps:$4 sm:$0xff]  }
 0x25e   : > { %9396 = vmatprep.subr.bf16.mxu1 %v11296_v22  ;;  %v11363_v22 = vld [vmem:[%s13149_s8 + $0xa70] ss:$8 sps:$4 sm:$0xff]   ;;  %v11372_v35 = vld [vmem:[%s13149_s8 + $0xb60] ss:$8 sps:$4 sm:$0xff]  }
 0x260   : > { %9344 = vmatpush1.bf16.msra.mxu0 %v11291_v24  ;;  %v11371_v24 = vld [vmem:[%s13149_s8 + $0xa64] ss:$8 sps:$4 sm:$0xff]  }
 0x261   : > { %9397 = vmatpush1.bf16.msra.mxu1 %v11294_v28  ;;  %9345 = vmatprep.subr.bf16.mxu0 %v11299_v31  ;;  %v11384_v28 = vld [vmem:[%s14204_s0 + $0x16c] ss:$144 sps:$4 sm:$0xff]  }
 0x262   : > { %9398 = vmatprep.subr.bf16.mxu1 %v11302_v32  ;;  %v11369_v32 = vld [vmem:[%s13149_s8 + $0xa60] ss:$8 sps:$4 sm:$0xff]  }
 0x264   : > { %9346 = vmatpush1.bf16.msra.mxu0 %v11297_v36 }
 0x265   : > { %9399 = vmatpush1.bf16.msra.mxu1 %v11300_v38  ;;  %9347 = vmatprep.subr.bf16.mxu0 %v11305_v40  ;;  %v11380_v38 = vld [vmem:[%s13149_s8 + $0xa54] ss:$8 sps:$4 sm:$0xff]  }
 0x266   : > { %9400 = vmatprep.subr.bf16.mxu1 %v11308_v41  ;;  %v11383_v40 = vld [vmem:[%s13149_s8 + $0xb54] ss:$8 sps:$4 sm:$0xff]  }
 0x268   : > { %9348 = vmatpush1.bf16.msra.mxu0 %v11303_v44  ;;  %v11378_v44 = vld [vmem:[%s13149_s8 + $0xa50] ss:$8 sps:$4 sm:$0xff]  }
 0x269   : > { %9401 = vmatpush1.bf16.msra.mxu1 %v11306_v45  ;;  %9349 = vmatprep.subr.bf16.mxu0 %v11311_v46 }
 0x26a   : > { %9402 = vmatprep.subr.bf16.mxu1 %v11314_v47  ;;  %v11386_v47 = vld [vmem:[%s14204_s0 + $0x168] ss:$144 sps:$4 sm:$0xff]  }
 0x26c   : > { %9350 = vmatpush2.bf16.msra.mxu0 %v11309_v48 }
 0x26d   : > { %9403 = vmatpush2.bf16.msra.mxu1 %v11312_v49  ;;  %9351 = vmatprep.subr.bf16.mxu0 %v11317_v50 }
 0x26e   : > { %9404 = vmatprep.subr.bf16.mxu1 %v11320_v51 }
 0x270   : > { %9352 = vmatpush2.bf16.msra.mxu0 %v11315_v52  ;;  %v11389_v52 = vld [vmem:[%s13149_s8 + $0xa44] ss:$8 sps:$4 sm:$0xff]  }
 0x271   : > { %9405 = vmatpush2.bf16.msra.mxu1 %v11318_v53  ;;  %9353 = vmatprep.subr.bf16.mxu0 %v11323_v54  ;;  %v11392_v53 = vld [vmem:[%s13149_s8 + $0xb44] ss:$8 sps:$4 sm:$0xff]  }
 0x272   : > { %9406 = vmatprep.subr.bf16.mxu1 %v11326_v55 }
 0x274   : > { %9354 = vmatpush2.bf16.msra.mxu0 %v11321_v57  ;;  %v11467_v57 = vld [vmem:[%s14204_s0 + $0x54] ss:$144 sps:$4 sm:$0xff]  }
 0x275   : > { %9407 = vmatpush2.bf16.msra.mxu1 %v11324_v58  ;;  %9355 = vmatprep.subr.bf16.mxu0 %v11329_v59 }
 0x276   : > { %9408 = vmatprep.subr.bf16.mxu1 %v11332_v60  ;;  %v11387_v60 = vld [vmem:[%s13149_s8 + $0xa40] ss:$8 sps:$4 sm:$0xff]  }
 0x278   : > { %9356 = vmatpush2.bf16.msra.mxu0 %v11327_v61 }
 0x279   : > { %9409 = vmatpush2.bf16.msra.mxu1 %v11330_v62  ;;  %9357 = vmatprep.subr.bf16.mxu0 %v11335_v0 }
 0x27a   : > { %9410 = vmatprep.subr.bf16.mxu1 %v11338_v1 }
 0x27c   : > { %9358 = vmatpush2.bf16.msra.mxu0 %v11333_v2  ;;  %v11395_v2 = vld [vmem:[%s13149_s8 + $0xa34] ss:$8 sps:$4 sm:$0xff]  }
 0x27d   : > { %9411 = vmatpush2.bf16.msra.mxu1 %v11336_v3  ;;  %9359 = vmatprep.subr.bf16.mxu0 %v11341_v4  ;;  %v11398_v3 = vld [vmem:[%s13149_s8 + $0xb34] ss:$8 sps:$4 sm:$0xff]  }
 0x27e   : > { %9412 = vmatprep.subr.bf16.mxu1 %v11344_v6 }
 0x280   : > { %9360 = vmatpush2.bf16.msra.mxu0 %v11339_v7 }
 0x281   : > { %9413 = vmatpush2.bf16.msra.mxu1 %v11342_v8  ;;  %9361 = vmatprep.subr.bf16.mxu0 %v11347_v9  ;;  %v11393_v8 = vld [vmem:[%s13149_s8 + $0xa30] ss:$8 sps:$4 sm:$0xff]  }
 0x282   : > { %9414 = vmatprep.subr.bf16.mxu1 %v11350_v10 }
 0x284   : > { %9362 = vmatpush2.bf16.msra.mxu0 %v11345_v11  ;;  %v11396_v11 = vld [vmem:[%s13149_s8 + $0xb30] ss:$8 sps:$4 sm:$0xff]  }
 0x285   : > { %9415 = vmatpush2.bf16.msra.mxu1 %v11348_v13  ;;  %9363 = vmatprep.subr.bf16.mxu0 %v11353_v14  ;;  %v11401_v14 = vld [vmem:[%s13149_s8 + $0xa24] ss:$8 sps:$4 sm:$0xff]  }
 0x286   : > { %9416 = vmatprep.subr.bf16.mxu1 %v11356_v15  ;;  %v11404_v15 = vld [vmem:[%s13149_s8 + $0xb24] ss:$8 sps:$4 sm:$0xff]  }
 0x288   : > { %9364 = vmatpush2.bf16.msra.mxu0 %v11351_v16 }
 0x289   : > { %9417 = vmatpush2.bf16.msra.mxu1 %v11354_v17  ;;  %9439 = vmatprep.subr.bf16.mxu0 %v11365_v18 }
 0x28a   : > { %9492 = vmatprep.subr.bf16.mxu1 %v11368_v19  ;;  %v11402_v19 = vld [vmem:[%s13149_s8 + $0xb20] ss:$8 sps:$4 sm:$0xff]  }
 0x28b   : > { %v9049_v30 = vpop.f32.mrf.mxu0  ;;  %9366 = vmatmul.mubr.bf16.vlgmr.msra.gmra.mxu0 %v11357_v20  ;;  %v11407_v20 = vld [vmem:[%s13149_s8 + $0xa14] ss:$8 sps:$4 sm:$0xff]  }
 0x28c   : > { %v9102_v31 = vpop.f32.mrf.mxu1  ;;  %9419 = vmatmul.mubr.bf16.vlgmr.msra.gmra.mxu1 %v11360_v21  ;;  %v9050_v33 = vadd.f32 %v9049_v30, %v13514_v56  ;;  %9440 = vmatpush1.bf16.msra.mxu0 %v11363_v22  ;;  %v11377_v56 = vld [vmem:[%s14204_s0 + $0x160] ss:$144 sps:$4 sm:$0xff]   ;;  %v11410_v21 = vld [vmem:[%s13149_s8 + $0xb14] ss:$8 sps:$4 sm:$0xff]  }
 0x28d   : > { %9493 = vmatpush1.bf16.msra.mxu1 %v11366_v23  ;;  %v9051_v36 = vpop.f32.mrf.mxu0  ;;  %9441 = vmatprep.subr.bf16.mxu0 %v11371_v24  ;;  %v11405_v22 = vld [vmem:[%s13149_s8 + $0xa10] ss:$8 sps:$4 sm:$0xff]   ;;  %v11413_v23 = vld [vmem:[%s13149_s8 + $0xa04] ss:$8 sps:$4 sm:$0xff]   ;;  %v11422_v30 = vld [vmem:[%s13149_s8 + $0xbf4] ss:$8 sps:$4 sm:$0xff]  }
 0x28e   : > { %v9104_v37 = vpop.f32.mrf.mxu1  ;;  %9494 = vmatprep.subr.bf16.mxu1 %v11374_v25  ;;  %v13626_v41 = vadd.f32 %v9102_v31, %v9050_v33  ;;  %v9052_v42 = vadd.f32 %v9051_v36, %v13524_v63  ;;  %9375 = vmatprep.mubr.bf16.mxu0 %v11375_v26  ;;  %v11381_v63 = vld [vmem:[%s13149_s8 + $0xb50] ss:$8 sps:$4 sm:$0xff]   ;;  %v11416_v24 = vld [vmem:[%s13149_s8 + $0xb04] ss:$8 sps:$4 sm:$0xff]   ;;  %v11411_v25 = vld [vmem:[%s13149_s8 + $0xa00] ss:$8 sps:$4 sm:$0xff]  }
 0x28f   : > { %9428 = vmatprep.mubr.bf16.mxu1 %v11384_v28  ;;  %v9053_v45 = vpop.f32.mrf.mxu0  ;;  %v11414_v26 = vld [vmem:[%s13149_s8 + $0xb00] ss:$8 sps:$4 sm:$0xff]   ;;  %v11419_v28 = vld [vmem:[%s13149_s8 + $0xaf4] ss:$8 sps:$4 sm:$0xff]   ;;  %v11417_v31 = vld [vmem:[%s13149_s8 + $0xaf0] ss:$8 sps:$4 sm:$0xff]  }
 0x290   : > { %v9106_v46 = vpop.f32.mrf.mxu1  ;;  %v13636_v48 = vadd.f32 %v9104_v37, %v9052_v42  ;;  %v9054_v49 = vadd.f32 %v9053_v45, %v13530_v5  ;;  %9442 = vmatpush1.bf16.msra.mxu0 %v11369_v32  ;;  %v11470_v5 = vld [vmem:[%s14204_s0 + $0x5c] ss:$144 sps:$4 sm:$0xff]   ;;  %v11420_v32 = vld [vmem:[%s13149_s8 + $0xbf0] ss:$8 sps:$4 sm:$0xff]   ;;  %v11423_v36 = vld [vmem:[%s13149_s8 + $0xae0] ss:$8 sps:$4 sm:$0xff]  }
 0x291   : > { %9495 = vmatpush1.bf16.msra.mxu1 %v11372_v35  ;;  %v9055_v50 = vpop.f32.mrf.mxu0  ;;  %9443 = vmatprep.subr.bf16.mxu0 %v11380_v38  ;;  %v11425_v33 = vld [vmem:[%s13149_s8 + $0xae4] ss:$8 sps:$4 sm:$0xff]   ;;  %v11426_v37 = vld [vmem:[%s13149_s8 + $0xbe0] ss:$8 sps:$4 sm:$0xff]   ;;  %v11431_v38 = vld [vmem:[%s13149_s8 + $0xad4] ss:$8 sps:$4 sm:$0xff]  }
 0x292   : > { %v9108_v51 = vpop.f32.mrf.mxu1  ;;  %9496 = vmatprep.subr.bf16.mxu1 %v11383_v40  ;;  %v13642_v54 = vadd.f32 %v9106_v46, %v9054_v49  ;;  %v9056_v55 = vadd.f32 %v9055_v50, %v13540_v12  ;;  %v11390_v12 = vld [vmem:[%s13149_s8 + $0xb40] ss:$8 sps:$4 sm:$0xff]   ;;  %v11428_v35 = vld [vmem:[%s13149_s8 + $0xbe4] ss:$8 sps:$4 sm:$0xff]   ;;  %v11434_v40 = vld [vmem:[%s13149_s8 + $0xbd4] ss:$8 sps:$4 sm:$0xff]  }
 0x293   : > { %v9059_v58 = vpop.f32.mrf.mxu0  ;;  %9376 = vmatmul.mubr.bf16.gmra.mxu0 %v11377_v56  ;;  %v11429_v42 = vld [vmem:[%s13149_s8 + $0xad0] ss:$8 sps:$4 sm:$0xff]   ;;  %v11440_v45 = vld [vmem:[%s13149_s8 + $0xbc4] ss:$8 sps:$4 sm:$0xff]   ;;  %v11435_v46 = vld [vmem:[%s13149_s8 + $0xac0] ss:$8 sps:$4 sm:$0xff]  }
 0x294   : > { %v9112_v59 = vpop.f32.mrf.mxu1  ;;  %9429 = vmatmul.mubr.bf16.gmra.mxu1 %v11386_v47  ;;  %v13652_v61 = vadd.f32 %v9108_v51, %v9056_v55  ;;  %v9060_v62 = vadd.f32 %v9059_v58, %v13553_v29  ;;  %9444 = vmatpush1.bf16.msra.mxu0 %v11378_v44  ;;  %v11432_v56 = vld [vmem:[%s13149_s8 + $0xbd0] ss:$8 sps:$4 sm:$0xff]   ;;  %v11437_v44 = vld [vmem:[%s13149_s8 + $0xac4] ss:$8 sps:$4 sm:$0xff]   ;;  %v11438_v47 = vld [vmem:[%s13149_s8 + $0xbc0] ss:$8 sps:$4 sm:$0xff]  }
 0x295   : > { %9497 = vmatpush1.bf16.msra.mxu1 %v11381_v63  ;;  %v9061_v0 = vpop.f32.mrf.mxu0  ;;  %9445 = vmatprep.subr.bf16.mxu0 %v11389_v52  ;;  %v11443_v49 = vld [vmem:[%s13149_s8 + $0xab4] ss:$8 sps:$4 sm:$0xff]   ;;  %v11441_v50 = vld [vmem:[%s13149_s8 + $0xab0] ss:$8 sps:$4 sm:$0xff]   ;;  %v11449_v52 = vld [vmem:[%s13149_s8 + $0xaa4] ss:$8 sps:$4 sm:$0xff]  }
 0x296   : > { %v9114_v1 = vpop.f32.mrf.mxu1  ;;  %9498 = vmatprep.subr.bf16.mxu1 %v11392_v53  ;;  %v9062_v4 = vadd.f32 %v9061_v0, %v13558_v34  ;;  %v13659_v6 = vadd.f32 %v9112_v59, %v9060_v62  ;;  %9471 = vmatprep.mubr.bf16.mxu0 %v11467_v57  ;;  %v11446_v63 = vld [vmem:[%s13149_s8 + $0xbb4] ss:$8 sps:$4 sm:$0xff]   ;;  %v11444_v51 = vld [vmem:[%s13149_s8 + $0xbb0] ss:$8 sps:$4 sm:$0xff]   ;;  %v11452_v53 = vld [vmem:[%s13149_s8 + $0xba4] ss:$8 sps:$4 sm:$0xff]  }
 0x297   : > { %9524 = vmatprep.mubr.bf16.mxu1 %v11470_v5  ;;  %v9063_v29 = vpop.f32.mrf.mxu0  ;;  %v11447_v55 = vld [vmem:[%s13149_s8 + $0xaa0] ss:$8 sps:$4 sm:$0xff]   ;;  %v11455_v5 = vld [vmem:[%s13149_s8 + $0xa94] ss:$8 sps:$4 sm:$0xff]   ;;  %v11453_v59 = vld [vmem:[%s13149_s8 + $0xa90] ss:$8 sps:$4 sm:$0xff]  }
 0x298   : > { %v9116_v7 = vpop.f32.mrf.mxu1  ;;  %v9064_v9 = vadd.f32 %v9063_v29, %v13563_v39  ;;  %v13663_v10 = vadd.f32 %v9114_v1, %v9062_v4  ;;  %9446 = vmatpush1.bf16.msra.mxu0 %v11387_v60  ;;  %v11399_v39 = vld [vmem:[%s13149_s8 + $0xa20] ss:$8 sps:$4 sm:$0xff]   ;;  %v11458_v58 = vld [vmem:[%s13149_s8 + $0xb94] ss:$8 sps:$4 sm:$0xff]   ;;  %v11456_v60 = vld [vmem:[%s13149_s8 + $0xb90] ss:$8 sps:$4 sm:$0xff]  }
 0x299   : > { %9499 = vmatpush1.bf16.msra.mxu1 %v11390_v12  ;;  %v9065_v34 = vpop.f32.mrf.mxu0  ;;  %9447 = vmatprep.subr.bf16.mxu0 %v11395_v2  ;;  %v11450_v57 = vld [vmem:[%s13149_s8 + $0xba0] ss:$8 sps:$4 sm:$0xff]   ;;  %v11461_v62 = vld [vmem:[%s13149_s8 + $0xa84] ss:$8 sps:$4 sm:$0xff]   ;;  %v11473_v4 = vld [vmem:[%s13149_s8 + $0xc74] ss:$8 sps:$4 sm:$0xff]  }
 0x29a   : > { %v9118_v13 = vpop.f32.mrf.mxu1  ;;  %9500 = vmatprep.subr.bf16.mxu1 %v11398_v3  ;;  %v9066_v16 = vadd.f32 %v9065_v34, %v13567_v43  ;;  %v13669_v17 = vadd.f32 %v9116_v7, %v9064_v9  ;;  %v11408_v43 = vld [vmem:[%s13149_s8 + $0xb10] ss:$8 sps:$4 sm:$0xff]   ;;  %v11464_v12 = vld [vmem:[%s13149_s8 + $0xb84] ss:$8 sps:$4 sm:$0xff]   ;;  %v11459_v0 = vld [vmem:[%s13149_s8 + $0xa80] ss:$8 sps:$4 sm:$0xff]  }
 0x29b   : > { %v11462_v1 = vld [vmem:[%s13149_s8 + $0xb80] ss:$8 sps:$4 sm:$0xff]   ;;  %v11476_v29 = vld [vmem:[%s13149_s8 + $0xd74] ss:$8 sps:$4 sm:$0xff]   ;;  %v11471_v7 = vld [vmem:[%s13149_s8 + $0xc70] ss:$8 sps:$4 sm:$0xff]  }
 0x29c   : > { %v13672_v18 = vadd.f32 %v9118_v13, %v9066_v16  ;;  %9448 = vmatpush1.bf16.msra.mxu0 %v11393_v8  ;;  %v11465_v2 = vld [vmem:[%s14204_s0 + $0x50] ss:$144 sps:$4 sm:$0xff]   ;;  %v11468_v3 = vld [vmem:[%s14204_s0 + $0x58] ss:$144 sps:$4 sm:$0xff]   ;;  %v11479_v9 = vld [vmem:[%s13149_s8 + $0xc64] ss:$8 sps:$4 sm:$0xff]  }
 0x29d   : > { %9501 = vmatpush1.bf16.msra.mxu1 %v11396_v11  ;;  %9449 = vmatprep.subr.bf16.mxu0 %v11401_v14  ;;  %v11474_v8 = vld [vmem:[%s13149_s8 + $0xd70] ss:$8 sps:$4 sm:$0xff]   ;;  %v11482_v11 = vld [vmem:[%s13149_s8 + $0xd64] ss:$8 sps:$4 sm:$0xff]   ;;  %v11477_v34 = vld [vmem:[%s13149_s8 + $0xc60] ss:$8 sps:$4 sm:$0xff]  }
 0x29e   : > { %9502 = vmatprep.subr.bf16.mxu1 %v11404_v15  ;;  %v11480_v13 = vld [vmem:[%s13149_s8 + $0xd60] ss:$8 sps:$4 sm:$0xff]   ;;  %v11483_v14 = vld [vmem:[%s14204_s0 + $0x174] ss:$144 sps:$4 sm:$0xff]   ;;  %v11492_v15 = vld [vmem:[%s14204_s0 + $0x17c] ss:$144 sps:$4 sm:$0xff]  }
 0x2a0   : > { %9450 = vmatpush1.bf16.msra.mxu0 %v11399_v39 }
 0x2a1   : > { %9503 = vmatpush1.bf16.msra.mxu1 %v11402_v19  ;;  %9451 = vmatprep.subr.bf16.mxu0 %v11407_v20 }
 0x2a2   : > { %9504 = vmatprep.subr.bf16.mxu1 %v11410_v21 }
 0x2a4   : > { %9452 = vmatpush1.bf16.msra.mxu0 %v11405_v22  ;;  %v11485_v22 = vld [vmem:[%s14204_s0 + $0x170] ss:$144 sps:$4 sm:$0xff]  }
 0x2a5   : > { %9505 = vmatpush1.bf16.msra.mxu1 %v11408_v43  ;;  %9453 = vmatprep.subr.bf16.mxu0 %v11413_v23  ;;  %v11488_v43 = vld [vmem:[%s13149_s8 + $0xc54] ss:$8 sps:$4 sm:$0xff]  }
 0x2a6   : > { %9506 = vmatprep.subr.bf16.mxu1 %v11416_v24  ;;  %v11491_v23 = vld [vmem:[%s13149_s8 + $0xd54] ss:$8 sps:$4 sm:$0xff]  }
 0x2a8   : > { %9454 = vmatpush1.bf16.msra.mxu0 %v11411_v25 }
 0x2a9   : > { %9507 = vmatpush1.bf16.msra.mxu1 %v11414_v26  ;;  %9455 = vmatprep.subr.bf16.mxu0 %v11419_v28  ;;  %v11494_v26 = vld [vmem:[%s14204_s0 + $0x178] ss:$144 sps:$4 sm:$0xff]  }
 0x2aa   : > { %9508 = vmatprep.subr.bf16.mxu1 %v11422_v30 }
 0x2ac   : > { %9456 = vmatpush2.bf16.msra.mxu0 %v11417_v31 }
 0x2ad   : > { %9509 = vmatpush2.bf16.msra.mxu1 %v11420_v32  ;;  %9457 = vmatprep.subr.bf16.mxu0 %v11425_v33  ;;  %v11489_v33 = vld [vmem:[%s13149_s8 + $0xd50] ss:$8 sps:$4 sm:$0xff]  }
 0x2ae   : > { %9510 = vmatprep.subr.bf16.mxu1 %v11428_v35 }
 0x2b0   : > { %9458 = vmatpush2.bf16.msra.mxu0 %v11423_v36  ;;  %v11497_v36 = vld [vmem:[%s13149_s8 + $0xc44] ss:$8 sps:$4 sm:$0xff]  }
 0x2b1   : > { %9511 = vmatpush2.bf16.msra.mxu1 %v11426_v37  ;;  %9459 = vmatprep.subr.bf16.mxu0 %v11431_v38  ;;  %v11500_v37 = vld [vmem:[%s13149_s8 + $0xd44] ss:$8 sps:$4 sm:$0xff]  }
 0x2b2   : > { %9512 = vmatprep.subr.bf16.mxu1 %v11434_v40 }
 0x2b4   : > { %9460 = vmatpush2.bf16.msra.mxu0 %v11429_v42  ;;  %v11495_v42 = vld [vmem:[%s13149_s8 + $0xc40] ss:$8 sps:$4 sm:$0xff]  }
 0x2b5   : > { %9513 = vmatpush2.bf16.msra.mxu1 %v11432_v56  ;;  %9461 = vmatprep.subr.bf16.mxu0 %v11437_v44  ;;  %v11578_v56 = vld [vmem:[%s14204_s0 + $0x6c] ss:$144 sps:$4 sm:$0xff]  }
 0x2b6   : > { %9514 = vmatprep.subr.bf16.mxu1 %v11440_v45 }
 0x2b8   : > { %9462 = vmatpush2.bf16.msra.mxu0 %v11435_v46  ;;  %v11498_v46 = vld [vmem:[%s13149_s8 + $0xd40] ss:$8 sps:$4 sm:$0xff]  }
 0x2b9   : > { %9515 = vmatpush2.bf16.msra.mxu1 %v11438_v47  ;;  %9463 = vmatprep.subr.bf16.mxu0 %v11443_v49 }
 0x2ba   : > { %9516 = vmatprep.subr.bf16.mxu1 %v11446_v63 }
 0x2bc   : > { %9464 = vmatpush2.bf16.msra.mxu0 %v11441_v50  ;;  %v11503_v50 = vld [vmem:[%s13149_s8 + $0xc34] ss:$8 sps:$4 sm:$0xff]  }
 0x2bd   : > { %9517 = vmatpush2.bf16.msra.mxu1 %v11444_v51  ;;  %9465 = vmatprep.subr.bf16.mxu0 %v11449_v52  ;;  %v11506_v51 = vld [vmem:[%s13149_s8 + $0xd34] ss:$8 sps:$4 sm:$0xff]  }
 0x2be   : > { %9518 = vmatprep.subr.bf16.mxu1 %v11452_v53 }
 0x2c0   : > { %9466 = vmatpush2.bf16.msra.mxu0 %v11447_v55  ;;  %v11501_v55 = vld [vmem:[%s13149_s8 + $0xc30] ss:$8 sps:$4 sm:$0xff]  }
 0x2c1   : > { %9519 = vmatpush2.bf16.msra.mxu1 %v11450_v57  ;;  %9467 = vmatprep.subr.bf16.mxu0 %v11455_v5  ;;  %v11504_v57 = vld [vmem:[%s13149_s8 + $0xd30] ss:$8 sps:$4 sm:$0xff]  }
 0x2c2   : > { %9520 = vmatprep.subr.bf16.mxu1 %v11458_v58 }
 0x2c4   : > { %9468 = vmatpush2.bf16.msra.mxu0 %v11453_v59 }
 0x2c5   : > { %9521 = vmatpush2.bf16.msra.mxu1 %v11456_v60  ;;  %9469 = vmatprep.subr.bf16.mxu0 %v11461_v62  ;;  %v11509_v62 = vld [vmem:[%s13149_s8 + $0xc24] ss:$8 sps:$4 sm:$0xff]  }
 0x2c6   : > { %9522 = vmatprep.subr.bf16.mxu1 %v11464_v12  ;;  %v11512_v12 = vld [vmem:[%s13149_s8 + $0xd24] ss:$8 sps:$4 sm:$0xff]  }
 0x2c8   : > { %9470 = vmatpush2.bf16.msra.mxu0 %v11459_v0 }
 0x2c9   : > { %9523 = vmatpush2.bf16.msra.mxu1 %v11462_v1  ;;  %9545 = vmatprep.subr.bf16.mxu0 %v11473_v4  ;;  %v11515_v4 = vld [vmem:[%s13149_s8 + $0xc14] ss:$8 sps:$4 sm:$0xff]  }
 0x2ca   : > { %9598 = vmatprep.subr.bf16.mxu1 %v11476_v29  ;;  %v11518_v29 = vld [vmem:[%s13149_s8 + $0xd14] ss:$8 sps:$4 sm:$0xff]  }
 0x2cb   : > { %v9155_v16 = vpop.f32.mrf.mxu0  ;;  %9472 = vmatmul.mubr.bf16.vlgmr.msra.gmra.mxu0 %v11465_v2  ;;  %v11507_v2 = vld [vmem:[%s13149_s8 + $0xc20] ss:$8 sps:$4 sm:$0xff]  }
 0x2cc   : > { %v9208_v39 = vpop.f32.mrf.mxu1  ;;  %9525 = vmatmul.mubr.bf16.vlgmr.msra.gmra.mxu1 %v11468_v3  ;;  %v9156_v19 = vadd.f32 %v9155_v16, %v13626_v41  ;;  %9546 = vmatpush1.bf16.msra.mxu0 %v11471_v7  ;;  %v11486_v41 = vld [vmem:[%s13149_s8 + $0xc50] ss:$8 sps:$4 sm:$0xff]   ;;  %v11510_v3 = vld [vmem:[%s13149_s8 + $0xd20] ss:$8 sps:$4 sm:$0xff]  }
 0x2cd   : > { %9599 = vmatpush1.bf16.msra.mxu1 %v11474_v8  ;;  %v9157_v20 = vpop.f32.mrf.mxu0  ;;  %9547 = vmatprep.subr.bf16.mxu0 %v11479_v9  ;;  %v11516_v7 = vld [vmem:[%s13149_s8 + $0xd10] ss:$8 sps:$4 sm:$0xff]   ;;  %v11521_v8 = vld [vmem:[%s13149_s8 + $0xc04] ss:$8 sps:$4 sm:$0xff]  }
 0x2ce   : > { %v9210_v21 = vpop.f32.mrf.mxu1  ;;  %9600 = vmatprep.subr.bf16.mxu1 %v11482_v11  ;;  %v13741_v24 = vadd.f32 %v9208_v39, %v9156_v19  ;;  %v9158_v25 = vadd.f32 %v9157_v20, %v13636_v48  ;;  %9481 = vmatprep.mubr.bf16.mxu0 %v11483_v14  ;;  %v11524_v9 = vld [vmem:[%s13149_s8 + $0xd04] ss:$8 sps:$4 sm:$0xff]   ;;  %v11519_v11 = vld [vmem:[%s13149_s8 + $0xc00] ss:$8 sps:$4 sm:$0xff]   ;;  %v11530_v14 = vld [vmem:[%s13149_s8 + $0xdf4] ss:$8 sps:$4 sm:$0xff]  }
 0x2cf   : > { %9534 = vmatprep.mubr.bf16.mxu1 %v11492_v15  ;;  %v9159_v28 = vpop.f32.mrf.mxu0  ;;  %v11525_v15 = vld [vmem:[%s13149_s8 + $0xcf0] ss:$8 sps:$4 sm:$0xff]   ;;  %v11533_v39 = vld [vmem:[%s13149_s8 + $0xce4] ss:$8 sps:$4 sm:$0xff]   ;;  %v11531_v20 = vld [vmem:[%s13149_s8 + $0xce0] ss:$8 sps:$4 sm:$0xff]  }
 0x2d0   : > { %v9212_v30 = vpop.f32.mrf.mxu1  ;;  %v13748_v31 = vadd.f32 %v9210_v21, %v9158_v25  ;;  %v9160_v32 = vadd.f32 %v9159_v28, %v13642_v54  ;;  %9548 = vmatpush1.bf16.msra.mxu0 %v11477_v34  ;;  %v11575_v54 = vld [vmem:[%s14204_s0 + $0x64] ss:$144 sps:$4 sm:$0xff]   ;;  %v11522_v34 = vld [vmem:[%s13149_s8 + $0xd00] ss:$8 sps:$4 sm:$0xff]   ;;  %v11528_v16 = vld [vmem:[%s13149_s8 + $0xdf0] ss:$8 sps:$4 sm:$0xff]  }
 0x2d1   : > { %9601 = vmatpush1.bf16.msra.mxu1 %v11480_v13  ;;  %v9161_v48 = vpop.f32.mrf.mxu0  ;;  %9549 = vmatprep.subr.bf16.mxu0 %v11488_v43  ;;  %v11527_v13 = vld [vmem:[%s13149_s8 + $0xcf4] ss:$8 sps:$4 sm:$0xff]   ;;  %v11536_v19 = vld [vmem:[%s13149_s8 + $0xde4] ss:$8 sps:$4 sm:$0xff]   ;;  %v11534_v21 = vld [vmem:[%s13149_s8 + $0xde0] ss:$8 sps:$4 sm:$0xff]  }
 0x2d2   : > { %v9214_v35 = vpop.f32.mrf.mxu1  ;;  %9602 = vmatprep.subr.bf16.mxu1 %v11491_v23  ;;  %v13754_v38 = vadd.f32 %v9212_v30, %v9160_v32  ;;  %v9162_v40 = vadd.f32 %v9161_v48, %v13652_v61  ;;  %v11542_v43 = vld [vmem:[%s13149_s8 + $0xdd4] ss:$8 sps:$4 sm:$0xff]   ;;  %v11537_v23 = vld [vmem:[%s13149_s8 + $0xcd0] ss:$8 sps:$4 sm:$0xff]   ;;  %v11543_v28 = vld [vmem:[%s13149_s8 + $0xcc0] ss:$8 sps:$4 sm:$0xff]  }
 0x2d3   : > { %v9165_v44 = vpop.f32.mrf.mxu0  ;;  %9482 = vmatmul.mubr.bf16.gmra.mxu0 %v11485_v22  ;;  %v11539_v22 = vld [vmem:[%s13149_s8 + $0xcd4] ss:$8 sps:$4 sm:$0xff]   ;;  %v11540_v25 = vld [vmem:[%s13149_s8 + $0xdd0] ss:$8 sps:$4 sm:$0xff]   ;;  %v11546_v30 = vld [vmem:[%s13149_s8 + $0xdc0] ss:$8 sps:$4 sm:$0xff]  }
 0x2d4   : > { %v9218_v45 = vpop.f32.mrf.mxu1  ;;  %9535 = vmatmul.mubr.bf16.gmra.mxu1 %v11494_v26  ;;  %v13765_v47 = vadd.f32 %v9214_v35, %v9162_v40  ;;  %v9166_v61 = vadd.f32 %v9165_v44, %v13659_v6  ;;  %9550 = vmatpush1.bf16.msra.mxu0 %v11486_v41  ;;  %v11545_v41 = vld [vmem:[%s13149_s8 + $0xcc4] ss:$8 sps:$4 sm:$0xff]   ;;  %v11551_v32 = vld [vmem:[%s13149_s8 + $0xcb4] ss:$8 sps:$4 sm:$0xff]   ;;  %v11549_v48 = vld [vmem:[%s13149_s8 + $0xcb0] ss:$8 sps:$4 sm:$0xff]  }
 0x2d5   : > { %9603 = vmatpush1.bf16.msra.mxu1 %v11489_v33  ;;  %v9167_v49 = vpop.f32.mrf.mxu0  ;;  %9551 = vmatprep.subr.bf16.mxu0 %v11497_v36  ;;  %v11548_v26 = vld [vmem:[%s13149_s8 + $0xdc4] ss:$8 sps:$4 sm:$0xff]   ;;  %v11554_v33 = vld [vmem:[%s13149_s8 + $0xdb4] ss:$8 sps:$4 sm:$0xff]   ;;  %v11552_v35 = vld [vmem:[%s13149_s8 + $0xdb0] ss:$8 sps:$4 sm:$0xff]  }
 0x2d6   : > { %v9220_v63 = vpop.f32.mrf.mxu1  ;;  %9604 = vmatprep.subr.bf16.mxu1 %v11500_v37  ;;  %v9168_v52 = vadd.f32 %v9167_v49, %v13663_v10  ;;  %v13771_v53 = vadd.f32 %v9218_v45, %v9166_v61  ;;  %9577 = vmatprep.mubr.bf16.mxu0 %v11575_v54  ;;  %v11557_v36 = vld [vmem:[%s13149_s8 + $0xca4] ss:$8 sps:$4 sm:$0xff]   ;;  %v11555_v40 = vld [vmem:[%s13149_s8 + $0xca0] ss:$8 sps:$4 sm:$0xff]   ;;  %v11563_v54 = vld [vmem:[%s13149_s8 + $0xc94] ss:$8 sps:$4 sm:$0xff]  }
 0x2d7   : > { %9630 = vmatprep.mubr.bf16.mxu1 %v11578_v56  ;;  %v9169_v5 = vpop.f32.mrf.mxu0  ;;  %v11560_v37 = vld [vmem:[%s13149_s8 + $0xda4] ss:$8 sps:$4 sm:$0xff]   ;;  %v11566_v56 = vld [vmem:[%s13149_s8 + $0xd94] ss:$8 sps:$4 sm:$0xff]   ;;  %v11561_v44 = vld [vmem:[%s13149_s8 + $0xc90] ss:$8 sps:$4 sm:$0xff]  }
 0x2d8   : > { %v9222_v6 = vpop.f32.mrf.mxu1  ;;  %v9170_v58 = vadd.f32 %v9169_v5, %v13669_v17  ;;  %v13776_v59 = vadd.f32 %v9220_v63, %v9168_v52  ;;  %9552 = vmatpush1.bf16.msra.mxu0 %v11495_v42  ;;  %v11558_v42 = vld [vmem:[%s13149_s8 + $0xda0] ss:$8 sps:$4 sm:$0xff]   ;;  %v11564_v45 = vld [vmem:[%s13149_s8 + $0xd90] ss:$8 sps:$4 sm:$0xff]   ;;  %v11572_v61 = vld [vmem:[%s13149_s8 + $0xd84] ss:$8 sps:$4 sm:$0xff]  }
 0x2d9   : > { %9605 = vmatpush1.bf16.msra.mxu1 %v11498_v46  ;;  %v9171_v10 = vpop.f32.mrf.mxu0  ;;  %9553 = vmatprep.subr.bf16.mxu0 %v11503_v50  ;;  %v11569_v46 = vld [vmem:[%s13149_s8 + $0xc84] ss:$8 sps:$4 sm:$0xff]   ;;  %v11567_v49 = vld [vmem:[%s13149_s8 + $0xc80] ss:$8 sps:$4 sm:$0xff]   ;;  %v11581_v50 = vld [vmem:[%s13149_s8 + $0xe74] ss:$8 sps:$4 sm:$0xff]  }
 0x2da   : > { %v9224_v60 = vpop.f32.mrf.mxu1  ;;  %9606 = vmatprep.subr.bf16.mxu1 %v11506_v51  ;;  %v9172_v0 = vadd.f32 %v9171_v10, %v13672_v18  ;;  %v13781_v1 = vadd.f32 %v9222_v6, %v9170_v58  ;;  %v11513_v18 = vld [vmem:[%s13149_s8 + $0xc10] ss:$8 sps:$4 sm:$0xff]   ;;  %v11570_v63 = vld [vmem:[%s13149_s8 + $0xd80] ss:$8 sps:$4 sm:$0xff]   ;;  %v11584_v51 = vld [vmem:[%s13149_s8 + $0xf74] ss:$8 sps:$4 sm:$0xff]  }
 0x2db   : > { %v11573_v52 = vld [vmem:[%s14204_s0 + $0x60] ss:$144 sps:$4 sm:$0xff]   ;;  %v11587_v6 = vld [vmem:[%s13149_s8 + $0xe64] ss:$8 sps:$4 sm:$0xff]  }
 0x2dc   : > { %v13783_v17 = vadd.f32 %v9224_v60, %v9172_v0  ;;  %9554 = vmatpush1.bf16.msra.mxu0 %v11501_v55  ;;  %v11576_v55 = vld [vmem:[%s14204_s0 + $0x68] ss:$144 sps:$4 sm:$0xff]   ;;  %v11590_v58 = vld [vmem:[%s13149_s8 + $0xf64] ss:$8 sps:$4 sm:$0xff]  }
 0x2dd   : > { %9607 = vmatpush1.bf16.msra.mxu1 %v11504_v57  ;;  %9555 = vmatprep.subr.bf16.mxu0 %v11509_v62  ;;  %v11579_v57 = vld [vmem:[%s13149_s8 + $0xe70] ss:$8 sps:$4 sm:$0xff]   ;;  %v11591_v10 = vld [vmem:[%s14204_s0 + $0x184] ss:$144 sps:$4 sm:$0xff]   ;;  %v11600_v60 = vld [vmem:[%s14204_s0 + $0x18c] ss:$144 sps:$4 sm:$0xff]  }
 0x2de   : > { %9608 = vmatprep.subr.bf16.mxu1 %v11512_v12  ;;  %v11582_v5 = vld [vmem:[%s13149_s8 + $0xf70] ss:$8 sps:$4 sm:$0xff]  }
 0x2e0   : > { %9556 = vmatpush1.bf16.msra.mxu0 %v11507_v2  ;;  %v11585_v2 = vld [vmem:[%s13149_s8 + $0xe60] ss:$8 sps:$4 sm:$0xff]  }
 0x2e1   : > { %9609 = vmatpush1.bf16.msra.mxu1 %v11510_v3  ;;  %9557 = vmatprep.subr.bf16.mxu0 %v11515_v4  ;;  %v11588_v3 = vld [vmem:[%s13149_s8 + $0xf60] ss:$8 sps:$4 sm:$0xff]  }
 0x2e2   : > { %9610 = vmatprep.subr.bf16.mxu1 %v11518_v29 }
 0x2e4   : > { %9558 = vmatpush1.bf16.msra.mxu0 %v11513_v18  ;;  %v11596_v18 = vld [vmem:[%s13149_s8 + $0xe54] ss:$8 sps:$4 sm:$0xff]  }
 0x2e5   : > { %9611 = vmatpush1.bf16.msra.mxu1 %v11516_v7  ;;  %9559 = vmatprep.subr.bf16.mxu0 %v11521_v8  ;;  %v11599_v7 = vld [vmem:[%s13149_s8 + $0xf54] ss:$8 sps:$4 sm:$0xff]  }
 0x2e6   : > { %9612 = vmatprep.subr.bf16.mxu1 %v11524_v9 }
 0x2e8   : > { %9560 = vmatpush1.bf16.msra.mxu0 %v11519_v11 }
 0x2e9   : > { %9613 = vmatpush1.bf16.msra.mxu1 %v11522_v34  ;;  %9561 = vmatprep.subr.bf16.mxu0 %v11527_v13  ;;  %v11593_v34 = vld [vmem:[%s14204_s0 + $0x180] ss:$144 sps:$4 sm:$0xff]   ;;  %v11602_v13 = vld [vmem:[%s14204_s0 + $0x188] ss:$144 sps:$4 sm:$0xff]  }
 0x2ea   : > { %9614 = vmatprep.subr.bf16.mxu1 %v11530_v14 }
 0x2ec   : > { %9562 = vmatpush2.bf16.msra.mxu0 %v11525_v15 }
 0x2ed   : > { %9615 = vmatpush2.bf16.msra.mxu1 %v11528_v16  ;;  %9563 = vmatprep.subr.bf16.mxu0 %v11533_v39  ;;  %v11597_v16 = vld [vmem:[%s13149_s8 + $0xf50] ss:$8 sps:$4 sm:$0xff]  }
 0x2ee   : > { %9616 = vmatprep.subr.bf16.mxu1 %v11536_v19 }
 0x2f0   : > { %9564 = vmatpush2.bf16.msra.mxu0 %v11531_v20  ;;  %v11605_v20 = vld [vmem:[%s13149_s8 + $0xe44] ss:$8 sps:$4 sm:$0xff]  }
 0x2f1   : > { %9617 = vmatpush2.bf16.msra.mxu1 %v11534_v21  ;;  %9565 = vmatprep.subr.bf16.mxu0 %v11539_v22  ;;  %v11608_v21 = vld [vmem:[%s13149_s8 + $0xf44] ss:$8 sps:$4 sm:$0xff]  }
 0x2f2   : > { %9618 = vmatprep.subr.bf16.mxu1 %v11542_v43 }
 0x2f4   : > { %9566 = vmatpush2.bf16.msra.mxu0 %v11537_v23  ;;  %v11686_v23 = vld [vmem:[%s14204_s0 + $0x7c] ss:$144 sps:$4 sm:$0xff]  }
 0x2f5   : > { %9619 = vmatpush2.bf16.msra.mxu1 %v11540_v25  ;;  %9567 = vmatprep.subr.bf16.mxu0 %v11545_v41 }
 0x2f6   : > { %9620 = vmatprep.subr.bf16.mxu1 %v11548_v26 }
 0x2f8   : > { %9568 = vmatpush2.bf16.msra.mxu0 %v11543_v28 }
 0x2f9   : > { %9621 = vmatpush2.bf16.msra.mxu1 %v11546_v30  ;;  %9569 = vmatprep.subr.bf16.mxu0 %v11551_v32  ;;  %v11606_v30 = vld [vmem:[%s13149_s8 + $0xf40] ss:$8 sps:$4 sm:$0xff]  }
 0x2fa   : > { %9622 = vmatprep.subr.bf16.mxu1 %v11554_v33 }
 0x2fc   : > { %9570 = vmatpush2.bf16.msra.mxu0 %v11549_v48  ;;  %v11611_v48 = vld [vmem:[%s13149_s8 + $0xe34] ss:$8 sps:$4 sm:$0xff]  }
 0x2fd   : > { %9623 = vmatpush2.bf16.msra.mxu1 %v11552_v35  ;;  %9571 = vmatprep.subr.bf16.mxu0 %v11557_v36  ;;  %v11614_v35 = vld [vmem:[%s13149_s8 + $0xf34] ss:$8 sps:$4 sm:$0xff]  }
 0x2fe   : > { %9624 = vmatprep.subr.bf16.mxu1 %v11560_v37 }
 0x300   : > { %9572 = vmatpush2.bf16.msra.mxu0 %v11555_v40  ;;  %v11609_v40 = vld [vmem:[%s13149_s8 + $0xe30] ss:$8 sps:$4 sm:$0xff]  }
 0x301   : > { %9625 = vmatpush2.bf16.msra.mxu1 %v11558_v42  ;;  %9573 = vmatprep.subr.bf16.mxu0 %v11563_v54  ;;  %v11612_v42 = vld [vmem:[%s13149_s8 + $0xf30] ss:$8 sps:$4 sm:$0xff]   ;;  %v11617_v54 = vld [vmem:[%s13149_s8 + $0xe24] ss:$8 sps:$4 sm:$0xff]  }
 0x302   : > { %9626 = vmatprep.subr.bf16.mxu1 %v11566_v56  ;;  %v11615_v56 = vld [vmem:[%s13149_s8 + $0xe20] ss:$8 sps:$4 sm:$0xff]  }
 0x304   : > { %9574 = vmatpush2.bf16.msra.mxu0 %v11561_v44  ;;  %v11618_v44 = vld [vmem:[%s13149_s8 + $0xf20] ss:$8 sps:$4 sm:$0xff]  }
 0x305   : > { %9627 = vmatpush2.bf16.msra.mxu1 %v11564_v45  ;;  %9575 = vmatprep.subr.bf16.mxu0 %v11569_v46  ;;  %v11623_v45 = vld [vmem:[%s13149_s8 + $0xe14] ss:$8 sps:$4 sm:$0xff]  }
 0x306   : > { %9628 = vmatprep.subr.bf16.mxu1 %v11572_v61  ;;  %v11626_v46 = vld [vmem:[%s13149_s8 + $0xf14] ss:$8 sps:$4 sm:$0xff]   ;;  %v11621_v61 = vld [vmem:[%s13149_s8 + $0xe10] ss:$8 sps:$4 sm:$0xff]  }
 0x308   : > { %9576 = vmatpush2.bf16.msra.mxu0 %v11567_v49  ;;  %v11624_v49 = vld [vmem:[%s13149_s8 + $0xf10] ss:$8 sps:$4 sm:$0xff]  }
 0x309   : > { %9629 = vmatpush2.bf16.msra.mxu1 %v11570_v63  ;;  %9651 = vmatprep.subr.bf16.mxu0 %v11581_v50  ;;  %v11629_v63 = vld [vmem:[%s13149_s8 + $0xe04] ss:$8 sps:$4 sm:$0xff]  }
 0x30a   : > { %9704 = vmatprep.subr.bf16.mxu1 %v11584_v51  ;;  %v11632_v50 = vld [vmem:[%s13149_s8 + $0xf04] ss:$8 sps:$4 sm:$0xff]   ;;  %v11627_v51 = vld [vmem:[%s13149_s8 + $0xe00] ss:$8 sps:$4 sm:$0xff]  }
 0x30b   : > { %v9261_v62 = vpop.f32.mrf.mxu0  ;;  %9578 = vmatmul.mubr.bf16.vlgmr.msra.gmra.mxu0 %v11573_v52  ;;  %v11630_v52 = vld [vmem:[%s13149_s8 + $0xf00] ss:$8 sps:$4 sm:$0xff]  }
 0x30c   : > { %v9314_v12 = vpop.f32.mrf.mxu1  ;;  %9631 = vmatmul.mubr.bf16.vlgmr.msra.gmra.mxu1 %v11576_v55  ;;  %v9262_v0 = vadd.f32 %v9261_v62, %v13741_v24  ;;  %9652 = vmatpush1.bf16.msra.mxu0 %v11579_v57  ;;  %v11635_v55 = vld [vmem:[%s13149_s8 + $0xef4] ss:$8 sps:$4 sm:$0xff]   ;;  %v11642_v62 = vld [vmem:[%s13149_s8 + $0xfe0] ss:$8 sps:$4 sm:$0xff]  }
 0x30d   : > { %9705 = vmatpush1.bf16.msra.mxu1 %v11582_v5  ;;  %v9263_v4 = vpop.f32.mrf.mxu0  ;;  %9653 = vmatprep.subr.bf16.mxu0 %v11587_v6  ;;  %v11638_v57 = vld [vmem:[%s13149_s8 + $0xff4] ss:$8 sps:$4 sm:$0xff]   ;;  %v11633_v5 = vld [vmem:[%s13149_s8 + $0xef0] ss:$8 sps:$4 sm:$0xff]  }
 0x30e   : > { %v9316_v29 = vpop.f32.mrf.mxu1  ;;  %9706 = vmatprep.subr.bf16.mxu1 %v11590_v58  ;;  %v13850_v8 = vadd.f32 %v9314_v12, %v9262_v0  ;;  %v9264_v9 = vadd.f32 %v9263_v4, %v13748_v31  ;;  %9587 = vmatprep.mubr.bf16.mxu0 %v11591_v10  ;;  %v11594_v31 = vld [vmem:[%s13149_s8 + $0xe50] ss:$8 sps:$4 sm:$0xff]   ;;  %v11641_v58 = vld [vmem:[%s13149_s8 + $0xee4] ss:$8 sps:$4 sm:$0xff]   ;;  %v11647_v12 = vld [vmem:[%s13149_s8 + $0xed4] ss:$8 sps:$4 sm:$0xff]  }
 0x30f   : > { %9640 = vmatprep.mubr.bf16.mxu1 %v11600_v60  ;;  %v9265_v24 = vpop.f32.mrf.mxu0  ;;  %v11636_v6 = vld [vmem:[%s13149_s8 + $0xff0] ss:$8 sps:$4 sm:$0xff]   ;;  %v11644_v10 = vld [vmem:[%s13149_s8 + $0xfe4] ss:$8 sps:$4 sm:$0xff]   ;;  %v11639_v60 = vld [vmem:[%s13149_s8 + $0xee0] ss:$8 sps:$4 sm:$0xff]  }
 0x310   : > { %v9318_v11 = vpop.f32.mrf.mxu1  ;;  %v13859_v14 = vadd.f32 %v9316_v29, %v9264_v9  ;;  %v9266_v15 = vadd.f32 %v9265_v24, %v13754_v38  ;;  %9654 = vmatpush1.bf16.msra.mxu0 %v11585_v2  ;;  %v11683_v38 = vld [vmem:[%s14204_s0 + $0x74] ss:$144 sps:$4 sm:$0xff]   ;;  %v11645_v2 = vld [vmem:[%s13149_s8 + $0xed0] ss:$8 sps:$4 sm:$0xff]  }
 0x311   : > { %9707 = vmatpush1.bf16.msra.mxu1 %v11588_v3  ;;  %v9267_v39 = vpop.f32.mrf.mxu0  ;;  %9655 = vmatprep.subr.bf16.mxu0 %v11596_v18  ;;  %v11650_v0 = vld [vmem:[%s13149_s8 + $0xfd4] ss:$8 sps:$4 sm:$0xff]   ;;  %v11648_v3 = vld [vmem:[%s13149_s8 + $0xfd0] ss:$8 sps:$4 sm:$0xff]   ;;  %v11653_v4 = vld [vmem:[%s13149_s8 + $0xec4] ss:$8 sps:$4 sm:$0xff]  }
 0x312   : > { %v9320_v19 = vpop.f32.mrf.mxu1  ;;  %9708 = vmatprep.subr.bf16.mxu1 %v11599_v7  ;;  %v13866_v22 = vadd.f32 %v9318_v11, %v9266_v15  ;;  %v9268_v43 = vadd.f32 %v9267_v39, %v13765_v47  ;;  %v11603_v47 = vld [vmem:[%s13149_s8 + $0xe40] ss:$8 sps:$4 sm:$0xff]   ;;  %v11656_v29 = vld [vmem:[%s13149_s8 + $0xfc4] ss:$8 sps:$4 sm:$0xff]   ;;  %v11659_v9 = vld [vmem:[%s13149_s8 + $0xeb4] ss:$8 sps:$4 sm:$0xff]  }
 0x313   : > { %v9271_v25 = vpop.f32.mrf.mxu0  ;;  %9588 = vmatmul.mubr.bf16.gmra.mxu0 %v11593_v34  ;;  %v11651_v18 = vld [vmem:[%s13149_s8 + $0xec0] ss:$8 sps:$4 sm:$0xff]   ;;  %v11662_v24 = vld [vmem:[%s13149_s8 + $0xfb4] ss:$8 sps:$4 sm:$0xff]   ;;  %v11657_v11 = vld [vmem:[%s13149_s8 + $0xeb0] ss:$8 sps:$4 sm:$0xff]  }
 0x314   : > { %v9324_v41 = vpop.f32.mrf.mxu1  ;;  %9641 = vmatmul.mubr.bf16.gmra.mxu1 %v11602_v13  ;;  %v13875_v26 = vadd.f32 %v9320_v19, %v9268_v43  ;;  %v9272_v28 = vadd.f32 %v9271_v25, %v13771_v53  ;;  %9656 = vmatpush1.bf16.msra.mxu0 %v11594_v31  ;;  %v11654_v7 = vld [vmem:[%s13149_s8 + $0xfc0] ss:$8 sps:$4 sm:$0xff]   ;;  %v11660_v34 = vld [vmem:[%s13149_s8 + $0xfb0] ss:$8 sps:$4 sm:$0xff]   ;;  %v11665_v13 = vld [vmem:[%s13149_s8 + $0xea4] ss:$8 sps:$4 sm:$0xff]  }
 0x315   : > { %9709 = vmatpush1.bf16.msra.mxu1 %v11597_v16  ;;  %v9273_v32 = vpop.f32.mrf.mxu0  ;;  %9657 = vmatprep.subr.bf16.mxu0 %v11605_v20  ;;  %v11668_v15 = vld [vmem:[%s13149_s8 + $0xfa4] ss:$8 sps:$4 sm:$0xff]   ;;  %v11663_v31 = vld [vmem:[%s13149_s8 + $0xea0] ss:$8 sps:$4 sm:$0xff]   ;;  %v11671_v39 = vld [vmem:[%s13149_s8 + $0xe94] ss:$8 sps:$4 sm:$0xff]  }
 0x316   : > { %v9326_v33 = vpop.f32.mrf.mxu1  ;;  %9710 = vmatprep.subr.bf16.mxu1 %v11608_v21  ;;  %v9274_v36 = vadd.f32 %v9273_v32, %v13776_v59  ;;  %v13883_v37 = vadd.f32 %v9324_v41, %v9272_v28  ;;  %9683 = vmatprep.mubr.bf16.mxu0 %v11683_v38  ;;  %v11620_v59 = vld [vmem:[%s13149_s8 + $0xf24] ss:$8 sps:$4 sm:$0xff]   ;;  %v11666_v16 = vld [vmem:[%s13149_s8 + $0xfa0] ss:$8 sps:$4 sm:$0xff]   ;;  %v11674_v19 = vld [vmem:[%s13149_s8 + $0xf94] ss:$8 sps:$4 sm:$0xff]  }
 0x317   : > { %9736 = vmatprep.mubr.bf16.mxu1 %v11686_v23  ;;  %v11669_v20 = vld [vmem:[%s13149_s8 + $0xe90] ss:$8 sps:$4 sm:$0xff]   ;;  %v11677_v43 = vld [vmem:[%s13149_s8 + $0xe84] ss:$8 sps:$4 sm:$0xff]   ;;  %v11675_v23 = vld [vmem:[%s13149_s8 + $0xe80] ss:$8 sps:$4 sm:$0xff]   ;;  %v13933_v41 = vpop.f32.mrf.mxu0 }
 0x318   : > { %v13885_v53 = vadd.f32 %v9326_v33, %v9274_v36  ;;  %9658 = vmatpush1.bf16.msra.mxu0 %v11603_v47  ;;  %v11672_v21 = vld [vmem:[%s13149_s8 + $0xf90] ss:$8 sps:$4 sm:$0xff]   ;;  %v11680_v38 = vld [vmem:[%s13149_s8 + $0xf84] ss:$8 sps:$4 sm:$0xff]   ;;  %v11678_v25 = vld [vmem:[%s13149_s8 + $0xf80] ss:$8 sps:$4 sm:$0xff]  }
 0x319   : > { %9711 = vmatpush1.bf16.msra.mxu1 %v11606_v30  ;;  %9659 = vmatprep.subr.bf16.mxu0 %v11611_v48  ;;  %v11689_v28 = vld [vmem:[%s13149_s8 + $0x1074] ss:$8 sps:$4 sm:$0xff]   ;;  %v13937_v30 = vpop.f32.mrf.mxu1  ;;  %v11681_v32 = vld [vmem:[%s14204_s0 + $0x70] ss:$144 sps:$4 sm:$0xff]   ;;  %v11684_v33 = vld [vmem:[%s14204_s0 + $0x78] ss:$144 sps:$4 sm:$0xff]   ;;  %v13947_v36 = vpop.f32.mrf.mxu0 }
 0x31a   : > { %9712 = vmatprep.subr.bf16.mxu1 %v11614_v35  ;;  %v11692_v47 = vld [vmem:[%s13149_s8 + $0x1174] ss:$8 sps:$4 sm:$0xff]   ;;  %v11687_v48 = vld [vmem:[%s13149_s8 + $0x1070] ss:$8 sps:$4 sm:$0xff]  }
 0x31b   : > { %v11690_v35 = vld [vmem:[%s13149_s8 + $0x1170] ss:$8 sps:$4 sm:$0xff]  }
 0x31c   : > { %9660 = vmatpush1.bf16.msra.mxu0 %v11609_v40  ;;  %v11695_v40 = vld [vmem:[%s13149_s8 + $0x1064] ss:$8 sps:$4 sm:$0xff]  }
 0x31d   : > { %9713 = vmatpush1.bf16.msra.mxu1 %v11612_v42  ;;  %9661 = vmatprep.subr.bf16.mxu0 %v11617_v54  ;;  %v11698_v42 = vld [vmem:[%s13149_s8 + $0x1164] ss:$8 sps:$4 sm:$0xff]  }
 0x31e   : > { %9714 = vmatprep.subr.bf16.mxu1 %v11620_v59  ;;  %v11699_v54 = vld [vmem:[%s14204_s0 + $0x194] ss:$144 sps:$4 sm:$0xff]   ;;  %v11708_v59 = vld [vmem:[%s14204_s0 + $0x19c] ss:$144 sps:$4 sm:$0xff]  }
 0x320   : > { %9662 = vmatpush1.bf16.msra.mxu0 %v11615_v56  ;;  %v13957_v56 = vpop.f32.mrf.mxu1 }
 0x321   : > { %9715 = vmatpush1.bf16.msra.mxu1 %v11618_v44  ;;  %9663 = vmatprep.subr.bf16.mxu0 %v11623_v45 }
 0x322   : > { %9716 = vmatprep.subr.bf16.mxu1 %v11626_v46  ;;  %v11693_v46 = vld [vmem:[%s13149_s8 + $0x1060] ss:$8 sps:$4 sm:$0xff]  }
 0x324   : > { %9664 = vmatpush1.bf16.msra.mxu0 %v11621_v61  ;;  %v11696_v61 = vld [vmem:[%s13149_s8 + $0x1160] ss:$8 sps:$4 sm:$0xff]  }
 0x325   : > { %9717 = vmatpush1.bf16.msra.mxu1 %v11624_v49  ;;  %9665 = vmatprep.subr.bf16.mxu0 %v11629_v63  ;;  %v11704_v63 = vld [vmem:[%s13149_s8 + $0x1054] ss:$8 sps:$4 sm:$0xff]  }
 0x326   : > { %9718 = vmatprep.subr.bf16.mxu1 %v11632_v50  ;;  %v11707_v50 = vld [vmem:[%s13149_s8 + $0x1154] ss:$8 sps:$4 sm:$0xff]  }
 0x328   : > { %9666 = vmatpush1.bf16.msra.mxu0 %v11627_v51 }
 0x329   : > { %9719 = vmatpush1.bf16.msra.mxu1 %v11630_v52  ;;  %9667 = vmatprep.subr.bf16.mxu0 %v11635_v55  ;;  %v11710_v52 = vld [vmem:[%s14204_s0 + $0x198] ss:$144 sps:$4 sm:$0xff]  }
 0x32a   : > { %9720 = vmatprep.subr.bf16.mxu1 %v11638_v57  ;;  %v11702_v55 = vld [vmem:[%s13149_s8 + $0x1050] ss:$8 sps:$4 sm:$0xff]  }
 0x32b   : > { %v11705_v57 = vld [vmem:[%s13149_s8 + $0x1150] ss:$8 sps:$4 sm:$0xff]  }
 0x32c   : > { %9668 = vmatpush2.bf16.msra.mxu0 %v11633_v5  ;;  %v11713_v5 = vld [vmem:[%s13149_s8 + $0x1044] ss:$8 sps:$4 sm:$0xff]  }
 0x32d   : > { %9721 = vmatpush2.bf16.msra.mxu1 %v11636_v6  ;;  %9669 = vmatprep.subr.bf16.mxu0 %v11641_v58  ;;  %v11716_v6 = vld [vmem:[%s13149_s8 + $0x1144] ss:$8 sps:$4 sm:$0xff]  }
 0x32e   : > { %9722 = vmatprep.subr.bf16.mxu1 %v11644_v10  ;;  %v11791_v58 = vld [vmem:[%s14204_s0 + $0x84] ss:$144 sps:$4 sm:$0xff]   ;;  %v11794_v10 = vld [vmem:[%s14204_s0 + $0x8c] ss:$144 sps:$4 sm:$0xff]  }
 0x330   : > { %9670 = vmatpush2.bf16.msra.mxu0 %v11639_v60  ;;  %v11711_v60 = vld [vmem:[%s13149_s8 + $0x1040] ss:$8 sps:$4 sm:$0xff]  }
 0x331   : > { %9723 = vmatpush2.bf16.msra.mxu1 %v11642_v62  ;;  %9671 = vmatprep.subr.bf16.mxu0 %v11647_v12  ;;  %v11714_v62 = vld [vmem:[%s13149_s8 + $0x1140] ss:$8 sps:$4 sm:$0xff]   ;;  %v11719_v12 = vld [vmem:[%s13149_s8 + $0x1034] ss:$8 sps:$4 sm:$0xff]  }
 0x332   : > { %9724 = vmatprep.subr.bf16.mxu1 %v11650_v0  ;;  %v11722_v0 = vld [vmem:[%s13149_s8 + $0x1134] ss:$8 sps:$4 sm:$0xff]  }
 0x334   : > { %9672 = vmatpush2.bf16.msra.mxu0 %v11645_v2  ;;  %v11717_v2 = vld [vmem:[%s13149_s8 + $0x1030] ss:$8 sps:$4 sm:$0xff]  }
 0x335   : > { %9725 = vmatpush2.bf16.msra.mxu1 %v11648_v3  ;;  %9673 = vmatprep.subr.bf16.mxu0 %v11653_v4  ;;  %v11720_v3 = vld [vmem:[%s13149_s8 + $0x1130] ss:$8 sps:$4 sm:$0xff]   ;;  %v11725_v4 = vld [vmem:[%s13149_s8 + $0x1024] ss:$8 sps:$4 sm:$0xff]  }
 0x336   : > { %9726 = vmatprep.subr.bf16.mxu1 %v11656_v29  ;;  %v11728_v29 = vld [vmem:[%s13149_s8 + $0x1124] ss:$8 sps:$4 sm:$0xff]  }
 0x338   : > { %9674 = vmatpush2.bf16.msra.mxu0 %v11651_v18  ;;  %v11723_v18 = vld [vmem:[%s13149_s8 + $0x1020] ss:$8 sps:$4 sm:$0xff]  }
 0x339   : > { %9727 = vmatpush2.bf16.msra.mxu1 %v11654_v7  ;;  %9675 = vmatprep.subr.bf16.mxu0 %v11659_v9  ;;  %v11726_v7 = vld [vmem:[%s13149_s8 + $0x1120] ss:$8 sps:$4 sm:$0xff]   ;;  %v11731_v9 = vld [vmem:[%s13149_s8 + $0x1014] ss:$8 sps:$4 sm:$0xff]  }
 0x33a   : > { %9728 = vmatprep.subr.bf16.mxu1 %v11662_v24  ;;  %v11734_v24 = vld [vmem:[%s13149_s8 + $0x1114] ss:$8 sps:$4 sm:$0xff]  }
 0x33c   : > { %9676 = vmatpush2.bf16.msra.mxu0 %v11657_v11  ;;  %v11729_v11 = vld [vmem:[%s13149_s8 + $0x1010] ss:$8 sps:$4 sm:$0xff]  }
 0x33d   : > { %9729 = vmatpush2.bf16.msra.mxu1 %v11660_v34  ;;  %9677 = vmatprep.subr.bf16.mxu0 %v11665_v13  ;;  %v11732_v34 = vld [vmem:[%s13149_s8 + $0x1110] ss:$8 sps:$4 sm:$0xff]   ;;  %v11737_v13 = vld [vmem:[%s13149_s8 + $0x1004] ss:$8 sps:$4 sm:$0xff]  }
 0x33e   : > { %9730 = vmatprep.subr.bf16.mxu1 %v11668_v15  ;;  %v11740_v15 = vld [vmem:[%s13149_s8 + $0x1104] ss:$8 sps:$4 sm:$0xff]  }
 0x340   : > { %9678 = vmatpush2.bf16.msra.mxu0 %v11663_v31  ;;  %v11735_v31 = vld [vmem:[%s13149_s8 + $0x1000] ss:$8 sps:$4 sm:$0xff]  }
 0x341   : > { %9731 = vmatpush2.bf16.msra.mxu1 %v11666_v16  ;;  %9679 = vmatprep.subr.bf16.mxu0 %v11671_v39  ;;  %v11738_v16 = vld [vmem:[%s13149_s8 + $0x1100] ss:$8 sps:$4 sm:$0xff]   ;;  %v11743_v39 = vld [vmem:[%s13149_s8 + $0x10f4] ss:$8 sps:$4 sm:$0xff]  }
 0x342   : > { %9732 = vmatprep.subr.bf16.mxu1 %v11674_v19  ;;  %v11746_v19 = vld [vmem:[%s13149_s8 + $0x11f4] ss:$8 sps:$4 sm:$0xff]  }
 0x344   : > { %9680 = vmatpush2.bf16.msra.mxu0 %v11669_v20  ;;  %v11741_v20 = vld [vmem:[%s13149_s8 + $0x10f0] ss:$8 sps:$4 sm:$0xff]  }
 0x345   : > { %9733 = vmatpush2.bf16.msra.mxu1 %v11672_v21  ;;  %9681 = vmatprep.subr.bf16.mxu0 %v11677_v43  ;;  %v11744_v21 = vld [vmem:[%s13149_s8 + $0x11f0] ss:$8 sps:$4 sm:$0xff]   ;;  %v11749_v43 = vld [vmem:[%s13149_s8 + $0x10e4] ss:$8 sps:$4 sm:$0xff]  }
 0x346   : > { %9734 = vmatprep.subr.bf16.mxu1 %v11680_v38  ;;  %v11752_v38 = vld [vmem:[%s13149_s8 + $0x11e4] ss:$8 sps:$4 sm:$0xff]  }
 0x348   : > { %9682 = vmatpush2.bf16.msra.mxu0 %v11675_v23  ;;  %v11747_v23 = vld [vmem:[%s13149_s8 + $0x10e0] ss:$8 sps:$4 sm:$0xff]  }
 0x349   : > { %9735 = vmatpush2.bf16.msra.mxu1 %v11678_v25  ;;  %9757 = vmatprep.subr.bf16.mxu0 %v11689_v28  ;;  %v11750_v25 = vld [vmem:[%s13149_s8 + $0x11e0] ss:$8 sps:$4 sm:$0xff]   ;;  %v11755_v28 = vld [vmem:[%s13149_s8 + $0x10d4] ss:$8 sps:$4 sm:$0xff]  }
 0x34a   : > { %9810 = vmatprep.subr.bf16.mxu1 %v11692_v47  ;;  %v11758_v47 = vld [vmem:[%s13149_s8 + $0x11d4] ss:$8 sps:$4 sm:$0xff]  }
 0x34b   : > { %v9367_v44 = vpop.f32.mrf.mxu0  ;;  %9684 = vmatmul.mubr.bf16.vlgmr.msra.gmra.mxu0 %v11681_v32  ;;  %v11753_v32 = vld [vmem:[%s13149_s8 + $0x10d0] ss:$8 sps:$4 sm:$0xff]  }
 0x34c   : > { %9737 = vmatmul.mubr.bf16.vlgmr.msra.gmra.mxu1 %v11684_v33  ;;  %v9368_v45 = vadd.f32 %v9367_v44, %v13850_v8  ;;  %9758 = vmatpush1.bf16.msra.mxu0 %v11687_v48  ;;  %v9420_v49 = vpop.f32.mrf.mxu1  ;;  %v11701_v8 = vld [vmem:[%s14204_s0 + $0x190] ss:$144 sps:$4 sm:$0xff]   ;;  %v11761_v48 = vld [vmem:[%s13149_s8 + $0x10c4] ss:$8 sps:$4 sm:$0xff]  }
 0x34d   : > { %9811 = vmatpush1.bf16.msra.mxu1 %v11690_v35  ;;  %9759 = vmatprep.subr.bf16.mxu0 %v11695_v40  ;;  %v11756_v33 = vld [vmem:[%s13149_s8 + $0x11d0] ss:$8 sps:$4 sm:$0xff]   ;;  %v11764_v35 = vld [vmem:[%s13149_s8 + $0x11c4] ss:$8 sps:$4 sm:$0xff]   ;;  %v11759_v40 = vld [vmem:[%s13149_s8 + $0x10c0] ss:$8 sps:$4 sm:$0xff]  }
 0x34e   : > { %9812 = vmatprep.subr.bf16.mxu1 %v11698_v42  ;;  %v13964_v51 = vadd.f32 %v9420_v49, %v9368_v45  ;;  %9693 = vmatprep.mubr.bf16.mxu0 %v11699_v54  ;;  %v11762_v42 = vld [vmem:[%s13149_s8 + $0x11c0] ss:$8 sps:$4 sm:$0xff]   ;;  %v11767_v54 = vld [vmem:[%s13149_s8 + $0x10b4] ss:$8 sps:$4 sm:$0xff]   ;;  %v11765_v44 = vld [vmem:[%s13149_s8 + $0x10b0] ss:$8 sps:$4 sm:$0xff]  }
 0x34f   : > { %9746 = vmatprep.mubr.bf16.mxu1 %v11708_v59  ;;  %v11770_v59 = vld [vmem:[%s13149_s8 + $0x11b4] ss:$8 sps:$4 sm:$0xff]   ;;  %v11768_v45 = vld [vmem:[%s13149_s8 + $0x11b0] ss:$8 sps:$4 sm:$0xff]   ;;  %v11771_v49 = vld [vmem:[%s13149_s8 + $0x10a0] ss:$8 sps:$4 sm:$0xff]  }
 0x350   : > { %9760 = vmatpush1.bf16.msra.mxu0 %v11693_v46  ;;  %v11773_v46 = vld [vmem:[%s13149_s8 + $0x10a4] ss:$8 sps:$4 sm:$0xff]  }
 0x351   : > { %9813 = vmatpush1.bf16.msra.mxu1 %v11696_v61  ;;  %9761 = vmatprep.subr.bf16.mxu0 %v11704_v63  ;;  %v11776_v61 = vld [vmem:[%s13149_s8 + $0x11a4] ss:$8 sps:$4 sm:$0xff]   ;;  %v11774_v63 = vld [vmem:[%s13149_s8 + $0x11a0] ss:$8 sps:$4 sm:$0xff]  }
 0x352   : > { %9814 = vmatprep.subr.bf16.mxu1 %v11707_v50  ;;  %v11779_v50 = vld [vmem:[%s13149_s8 + $0x1094] ss:$8 sps:$4 sm:$0xff]  }
 0x353   : > { %9694 = vmatmul.mubr.bf16.gmra.mxu0 %v11701_v8  ;;  %v11782_v8 = vld [vmem:[%s13149_s8 + $0x1194] ss:$8 sps:$4 sm:$0xff]  }
 0x354   : > { %9747 = vmatmul.mubr.bf16.gmra.mxu1 %v11710_v52  ;;  %9762 = vmatpush1.bf16.msra.mxu0 %v11702_v55  ;;  %v11777_v52 = vld [vmem:[%s13149_s8 + $0x1090] ss:$8 sps:$4 sm:$0xff]  }
 0x355   : > { %9815 = vmatpush1.bf16.msra.mxu1 %v11705_v57  ;;  %9763 = vmatprep.subr.bf16.mxu0 %v11713_v5  ;;  %v11780_v55 = vld [vmem:[%s13149_s8 + $0x1190] ss:$8 sps:$4 sm:$0xff]   ;;  %v11785_v57 = vld [vmem:[%s13149_s8 + $0x1084] ss:$8 sps:$4 sm:$0xff]  }
 0x356   : > { %9816 = vmatprep.subr.bf16.mxu1 %v11716_v6  ;;  %9789 = vmatprep.mubr.bf16.mxu0 %v11791_v58  ;;  %v11788_v5 = vld [vmem:[%s13149_s8 + $0x1184] ss:$8 sps:$4 sm:$0xff]   ;;  %v11783_v6 = vld [vmem:[%s13149_s8 + $0x1080] ss:$8 sps:$4 sm:$0xff]  }
 0x357   : > { %9842 = vmatprep.mubr.bf16.mxu1 %v11794_v10  ;;  %v11786_v58 = vld [vmem:[%s13149_s8 + $0x1180] ss:$8 sps:$4 sm:$0xff]   ;;  %s11805_s8 = sshll.u32 %s11880_s18, 4  ;;  %s11806_s8 = int_to_ptr.vmem [resolvable:$false] %s11805_s8 }
 0x358   : > { %9764 = vmatpush1.bf16.msra.mxu0 %v11711_v60  ;;  %v11789_v10 = vld [vmem:[%s14204_s0 + $0x80] ss:$144 sps:$4 sm:$0xff]   ;;  %v11792_v60 = vld [vmem:[%s14204_s0 + $0x88] ss:$144 sps:$4 sm:$0xff]   ;;  %s11807_s9 = scalar_lea.vmem %s11806_s8, 128  ;;  %p11808_p4 = scmp.lt.s32.totalorder %s9975_s24, %s11806_s8 }
 0x359   : > { %9817 = vmatpush1.bf16.msra.mxu1 %v11714_v62  ;;  %9765 = vmatprep.subr.bf16.mxu0 %v11719_v12  ;;  %v11795_v62 = vld [vmem:[%s14204_s0 + $0x1a4] ss:$144 sps:$4 sm:$0xff]   ;;  %v11797_v12 = vld [vmem:[%s14204_s0 + $0x1ac] ss:$144 sps:$4 sm:$0xff]   ;;  %p11809_p6 = scmp.lt.s32.totalorder %s11807_s9, %s11801_s7 }
 0x35a   : > { %9818 = vmatprep.subr.bf16.mxu1 %v11722_v0  ;;  %v11799_v0 = vld [vmem:[%s14204_s0 + $0x1a0] ss:$144 sps:$4 sm:$0xff]  }
 0x35b   : > { %p11810_p7 = por %p11809_p6, %p11808_p4 }
 0x35c   : > { %9766 = vmatpush1.bf16.msra.mxu0 %v11717_v2  ;;  %v11800_v2 = vld [vmem:[%s14204_s0 + $0x1a8] ss:$144 sps:$4 sm:$0xff]  }
 0x35d   : > { %9819 = vmatpush1.bf16.msra.mxu1 %v11720_v3  ;;  %9767 = vmatprep.subr.bf16.mxu0 %v11725_v4  ;;  %v9369_v3 = vpop.f32.mrf.mxu0  ;;  %p11811_p8 = pnand %p11810_p7, %p11804_p3 }
 0x35e   : > { %9820 = vmatprep.subr.bf16.mxu1 %v11728_v29  ;;  %v9422_v29 = vpop.f32.mrf.mxu1  ;;  %v9370_v27 = vadd.f32 %v9369_v3, %v13859_v14  ;;  %v9278_v14 = vadd.f32 %v13947_v36, %v13783_v17 }
 0x35f   : > { %v9371_v4 = vpop.f32.mrf.mxu0 }
 0x360   : > { %9768 = vmatpush1.bf16.msra.mxu0 %v11723_v18 }
 0x361   : > { %9821 = vmatpush1.bf16.msra.mxu1 %v11726_v7  ;;  %9769 = vmatprep.subr.bf16.mxu0 %v11731_v9  ;;  %v9373_v18 = vpop.f32.mrf.mxu0  ;;  %v9424_v7 = vpop.f32.mrf.mxu1 }
 0x362   : > { %9822 = vmatprep.subr.bf16.mxu1 %v11734_v24 }
 0x363   : > { %v9377_v9 = vpop.f32.mrf.mxu0  ;;  %v9426_v24 = vpop.f32.mrf.mxu1 }
 0x364   : > { %9770 = vmatpush1.bf16.msra.mxu0 %v11729_v11 }
 0x365   : > { %9823 = vmatpush1.bf16.msra.mxu1 %v11732_v34  ;;  %9771 = vmatprep.subr.bf16.mxu0 %v11737_v13  ;;  %v9379_v11 = vpop.f32.mrf.mxu0  ;;  %v14050_v34 = vpop.f32.mrf.mxu1 }
 0x366   : > { %9824 = vmatprep.subr.bf16.mxu1 %v11740_v15 }
 0x367   : > { %v14052_v13 = vpop.f32.mrf.mxu0  ;;  %v14054_v15 = vpop.f32.mrf.mxu1 }
 0x368   : > { %9772 = vmatpush1.bf16.msra.mxu0 %v11735_v31 }
 0x369   : > { %9825 = vmatpush1.bf16.msra.mxu1 %v11738_v16  ;;  %9773 = vmatprep.subr.bf16.mxu0 %v11743_v39  ;;  %v14056_v31 = vpop.f32.mrf.mxu0  ;;  %v14058_v16 = vpop.f32.mrf.mxu1 }
 0x36a   : > { %9826 = vmatprep.subr.bf16.mxu1 %v11746_v19 }
 0x36b   : > { %v14060_v19 = vpop.f32.mrf.mxu1 }
 0x36c   : > { %9774 = vmatpush2.bf16.msra.mxu0 %v11741_v20 }
 0x36d   : > { %9827 = vmatpush2.bf16.msra.mxu1 %v11744_v21  ;;  %9775 = vmatprep.subr.bf16.mxu0 %v11749_v43 }
 0x36e   : > { %9828 = vmatprep.subr.bf16.mxu1 %v11752_v38 }
 0x370   : > { %9776 = vmatpush2.bf16.msra.mxu0 %v11747_v23 }
 0x371   : > { %9829 = vmatpush2.bf16.msra.mxu1 %v11750_v25  ;;  %9777 = vmatprep.subr.bf16.mxu0 %v11755_v28 }
 0x372   : > { %9830 = vmatprep.subr.bf16.mxu1 %v11758_v47 }
 0x374   : > { %9778 = vmatpush2.bf16.msra.mxu0 %v11753_v32 }
 0x375   : > { %9831 = vmatpush2.bf16.msra.mxu1 %v11756_v33  ;;  %9779 = vmatprep.subr.bf16.mxu0 %v11761_v48 }
 0x376   : > { %9832 = vmatprep.subr.bf16.mxu1 %v11764_v35 }
 0x378   : > { %9780 = vmatpush2.bf16.msra.mxu0 %v11759_v40 }
 0x379   : > { %9833 = vmatpush2.bf16.msra.mxu1 %v11762_v42  ;;  %9781 = vmatprep.subr.bf16.mxu0 %v11767_v54 }
 0x37a   : > { %9834 = vmatprep.subr.bf16.mxu1 %v11770_v59 }
 0x37c   : > { %9782 = vmatpush2.bf16.msra.mxu0 %v11765_v44 }
 0x37d   : > { %9835 = vmatpush2.bf16.msra.mxu1 %v11768_v45  ;;  %9783 = vmatprep.subr.bf16.mxu0 %v11773_v46 }
 0x37e   : > { %9836 = vmatprep.subr.bf16.mxu1 %v11776_v61 }
 0x380   : > { %9784 = vmatpush2.bf16.msra.mxu0 %v11771_v49 }
 0x381   : > { %9837 = vmatpush2.bf16.msra.mxu1 %v11774_v63  ;;  %9785 = vmatprep.subr.bf16.mxu0 %v11779_v50 }
 0x382   : > { %9838 = vmatprep.subr.bf16.mxu1 %v11782_v8 }
 0x384   : > { %9786 = vmatpush2.bf16.msra.mxu0 %v11777_v52 }
 0x385   : > { %9839 = vmatpush2.bf16.msra.mxu1 %v11780_v55  ;;  %9787 = vmatprep.subr.bf16.mxu0 %v11785_v57 }
 0x386   : > { %9840 = vmatprep.subr.bf16.mxu1 %v11788_v5 }
 0x388   : > { %9788 = vmatpush2.bf16.msra.mxu0 %v11783_v6 }
 0x389   : > { %9841 = vmatpush2.bf16.msra.mxu1 %v11786_v58 }
 0x38b   : > { %9790 = vmatmul.mubr.bf16.vlgmr.msra.gmra.mxu0 %v11789_v10  ;;  %v9473_v39 = vpop.f32.mrf.mxu0 }
 0x38c   : > { %9843 = vmatmul.mubr.bf16.vlgmr.msra.gmra.mxu1 %v11792_v60  ;;  %9799 = vmatprep.mubr.bf16.mxu0 %v11795_v62  ;;  %v9526_v21 = vpop.f32.mrf.mxu1 }
 0x38d   : > { %9852 = vmatprep.mubr.bf16.mxu1 %v11797_v12  ;;  %v9475_v20 = vpop.f32.mrf.mxu0 }
 0x38e   : > { %v9528_v38 = vpop.f32.mrf.mxu1 }
 0x38f   : > { %v9477_v43 = vpop.f32.mrf.mxu0 }
 0x390   : > { %v9530_v25 = vpop.f32.mrf.mxu1 }
 0x391   : > { %v9479_v23 = vpop.f32.mrf.mxu0 }
 0x392   : > { %v14062_v47 = vpop.f32.mrf.mxu1 }
 0x393   : > { %9800 = vmatmul.mubr.bf16.gmra.mxu0 %v11799_v0  ;;  %v9483_v28 = vpop.f32.mrf.mxu0 }
 0x394   : > { %9853 = vmatmul.mubr.bf16.gmra.mxu1 %v11800_v2  ;;  %v14064_v33 = vpop.f32.mrf.mxu1 }
 0x395   : > { %v9485_v32 = vpop.f32.mrf.mxu0 }
 0x396   : > { %v14068_v35 = vpop.f32.mrf.mxu1 }
 0x397   : > { %v14066_v48 = vpop.f32.mrf.mxu0 }
 0x398   : > { %v14072_v42 = vpop.f32.mrf.mxu1 }
 0x399   : > { %v14070_v40 = vpop.f32.mrf.mxu0  ;;  %14214 = vst [vmem:[#allocation8_spill] sm:$0xff] %v14072_v42 }
 0x39a   : > { %v14074_v59 = vpop.f32.mrf.mxu1 }
 0x39b   : > { %14215 = vst [vmem:[#allocation9_spill] sm:$0xff] %v14074_v59 }
 0x3cb   : > { %v9579_v54 = vpop.f32.mrf.mxu0 }
 0x3cc   : > { %v9632_v44 = vpop.f32.mrf.mxu1 }
 0x3cd   : > { %v9581_v45 = vpop.f32.mrf.mxu0 }
 0x3ce   : > { %v9634_v46 = vpop.f32.mrf.mxu1 }
 0x3cf   : > { %v9583_v61 = vpop.f32.mrf.mxu0 }
 0x3d0   : > { %v14076_v49 = vpop.f32.mrf.mxu1 }
 0x3d1   : > { %v9585_v63 = vpop.f32.mrf.mxu0 }
 0x3d2   : > { %v14078_v50 = vpop.f32.mrf.mxu1 }
 0x3d3   : > { %14216 = vst [vmem:[#allocation10_spill] sm:$0xff] %v14078_v50  ;;  %v9589_v8 = vpop.f32.mrf.mxu0 }
 0x3d4   : > { %v14080_v52 = vpop.f32.mrf.mxu1 }
 0x3d5   : > { %14217 = vst [vmem:[#allocation11_spill] sm:$0xff] %v14080_v52  ;;  %v14082_v55 = vpop.f32.mrf.mxu0 }
 0x3d6   : > { %14218 = vst [vmem:[#allocation12_spill] sm:$0xff] %v14082_v55  ;;  %v14084_v57 = vpop.f32.mrf.mxu1 }
 0x3d7   : > { %14219 = vst [vmem:[#allocation13_spill] sm:$0xff] %v14084_v57  ;;  %v14086_v5 = vpop.f32.mrf.mxu0  ;;  %v9372_v57 = vadd.f32 %v9371_v4, %v13866_v22  ;;  %v9380_v22 = vadd.f32 %v9379_v11, %v13885_v53 }
 0x3d8   : > { %14220 = vst [vmem:[#allocation14_spill] sm:$0xff] %v14086_v5  ;;  %v14088_v6 = vpop.f32.mrf.mxu1  ;;  %v9423_v5 = vadd.f32 %v9422_v29, %v9370_v27 }
 0x3d9   : > { %14221 = vst [vmem:[#allocation15_spill] sm:$0xff] %v14088_v6  ;;  %v14090_v58 = vpop.f32.mrf.mxu0  ;;  %v9374_v6 = vadd.f32 %v9373_v18, %v13875_v26  ;;  %v9425_v50 = vadd.f32 %v9424_v7, %v9372_v57  ;;  %v9331_v7 = vadd.f32 %v13957_v56, %v9278_v14  ;;  %v9433_v53 = vadd.f32 %v14054_v15, %v9380_v22 }
 0x3da   : > { %14222 = vst [vmem:[#allocation16_spill] sm:$0xff] %v14090_v58  ;;  %v14092_v10 = vpop.f32.mrf.mxu1  ;;  %v9474_v58 = vadd.f32 %v9473_v39, %v13964_v51  ;;  %v9476_v55 = vadd.f32 %v9475_v20, %v9423_v5 }
 0x3db   : > { %14223 = vst [vmem:[#allocation17_spill] sm:$0xff] %v14092_v10  ;;  %v9276_v10 = vadd.f32 %v13933_v41, %v13781_v1  ;;  %v9427_v26 = vadd.f32 %v9426_v24, %v9374_v6  ;;  %v9478_v51 = vadd.f32 %v9477_v43, %v9425_v50  ;;  %v9486_v20 = vadd.f32 %v9485_v32, %v9433_v53 }
 0x3dc   : > { %v9527_v4 = vadd.f32 %v9526_v21, %v9474_v58  ;;  %v9529_v41 = vadd.f32 %v9528_v38, %v9476_v55  ;;  %v14228_v6 = vld [vmem:[#allocation11_spill] sm:$0xff] }
 0x3dd   : > { %v9329_v29 = vadd.f32 %v13937_v30, %v9276_v10  ;;  %v9480_v18 = vadd.f32 %v9479_v23, %v9427_v26  ;;  %v9531_v24 = vadd.f32 %v9530_v25, %v9478_v51  ;;  %v9384_v30 = vadd.f32 %v14056_v31, %v9331_v7 }
 0x3de   : > { %v9582_v39 = vadd.f32 %v9581_v45, %v9529_v41  ;;  %v9539_v32 = vadd.f32 %v14068_v35, %v9486_v20 }
 0x3df   : > { %v9382_v17 = vadd.f32 %v14052_v13, %v9329_v29  ;;  %v9584_v43 = vadd.f32 %v9583_v61, %v9531_v24  ;;  %v14225_v61 = vld [vmem:[#allocation12_spill] sm:$0xff]  ;;  %v14231_v22 = vld [vmem:[#allocation14_spill] sm:$0xff] }
 0x3e0   : > { %v9635_v23 = vadd.f32 %v9634_v46, %v9582_v39  ;;  %v9592_v50 = vadd.f32 %v14225_v61, %v9539_v32 }
 0x3e1   : > { %v9435_v56 = vadd.f32 %v14058_v16, %v9382_v17  ;;  %v14233_v17 = vld [vmem:[#allocation16_spill] sm:$0xff] }
 0x3e3   : > { %v9488_v31 = vadd.f32 %v14066_v48, %v9435_v56  ;;  %v14227_v48 = vld [vmem:[#allocation8_spill] sm:$0xff] }
 0x3e5   : > { %v9541_v35 = vadd.f32 %v14227_v48, %v9488_v31 }
 0x40b   : > { %v9685_v60 = vpop.f32.mrf.mxu0 }
 0x40c   : > { %v9738_v62 = vpop.f32.mrf.mxu1 }
 0x40d   : > { %v9687_v12 = vpop.f32.mrf.mxu0 }
 0x40e   : > { %v14094_v0 = vpop.f32.mrf.mxu1  ;;  %v9688_v45 = vadd.f32 %v9687_v12, %v9635_v23 }
 0x40f   : > { %14224 = vst [vmem:[#allocation18_spill] sm:$0xff] %v14094_v0  ;;  %v9689_v2 = vpop.f32.mrf.mxu0  ;;  %v9378_v0 = vadd.f32 %v9377_v9, %v13883_v37  ;;  %v9580_v37 = vadd.f32 %v9579_v54, %v9527_v4 }
 0x410   : > { %v14097_v59 = vpop.f32.mrf.mxu1 }
 0x411   : > { %v9691_v52 = vpop.f32.mrf.mxu0  ;;  %v9431_v1 = vadd.f32 %v14050_v34, %v9378_v0  ;;  %v9533_v34 = vadd.f32 %v14062_v47, %v9480_v18  ;;  %v9633_v21 = vadd.f32 %v9632_v44, %v9580_v37  ;;  %v9637_v47 = vadd.f32 %v14076_v49, %v9584_v43  ;;  %v14230_v0 = vld [vmem:[#allocation9_spill] sm:$0xff]  ;;  %v14234_v43 = vld [vmem:[#allocation15_spill] sm:$0xff] }
 0x412   : > { %v14104_v42 = vpop.f32.mrf.mxu1 }
 0x413   : > { %v9695_v3 = vpop.f32.mrf.mxu0  ;;  %v9484_v11 = vadd.f32 %v9483_v28, %v9431_v1  ;;  %v9586_v54 = vadd.f32 %v9585_v63, %v9533_v34  ;;  %v9686_v25 = vadd.f32 %v9685_v60, %v9633_v21  ;;  %v9437_v28 = vadd.f32 %v14060_v19, %v9384_v30  ;;  %v9863_v19 = vld [vmem:[%s14135_s13] sm:$0xff]  ;;  %v9864_v1 = vld [vmem:[%s14135_s13 + $0x8] sm:$0xff] }
 0x414   : > { %v14110_v27 = vpop.f32.mrf.mxu1  ;;  %v9690_v5 = vadd.f32 %v9689_v2, %v9637_v47  ;;  %v14232_v2 = vld [vmem:[#allocation13_spill] sm:$0xff]  ;;  %v9867_v4 = vunpack.c.l.bf16 %v9863_v19  ;;  %v9869_v21 = vunpack.c.l.bf16 %v9864_v1 }
 0x415   : > { %v9697_v36 = vpop.f32.mrf.mxu0  ;;  %v9537_v15 = vadd.f32 %v14064_v33, %v9484_v11  ;;  %v9490_v16 = vadd.f32 %v14070_v40, %v9437_v28  ;;  %v14226_v33 = vld [vmem:[#allocation10_spill] sm:$0xff]  ;;  %v9739_v63 = vadd.f32 %v9738_v62, %v9686_v25  ;;  %v9594_v62 = vadd.f32 %v14231_v22, %v9541_v35 }
 0x416   : > { %v14117_v9 = vpop.f32.mrf.mxu1  ;;  %v9639_v46 = vadd.f32 %v14226_v33, %v9586_v54  ;;  %v14229_v58 = vld [vmem:[#allocation18_spill] sm:$0xff]  ;;  %v9645_v26 = vadd.f32 %v14232_v2, %v9592_v50  ;;  %v9743_v41 = vadd.f32 %v14097_v59, %v9690_v5  ;;  %v9870_v59 = vunpack.c.h.bf16 %v9864_v1  ;;  %v9865_v33 = vld [vmem:[%s14135_s13 + $0x10] sm:$0xff] }
 0x417   : > { %v9699_v38 = vpop.f32.mrf.mxu0  ;;  %v9590_v44 = vadd.f32 %v9589_v8, %v9537_v15  ;;  %v9741_v10 = vadd.f32 %v14229_v58, %v9688_v45  ;;  %v9543_v14 = vadd.f32 %v14230_v0, %v9490_v16  ;;  %v9647_v56 = vadd.f32 %v14234_v43, %v9594_v62 }
 0x418   : > { %v14123_v13 = vpop.f32.mrf.mxu1  ;;  %v9692_v60 = vadd.f32 %v9691_v52, %v9639_v46  ;;  %v9698_v24 = vadd.f32 %v9697_v36, %v9645_v26  ;;  %v9868_v52 = vunpack.c.h.bf16 %v9863_v19  ;;  %v14235_v36 = vld [vmem:[#allocation17_spill] sm:$0xff] }
 0x419   : > { %v9701_v55 = vpop.f32.mrf.mxu0  ;;  %v9643_v40 = vadd.f32 %v14228_v6, %v9590_v44  ;;  %v9596_v53 = vadd.f32 %v14233_v17, %v9543_v14  ;;  %v9700_v32 = vadd.f32 %v9699_v38, %v9647_v56  ;;  %v9871_v6 = vunpack.c.l.bf16 %v9865_v33 }
 0x41a   : > { %v14132_v57 = vpop.f32.mrf.mxu1  ;;  %v9745_v30 = vadd.f32 %v14104_v42, %v9692_v60  ;;  %v9751_v42 = vadd.f32 %v14117_v9, %v9698_v24  ;;  %v9872_v60 = vunpack.c.h.bf16 %v9865_v33 }
 0x41b   : > { %v9696_v18 = vadd.f32 %v9695_v3, %v9643_v40  ;;  %v9649_v31 = vadd.f32 %v14235_v36, %v9596_v53  ;;  %v9753_v38 = vadd.f32 %v14123_v13, %v9700_v32 }
 0x41d   : > { %v9749_v3 = vadd.f32 %v14110_v27, %v9696_v18  ;;  %v9702_v46 = vadd.f32 %v9701_v55, %v9649_v31 }
 0x41f   : > { %v9755_v0 = vadd.f32 %v14132_v57, %v9702_v46 }
 0x44b   : > { %v9791_v49 = vpop.f32.mrf.mxu0 }
 0x44c   : > { %v9844_v8 = vpop.f32.mrf.mxu1  ;;  %v9792_v12 = vadd.f32 %v9791_v49, %v9739_v63  ;;  %v9866_v49 = vld [vmem:[%s14135_s13 + $0x18] sm:$0xff] }
 0x44d   : > { %v9793_v51 = vpop.f32.mrf.mxu0  ;;  %v9873_v22 = vunpack.c.l.bf16 %v9866_v49  ;;  %v9874_v13 = vunpack.c.h.bf16 %v9866_v49  ;;  %v14236_v49 = vld [vmem:[#allocation7_spill] sm:$0xff] }
 0x44e   : > { %v9846_v29 = vpop.f32.mrf.mxu1  ;;  %v9845_v37 = vadd.f32 %v9844_v8, %v9792_v12  ;;  %v9794_v7 = vadd.f32 %v9793_v51, %v9741_v10 }
 0x44f   : > { %v9795_v11 = vpop.f32.mrf.mxu0 }
 0x450   : > { %v9848_v39 = vpop.f32.mrf.mxu1  ;;  %v9847_v20 = vadd.f32 %v9846_v29, %v9794_v7  ;;  %v9796_v34 = vadd.f32 %v9795_v11, %v9743_v41  ;;  %v9875_v54 = vadd.f32 %v9867_v4, %v9845_v37 }
 0x451   : > { %v9797_v15 = vpop.f32.mrf.mxu0 }
 0x452   : > { %v9850_v23 = vpop.f32.mrf.mxu1  ;;  %v9849_v25 = vadd.f32 %v9848_v39, %v9796_v34  ;;  %v9798_v28 = vadd.f32 %v9797_v15, %v9745_v30  ;;  %v9876_v45 = vadd.f32 %v9868_v52, %v9847_v20  ;;  %v9883_v27 = vmax.f32 %v9875_v54, 0.0 }
 0x453   : > { %v9801_v47 = vpop.f32.mrf.mxu0 }
 0x454   : > { %v9854_v44 = vpop.f32.mrf.mxu1  ;;  %v9877_v16 = vadd.f32 %v9869_v21, %v9849_v25  ;;  %v9851_v61 = vadd.f32 %v9850_v23, %v9798_v28  ;;  %v9802_v50 = vadd.f32 %v9801_v47, %v9749_v3  ;;  %v9884_v40 = vmax.f32 %v9876_v45, 0.0 }
 0x455   : > { %v9803_v63 = vpop.f32.mrf.mxu0 }
 0x456   : > { %v9856_v5 = vpop.f32.mrf.mxu1  ;;  %v9885_v19 = vmax.f32 %v9877_v16, 0.0  ;;  %v9878_v48 = vadd.f32 %v9870_v59, %v9851_v61  ;;  %v9804_v35 = vadd.f32 %v9803_v63, %v9751_v42  ;;  %v9855_v8 = vadd.f32 %v9854_v44, %v9802_v50 }
 0x457   : > { %v9805_v9 = vpop.f32.mrf.mxu0  ;;  %v11879_v50 = vmov 1983009808  }
 0x458   : > { %v9891_v58 = vadd.f32 %v9885_v19, %v9883_v27  ;;  %v9886_v10 = vmax.f32 %v9878_v48, 0.0  ;;  %v9858_v12 = vpop.f32.mrf.mxu1  ;;  %v9857_v55 = vadd.f32 %v9856_v5, %v9804_v35  ;;  %v9806_v14 = vadd.f32 %v9805_v9, %v9753_v38 }
 0x459   : > { %v9807_v62 = vpop.f32.mrf.mxu0  ;;  %v9879_v4 = vadd.f32 %v9871_v6, %v9855_v8  ;;  %v9930_v33 = vunpack.c.l.s4 %v11879_v50 }
 0x45a   : > { %v9892_v2 = vrot.slane %v9891_v58, 4  ;;  %v9898_v26 = vadd.f32 %v9886_v10, %v9884_v40  ;;  %v9859_v51 = vadd.f32 %v9858_v12, %v9806_v14  ;;  %v9808_v29 = vadd.f32 %v9807_v62, %v9755_v0  ;;  %v9860_v18 = vpop.f32.mrf.mxu1 }
 0x45b   : > { %v9880_v37 = vadd.f32 %v9872_v60, %v9857_v55  ;;  %v9887_v52 = vmax.f32 %v9879_v4, 0.0  ;;  %v9931_v27 = vunpack.c.0.s8 %v9930_v33 }
 0x45c   : > { %v9893_v1 = vadd.f32 %v9892_v2, %v9891_v58  ;;  %v9899_v41 = vrot.slane %v9898_v26, 4  ;;  %v9881_v7 = vadd.f32 %v9873_v22, %v9859_v51  ;;  %v9861_v17 = vadd.f32 %v9860_v18, %v9808_v29 }
 0x45d   : > { %v9888_v20 = vmax.f32 %v9880_v37, 0.0  ;;  %v9934_v38 = vsub.s32 %v9931_v27, %v14236_v49 }
 0x45e   : > { %v9894_v53 = vrot.slane %v9893_v1, 2  ;;  %v9900_v24 = vadd.f32 %v9899_v41, %v9898_v26  ;;  %v9889_v57 = vmax.f32 %v9881_v7, 0.0  ;;  %v9882_v11 = vadd.f32 %v9874_v13, %v9861_v17 }
 0x460   : > { %v9895_v39 = vadd.f32 %v9894_v53, %v9893_v1  ;;  %v9901_v30 = vrot.slane %v9900_v24, 2  ;;  %v9905_v34 = vadd.f32 %v9889_v57, %v9887_v52  ;;  %v9890_v21 = vmax.f32 %v9882_v11, 0.0 }
 0x462   : > { %v9896_v43 = vrot.slane %v9895_v39, 1  ;;  %v9902_v56 = vadd.f32 %v9901_v30, %v9900_v24  ;;  %v9906_v15 = vrot.slane %v9905_v34, 4  ;;  %v9912_v23 = vadd.f32 %v9890_v21, %v9888_v20 }
 0x464   : > { %v9897_v59 = vadd.f32 %v9896_v43, %v9895_v39  ;;  %v9903_v3 = vrot.slane %v9902_v56, 1  ;;  %v9907_v54 = vadd.f32 %v9906_v15, %v9905_v34  ;;  %v9913_v25 = vrot.slane %v9912_v23, 4 }
 0x466   : > { %v9904_v28 = vadd.f32 %v9903_v3, %v9902_v56  ;;  %v9908_v36 = vrot.slane %v9907_v54, 2  ;;  %v9914_v31 = vadd.f32 %v9913_v25, %v9912_v23  ;;  %v9920_v32 = vmul.f32 0.0625, %v9897_v59 }
 0x468   : > { %v9921_v42 = vmul.f32 0.0625, %v9904_v28  ;;  %v9909_v47 = vadd.f32 %v9908_v36, %v9907_v54  ;;  %v9915_v44 = vrot.slane %v9914_v31, 2 }
 0x46a   : > { %v9928_v45 = vcombine.low %v9920_v32, %v9921_v42  ;;  %v9910_v16 = vrot.slane %v9909_v47, 1  ;;  %v9916_v61 = vadd.f32 %v9915_v44, %v9914_v31 }
 0x46c   : > { %v9911_v46 = vadd.f32 %v9910_v16, %v9909_v47  ;;  %v9917_v63 = vrot.slane %v9916_v61, 1  ;;  %v9935_v6 = vrot.slane %v9928_v45, %v9934_v38 }
 0x46e   : > { %v9918_v5 = vadd.f32 %v9917_v63, %v9916_v61  ;;  %v9922_v19 = vmul.f32 0.0625, %v9911_v46 }
 0x470   : > { %v9923_v48 = vmul.f32 0.0625, %v9918_v5 }
 0x472   : > { %v9936_v35 = vcombine.low %v9922_v19, %v9923_v48 }
 0x474   : > { %v9943_v8 = vrot.slane %v9936_v35, %v9934_v38 }
 0x476   : > { %v9948_v9 = vrot.slane %v9943_v8, 7 }
 0x478   : > { %v9950_v40 = vsel %vm9949_vm0, %v9948_v9, %v9935_v6 }
 0x479   : > { %v9952_v58 = vsel %vm9951_vm1, %v9948_v9, %v9950_v40 }
 0x47a   : > { %v9954_v10 = vsel %vm9953_vm2, %v9948_v9, %v9952_v58 }
 0x47b   : > { %v9956_v60 = vsel %vm9955_vm3, %v9948_v9, %v9954_v10 }
 0x47c   : > { %9958 = vst [vmem:[%s4992_s22] sm:$0xf] %v9956_v60 }
 0x47d   : > { %11814 = shalt.err (!%p11811_p8)
}
 0x47e   : > { %s11815_s10 = scalar_lea.hbm %s14162_s5, 64  ;;  %s11819_s12 = scalar_lea.hbm %s14208_s4, 128 }
 0x47f   : > { %p11816_p11 = scmp.ne.s32.totalorder %s14162_s5, %s11815_s10  ;;  %p11820_p0 = scmp.lt.s32.totalorder %s14162_s5, %s14208_s4 }
 0x480   : > { %p11821_p1 = scmp.lt.s32.totalorder %s11819_s12, %s11815_s10 }
 0x481   : > { %p11817_p12 = pnand %p11816_p11, %p11949_p5 }
 0x482   : > { %p11822_p2 = por %p11821_p1, %p11820_p0 }
 0x483   : > { %p11818_p13 = pneg %p11817_p12 }
 0x485   : > { %p11823_p3 = pnand %p11822_p2, %p11818_p13 }
 0x487   : > { %11826 = shalt.err (!%p11823_p3)
}
 0x488   : > { %10773 = dma.vmem_to_hbm [thread:$0]  (%p11949_p5), %s9975_s24, 64, %s14162_s5, %s9960_s6  }
 0x489 PF: > { %s9986_s21 = sand.u32 1, %s11857_s15   ;;  %p10776_p4 = pnand %p10105_p10, %p11960_p9 }
 0x48a   : > { %s9987_s22 = scalar_lea.sflag [#allocation5], %s9986_s21 }
 0x48b   : > { %p10777_p6 = pneg %p10776_p4 }
 0x48d   : > { %11852 = dma.done.wait (%p10777_p6), %s9987_s22, 64  }
 0x48e   : > { %11854 = vsyncadd (%p10777_p6), %s9987_s22, 4294967232  ;;  %s17_s20 = sadd.s32 1, %s11877_s20   ;;  %s14237_s15 = smov %s11861_s16 }
 0x48f   : > { %p14_p7 = scmp.ge.s32.totalorder %s17_s20, 4   ;;  %s14238_s16 = smov %s11865_s17 }
 0x490   : > { %s14239_s17 = smov %s11958_s28  ;;  %s14240_s18 = smov %s11873_s19 }
 0x491   : > { %s14241_s19 = smov %s14243_s23  ;;  %16 = sbr.rel (!%p14_p7) target bundleno = 4 (0x4), region = 186 }
 0x496   :  { %9992 = vsyncpa [#allocation5], 1 }
 0x497   :  { %9994 = vsyncpa [#allocation5 + $0x1], 1 }

</bundles_post_ra>
